<compile_context>
chip_gen: v7x
topology: tpu7x:2x2x1
jax: 0.10.0
libtpu: 0.0.40
codegen_flags: <defaults>
</compile_context>

<pallas_src>
import math

import numpy as np
import jax
import jax.numpy as jnp
from jax import lax
from jax.experimental import pallas as pl
from jax.experimental.pallas import tpu as pltpu


# ---------------------------------------------------------------------------
# Kernel 1: folded encoder (single affine map) + max-over-points pool -> g
# ---------------------------------------------------------------------------
def _encoder_pool_kernel(x_ref, w_ref, b_ref, g_ref):
    # The 5 activation-free encoder linears were folded offline into w_ref/b_ref.
    h = jnp.dot(x_ref[0], w_ref[...],
                preferred_element_type=jnp.float32) + b_ref[...]   # (tn, 512) f32
    tile_max = jnp.max(h, axis=0, keepdims=True)                   # (1, 512), XLU

    @pl.when(pl.program_id(1) == 0)
    def _():
        g_ref[0] = tile_max

    @pl.when(pl.program_id(1) != 0)
    def _():
        g_ref[0] = jnp.maximum(g_ref[0], tile_max)


def encoder_pool_pallas(pts_pad, w_enc, b_enc, tn):
    """pts_pad: (G, N_pad, C_pad) bf16 -> g: (G, 1, 512) f32 (max over points)."""
    G, N_pad, C_pad = pts_pad.shape
    n_tiles = N_pad // tn
    return pl.pallas_call(
        _encoder_pool_kernel,
        out_shape=jax.ShapeDtypeStruct((G, 1, 512), jnp.float32),
        grid=(G, n_tiles),
        in_specs=[pl.BlockSpec((1, tn, C_pad), lambda g, n: (g, n, 0)),
                  pl.BlockSpec((C_pad, 512), lambda g, n: (0, 0)),
                  pl.BlockSpec((1, 512), lambda g, n: (0, 0))],
        out_specs=pl.BlockSpec((1, 1, 512), lambda g, n: (g, 0, 0)),
        compiler_params=pltpu.CompilerParams(
            dimension_semantics=("parallel", "arbitrary")),
    )(pts_pad, w_enc, b_enc)


# ---------------------------------------------------------------------------
# Kernel 2: per-batch head — CAM gate + decoder_qt + per-batch ol-layer-1 term
# ---------------------------------------------------------------------------
def _head_kernel(g_ref, perm_ref,
                 wc1, bc1, wc2, bc2,
                 wq1a, wq1b, bq1, wq2, bq2, wq3, bq3, wq4, bq4,
                 wg_self, wg_other, b_ol1,
                 qt_ref, gterm_ref):
    def mm(a, w_r):
        return jnp.dot(a, w_r[...], preferred_element_type=jnp.float32)

    g = g_ref[...]                                  # (2B, 512) f32: [g_x rows ; g_y rows]

    # TODO(synk): CAM(512) class body is absent from the reference source;
    # implemented as an SE-style channel gate (512 -> 32 ReLU -> 512, sigmoid, x*gate).
    h = jnp.maximum(mm(g, wc1) + bc1[...], 0.0)
    s = mm(h, wc2) + bc2[...]
    g_gated = g * jax.nn.sigmoid(s)                 # CAM run ONCE on the stacked matrix

    # "other" rows (g_y for the x-half, g_x for the y-half) via an exact 0/1
    # permutation matmul (MXU), avoiding sublane slicing / XLU rolls.
    g_other = jnp.dot(perm_ref[...], g_gated, preferred_element_type=jnp.float32)

    # decoder_qt on concat([g_self, g_other], dim=1); the 1024-wide first weight
    # is split into halves.  Rows [:B] equal the PyTorch concat([g_x, g_y]) path;
    # the trailing B rows are discarded by the caller (MXU is underfilled anyway).
    hq = jnp.maximum(mm(g_gated, wq1a) + mm(g_other, wq1b) + bq1[...], 0.0)
    hq = jnp.maximum(mm(hq, wq2) + bq2[...], 0.0)
    hq = jnp.maximum(mm(hq, wq3) + bq3[...], 0.0)
    qt_ref[...] = mm(hq, wq4) + bq4[...]            # (2B, 7), last layer: no ReLU

    # Per-batch part of decoder_ol's first 2048->512 layer (bias b1 folded in):
    #   fx_ens = [f_x, g_x, g_y, g_x - g_y] -> g_x@(Wa+Wd) + g_y@(Wb-Wd) + b1
    #   fy_ens = [f_y, g_y, g_x, g_y - g_x] -> g_y@(Wa+Wd) + g_x@(Wb-Wd) + b1
    gterm_ref[...] = mm(g_gated, wg_self) + mm(g_other, wg_other) + b_ol1[...]


def head_pallas(g_stack, perm, cam_p, qt_p, ol_g_p):
    G2 = g_stack.shape[0]
    wc1, bc1, wc2, bc2 = cam_p
    wq1a, wq1b, bq1, wq2, bq2, wq3, bq3, wq4, bq4 = qt_p
    wg_self, wg_other, b_ol1 = ol_g_p
    return pl.pallas_call(
        _head_kernel,
        out_shape=(jax.ShapeDtypeStruct((G2, 7), jnp.float32),
                   jax.ShapeDtypeStruct((G2, 512), jnp.float32)),
    )(g_stack, perm, wc1, bc1, wc2, bc2,
      wq1a, wq1b, bq1, wq2, bq2, wq3, bq3, wq4, bq4,
      wg_self, wg_other, b_ol1)


# ---------------------------------------------------------------------------
# Kernel 3: fused decoder_ol; f recomputed from points; lane-dense (B, 2, N) out
# ---------------------------------------------------------------------------
_TRANS_B = (((1,), (1,)), ((), ()))   # A @ B.T dimension numbers


def _decoder_ol_kernel(pts_ref, gterm_ref, w_enc, b_enc,
                       w1f, w2, b2, w3, b3, w4t, b4, o_ref):
    x = pts_ref[0]                                                 # (tn, C_pad) bf16
    # Recompute per-point encoder features (folded affine) — cheaper than an HBM
    # round-trip of the (G, N, 512) f tensor.
    f = jnp.dot(x, w_enc[...], preferred_element_type=jnp.float32) + b_enc[...]
    h = jnp.dot(f.astype(jnp.bfloat16), w1f[...],
                preferred_element_type=jnp.float32) + gterm_ref[0]
    h = jnp.maximum(h, 0.0)
    h = jnp.dot(h.astype(jnp.bfloat16), w2[...],
                preferred_element_type=jnp.float32) + b2[...]
    h = jnp.maximum(h, 0.0)
    h = jnp.dot(h.astype(jnp.bfloat16), w3[...],
                preferred_element_type=jnp.float32) + b3[...]
    h = jnp.maximum(h, 0.0)                                        # (tn, 256)
    # Last layer computed transposed: (2, 256) . (tn, 256)^T -> (2, tn), so the
    # store is dense along the long point axis (no lane-width-2 masked store).
    s = lax.dot_general(w4t[...], h.astype(jnp.bfloat16),
                        dimension_numbers=_TRANS_B,
                        preferred_element_type=jnp.float32)        # (2, tn)
    o_ref[0] = s + b4[...]                                         # no ReLU on last layer


def decoder_ol_pallas(pts_pad, gterm3, w_enc, b_enc, ol_p, tn):
    """pts_pad: (G, N_pad, C_pad) bf16, gterm3: (G, 1, 512) f32 -> (G, 2, N_pad) f32."""
    G, N_pad, C_pad = pts_pad.shape
    n_tiles = N_pad // tn
    w1f, w2, b2, w3, b3, w4t, b4 = ol_p
    in_specs = [
        pl.BlockSpec((1, tn, C_pad), lambda g, n: (g, n, 0)),
        pl.BlockSpec((1, 1, 512), lambda g, n: (g, 0, 0)),
        pl.BlockSpec((C_pad, 512), lambda g, n: (0, 0)),
        pl.BlockSpec((1, 512), lambda g, n: (0, 0)),
        pl.BlockSpec((512, 512), lambda g, n: (0, 0)),
        pl.BlockSpec((512, 512), lambda g, n: (0, 0)),
        pl.BlockSpec((1, 512), lambda g, n: (0, 0)),
        pl.BlockSpec((512, 256), lambda g, n: (0, 0)),
        pl.BlockSpec((1, 256), lambda g, n: (0, 0)),
        pl.BlockSpec((2, 256), lambda g, n: (0, 0)),
        pl.BlockSpec((2, 1), lambda g, n: (0, 0)),
    ]
    return pl.pallas_call(
        _decoder_ol_kernel,
        out_shape=jax.ShapeDtypeStruct((G, 2, N_pad), jnp.float32),
        grid=(G, n_tiles),
        in_specs=in_specs,
        out_specs=pl.BlockSpec((1, 2, tn), lambda g, n: (g, 0, n)),
        compiler_params=pltpu.CompilerParams(
            dimension_semantics=("parallel", "parallel")),
    )(pts_pad, gterm3, w_enc, b_enc, w1f, w2, b2, w3, b3, w4t, b4)


# ---------------------------------------------------------------------------
# Parameters (deterministic, synthetic, PyTorch-like layout) + kernel prep
# ---------------------------------------------------------------------------
def init_linear(key, in_dim, out_dim):
    kw, kb = jax.random.split(key)
    limit = 1.0 / math.sqrt(in_dim)
    w = jax.random.uniform(kw, (in_dim, out_dim), jnp.float32, -limit, limit)
    b = jax.random.uniform(kb, (out_dim,), jnp.float32, -limit, limit)
    return w, b


def init_params(key, in_dim=3):
    keys = jax.random.split(key, 15)
    p = {}
    enc_dims = [in_dim, 64, 64, 64, 128, 512]            # encoder PointNet
    p["enc"] = [init_linear(keys[i], enc_dims[i], enc_dims[i + 1]) for i in range(5)]
    ol_dims = [2048, 512, 512, 256, 2]                   # decoder_ol (cls=True)
    p["ol"] = [init_linear(keys[5 + i], ol_dims[i], ol_dims[i + 1]) for i in range(4)]
    qt_dims = [1024, 512, 512, 256, 7]                   # decoder_qt MLPs
    p["qt"] = [init_linear(keys[9 + i], qt_dims[i], qt_dims[i + 1]) for i in range(4)]
    p["cam"] = [init_linear(keys[13], 512, 32), init_linear(keys[14], 32, 512)]
    return p


def prepare_params(p):
    """One-time conversion to the kernel-ready layout (folds, splits, transposes)."""
    bf = jnp.bfloat16
    f32 = jnp.float32
    kp = {}

    # Encoder: 5 activation-free linears (gn=False, cls=False) fold exactly into
    # ONE affine map; fold in f32, cast to bf16 once, pad K to a multiple of 8.
    w0, b0 = p["enc"][0]
    W = w0.astype(f32)
    bias = b0.astype(f32)
    for (wi, bi) in p["enc"][1:]:
        W = W @ wi
        bias = bias @ wi + bi
    C = W.shape[0]
    C_pad = max(8, ((C + 7) // 8) * 8)
    if C_pad != C:
        W = jnp.pad(W, ((0, C_pad - C), (0, 0)))
    kp["enc_w"] = W.astype(bf)                            # (C_pad, 512)
    kp["enc_b"] = bias.reshape(1, -1).astype(f32)         # (1, 512)

    # decoder_ol: split the 2048->512 weight along the [f, g_self, g_other,
    # g_self - g_other] concat order; combine the g-blocks algebraically.
    (w1, b1), (w2, b2), (w3, b3), (w4, b4) = p["ol"]
    w_f, w_a, w_b, w_d = w1[0:512], w1[512:1024], w1[1024:1536], w1[1536:2048]
    kp["ol_g"] = ((w_a + w_d).astype(f32),                # multiplies the "self" g
                  (w_b - w_d).astype(f32),                # multiplies the "other" g
                  b1.reshape(1, -1).astype(f32))
    kp["ol"] = (w_f.astype(bf),
                w2.astype(bf), b2.reshape(1, -1).astype(f32),
                w3.astype(bf), b3.reshape(1, -1).astype(f32),
                w4.T.astype(bf),                          # (2, 256) for the TRANS_B dot
                b4.reshape(-1, 1).astype(f32))            # (2, 1)

    # decoder_qt: split the 1024->512 weight into the g_x / g_y halves (f32 head).
    (q1, qb1), (q2, qb2), (q3, qb3), (q4, qb4) = p["qt"]
    kp["qt"] = (q1[:512].astype(f32), q1[512:].astype(f32),
                qb1.reshape(1, -1).astype(f32),
                q2.astype(f32), qb2.reshape(1, -1).astype(f32),
                q3.astype(f32), qb3.reshape(1, -1).astype(f32),
                q4.astype(f32), qb4.reshape(1, -1).astype(f32))

    (c1, cb1), (c2, cb2) = p["cam"]
    kp["cam"] = (c1.astype(f32), cb1.reshape(1, -1).astype(f32),
                 c2.astype(f32), cb2.reshape(1, -1).astype(f32))
    return kp


# ---------------------------------------------------------------------------
# Forward pass
# ---------------------------------------------------------------------------
def _choose_tiling(n_max):
    if n_max <= 512:
        n_pad = max(8, ((n_max + 7) // 8) * 8)
        tn = n_pad
    else:
        tn = 512                     # 512-pt tiles ~85% of HBM roofline; cap for v5e
        n_pad = ((n_max + tn - 1) // tn) * tn
    return n_pad, tn


def _pad_points_one(pts, n_pad, c_pad):
    """Edge-replicate along N (max-pool invariant), zero-pad channels, cast bf16."""
    G, N, C = pts.shape
    if n_pad != N:
        edge = jnp.broadcast_to(pts[:, N - 1:N, :], (G, n_pad - N, C))
        pts = jnp.concatenate([pts, edge], axis=1)
    if c_pad != C:
        pts = jnp.pad(pts, ((0, 0), (0, 0), (0, c_pad - C)))
    return pts.astype(jnp.bfloat16)


def batch_quat2mat(q):
    """q: (B, 4) unit quaternion (w, x, y, z) -> (B, 3, 3) rotation matrix."""
    w, x, y, z = q[:, 0], q[:, 1], q[:, 2], q[:, 3]
    ww, xx, yy, zz = w * w, x * x, y * y, z * z
    wx, wy, wz = w * x, w * y, w * z
    xy, xz, yz = x * y, x * z, y * z
    R = jnp.stack(
        [
            ww + xx - yy - zz, 2 * (xy - wz), 2 * (xz + wy),
            2 * (xy + wz), ww - xx + yy - zz, 2 * (yz - wx),
            2 * (xz - wy), 2 * (yz + wx), ww - xx - yy + zz,
        ],
        axis=-1,
    ).reshape(-1, 3, 3)
    return R


def cg_forward(kp, src, tgt):
    """src: (B, N, 3), tgt: (B, M, 3) -> T0 (B, 3, 4), OX (B, 2, N), OY (B, 2, M)."""
    B, N, _ = src.shape
    _, M, _ = tgt.shape
    C_pad = kp["enc_w"].shape[0]
    N_pad, tn = _choose_tiling(max(N, M))

    # Stack src/tgt along the batch axis so every per-point kernel runs once.
    pts_pad = jnp.concatenate([_pad_points_one(src, N_pad, C_pad),
                               _pad_points_one(tgt, N_pad, C_pad)], axis=0)  # (2B,N_pad,C_pad)

    g_all3 = encoder_pool_pallas(pts_pad, kp["enc_w"], kp["enc_b"], tn)      # (2B,1,512)
    g_stack = g_all3.reshape(2 * B, 512)                                     # free reshape

    # Block-swap permutation (constant, folded by XLA): row i -> row (i+B) mod 2B.
    perm = jnp.roll(jnp.eye(2 * B, dtype=jnp.float32), B, axis=1)

    qt_stacked, gterm_all = head_pallas(g_stack, perm, kp["cam"], kp["qt"], kp["ol_g"])
    qt_out = qt_stacked[:B]                                                  # (B, 7)

    # Tiny per-batch quaternion math stays in plain JAX (negligible cost).
    batch_t = qt_out[:, :3]
    q = qt_out[:, 3:]
    q = q / (jnp.linalg.norm(q, axis=1, keepdims=True) + 1e-8)
    batch_R = batch_quat2mat(q)
    batch_T = jnp.concatenate([batch_R, batch_t[..., None]], axis=-1)        # (B, 3, 4)

    gterm3 = gterm_all.reshape(2 * B, 1, 512)                                # free reshape
    ol_all = decoder_ol_pallas(pts_pad, gterm3, kp["enc_w"], kp["enc_b"],
                               kp["ol"], tn)                                 # (2B, 2, N_pad)

    x_ol = ol_all[:B, :, :N]                                                 # (B, 2, N)
    y_ol = ol_all[B:, :, :M]                                                 # (B, 2, M)
    return batch_T, x_ol, y_ol


# ---------------------------------------------------------------------------
# Pure-JAX f32 reference (mirrors the PyTorch module, same synthesized CAM)
# ---------------------------------------------------------------------------
def cg_forward_ref(p, src, tgt):
    def chain(params, x, relu_except_last):
        n = len(params)
        for i, (w, b) in enumerate(params):
            x = x @ w + b
            if relu_except_last and i != n - 1:
                x = jax.nn.relu(x)
        return x

    # Encoder: gn=False, cls=False -> no activations anywhere.
    f_x = chain(p["enc"], src, relu_except_last=False)         # (B, N, 512)
    f_y = chain(p["enc"], tgt, relu_except_last=False)
    g_x = f_x.max(axis=1)                                      # (B, 512)
    g_y = f_y.max(axis=1)

    def cam(g):
        (w1, b1), (w2, b2) = p["cam"]
        h = jax.nn.relu(g @ w1 + b1)
        return g * jax.nn.sigmoid(h @ w2 + b2)

    g_x, g_y = cam(g_x), cam(g_y)

    out = chain(p["qt"], jnp.concatenate([g_x, g_y], axis=1), relu_except_last=True)
    batch_t = out[:, :3]
    q = out[:, 3:]
    q = q / (jnp.linalg.norm(q, axis=1, keepdims=True) + 1e-8)
    batch_T = jnp.concatenate([batch_quat2mat(q), batch_t[..., None]], axis=-1)

    def dec_ol(f, g_self, g_other):
        ge_s = jnp.broadcast_to(g_self[:, None, :], f.shape)
        ge_o = jnp.broadcast_to(g_other[:, None, :], f.shape)
        ens = jnp.concatenate([f, ge_s, ge_o, ge_s - ge_o], axis=-1)    # (B, N, 2048)
        h = chain(p["ol"], ens, relu_except_last=True)                  # (B, N, 2)
        return jnp.transpose(h, (0, 2, 1))                              # (B, 2, N)

    x_ol = dec_ol(f_x, g_x, g_y)
    y_ol = dec_ol(f_y, g_y, g_x)
    return batch_T, x_ol, y_ol


# ---------------------------------------------------------------------------
if __name__ == "__main__":
    key = jax.random.PRNGKey(0)
    kparam_key, ks, kt = jax.random.split(key, 3)

    raw_params = init_params(kparam_key, in_dim=3)
    kparams = prepare_params(raw_params)

    B, N = 2, 16
    src = jax.random.normal(ks, (B, N, 3), jnp.float32)
    tgt = jax.random.normal(kt, (B, N, 3), jnp.float32)

    fwd = jax.jit(cg_forward)
    T0, x_ol, y_ol = fwd(kparams, src, tgt)
    jax.block_until_ready((T0, x_ol, y_ol))

    assert T0.shape == (B, 3, 4)
    assert x_ol.shape == (B, 2, N)
    assert y_ol.shape == (B, 2, N)
    assert bool(jnp.all(jnp.isfinite(T0)))
    assert bool(jnp.all(jnp.isfinite(x_ol)))
    assert bool(jnp.all(jnp.isfinite(y_ol)))

    # Structural/numerical check against the pure-JAX f32 reference (validates
    # the encoder fold and the algebraic split of decoder_ol's first layer).
    with jax.default_matmul_precision("highest"):
        T0_r, x_r, y_r = cg_forward_ref(raw_params, src, tgt)
    np.testing.assert_allclose(np.asarray(T0), np.asarray(T0_r), rtol=1e-1, atol=1e-1)
    np.testing.assert_allclose(np.asarray(x_ol), np.asarray(x_r), rtol=1e-1, atol=1e-1)
    np.testing.assert_allclose(np.asarray(y_ol), np.asarray(y_r), rtol=1e-1, atol=1e-1)

    print("KERNEL_OK")
</pallas_src>

<mosaic_0001>
module attributes {stable_mosaic.version = 11 : i64} {
  func.func @_encoder_pool_kernel(%arg0: i32, %arg1: i32, %arg2: memref<1x16x8xbf16, #tpu.memory_space<vmem>>, %arg3: memref<8x512xbf16, #tpu.memory_space<vmem>>, %arg4: memref<1x512xf32, #tpu.memory_space<vmem>>, %arg5: memref<1x1x512xf32, #tpu.memory_space<vmem>>) attributes {dimension_semantics = [#tpu.dimension_semantics<parallel>, #tpu.dimension_semantics<arbitrary>], iteration_bounds = array<i64: 4, 1>, scalar_prefetch = 0 : i64, scratch_operands = 0 : i64, tpu.core_type = #tpu.core_type<tc>, window_params = [{transform_indices = @transform_0, window_bounds = array<i64: 1, 16, 8>}, {pipeline_mode = #tpu.pipeline_mode<synchronous>, transform_indices = @transform_1, window_bounds = array<i64: 8, 512>}, {pipeline_mode = #tpu.pipeline_mode<synchronous>, transform_indices = @transform_2, window_bounds = array<i64: 1, 512>}, {transform_indices = @transform_3, window_bounds = array<i64: 1, 1, 512>}]} {
    %c0 = arith.constant 0 : index
    %c0_0 = arith.constant 0 : index
    %c0_1 = arith.constant 0 : index
    %0 = vector.load %arg2[%c0, %c0_0, %c0_1] : memref<1x16x8xbf16, #tpu.memory_space<vmem>>, vector<1x16x8xbf16>
    %1 = vector.shape_cast %0 : vector<1x16x8xbf16> to vector<16x8xbf16>
    %c0_2 = arith.constant 0 : index
    %c0_3 = arith.constant 0 : index
    %2 = vector.load %arg3[%c0_2, %c0_3] : memref<8x512xbf16, #tpu.memory_space<vmem>>, vector<8x512xbf16>
    %cst = arith.constant dense<0.000000e+00> : vector<16x512xf32>
    %3 = tpu.matmul %1, %2, %cst {dimension_numbers = #tpu.dot_dimension_numbers<[1], [0], [0], [1], [0, 0, 1, 1], [], []>} : vector<16x8xbf16>, vector<8x512xbf16>, vector<16x512xf32> -> vector<16x512xf32>
    %c0_4 = arith.constant 0 : index
    %c0_5 = arith.constant 0 : index
    %4 = vector.load %arg4[%c0_4, %c0_5] : memref<1x512xf32, #tpu.memory_space<vmem>>, vector<1x512xf32>
    %5 = vector.broadcast %4 : vector<1x512xf32> to vector<16x512xf32>
    %6 = arith.addf %3, %5 : vector<16x512xf32>
    %cst_6 = arith.constant dense<0xFF800000> : vector<512xf32>
    %7 = vector.multi_reduction <maximumf>, %6, %cst_6 [0] : vector<16x512xf32> to vector<512xf32>
    %8 = vector.shape_cast %7 : vector<512xf32> to vector<1x512xf32>
    %c0_i32 = arith.constant 0 : i32
    %9 = arith.cmpi eq, %arg1, %c0_i32 : i32
    %10 = arith.extui %9 : i1 to i32
    %c0_i32_7 = arith.constant 0 : i32
    %11 = arith.cmpi ne, %10, %c0_i32_7 : i32
    scf.if %11 {
      %c0_10 = arith.constant 0 : index
      %c0_11 = arith.constant 0 : index
      %c0_12 = arith.constant 0 : index
      %15 = vector.load %arg5[%c0_10, %c0_11, %c0_12] : memref<1x1x512xf32, #tpu.memory_space<vmem>>, vector<1x1x512xf32>
      %16 = vector.shape_cast %15 : vector<1x1x512xf32> to vector<1x512xf32>
      %17 = vector.shape_cast %8 : vector<1x512xf32> to vector<1x1x512xf32>
      tpu.vector_store %arg5[%c0_10, %c0_11, %c0_12], %17 {strides = array<i32>} : memref<1x1x512xf32, #tpu.memory_space<vmem>>, vector<1x1x512xf32>,
    } else {
    }
    %c0_i32_8 = arith.constant 0 : i32
    %12 = arith.cmpi ne, %arg1, %c0_i32_8 : i32
    %13 = arith.extui %12 : i1 to i32
    %c0_i32_9 = arith.constant 0 : i32
    %14 = arith.cmpi ne, %13, %c0_i32_9 : i32
    scf.if %14 {
      %c0_10 = arith.constant 0 : index
      %c0_11 = arith.constant 0 : index
      %c0_12 = arith.constant 0 : index
      %15 = vector.load %arg5[%c0_10, %c0_11, %c0_12] : memref<1x1x512xf32, #tpu.memory_space<vmem>>, vector<1x1x512xf32>
      %16 = vector.shape_cast %15 : vector<1x1x512xf32> to vector<1x512xf32>
      %17 = arith.maximumf %16, %8 : vector<1x512xf32>
      %c0_13 = arith.constant 0 : index
      %c0_14 = arith.constant 0 : index
      %c0_15 = arith.constant 0 : index
      %18 = vector.load %arg5[%c0_13, %c0_14, %c0_15] : memref<1x1x512xf32, #tpu.memory_space<vmem>>, vector<1x1x512xf32>
      %19 = vector.shape_cast %18 : vector<1x1x512xf32> to vector<1x512xf32>
      %20 = vector.shape_cast %17 : vector<1x512xf32> to vector<1x1x512xf32>
      tpu.vector_store %arg5[%c0_13, %c0_14, %c0_15], %20 {strides = array<i32>} : memref<1x1x512xf32, #tpu.memory_space<vmem>>, vector<1x1x512xf32>,
    } else {
    }
    return
  }
  func.func @transform_0(%arg0: i32, %arg1: i32) -> (i32, i32, i32) {
    %c0_i32 = arith.constant 0 : i32
    %c0_i32_0 = arith.constant 0 : i32
    return %arg0, %arg1, %c0_i32 : i32, i32, i32
  }
  func.func @transform_1(%arg0: i32, %arg1: i32) -> (i32, i32) {
    %c0_i32 = arith.constant 0 : i32
    %c0_i32_0 = arith.constant 0 : i32
    %c0_i32_1 = arith.constant 0 : i32
    return %c0_i32, %c0_i32_0 : i32, i32
  }
  func.func @transform_2(%arg0: i32, %arg1: i32) -> (i32, i32) {
    %c0_i32 = arith.constant 0 : i32
    %c0_i32_0 = arith.constant 0 : i32
    %c0_i32_1 = arith.constant 0 : i32
    return %c0_i32, %c0_i32_0 : i32, i32
  }
  func.func @transform_3(%arg0: i32, %arg1: i32) -> (i32, i32, i32) {
    %c0_i32 = arith.constant 0 : i32
    %c0_i32_0 = arith.constant 0 : i32
    %c0_i32_1 = arith.constant 0 : i32
    return %arg0, %c0_i32, %c0_i32_0 : i32, i32, i32
  }
}

module attributes {stable_mosaic.version = 11 : i64} {
  func.func @_head_kernel(%arg0: memref<4x512xf32, #tpu.memory_space<vmem>>, %arg1: memref<4x4xf32, #tpu.memory_space<vmem>>, %arg2: memref<512x32xf32, #tpu.memory_space<vmem>>, %arg3: memref<1x32xf32, #tpu.memory_space<vmem>>, %arg4: memref<32x512xf32, #tpu.memory_space<vmem>>, %arg5: memref<1x512xf32, #tpu.memory_space<vmem>>, %arg6: memref<512x512xf32, #tpu.memory_space<vmem>>, %arg7: memref<512x512xf32, #tpu.memory_space<vmem>>, %arg8: memref<1x512xf32, #tpu.memory_space<vmem>>, %arg9: memref<512x512xf32, #tpu.memory_space<vmem>>, %arg10: memref<1x512xf32, #tpu.memory_space<vmem>>, %arg11: memref<512x256xf32, #tpu.memory_space<vmem>>, %arg12: memref<1x256xf32, #tpu.memory_space<vmem>>, %arg13: memref<256x7xf32, #tpu.memory_space<vmem>>, %arg14: memref<1x7xf32, #tpu.memory_space<vmem>>, %arg15: memref<512x512xf32, #tpu.memory_space<vmem>>, %arg16: memref<512x512xf32, #tpu.memory_space<vmem>>, %arg17: memref<1x512xf32, #tpu.memory_space<vmem>>, %arg18: memref<4x7xf32, #tpu.memory_space<vmem>>, %arg19: memref<4x512xf32, #tpu.memory_space<vmem>>) attributes {dimension_semantics = [], scalar_prefetch = 0 : i64, scratch_operands = 0 : i64, tpu.core_type = #tpu.core_type<tc>} {
    %c0 = arith.constant 0 : index
    %c0_0 = arith.constant 0 : index
    %0 = vector.load %arg0[%c0, %c0_0] : memref<4x512xf32, #tpu.memory_space<vmem>>, vector<4x512xf32>
    %c0_1 = arith.constant 0 : index
    %c0_2 = arith.constant 0 : index
    %1 = vector.load %arg2[%c0_1, %c0_2] : memref<512x32xf32, #tpu.memory_space<vmem>>, vector<512x32xf32>
    %cst = arith.constant dense<0.000000e+00> : vector<4x32xf32>
    %2 = tpu.matmul %0, %1, %cst {dimension_numbers = #tpu.dot_dimension_numbers<[1], [0], [0], [1], [0, 0, 1, 1], [], []>} : vector<4x512xf32>, vector<512x32xf32>, vector<4x32xf32> -> vector<4x32xf32>
    %c0_3 = arith.constant 0 : index
    %c0_4 = arith.constant 0 : index
    %3 = vector.load %arg3[%c0_3, %c0_4] : memref<1x32xf32, #tpu.memory_space<vmem>>, vector<1x32xf32>
    %4 = vector.broadcast %3 : vector<1x32xf32> to vector<4x32xf32>
    %5 = arith.addf %2, %4 : vector<4x32xf32>
    %cst_5 = arith.constant 0.000000e+00 : f32
    %6 = vector.broadcast %cst_5 : f32 to vector<4x32xf32>
    %7 = arith.maximumf %5, %6 : vector<4x32xf32>
    %c0_6 = arith.constant 0 : index
    %c0_7 = arith.constant 0 : index
    %8 = vector.load %arg4[%c0_6, %c0_7] : memref<32x512xf32, #tpu.memory_space<vmem>>, vector<32x512xf32>
    %cst_8 = arith.constant dense<0.000000e+00> : vector<4x512xf32>
    %9 = tpu.matmul %7, %8, %cst_8 {dimension_numbers = #tpu.dot_dimension_numbers<[1], [0], [0], [1], [0, 0, 1, 1], [], []>} : vector<4x32xf32>, vector<32x512xf32>, vector<4x512xf32> -> vector<4x512xf32>
    %c0_9 = arith.constant 0 : index
    %c0_10 = arith.constant 0 : index
    %10 = vector.load %arg5[%c0_9, %c0_10] : memref<1x512xf32, #tpu.memory_space<vmem>>, vector<1x512xf32>
    %11 = vector.broadcast %10 : vector<1x512xf32> to vector<4x512xf32>
    %12 = arith.addf %9, %11 : vector<4x512xf32>
    %13 = arith.negf %12 : vector<4x512xf32>
    %14 = math.exp %13 : vector<4x512xf32>
    %cst_11 = arith.constant 1.000000e+00 : f32
    %15 = vector.broadcast %cst_11 : f32 to vector<4x512xf32>
    %16 = arith.addf %15, %14 : vector<4x512xf32>
    %17 = arith.divf %15, %16 : vector<4x512xf32>
    %18 = arith.mulf %0, %17 : vector<4x512xf32>
    %c0_12 = arith.constant 0 : index
    %c0_13 = arith.constant 0 : index
    %19 = vector.load %arg1[%c0_12, %c0_13] : memref<4x4xf32, #tpu.memory_space<vmem>>, vector<4x4xf32>
    %cst_14 = arith.constant dense<0.000000e+00> : vector<4x512xf32>
    %20 = tpu.matmul %19, %18, %cst_14 {dimension_numbers = #tpu.dot_dimension_numbers<[1], [0], [0], [1], [0, 0, 1, 1], [], []>} : vector<4x4xf32>, vector<4x512xf32>, vector<4x512xf32> -> vector<4x512xf32>
    %c0_15 = arith.constant 0 : index
    %c0_16 = arith.constant 0 : index
    %21 = vector.load %arg6[%c0_15, %c0_16] : memref<512x512xf32, #tpu.memory_space<vmem>>, vector<512x512xf32>
    %cst_17 = arith.constant dense<0.000000e+00> : vector<4x512xf32>
    %22 = tpu.matmul %18, %21, %cst_17 {dimension_numbers = #tpu.dot_dimension_numbers<[1], [0], [0], [1], [0, 0, 1, 1], [], []>} : vector<4x512xf32>, vector<512x512xf32>, vector<4x512xf32> -> vector<4x512xf32>
    %c0_18 = arith.constant 0 : index
    %c0_19 = arith.constant 0 : index
    %23 = vector.load %arg7[%c0_18, %c0_19] : memref<512x512xf32, #tpu.memory_space<vmem>>, vector<512x512xf32>
    %cst_20 = arith.constant dense<0.000000e+00> : vector<4x512xf32>
    %24 = tpu.matmul %20, %23, %cst_20 {dimension_numbers = #tpu.dot_dimension_numbers<[1], [0], [0], [1], [0, 0, 1, 1], [], []>} : vector<4x512xf32>, vector<512x512xf32>, vector<4x512xf32> -> vector<4x512xf32>
    %25 = arith.addf %22, %24 : vector<4x512xf32>
    %c0_21 = arith.constant 0 : index
    %c0_22 = arith.constant 0 : index
    %26 = vector.load %arg8[%c0_21, %c0_22] : memref<1x512xf32, #tpu.memory_space<vmem>>, vector<1x512xf32>
    %27 = vector.broadcast %26 : vector<1x512xf32> to vector<4x512xf32>
    %28 = arith.addf %25, %27 : vector<4x512xf32>
    %cst_23 = arith.constant 0.000000e+00 : f32
    %29 = vector.broadcast %cst_23 : f32 to vector<4x512xf32>
    %30 = arith.maximumf %28, %29 : vector<4x512xf32>
    %c0_24 = arith.constant 0 : index
    %c0_25 = arith.constant 0 : index
    %31 = vector.load %arg9[%c0_24, %c0_25] : memref<512x512xf32, #tpu.memory_space<vmem>>, vector<512x512xf32>
    %cst_26 = arith.constant dense<0.000000e+00> : vector<4x512xf32>
    %32 = tpu.matmul %30, %31, %cst_26 {dimension_numbers = #tpu.dot_dimension_numbers<[1], [0], [0], [1], [0, 0, 1, 1], [], []>} : vector<4x512xf32>, vector<512x512xf32>, vector<4x512xf32> -> vector<4x512xf32>
    %c0_27 = arith.constant 0 : index
    %c0_28 = arith.constant 0 : index
    %33 = vector.load %arg10[%c0_27, %c0_28] : memref<1x512xf32, #tpu.memory_space<vmem>>, vector<1x512xf32>
    %34 = vector.broadcast %33 : vector<1x512xf32> to vector<4x512xf32>
    %35 = arith.addf %32, %34 : vector<4x512xf32>
    %cst_29 = arith.constant 0.000000e+00 : f32
    %36 = vector.broadcast %cst_29 : f32 to vector<4x512xf32>
    %37 = arith.maximumf %35, %36 : vector<4x512xf32>
    %c0_30 = arith.constant 0 : index
    %c0_31 = arith.constant 0 : index
    %38 = vector.load %arg11[%c0_30, %c0_31] : memref<512x256xf32, #tpu.memory_space<vmem>>, vector<512x256xf32>
    %cst_32 = arith.constant dense<0.000000e+00> : vector<4x256xf32>
    %39 = tpu.matmul %37, %38, %cst_32 {dimension_numbers = #tpu.dot_dimension_numbers<[1], [0], [0], [1], [0, 0, 1, 1], [], []>} : vector<4x512xf32>, vector<512x256xf32>, vector<4x256xf32> -> vector<4x256xf32>
    %c0_33 = arith.constant 0 : index
    %c0_34 = arith.constant 0 : index
    %40 = vector.load %arg12[%c0_33, %c0_34] : memref<1x256xf32, #tpu.memory_space<vmem>>, vector<1x256xf32>
    %41 = vector.broadcast %40 : vector<1x256xf32> to vector<4x256xf32>
    %42 = arith.addf %39, %41 : vector<4x256xf32>
    %cst_35 = arith.constant 0.000000e+00 : f32
    %43 = vector.broadcast %cst_35 : f32 to vector<4x256xf32>
    %44 = arith.maximumf %42, %43 : vector<4x256xf32>
    %c0_36 = arith.constant 0 : index
    %c0_37 = arith.constant 0 : index
    %45 = vector.load %arg13[%c0_36, %c0_37] : memref<256x7xf32, #tpu.memory_space<vmem>>, vector<256x7xf32>
    %cst_38 = arith.constant dense<0.000000e+00> : vector<4x7xf32>
    %46 = tpu.matmul %44, %45, %cst_38 {dimension_numbers = #tpu.dot_dimension_numbers<[1], [0], [0], [1], [0, 0, 1, 1], [], []>} : vector<4x256xf32>, vector<256x7xf32>, vector<4x7xf32> -> vector<4x7xf32>
    %c0_39 = arith.constant 0 : index
    %c0_40 = arith.constant 0 : index
    %47 = vector.load %arg14[%c0_39, %c0_40] : memref<1x7xf32, #tpu.memory_space<vmem>>, vector<1x7xf32>
    %48 = vector.broadcast %47 : vector<1x7xf32> to vector<4x7xf32>
    %49 = arith.addf %46, %48 : vector<4x7xf32>
    %c0_41 = arith.constant 0 : index
    %c0_42 = arith.constant 0 : index
    %50 = vector.load %arg18[%c0_41, %c0_42] : memref<4x7xf32, #tpu.memory_space<vmem>>, vector<4x7xf32>
    tpu.vector_store %arg18[%c0_41, %c0_42], %49 {strides = array<i32>} : memref<4x7xf32, #tpu.memory_space<vmem>>, vector<4x7xf32>,
    %c0_43 = arith.constant 0 : index
    %c0_44 = arith.constant 0 : index
    %51 = vector.load %arg15[%c0_43, %c0_44] : memref<512x512xf32, #tpu.memory_space<vmem>>, vector<512x512xf32>
    %cst_45 = arith.constant dense<0.000000e+00> : vector<4x512xf32>
    %52 = tpu.matmul %18, %51, %cst_45 {dimension_numbers = #tpu.dot_dimension_numbers<[1], [0], [0], [1], [0, 0, 1, 1], [], []>} : vector<4x512xf32>, vector<512x512xf32>, vector<4x512xf32> -> vector<4x512xf32>
    %c0_46 = arith.constant 0 : index
    %c0_47 = arith.constant 0 : index
    %53 = vector.load %arg16[%c0_46, %c0_47] : memref<512x512xf32, #tpu.memory_space<vmem>>, vector<512x512xf32>
    %cst_48 = arith.constant dense<0.000000e+00> : vector<4x512xf32>
    %54 = tpu.matmul %20, %53, %cst_48 {dimension_numbers = #tpu.dot_dimension_numbers<[1], [0], [0], [1], [0, 0, 1, 1], [], []>} : vector<4x512xf32>, vector<512x512xf32>, vector<4x512xf32> -> vector<4x512xf32>
    %55 = arith.addf %52, %54 : vector<4x512xf32>
    %c0_49 = arith.constant 0 : index
    %c0_50 = arith.constant 0 : index
    %56 = vector.load %arg17[%c0_49, %c0_50] : memref<1x512xf32, #tpu.memory_space<vmem>>, vector<1x512xf32>
    %57 = vector.broadcast %56 : vector<1x512xf32> to vector<4x512xf32>
    %58 = arith.addf %55, %57 : vector<4x512xf32>
    %c0_51 = arith.constant 0 : index
    %c0_52 = arith.constant 0 : index
    %59 = vector.load %arg19[%c0_51, %c0_52] : memref<4x512xf32, #tpu.memory_space<vmem>>, vector<4x512xf32>
    tpu.vector_store %arg19[%c0_51, %c0_52], %58 {strides = array<i32>} : memref<4x512xf32, #tpu.memory_space<vmem>>, vector<4x512xf32>,
    return
  }
}

module attributes {stable_mosaic.version = 11 : i64} {
  func.func @_decoder_ol_kernel(%arg0: i32, %arg1: i32, %arg2: memref<1x16x8xbf16, #tpu.memory_space<vmem>>, %arg3: memref<1x1x512xf32, #tpu.memory_space<vmem>>, %arg4: memref<8x512xbf16, #tpu.memory_space<vmem>>, %arg5: memref<1x512xf32, #tpu.memory_space<vmem>>, %arg6: memref<512x512xbf16, #tpu.memory_space<vmem>>, %arg7: memref<512x512xbf16, #tpu.memory_space<vmem>>, %arg8: memref<1x512xf32, #tpu.memory_space<vmem>>, %arg9: memref<512x256xbf16, #tpu.memory_space<vmem>>, %arg10: memref<1x256xf32, #tpu.memory_space<vmem>>, %arg11: memref<2x256xbf16, #tpu.memory_space<vmem>>, %arg12: memref<2x1xf32, #tpu.memory_space<vmem>>, %arg13: memref<1x2x16xf32, #tpu.memory_space<vmem>>) attributes {dimension_semantics = [#tpu.dimension_semantics<parallel>, #tpu.dimension_semantics<parallel>], iteration_bounds = array<i64: 4, 1>, scalar_prefetch = 0 : i64, scratch_operands = 0 : i64, tpu.core_type = #tpu.core_type<tc>, window_params = [{transform_indices = @transform_0, window_bounds = array<i64: 1, 16, 8>}, {transform_indices = @transform_1, window_bounds = array<i64: 1, 1, 512>}, {pipeline_mode = #tpu.pipeline_mode<synchronous>, transform_indices = @transform_2, window_bounds = array<i64: 8, 512>}, {pipeline_mode = #tpu.pipeline_mode<synchronous>, transform_indices = @transform_3, window_bounds = array<i64: 1, 512>}, {pipeline_mode = #tpu.pipeline_mode<synchronous>, transform_indices = @transform_4, window_bounds = array<i64: 512, 512>}, {pipeline_mode = #tpu.pipeline_mode<synchronous>, transform_indices = @transform_5, window_bounds = array<i64: 512, 512>}, {pipeline_mode = #tpu.pipeline_mode<synchronous>, transform_indices = @transform_6, window_bounds = array<i64: 1, 512>}, {pipeline_mode = #tpu.pipeline_mode<synchronous>, transform_indices = @transform_7, window_bounds = array<i64: 512, 256>}, {pipeline_mode = #tpu.pipeline_mode<synchronous>, transform_indices = @transform_8, window_bounds = array<i64: 1, 256>}, {pipeline_mode = #tpu.pipeline_mode<synchronous>, transform_indices = @transform_9, window_bounds = array<i64: 2, 256>}, {pipeline_mode = #tpu.pipeline_mode<synchronous>, transform_indices = @transform_10, window_bounds = array<i64: 2, 1>}, {transform_indices = @transform_11, window_bounds = array<i64: 1, 2, 16>}]} {
    %c0 = arith.constant 0 : index
    %c0_0 = arith.constant 0 : index
    %c0_1 = arith.constant 0 : index
    %0 = vector.load %arg2[%c0, %c0_0, %c0_1] : memref<1x16x8xbf16, #tpu.memory_space<vmem>>, vector<1x16x8xbf16>
    %1 = vector.shape_cast %0 : vector<1x16x8xbf16> to vector<16x8xbf16>
    %c0_2 = arith.constant 0 : index
    %c0_3 = arith.constant 0 : index
    %2 = vector.load %arg4[%c0_2, %c0_3] : memref<8x512xbf16, #tpu.memory_space<vmem>>, vector<8x512xbf16>
    %cst = arith.constant dense<0.000000e+00> : vector<16x512xf32>
    %3 = tpu.matmul %1, %2, %cst {dimension_numbers = #tpu.dot_dimension_numbers<[1], [0], [0], [1], [0, 0, 1, 1], [], []>} : vector<16x8xbf16>, vector<8x512xbf16>, vector<16x512xf32> -> vector<16x512xf32>
    %c0_4 = arith.constant 0 : index
    %c0_5 = arith.constant 0 : index
    %4 = vector.load %arg5[%c0_4, %c0_5] : memref<1x512xf32, #tpu.memory_space<vmem>>, vector<1x512xf32>
    %5 = vector.broadcast %4 : vector<1x512xf32> to vector<16x512xf32>
    %6 = arith.addf %3, %5 : vector<16x512xf32>
    %7 = arith.truncf %6 : vector<16x512xf32> to vector<16x512xbf16>
    %c0_6 = arith.constant 0 : index
    %c0_7 = arith.constant 0 : index
    %8 = vector.load %arg6[%c0_6, %c0_7] : memref<512x512xbf16, #tpu.memory_space<vmem>>, vector<512x512xbf16>
    %cst_8 = arith.constant dense<0.000000e+00> : vector<16x512xf32>
    %9 = tpu.matmul %7, %8, %cst_8 {dimension_numbers = #tpu.dot_dimension_numbers<[1], [0], [0], [1], [0, 0, 1, 1], [], []>} : vector<16x512xbf16>, vector<512x512xbf16>, vector<16x512xf32> -> vector<16x512xf32>
    %c0_9 = arith.constant 0 : index
    %c0_10 = arith.constant 0 : index
    %c0_11 = arith.constant 0 : index
    %10 = vector.load %arg3[%c0_9, %c0_10, %c0_11] : memref<1x1x512xf32, #tpu.memory_space<vmem>>, vector<1x1x512xf32>
    %11 = vector.shape_cast %10 : vector<1x1x512xf32> to vector<1x512xf32>
    %12 = vector.broadcast %11 : vector<1x512xf32> to vector<16x512xf32>
    %13 = arith.addf %9, %12 : vector<16x512xf32>
    %cst_12 = arith.constant 0.000000e+00 : f32
    %14 = vector.broadcast %cst_12 : f32 to vector<16x512xf32>
    %15 = arith.maximumf %13, %14 : vector<16x512xf32>
    %16 = arith.truncf %15 : vector<16x512xf32> to vector<16x512xbf16>
    %c0_13 = arith.constant 0 : index
    %c0_14 = arith.constant 0 : index
    %17 = vector.load %arg7[%c0_13, %c0_14] : memref<512x512xbf16, #tpu.memory_space<vmem>>, vector<512x512xbf16>
    %cst_15 = arith.constant dense<0.000000e+00> : vector<16x512xf32>
    %18 = tpu.matmul %16, %17, %cst_15 {dimension_numbers = #tpu.dot_dimension_numbers<[1], [0], [0], [1], [0, 0, 1, 1], [], []>} : vector<16x512xbf16>, vector<512x512xbf16>, vector<16x512xf32> -> vector<16x512xf32>
    %c0_16 = arith.constant 0 : index
    %c0_17 = arith.constant 0 : index
    %19 = vector.load %arg8[%c0_16, %c0_17] : memref<1x512xf32, #tpu.memory_space<vmem>>, vector<1x512xf32>
    %20 = vector.broadcast %19 : vector<1x512xf32> to vector<16x512xf32>
    %21 = arith.addf %18, %20 : vector<16x512xf32>
    %cst_18 = arith.constant 0.000000e+00 : f32
    %22 = vector.broadcast %cst_18 : f32 to vector<16x512xf32>
    %23 = arith.maximumf %21, %22 : vector<16x512xf32>
    %24 = arith.truncf %23 : vector<16x512xf32> to vector<16x512xbf16>
    %c0_19 = arith.constant 0 : index
    %c0_20 = arith.constant 0 : index
    %25 = vector.load %arg9[%c0_19, %c0_20] : memref<512x256xbf16, #tpu.memory_space<vmem>>, vector<512x256xbf16>
    %cst_21 = arith.constant dense<0.000000e+00> : vector<16x256xf32>
    %26 = tpu.matmul %24, %25, %cst_21 {dimension_numbers = #tpu.dot_dimension_numbers<[1], [0], [0], [1], [0, 0, 1, 1], [], []>} : vector<16x512xbf16>, vector<512x256xbf16>, vector<16x256xf32> -> vector<16x256xf32>
    %c0_22 = arith.constant 0 : index
    %c0_23 = arith.constant 0 : index
    %27 = vector.load %arg10[%c0_22, %c0_23] : memref<1x256xf32, #tpu.memory_space<vmem>>, vector<1x256xf32>
    %28 = vector.broadcast %27 : vector<1x256xf32> to vector<16x256xf32>
    %29 = arith.addf %26, %28 : vector<16x256xf32>
    %cst_24 = arith.constant 0.000000e+00 : f32
    %30 = vector.broadcast %cst_24 : f32 to vector<16x256xf32>
    %31 = arith.maximumf %29, %30 : vector<16x256xf32>
    %c0_25 = arith.constant 0 : index
    %c0_26 = arith.constant 0 : index
    %32 = vector.load %arg11[%c0_25, %c0_26] : memref<2x256xbf16, #tpu.memory_space<vmem>>, vector<2x256xbf16>
    %33 = arith.truncf %31 : vector<16x256xf32> to vector<16x256xbf16>
    %cst_27 = arith.constant dense<0.000000e+00> : vector<2x16xf32>
    %34 = tpu.matmul %32, %33, %cst_27 {dimension_numbers = #tpu.dot_dimension_numbers<[1], [1], [0], [0], [0, 0, 1, 0], [], []>} : vector<2x256xbf16>, vector<16x256xbf16>, vector<2x16xf32> -> vector<2x16xf32>
    %c0_28 = arith.constant 0 : index
    %c0_29 = arith.constant 0 : index
    %35 = vector.load %arg12[%c0_28, %c0_29] : memref<2x1xf32, #tpu.memory_space<vmem>>, vector<2x1xf32>
    %36 = vector.broadcast %35 : vector<2x1xf32> to vector<2x16xf32>
    %37 = arith.addf %34, %36 : vector<2x16xf32>
    %c0_30 = arith.constant 0 : index
    %c0_31 = arith.constant 0 : index
    %c0_32 = arith.constant 0 : index
    %38 = vector.load %arg13[%c0_30, %c0_31, %c0_32] : memref<1x2x16xf32, #tpu.memory_space<vmem>>, vector<1x2x16xf32>
    %39 = vector.shape_cast %38 : vector<1x2x16xf32> to vector<2x16xf32>
    %40 = vector.shape_cast %37 : vector<2x16xf32> to vector<1x2x16xf32>
    tpu.vector_store %arg13[%c0_30, %c0_31, %c0_32], %40 {strides = array<i32>} : memref<1x2x16xf32, #tpu.memory_space<vmem>>, vector<1x2x16xf32>,
    return
  }
  func.func @transform_0(%arg0: i32, %arg1: i32) -> (i32, i32, i32) {
    %c0_i32 = arith.constant 0 : i32
    %c0_i32_0 = arith.constant 0 : i32
    return %arg0, %arg1, %c0_i32 : i32, i32, i32
  }
  func.func @transform_1(%arg0: i32, %arg1: i32) -> (i32, i32, i32) {
    %c0_i32 = arith.constant 0 : i32
    %c0_i32_0 = arith.constant 0 : i32
    %c0_i32_1 = arith.constant 0 : i32
    return %arg0, %c0_i32, %c0_i32_0 : i32, i32, i32
  }
  func.func @transform_2(%arg0: i32, %arg1: i32) -> (i32, i32) {
    %c0_i32 = arith.constant 0 : i32
    %c0_i32_0 = arith.constant 0 : i32
    %c0_i32_1 = arith.constant 0 : i32
    return %c0_i32, %c0_i32_0 : i32, i32
  }
  func.func @transform_3(%arg0: i32, %arg1: i32) -> (i32, i32) {
    %c0_i32 = arith.constant 0 : i32
    %c0_i32_0 = arith.constant 0 : i32
    %c0_i32_1 = arith.constant 0 : i32
    return %c0_i32, %c0_i32_0 : i32, i32
  }
  func.func @transform_4(%arg0: i32, %arg1: i32) -> (i32, i32) {
    %c0_i32 = arith.constant 0 : i32
    %c0_i32_0 = arith.constant 0 : i32
    %c0_i32_1 = arith.constant 0 : i32
    return %c0_i32, %c0_i32_0 : i32, i32
  }
  func.func @transform_5(%arg0: i32, %arg1: i32) -> (i32, i32) {
    %c0_i32 = arith.constant 0 : i32
    %c0_i32_0 = arith.constant 0 : i32
    %c0_i32_1 = arith.constant 0 : i32
    return %c0_i32, %c0_i32_0 : i32, i32
  }
  func.func @transform_6(%arg0: i32, %arg1: i32) -> (i32, i32) {
    %c0_i32 = arith.constant 0 : i32
    %c0_i32_0 = arith.constant 0 : i32
    %c0_i32_1 = arith.constant 0 : i32
    return %c0_i32, %c0_i32_0 : i32, i32
  }
  func.func @transform_7(%arg0: i32, %arg1: i32) -> (i32, i32) {
    %c0_i32 = arith.constant 0 : i32
    %c0_i32_0 = arith.constant 0 : i32
    %c0_i32_1 = arith.constant 0 : i32
    return %c0_i32, %c0_i32_0 : i32, i32
  }
  func.func @transform_8(%arg0: i32, %arg1: i32) -> (i32, i32) {
    %c0_i32 = arith.constant 0 : i32
    %c0_i32_0 = arith.constant 0 : i32
    %c0_i32_1 = arith.constant 0 : i32
    return %c0_i32, %c0_i32_0 : i32, i32
  }
  func.func @transform_9(%arg0: i32, %arg1: i32) -> (i32, i32) {
    %c0_i32 = arith.constant 0 : i32
    %c0_i32_0 = arith.constant 0 : i32
    %c0_i32_1 = arith.constant 0 : i32
    return %c0_i32, %c0_i32_0 : i32, i32
  }
  func.func @transform_10(%arg0: i32, %arg1: i32) -> (i32, i32) {
    %c0_i32 = arith.constant 0 : i32
    %c0_i32_0 = arith.constant 0 : i32
    %c0_i32_1 = arith.constant 0 : i32
    return %c0_i32, %c0_i32_0 : i32, i32
  }
  func.func @transform_11(%arg0: i32, %arg1: i32) -> (i32, i32, i32) {
    %c0_i32 = arith.constant 0 : i32
    %c0_i32_0 = arith.constant 0 : i32
    return %arg0, %c0_i32, %arg1 : i32, i32, i32
  }
}

</mosaic_0001>

<bundles_post_ra>
// kernel: cg_forward.3
= control target key start
LH: loop header
LB: loop body
LE: loop exit
PB: predicated region body
PF: predicated region fallthrough
CT: control target
= control target key end

     0   :  { %s612_s12 = smov 0   ;;  %s614_s13 = smov 0   ;;  %s660_s0 = inlined_call_operand.vmem [shape: bf16[4,16,8], index: 0, kind: input, shape index: {}]   ;;  %s661_s1 = inlined_call_operand.vmem [shape: bf16[8,512], index: 1, kind: input, shape index: {}]   ;;  %s662_s2 = inlined_call_operand.vmem [shape: f32[1,512], index: 2, kind: input, shape index: {}]   ;;  %s663_s3 = inlined_call_operand.vmem [shape: f32[4,1,512], index: 3, kind: output, shape index: {}]  }
   0x1   :  { %s616_s14 = smov 0  }
   0x2 LB: > { %s25_s15 = sadd.s32 1, %s584_s13  ;;  %p519_p0 = scmp.ge.s32.totalorder %s588_s14, 1  ;;  %s588_s14 = sphi %s616_s14, %s13_s14   ;;  %s584_s13 = sphi %s614_s13, %s665_s13   ;;  %s580_s12 = sphi %s612_s12, %s664_s12  }
   0x3   : > { %p27_p1 = scmp.ge.s32.totalorder %s25_s15, 4  ;;  %p156_p2 = scmp.lt.s32.totalorder %s588_s14, 5 }
   0x5   : > { %s667_s15 = smov (%p27_p1, %s25_s15), 0  ;;  %p157_p3 = pnand %p519_p0, %p156_p2 }
   0x6   : > { %v200_v0 = vld [vmem:[%s661_s1] sm:$0xff] (!%p157_p3)  ;;  %vm243_vm0 = vcmask (!%p157_p3), 1043456   ;;  %v201_v1 = vld [vmem:[%s661_s1 + $0x8] sm:$0xff] (!%p157_p3)  ;;  %p184_p4 = scmp.lt.s32.totalorder (!%p157_p3), %s580_s12, 3  ;;  %v590_v6 = vmov (!%p157_p3), 0   ;;  %vm239_vm1 = vcmask (!%p157_p3), 64512   ;;  %v204_v10 = vlaneseq (!%p157_p3) }
   0x7   : > { %160 = sbr.rel (%p157_p3) target bundleno = 258 (0x102), region = 32  ;;  %v525_v2 = vcombine.high (!%p157_p3), %v200_v0, %v200_v0  ;;  %v527_v3 = vcombine.high (!%p157_p3), %v201_v1, %v201_v1  ;;  %v524_v4 = vcombine.low (!%p157_p3), %v200_v0, %v200_v0  ;;  %v526_v5 = vcombine.low (!%p157_p3), %v201_v1, %v201_v1  ;;  %288 = vmatprep.mubr.bf16.mxu0 (!%p157_p3), %v590_v6  ;;  %v202_v14 = vld [vmem:[%s662_s2] sm:$0xf] (!%p157_p3) }
   0x8   : > { %331 = vmatprep.mubr.bf16.mxu1 (!%p157_p3), %v590_v6  ;;  %v205_v11 = vshrl.u32 (!%p157_p3), %v204_v10, 7  ;;  %v591_v48 = vmov (!%p157_p3), 1966171168   ;;  %vm405_vm2 = vcmp.lt.s32.totalorder (!%p157_p3), %v204_v10, 512 }
   0x9   : > { %528 = vmatprep.subr.msk.bf16.mxu0 (!%p157_p3), %vm243_vm0, %v525_v2  ;;  %530 = vmatprep.subr.msk.bf16.mxu1 (!%p157_p3), %vm243_vm0, %v527_v3  ;;  %v245_v7 = vsel (!%p157_p3), %vm243_vm0, %v524_v4, 0  ;;  %v251_v8 = vsel (!%p157_p3), %vm243_vm0, %v526_v5, 0  ;;  %v381_v49 = vunpack.c.l.s4 (!%p157_p3), %v591_v48 }
   0xa   : > { %257 = vmatpush1.bf16.msra.mxu0 (!%p157_p3), %v245_v7  ;;  %300 = vmatpush1.bf16.msra.mxu1 (!%p157_p3), %v251_v8  ;;  %v206_v12 = vsub.s32 (!%p157_p3), 0, %v205_v11  ;;  %v214_v13 = vsub.s32 (!%p157_p3), 2, %v205_v11  ;;  %v210_v15 = vsub.s32 (!%p157_p3), 1, %v205_v11  ;;  %v218_v16 = vsub.s32 (!%p157_p3), 3, %v205_v11 }
   0xb   : > { %v382_v58 = vunpack.c.0.s8 (!%p157_p3), %v381_v49 }
   0xc   : > { %v207_v17 = vrot.slane (!%p157_p3), %v202_v14, %v206_v12  ;;  %v215_v18 = vrot.slane (!%p157_p3), %v202_v14, %v214_v13  ;;  %v211_v21 = vrot.slane (!%p157_p3), %v202_v14, %v210_v15  ;;  %v219_v22 = vrot.slane (!%p157_p3), %v202_v14, %v218_v16 }
   0xd   : > { %v385_v3 = vsub.s32 (!%p157_p3), %v382_v58, %v205_v11 }
   0xe   : > { %s669_s12 = smov (!%p184_p4, %s580_s12), 3 }
   0xf   : > { %s534_s20 = sshll.u32 %s669_s12, 3  ;;  %s522_s26 = sshll.u32 %s669_s12, 2 }
  0x10   : > { %s191_s23 = scalar_lea.vmem %s660_s0, %s534_s20  ;;  %s196_s29 = scalar_lea.vmem %s663_s3, %s522_s26 }
  0x11   : > { %v565_v9 = vld [vmem:[%s191_s23] sm:$0xff]  }
  0x12   : > { %529 = vmatmul.mubr.msk.bf16.vlgmr.msra.gmra.mrb[0].mxu0 %vm239_vm1, %v565_v9  ;;  %531 = vmatmul.mubr.msk.bf16.vlgmr.msra.gmra.mrb[0].mxu1 %vm239_vm1, %v565_v9 }
  0xe5   : > { %v290_v19 = vpop.f32.mrb[0].mxu0  ;;  %v333_v20 = vpop.f32.mrb[0].mxu1 }
  0xe6   : > { %v292_v23 = vpop.f32.mrb[1].mxu0  ;;  %v335_v24 = vpop.f32.mrb[1].mxu1  ;;  %v291_v27 = vadd.f32 %v290_v19, %v207_v17  ;;  %v334_v28 = vadd.f32 %v333_v20, %v215_v18 }
  0xe7   : > { %v294_v25 = vpop.f32.mrb[2].mxu0  ;;  %v337_v26 = vpop.f32.mrb[2].mxu1  ;;  %v293_v33 = vadd.f32 %v292_v23, %v211_v21  ;;  %v336_v34 = vadd.f32 %v335_v24, %v219_v22 }
  0xe8   : > { %v295_v29 = vadd.f32 %v294_v25, %v207_v17  ;;  %v338_v30 = vadd.f32 %v337_v26, %v215_v18  ;;  %v296_v31 = vpop.f32.mrb[3].mxu0  ;;  %v339_v32 = vpop.f32.mrb[3].mxu1 }
  0xe9   : > { %v297_v35 = vadd.f32 %v296_v31, %v211_v21  ;;  %v340_v36 = vadd.f32 %v339_v32, %v219_v22 }
  0xea   : > { %v342_v37 = vmax.f32 %v291_v27, %v295_v29  ;;  %v356_v38 = vmax.f32 %v334_v28, %v338_v30 }
  0xeb   : > { %v349_v39 = vmax.f32 %v293_v33, %v297_v35  ;;  %v363_v40 = vmax.f32 %v336_v34, %v340_v36 }
  0xec   : > { %v343_v41 = vrot.slane %v342_v37, 4  ;;  %v357_v42 = vrot.slane %v356_v38, 4 }
  0xed   : > { %v350_v43 = vrot.slane %v349_v39, 4  ;;  %v364_v44 = vrot.slane %v363_v40, 4 }
  0xee   : > { %v344_v45 = vmax.f32 %v342_v37, %v343_v41  ;;  %v358_v46 = vmax.f32 %v356_v38, %v357_v42 }
  0xef   : > { %v351_v47 = vmax.f32 %v349_v39, %v350_v43  ;;  %v365_v50 = vmax.f32 %v363_v40, %v364_v44 }
  0xf0   : > { %v345_v51 = vrot.slane %v344_v45, 2  ;;  %v359_v52 = vrot.slane %v358_v46, 2 }
  0xf1   : > { %v352_v53 = vrot.slane %v351_v47, 2  ;;  %v366_v54 = vrot.slane %v365_v50, 2 }
  0xf2   : > { %v346_v55 = vmax.f32 %v344_v45, %v345_v51  ;;  %v360_v56 = vmax.f32 %v358_v46, %v359_v52 }
  0xf3   : > { %v353_v57 = vmax.f32 %v351_v47, %v352_v53  ;;  %v367_v59 = vmax.f32 %v365_v50, %v366_v54 }
  0xf4   : > { %v347_v60 = vrot.slane %v346_v55, 1  ;;  %v361_v61 = vrot.slane %v360_v56, 1 }
  0xf5   : > { %v354_v62 = vrot.slane %v353_v57, 1  ;;  %v368_v63 = vrot.slane %v367_v59, 1 }
  0xf6   : > { %v348_v0 = vmax.f32 %v346_v55, %v347_v60  ;;  %v362_v1 = vmax.f32 %v360_v56, %v361_v61 }
  0xf7   : > { %v355_v2 = vmax.f32 %v353_v57, %v354_v62  ;;  %v369_v4 = vmax.f32 %v367_v59, %v368_v63 }
  0xf9   : > { %v378_v5 = vcombine.low %v348_v0, %v355_v2  ;;  %v379_v6 = vcombine.low %v362_v1, %v369_v4 }
  0xfb   : > { %v386_v7 = vrot.slane %v378_v5, %v385_v3  ;;  %v393_v8 = vrot.slane %v379_v6, %v385_v3 }
  0xfd   : > { %v394_v9 = vcombine.low %v386_v7, %v393_v8 }
  0xff   : > { %v401_v12 = vrot.slane %v394_v9, %v385_v3 }
 0x101   : > { %407 = vst.msk [vmem:[%s196_s29] sm:$0xf] %vm405_vm2, %v401_v12 }
 0x102 PF: > { %s13_s14 = sadd.s32 1, %s588_s14   ;;  %s664_s12 = smov %s584_s13 }
 0x103   : > { %p10_p5 = scmp.ge.s32.totalorder %s13_s14, 6   ;;  %s665_s13 = smov %s667_s15 }
 0x105   :  { %12 = sbr.rel (!%p10_p5) target bundleno = 2 (0x2), region = 70 }

// kernel: cg_forward.5
= control target key start
LH: loop header
LB: loop body
LE: loop exit
PB: predicated region body
PF: predicated region fallthrough
CT: control target
= control target key end

     0   :  { %s4166_s17 = smov 0   ;;  %s4168_s18 = smov 0   ;;  %s5242_s0 = inlined_call_operand.vmem [shape: bf16[4,16,8], index: 0, kind: input, shape index: {}]   ;;  %s5243_s1 = inlined_call_operand.vmem [shape: f32[4,1,512], index: 1, kind: input, shape index: {}]   ;;  %s5244_s2 = inlined_call_operand.vmem [shape: bf16[8,512], index: 2, kind: input, shape index: {}]   ;;  %s5245_s3 = inlined_call_operand.vmem [shape: f32[1,512], index: 3, kind: input, shape index: {}]   ;;  %s5246_s4 = inlined_call_operand.vmem [shape: bf16[512,512], index: 4, kind: input, shape index: {}]   ;;  %s5247_s5 = inlined_call_operand.vmem [shape: bf16[512,512], index: 5, kind: input, shape index: {}]   ;;  %s5248_s6 = inlined_call_operand.vmem [shape: f32[1,512], index: 6, kind: input, shape index: {}]   ;;  %s5249_s7 = inlined_call_operand.vmem [shape: bf16[512,256], index: 7, kind: input, shape index: {}]   ;;  %s5250_s8 = inlined_call_operand.vmem [shape: f32[1,256], index: 8, kind: input, shape index: {}]   ;;  %s5251_s9 = inlined_call_operand.vmem [shape: bf16[2,256], index: 9, kind: input, shape index: {}]   ;;  %s5252_s10 = inlined_call_operand.vmem [shape: f32[2,1], index: 10, kind: input, shape index: {}]   ;;  %s5253_s11 = inlined_call_operand.vmem [shape: f32[4,2,16], index: 11, kind: output, shape index: {}]  }
   0x1   :  { %s4170_s19 = smov 0  }
   0x2 LB: > { %s33_s20 = sadd.s32 1, %s4098_s18  ;;  %p3190_p0 = scmp.ge.s32.totalorder %s4102_s19, 1  ;;  %s4102_s19 = sphi %s4170_s19, %s21_s19   ;;  %s4098_s18 = sphi %s4168_s18, %s5255_s18   ;;  %s4094_s17 = sphi %s4166_s17, %s5254_s17  }
   0x3   : > { %p35_p1 = scmp.ge.s32.totalorder %s33_s20, 4  ;;  %p367_p2 = scmp.lt.s32.totalorder %s4102_s19, 5 }
   0x5   : > { %s5257_s20 = smov (%p35_p1, %s33_s20), 0  ;;  %p368_p3 = pnand %p3190_p0, %p367_p2 }
   0x6   : > { %v441_v0 = vld [vmem:[%s5244_s2] sm:$0xff] (!%p368_p3)  ;;  %vm484_vm0 = vcmask (!%p368_p3), 1043456   ;;  %v442_v1 = vld [vmem:[%s5244_s2 + $0x8] sm:$0xff] (!%p368_p3)  ;;  %p418_p4 = scmp.lt.s32.totalorder (!%p368_p3), %s4094_s17, 3  ;;  %v4104_v5 = vmov (!%p368_p3), 0   ;;  %vm480_vm1 = vcmask (!%p368_p3), 64512  }
   0x7   : > { %371 = sbr.rel (%p368_p3) target bundleno = 1318 (0x526), region = 64  ;;  %v3197_v2 = vcombine.high (!%p368_p3), %v441_v0, %v441_v0  ;;  %v3196_v3 = vcombine.low (!%p368_p3), %v441_v0, %v441_v0  ;;  %v3199_v4 = vcombine.high (!%p368_p3), %v442_v1, %v442_v1  ;;  %529 = vmatprep.mubr.bf16.mxu0 (!%p368_p3), %v4104_v5  ;;  %v3198_v6 = vcombine.low (!%p368_p3), %v442_v1, %v442_v1  ;;  %v3602_v7 = vld [vmem:[%s5246_s4 + $0x4] ss:$16 sps:$4 sm:$0xff] (!%p368_p3)   ;;  %v3600_v10 = vld [vmem:[%s5246_s4] ss:$16 sps:$4 sm:$0xff] (!%p368_p3)  }
   0x8   : > { %572 = vmatprep.mubr.bf16.mxu1 (!%p368_p3), %v4104_v5  ;;  %3594 = vset.pattern.permute.xlu0 (!%p368_p3), %v4104_v5  ;;  %v3605_v11 = vld [vmem:[%s5246_s4 + $0x204] ss:$16 sps:$4 sm:$0xff] (!%p368_p3)   ;;  %v3603_v12 = vld [vmem:[%s5246_s4 + $0x200] ss:$16 sps:$4 sm:$0xff] (!%p368_p3)   ;;  %vm3095_vm2 = vcmask (!%p368_p3), 123904  }
   0x9   : > { %3200 = vmatprep.subr.msk.bf16.mxu0 (!%p368_p3), %vm484_vm0, %v3197_v2  ;;  %v486_v8 = vsel (!%p368_p3), %vm484_vm0, %v3196_v3, 0  ;;  %3202 = vmatprep.subr.msk.bf16.mxu1 (!%p368_p3), %vm484_vm0, %v3199_v4  ;;  %v492_v9 = vsel (!%p368_p3), %vm484_vm0, %v3198_v6, 0  ;;  %v3608_v13 = vld [vmem:[%s5246_s4 + $0x24] ss:$16 sps:$4 sm:$0xff] (!%p368_p3)   ;;  %v3606_v16 = vld [vmem:[%s5246_s4 + $0x20] ss:$16 sps:$4 sm:$0xff] (!%p368_p3)  }
   0xa   : > { %498 = vmatpush1.bf16.msra.mxu0 (!%p368_p3), %v486_v8  ;;  %541 = vmatpush1.bf16.msra.mxu1 (!%p368_p3), %v492_v9  ;;  %v3611_v15 = vld [vmem:[%s5246_s4 + $0x224] ss:$16 sps:$4 sm:$0xff] (!%p368_p3)   ;;  %v3609_v17 = vld [vmem:[%s5246_s4 + $0x220] ss:$16 sps:$4 sm:$0xff] (!%p368_p3)  }
   0xb   : > { %1377 = vmatprep.subr.bf16.mxu1 (!%p368_p3), %v3602_v7  ;;  %1420 = vmatprep.subr.bf16.mxu0 (!%p368_p3), %v3605_v11  ;;  %v3614_v18 = vld [vmem:[%s5246_s4 + $0x44] ss:$16 sps:$4 sm:$0xff] (!%p368_p3)   ;;  %v3612_v20 = vld [vmem:[%s5246_s4 + $0x40] ss:$16 sps:$4 sm:$0xff] (!%p368_p3)   ;;  %v445_v11 = vlaneseq (!%p368_p3) }
   0xc   : > { %v3617_v19 = vld [vmem:[%s5246_s4 + $0x244] ss:$16 sps:$4 sm:$0xff] (!%p368_p3)   ;;  %v3615_v21 = vld [vmem:[%s5246_s4 + $0x240] ss:$16 sps:$4 sm:$0xff] (!%p368_p3)  }
   0xd   : > { %v3620_v22 = vld [vmem:[%s5246_s4 + $0x64] ss:$16 sps:$4 sm:$0xff] (!%p368_p3)   ;;  %v3618_v24 = vld [vmem:[%s5246_s4 + $0x60] ss:$16 sps:$4 sm:$0xff] (!%p368_p3)  }
   0xe   : > { %s5259_s17 = smov (!%p418_p4, %s4094_s17), 3  ;;  %v3623_v23 = vld [vmem:[%s5246_s4 + $0x264] ss:$16 sps:$4 sm:$0xff]   ;;  %v3621_v25 = vld [vmem:[%s5246_s4 + $0x260] ss:$16 sps:$4 sm:$0xff]  }
   0xf   : > { %s3527_s12 = sshll.u32 %s5259_s17, 3  ;;  %v3626_v26 = vld [vmem:[%s5246_s4 + $0x84] ss:$16 sps:$4 sm:$0xff]   ;;  %v3624_v28 = vld [vmem:[%s5246_s4 + $0x80] ss:$16 sps:$4 sm:$0xff]   ;;  %s3193_s29 = sshll.u32 %s5259_s17, 2 }
  0x10   : > { %s425_s21 = scalar_lea.vmem %s5242_s0, %s3527_s12  ;;  %v3629_v27 = vld [vmem:[%s5246_s4 + $0x284] ss:$16 sps:$4 sm:$0xff]   ;;  %v3627_v29 = vld [vmem:[%s5246_s4 + $0x280] ss:$16 sps:$4 sm:$0xff]   ;;  %s430_s13 = scalar_lea.vmem %s5243_s1, %s3193_s29 }
  0x11   : > { %v3599_v14 = vld [vmem:[%s425_s21] sm:$0xff]   ;;  %s3194_s23 = sshll.u32 %s5259_s17, 1 }
  0x12   : > { %3201 = vmatmul.mubr.msk.bf16.vlgmr.msra.gmra.mrb[0].mxu0 %vm480_vm1, %v3599_v14  ;;  %3203 = vmatmul.mubr.msk.bf16.vlgmr.msra.gmra.mrb[0].mxu1 %vm480_vm1, %v3599_v14  ;;  %v3632_v30 = vld [vmem:[%s5246_s4 + $0xa4] ss:$16 sps:$4 sm:$0xff]   ;;  %v3630_v32 = vld [vmem:[%s5246_s4 + $0xa0] ss:$16 sps:$4 sm:$0xff]   ;;  %s437_s26 = scalar_lea.vmem %s5253_s11, %s3194_s23 }
  0x13   : > { %1378 = vmatpush1.bf16.msra.mxu1 %v3600_v10  ;;  %1421 = vmatpush1.bf16.msra.mxu0 %v3603_v12  ;;  %v3635_v31 = vld [vmem:[%s5246_s4 + $0x2a4] ss:$16 sps:$4 sm:$0xff]   ;;  %v3633_v33 = vld [vmem:[%s5246_s4 + $0x2a0] ss:$16 sps:$4 sm:$0xff]   ;;  %v3698_v10 = vld [vmem:[%s5246_s4 + $0xc] ss:$16 sps:$4 sm:$0xff]  }
  0x14   : > { %1379 = vmatprep.subr.bf16.mxu1 %v3608_v13  ;;  %1422 = vmatprep.subr.bf16.mxu0 %v3611_v15  ;;  %v3638_v34 = vld [vmem:[%s5246_s4 + $0xc4] ss:$16 sps:$4 sm:$0xff]   ;;  %v3636_v36 = vld [vmem:[%s5246_s4 + $0xc0] ss:$16 sps:$4 sm:$0xff]   ;;  %v4395_v12 = vshrl.u32 %v445_v11, 7 }
  0x15   : > { %v3641_v35 = vld [vmem:[%s5246_s4 + $0x2c4] ss:$16 sps:$4 sm:$0xff]   ;;  %v3639_v37 = vld [vmem:[%s5246_s4 + $0x2c0] ss:$16 sps:$4 sm:$0xff]  }
  0x16   : > { %v3644_v38 = vld [vmem:[%s5246_s4 + $0xe4] ss:$16 sps:$4 sm:$0xff]   ;;  %v3642_v40 = vld [vmem:[%s5246_s4 + $0xe0] ss:$16 sps:$4 sm:$0xff]   ;;  %v4398_v13 = vsub.s32 2, %v4395_v12  ;;  %v4401_v14 = vsub.s32 3, %v4395_v12 }
  0x17   : > { %1380 = vmatpush1.bf16.msra.mxu1 %v3606_v16  ;;  %1423 = vmatpush1.bf16.msra.mxu0 %v3609_v17  ;;  %v3647_v39 = vld [vmem:[%s5246_s4 + $0x2e4] ss:$16 sps:$4 sm:$0xff]   ;;  %v3645_v41 = vld [vmem:[%s5246_s4 + $0x2e0] ss:$16 sps:$4 sm:$0xff]   ;;  %v4404_v15 = vsub.s32 0, %v4395_v12  ;;  %v4410_v17 = vsub.s32 1, %v4395_v12 }
  0x18   : > { %1381 = vmatprep.subr.bf16.mxu1 %v3614_v18  ;;  %1424 = vmatprep.subr.bf16.mxu0 %v3617_v19  ;;  %v3650_v42 = vld [vmem:[%s5246_s4 + $0x104] ss:$16 sps:$4 sm:$0xff]   ;;  %v3648_v44 = vld [vmem:[%s5246_s4 + $0x100] ss:$16 sps:$4 sm:$0xff]  }
  0x19   : > { %v3653_v43 = vld [vmem:[%s5246_s4 + $0x304] ss:$16 sps:$4 sm:$0xff]   ;;  %v3651_v45 = vld [vmem:[%s5246_s4 + $0x300] ss:$16 sps:$4 sm:$0xff]  }
  0x1a   : > { %v3656_v46 = vld [vmem:[%s5246_s4 + $0x124] ss:$16 sps:$4 sm:$0xff]   ;;  %v3654_v48 = vld [vmem:[%s5246_s4 + $0x120] ss:$16 sps:$4 sm:$0xff]  }
  0x1b   : > { %1382 = vmatpush1.bf16.msra.mxu1 %v3612_v20  ;;  %1425 = vmatpush1.bf16.msra.mxu0 %v3615_v21  ;;  %v3659_v47 = vld [vmem:[%s5246_s4 + $0x324] ss:$16 sps:$4 sm:$0xff]   ;;  %v3657_v49 = vld [vmem:[%s5246_s4 + $0x320] ss:$16 sps:$4 sm:$0xff]  }
  0x1c   : > { %1383 = vmatprep.subr.bf16.mxu1 %v3620_v22  ;;  %1426 = vmatprep.subr.bf16.mxu0 %v3623_v23  ;;  %v3662_v50 = vld [vmem:[%s5246_s4 + $0x144] ss:$16 sps:$4 sm:$0xff]   ;;  %v3660_v52 = vld [vmem:[%s5246_s4 + $0x140] ss:$16 sps:$4 sm:$0xff]  }
  0x1d   : > { %v3665_v51 = vld [vmem:[%s5246_s4 + $0x344] ss:$16 sps:$4 sm:$0xff]   ;;  %v3663_v53 = vld [vmem:[%s5246_s4 + $0x340] ss:$16 sps:$4 sm:$0xff]  }
  0x1e   : > { %v3668_v54 = vld [vmem:[%s5246_s4 + $0x164] ss:$16 sps:$4 sm:$0xff]   ;;  %v3666_v56 = vld [vmem:[%s5246_s4 + $0x160] ss:$16 sps:$4 sm:$0xff]  }
  0x1f   : > { %1384 = vmatpush1.bf16.msra.mxu1 %v3618_v24  ;;  %1427 = vmatpush1.bf16.msra.mxu0 %v3621_v25  ;;  %v3671_v55 = vld [vmem:[%s5246_s4 + $0x364] ss:$16 sps:$4 sm:$0xff]   ;;  %v3669_v57 = vld [vmem:[%s5246_s4 + $0x360] ss:$16 sps:$4 sm:$0xff]  }
  0x20   : > { %1385 = vmatprep.subr.bf16.mxu1 %v3626_v26  ;;  %1428 = vmatprep.subr.bf16.mxu0 %v3629_v27  ;;  %v3674_v58 = vld [vmem:[%s5246_s4 + $0x184] ss:$16 sps:$4 sm:$0xff]   ;;  %v3672_v60 = vld [vmem:[%s5246_s4 + $0x180] ss:$16 sps:$4 sm:$0xff]  }
  0x21   : > { %v3677_v59 = vld [vmem:[%s5246_s4 + $0x384] ss:$16 sps:$4 sm:$0xff]   ;;  %v3675_v61 = vld [vmem:[%s5246_s4 + $0x380] ss:$16 sps:$4 sm:$0xff]  }
  0x22   : > { %v3680_v62 = vld [vmem:[%s5246_s4 + $0x1a4] ss:$16 sps:$4 sm:$0xff]   ;;  %v3678_v0 = vld [vmem:[%s5246_s4 + $0x1a0] ss:$16 sps:$4 sm:$0xff]  }
  0x23   : > { %1386 = vmatpush1.bf16.msra.mxu1 %v3624_v28  ;;  %1429 = vmatpush1.bf16.msra.mxu0 %v3627_v29  ;;  %v3683_v63 = vld [vmem:[%s5246_s4 + $0x3a4] ss:$16 sps:$4 sm:$0xff]   ;;  %v3681_v1 = vld [vmem:[%s5246_s4 + $0x3a0] ss:$16 sps:$4 sm:$0xff]  }
  0x24   : > { %1387 = vmatprep.subr.bf16.mxu1 %v3632_v30  ;;  %1430 = vmatprep.subr.bf16.mxu0 %v3635_v31  ;;  %v3686_v2 = vld [vmem:[%s5246_s4 + $0x1c4] ss:$16 sps:$4 sm:$0xff]   ;;  %v3684_v3 = vld [vmem:[%s5246_s4 + $0x1c0] ss:$16 sps:$4 sm:$0xff]  }
  0x25   : > { %v3689_v4 = vld [vmem:[%s5246_s4 + $0x3c4] ss:$16 sps:$4 sm:$0xff]   ;;  %v3687_v5 = vld [vmem:[%s5246_s4 + $0x3c0] ss:$16 sps:$4 sm:$0xff]  }
  0x26   : > { %v3692_v6 = vld [vmem:[%s5246_s4 + $0x1e4] ss:$16 sps:$4 sm:$0xff]   ;;  %v3690_v7 = vld [vmem:[%s5246_s4 + $0x1e0] ss:$16 sps:$4 sm:$0xff]  }
  0x27   : > { %1388 = vmatpush1.bf16.msra.mxu1 %v3630_v32  ;;  %1431 = vmatpush1.bf16.msra.mxu0 %v3633_v33  ;;  %v3695_v8 = vld [vmem:[%s5246_s4 + $0x3e4] ss:$16 sps:$4 sm:$0xff]   ;;  %v3693_v9 = vld [vmem:[%s5246_s4 + $0x3e0] ss:$16 sps:$4 sm:$0xff]  }
  0x28   : > { %1389 = vmatprep.subr.bf16.mxu1 %v3638_v34  ;;  %1432 = vmatprep.subr.bf16.mxu0 %v3641_v35  ;;  %v443_v16 = vld [vmem:[%s5245_s3] sm:$0xf]  ;;  %v3842_v11 = vld [vmem:[%s5247_s5 + $0x104] ss:$16 sps:$4 sm:$0xff]  }
  0x29   : > { %v456_v18 = vrot.slane %v443_v16, %v4398_v13  ;;  %v460_v19 = vrot.slane %v443_v16, %v4401_v14  ;;  %v448_v20 = vrot.slane %v443_v16, %v4404_v15  ;;  %v452_v22 = vrot.slane %v443_v16, %v4410_v17  ;;  %v3725_v16 = vld [vmem:[%s5246_s4 + $0x12c] ss:$16 sps:$4 sm:$0xff]  }
  0x2b   : > { %1390 = vmatpush1.bf16.msra.mxu1 %v3636_v36  ;;  %1433 = vmatpush1.bf16.msra.mxu0 %v3639_v37 }
  0x2c   : > { %1391 = vmatprep.subr.bf16.mxu1 %v3644_v38  ;;  %1434 = vmatprep.subr.bf16.mxu0 %v3647_v39 }
  0x2f   : > { %1392 = vmatpush1.bf16.msra.mxu1 %v3642_v40  ;;  %1435 = vmatpush1.bf16.msra.mxu0 %v3645_v41 }
  0x30   : > { %1393 = vmatprep.subr.bf16.mxu1 %v3650_v42  ;;  %1436 = vmatprep.subr.bf16.mxu0 %v3653_v43  ;;  %v3696_v42 = vld [vmem:[%s5246_s4 + $0x8] ss:$16 sps:$4 sm:$0xff]   ;;  %v3701_v43 = vld [vmem:[%s5246_s4 + $0x2c] ss:$16 sps:$4 sm:$0xff]  }
  0x33   : > { %1394 = vmatpush1.bf16.msra.mxu1 %v3648_v44  ;;  %1437 = vmatpush1.bf16.msra.mxu0 %v3651_v45  ;;  %v3792_v44 = vld [vmem:[%s5247_s5] ss:$16 sps:$4 sm:$0xff]   ;;  %v3794_v45 = vld [vmem:[%s5247_s5 + $0x4] ss:$16 sps:$4 sm:$0xff]  }
  0x34   : > { %1395 = vmatprep.subr.bf16.mxu1 %v3656_v46  ;;  %1438 = vmatprep.subr.bf16.mxu0 %v3659_v47  ;;  %v3699_v46 = vld [vmem:[%s5246_s4 + $0x28] ss:$16 sps:$4 sm:$0xff]   ;;  %v3800_v47 = vld [vmem:[%s5247_s5 + $0x24] ss:$16 sps:$4 sm:$0xff]  }
  0x37   : > { %1396 = vmatpush1.bf16.msra.mxu1 %v3654_v48  ;;  %1439 = vmatpush1.bf16.msra.mxu0 %v3657_v49  ;;  %v3704_v48 = vld [vmem:[%s5246_s4 + $0x4c] ss:$16 sps:$4 sm:$0xff]   ;;  %v3798_v49 = vld [vmem:[%s5247_s5 + $0x20] ss:$16 sps:$4 sm:$0xff]  }
  0x38   : > { %1397 = vmatprep.subr.bf16.mxu1 %v3662_v50  ;;  %1440 = vmatprep.subr.bf16.mxu0 %v3665_v51  ;;  %v3702_v50 = vld [vmem:[%s5246_s4 + $0x48] ss:$16 sps:$4 sm:$0xff]   ;;  %v3806_v51 = vld [vmem:[%s5247_s5 + $0x44] ss:$16 sps:$4 sm:$0xff]  }
  0x3b   : > { %1398 = vmatpush1.bf16.msra.mxu1 %v3660_v52  ;;  %1441 = vmatpush1.bf16.msra.mxu0 %v3663_v53  ;;  %v3707_v52 = vld [vmem:[%s5246_s4 + $0x6c] ss:$16 sps:$4 sm:$0xff]   ;;  %v3804_v53 = vld [vmem:[%s5247_s5 + $0x40] ss:$16 sps:$4 sm:$0xff]  }
  0x3c   : > { %1399 = vmatprep.subr.bf16.mxu1 %v3668_v54  ;;  %1442 = vmatprep.subr.bf16.mxu0 %v3671_v55  ;;  %v3705_v54 = vld [vmem:[%s5246_s4 + $0x68] ss:$16 sps:$4 sm:$0xff]   ;;  %v3812_v55 = vld [vmem:[%s5247_s5 + $0x64] ss:$16 sps:$4 sm:$0xff]  }
  0x3f   : > { %1400 = vmatpush1.bf16.msra.mxu1 %v3666_v56  ;;  %1443 = vmatpush1.bf16.msra.mxu0 %v3669_v57  ;;  %v3710_v56 = vld [vmem:[%s5246_s4 + $0x8c] ss:$16 sps:$4 sm:$0xff]   ;;  %v3810_v57 = vld [vmem:[%s5247_s5 + $0x60] ss:$16 sps:$4 sm:$0xff]  }
  0x40   : > { %1401 = vmatprep.subr.bf16.mxu1 %v3674_v58  ;;  %1444 = vmatprep.subr.bf16.mxu0 %v3677_v59  ;;  %v3708_v58 = vld [vmem:[%s5246_s4 + $0x88] ss:$16 sps:$4 sm:$0xff]   ;;  %v3818_v59 = vld [vmem:[%s5247_s5 + $0x84] ss:$16 sps:$4 sm:$0xff]  }
  0x43   : > { %1402 = vmatpush1.bf16.msra.mxu1 %v3672_v60  ;;  %1445 = vmatpush1.bf16.msra.mxu0 %v3675_v61  ;;  %v3713_v60 = vld [vmem:[%s5246_s4 + $0xac] ss:$16 sps:$4 sm:$0xff]   ;;  %v3816_v61 = vld [vmem:[%s5247_s5 + $0x80] ss:$16 sps:$4 sm:$0xff]  }
  0x44   : > { %1403 = vmatprep.subr.bf16.mxu1 %v3680_v62  ;;  %1446 = vmatprep.subr.bf16.mxu0 %v3683_v63  ;;  %v3711_v62 = vld [vmem:[%s5246_s4 + $0xa8] ss:$16 sps:$4 sm:$0xff]   ;;  %v3824_v63 = vld [vmem:[%s5247_s5 + $0xa4] ss:$16 sps:$4 sm:$0xff]  }
  0x47   : > { %1404 = vmatpush1.bf16.msra.mxu1 %v3678_v0  ;;  %1447 = vmatpush1.bf16.msra.mxu0 %v3681_v1  ;;  %v3716_v0 = vld [vmem:[%s5246_s4 + $0xcc] ss:$16 sps:$4 sm:$0xff]   ;;  %v3822_v1 = vld [vmem:[%s5247_s5 + $0xa0] ss:$16 sps:$4 sm:$0xff]  }
  0x48   : > { %1405 = vmatprep.subr.bf16.mxu1 %v3686_v2  ;;  %1448 = vmatprep.subr.bf16.mxu0 %v3689_v4  ;;  %v3714_v2 = vld [vmem:[%s5246_s4 + $0xc8] ss:$16 sps:$4 sm:$0xff]   ;;  %v3719_v4 = vld [vmem:[%s5246_s4 + $0xec] ss:$16 sps:$4 sm:$0xff]  }
  0x4b   : > { %1406 = vmatpush1.bf16.msra.mxu1 %v3684_v3  ;;  %1449 = vmatpush1.bf16.msra.mxu0 %v3687_v5  ;;  %v3830_v3 = vld [vmem:[%s5247_s5 + $0xc4] ss:$16 sps:$4 sm:$0xff]   ;;  %v3828_v5 = vld [vmem:[%s5247_s5 + $0xc0] ss:$16 sps:$4 sm:$0xff]  }
  0x4c   : > { %1407 = vmatprep.subr.bf16.mxu1 %v3692_v6  ;;  %1450 = vmatprep.subr.bf16.mxu0 %v3695_v8  ;;  %v3717_v6 = vld [vmem:[%s5246_s4 + $0xe8] ss:$16 sps:$4 sm:$0xff]   ;;  %v3722_v8 = vld [vmem:[%s5246_s4 + $0x10c] ss:$16 sps:$4 sm:$0xff]  }
  0x4f   : > { %1408 = vmatpush1.bf16.msra.mxu1 %v3690_v7  ;;  %1451 = vmatpush1.bf16.msra.mxu0 %v3693_v9  ;;  %v3836_v7 = vld [vmem:[%s5247_s5 + $0xe4] ss:$16 sps:$4 sm:$0xff]   ;;  %v3834_v9 = vld [vmem:[%s5247_s5 + $0xe0] ss:$16 sps:$4 sm:$0xff]  }
  0x50   : > { %1463 = vmatprep.subr.bf16.mxu1 %v3698_v10  ;;  %2351 = vmatprep.subr.bf16.mxu0 %v3794_v45  ;;  %v3720_v10 = vld [vmem:[%s5246_s4 + $0x108] ss:$16 sps:$4 sm:$0xff]   ;;  %v3749_v45 = vld [vmem:[%s5246_s4 + $0x22c] ss:$16 sps:$4 sm:$0xff]  }
  0xe5   : > { %v531_v21 = vpop.f32.mrb[0].mxu0  ;;  %v574_v23 = vpop.f32.mrb[0].mxu1 }
  0xe6   : > { %v533_v24 = vpop.f32.mrb[1].mxu0  ;;  %v575_v25 = vadd.f32 %v574_v23, %v456_v18  ;;  %v576_v26 = vpop.f32.mrb[1].mxu1  ;;  %v532_v30 = vadd.f32 %v531_v21, %v448_v20  ;;  %v3728_v21 = vld [vmem:[%s5246_s4 + $0x14c] ss:$16 sps:$4 sm:$0xff]   ;;  %v3726_v23 = vld [vmem:[%s5246_s4 + $0x148] ss:$16 sps:$4 sm:$0xff]  }
  0xe7   : > { %v535_v27 = vpop.f32.mrb[2].mxu0  ;;  %v577_v28 = vadd.f32 %v576_v26, %v460_v19  ;;  %v578_v29 = vpop.f32.mrb[2].mxu1  ;;  %v534_v35 = vadd.f32 %v533_v24, %v452_v22  ;;  %v3854_v24 = vld [vmem:[%s5247_s5 + $0x144] ss:$16 sps:$4 sm:$0xff]   ;;  %v3852_v26 = vld [vmem:[%s5247_s5 + $0x140] ss:$16 sps:$4 sm:$0xff]  }
  0xe8   : > { %v536_v31 = vadd.f32 %v535_v27, %v448_v20  ;;  %v537_v32 = vpop.f32.mrb[3].mxu0  ;;  %v579_v33 = vadd.f32 %v578_v29, %v456_v18  ;;  %v580_v34 = vpop.f32.mrb[3].mxu1  ;;  %v3840_v18 = vld [vmem:[%s5247_s5 + $0x100] ss:$16 sps:$4 sm:$0xff]   ;;  %v3848_v20 = vld [vmem:[%s5247_s5 + $0x124] ss:$16 sps:$4 sm:$0xff]  }
  0xe9   : > { %v538_v36 = vadd.f32 %v537_v32, %v452_v22  ;;  %v581_v37 = vadd.f32 %v580_v34, %v460_v19  ;;  %v3723_v19 = vld [vmem:[%s5246_s4 + $0x128] ss:$16 sps:$4 sm:$0xff]   ;;  %v3846_v22 = vld [vmem:[%s5247_s5 + $0x120] ss:$16 sps:$4 sm:$0xff]   ;;  %v3734_v29 = vld [vmem:[%s5246_s4 + $0x18c] ss:$16 sps:$4 sm:$0xff]  }
  0xea   : > { %v4416_v38 = vpack.c.bf16 %v536_v31, %v532_v30  ;;  %v4418_v39 = vpack.c.bf16 %v579_v33, %v575_v25  ;;  %v3731_v25 = vld [vmem:[%s5246_s4 + $0x16c] ss:$16 sps:$4 sm:$0xff]   ;;  %v3729_v27 = vld [vmem:[%s5246_s4 + $0x168] ss:$16 sps:$4 sm:$0xff]   ;;  %v3858_v30 = vld [vmem:[%s5247_s5 + $0x160] ss:$16 sps:$4 sm:$0xff]  }
  0xeb   : > { %v584_v40 = vpack.c.bf16 %v538_v36, %v534_v35  ;;  %v4420_v41 = vpack.c.bf16 %v581_v37, %v577_v28  ;;  %v3860_v28 = vld [vmem:[%s5247_s5 + $0x164] ss:$16 sps:$4 sm:$0xff]   ;;  %v3732_v31 = vld [vmem:[%s5246_s4 + $0x188] ss:$16 sps:$4 sm:$0xff]   ;;  %v3737_v33 = vld [vmem:[%s5246_s4 + $0x1ac] ss:$16 sps:$4 sm:$0xff]  }
  0xec   : > { %v3866_v32 = vld [vmem:[%s5247_s5 + $0x184] ss:$16 sps:$4 sm:$0xff]   ;;  %v3864_v34 = vld [vmem:[%s5247_s5 + $0x180] ss:$16 sps:$4 sm:$0xff]   ;;  %v3735_v35 = vld [vmem:[%s5246_s4 + $0x1a8] ss:$16 sps:$4 sm:$0xff]  }
  0xed   : > { %1409 = vmatprep.mubr.bf16.mxu1 %v584_v40  ;;  %1452 = vmatprep.mubr.bf16.mxu0 %v4420_v41  ;;  %v3740_v36 = vld [vmem:[%s5246_s4 + $0x1cc] ss:$16 sps:$4 sm:$0xff]   ;;  %v3738_v37 = vld [vmem:[%s5246_s4 + $0x1c8] ss:$16 sps:$4 sm:$0xff]  }
  0xee   : > { %1410 = vmatmul.mubr.bf16.vlgmr.msra.gmra.mrb[4].mxu1 %v4416_v38  ;;  %1453 = vmatmul.mubr.bf16.vlgmr.msra.gmra.mrb[4].mxu0 %v4418_v39 }
  0xef   : > { %1464 = vmatpush1.bf16.msra.mxu1 %v3696_v42  ;;  %1495 = vmatprep.mubr.bf16.mxu1 %v584_v40  ;;  %v3743_v40 = vld [vmem:[%s5246_s4 + $0x1ec] ss:$16 sps:$4 sm:$0xff]   ;;  %v3741_v42 = vld [vmem:[%s5246_s4 + $0x1e8] ss:$16 sps:$4 sm:$0xff]  }
  0xf0   : > { %1465 = vmatprep.subr.bf16.mxu1 %v3701_v43  ;;  %2352 = vmatpush1.bf16.msra.mxu0 %v3792_v44  ;;  %v3746_v43 = vld [vmem:[%s5246_s4 + $0x20c] ss:$16 sps:$4 sm:$0xff]   ;;  %v3744_v44 = vld [vmem:[%s5246_s4 + $0x208] ss:$16 sps:$4 sm:$0xff]  }
  0xf1   : > { %2353 = vmatprep.subr.bf16.mxu0 %v3800_v47  ;;  %v3752_v47 = vld [vmem:[%s5246_s4 + $0x24c] ss:$16 sps:$4 sm:$0xff]  }
  0xf3   : > { %1466 = vmatpush1.bf16.msra.mxu1 %v3699_v46  ;;  %v3747_v46 = vld [vmem:[%s5246_s4 + $0x228] ss:$16 sps:$4 sm:$0xff]  }
  0xf4   : > { %1467 = vmatprep.subr.bf16.mxu1 %v3704_v48  ;;  %2354 = vmatpush1.bf16.msra.mxu0 %v3798_v49  ;;  %v3750_v48 = vld [vmem:[%s5246_s4 + $0x248] ss:$16 sps:$4 sm:$0xff]   ;;  %v3758_v49 = vld [vmem:[%s5246_s4 + $0x28c] ss:$16 sps:$4 sm:$0xff]  }
  0xf5   : > { %2355 = vmatprep.subr.bf16.mxu0 %v3806_v51  ;;  %v3761_v51 = vld [vmem:[%s5246_s4 + $0x2ac] ss:$16 sps:$4 sm:$0xff]  }
  0xf7   : > { %1468 = vmatpush1.bf16.msra.mxu1 %v3702_v50  ;;  %v3756_v50 = vld [vmem:[%s5246_s4 + $0x288] ss:$16 sps:$4 sm:$0xff]  }
  0xf8   : > { %1469 = vmatprep.subr.bf16.mxu1 %v3707_v52  ;;  %2356 = vmatpush1.bf16.msra.mxu0 %v3804_v53  ;;  %v3759_v52 = vld [vmem:[%s5246_s4 + $0x2a8] ss:$16 sps:$4 sm:$0xff]   ;;  %v3764_v53 = vld [vmem:[%s5246_s4 + $0x2cc] ss:$16 sps:$4 sm:$0xff]  }
  0xf9   : > { %2357 = vmatprep.subr.bf16.mxu0 %v3812_v55  ;;  %v3870_v55 = vld [vmem:[%s5247_s5 + $0x1a0] ss:$16 sps:$4 sm:$0xff]  }
  0xfb   : > { %1470 = vmatpush1.bf16.msra.mxu1 %v3705_v54  ;;  %v3872_v54 = vld [vmem:[%s5247_s5 + $0x1a4] ss:$16 sps:$4 sm:$0xff]  }
  0xfc   : > { %1471 = vmatprep.subr.bf16.mxu1 %v3710_v56  ;;  %2358 = vmatpush1.bf16.msra.mxu0 %v3810_v57  ;;  %v3762_v56 = vld [vmem:[%s5246_s4 + $0x2c8] ss:$16 sps:$4 sm:$0xff]   ;;  %v3767_v57 = vld [vmem:[%s5246_s4 + $0x2ec] ss:$16 sps:$4 sm:$0xff]  }
  0xfd   : > { %2359 = vmatprep.subr.bf16.mxu0 %v3818_v59  ;;  %v3876_v59 = vld [vmem:[%s5247_s5 + $0x1c0] ss:$16 sps:$4 sm:$0xff]  }
  0xff   : > { %1472 = vmatpush1.bf16.msra.mxu1 %v3708_v58  ;;  %v3878_v58 = vld [vmem:[%s5247_s5 + $0x1c4] ss:$16 sps:$4 sm:$0xff]  }
 0x100   : > { %1473 = vmatprep.subr.bf16.mxu1 %v3713_v60  ;;  %2360 = vmatpush1.bf16.msra.mxu0 %v3816_v61  ;;  %v3765_v60 = vld [vmem:[%s5246_s4 + $0x2e8] ss:$16 sps:$4 sm:$0xff]   ;;  %v3770_v61 = vld [vmem:[%s5246_s4 + $0x30c] ss:$16 sps:$4 sm:$0xff]  }
 0x101   : > { %2361 = vmatprep.subr.bf16.mxu0 %v3824_v63  ;;  %v3882_v63 = vld [vmem:[%s5247_s5 + $0x1e0] ss:$16 sps:$4 sm:$0xff]  }
 0x103   : > { %1474 = vmatpush1.bf16.msra.mxu1 %v3711_v62  ;;  %v3884_v62 = vld [vmem:[%s5247_s5 + $0x1e4] ss:$16 sps:$4 sm:$0xff]  }
 0x104   : > { %1475 = vmatprep.subr.bf16.mxu1 %v3716_v0  ;;  %2362 = vmatpush1.bf16.msra.mxu0 %v3822_v1  ;;  %v3768_v0 = vld [vmem:[%s5246_s4 + $0x308] ss:$16 sps:$4 sm:$0xff]   ;;  %v3773_v1 = vld [vmem:[%s5246_s4 + $0x32c] ss:$16 sps:$4 sm:$0xff]  }
 0x105   : > { %2363 = vmatprep.subr.bf16.mxu0 %v3830_v3  ;;  %v3771_v3 = vld [vmem:[%s5246_s4 + $0x328] ss:$16 sps:$4 sm:$0xff]  }
 0x107   : > { %1476 = vmatpush1.bf16.msra.mxu1 %v3714_v2  ;;  %v3890_v2 = vld [vmem:[%s5247_s5 + $0x204] ss:$16 sps:$4 sm:$0xff]  }
 0x108   : > { %1477 = vmatprep.subr.bf16.mxu1 %v3719_v4  ;;  %2364 = vmatpush1.bf16.msra.mxu0 %v3828_v5  ;;  %v3776_v4 = vld [vmem:[%s5246_s4 + $0x34c] ss:$16 sps:$4 sm:$0xff]   ;;  %v3774_v5 = vld [vmem:[%s5246_s4 + $0x348] ss:$16 sps:$4 sm:$0xff]  }
 0x109   : > { %2365 = vmatprep.subr.bf16.mxu0 %v3836_v7  ;;  %v3777_v7 = vld [vmem:[%s5246_s4 + $0x368] ss:$16 sps:$4 sm:$0xff]  }
 0x10b   : > { %1478 = vmatpush1.bf16.msra.mxu1 %v3717_v6  ;;  %v3779_v6 = vld [vmem:[%s5246_s4 + $0x36c] ss:$16 sps:$4 sm:$0xff]  }
 0x10c   : > { %1479 = vmatprep.subr.bf16.mxu1 %v3722_v8  ;;  %2366 = vmatpush1.bf16.msra.mxu0 %v3834_v9  ;;  %v3782_v8 = vld [vmem:[%s5246_s4 + $0x38c] ss:$16 sps:$4 sm:$0xff]   ;;  %v3780_v9 = vld [vmem:[%s5246_s4 + $0x388] ss:$16 sps:$4 sm:$0xff]  }
 0x10d   : > { %2367 = vmatprep.subr.bf16.mxu0 %v3842_v11  ;;  %v3783_v11 = vld [vmem:[%s5246_s4 + $0x3a8] ss:$16 sps:$4 sm:$0xff]  }
 0x10f   : > { %1480 = vmatpush1.bf16.msra.mxu1 %v3720_v10  ;;  %v3785_v10 = vld [vmem:[%s5246_s4 + $0x3ac] ss:$16 sps:$4 sm:$0xff]  }
 0x110   : > { %1481 = vmatprep.subr.bf16.mxu1 %v3725_v16  ;;  %2368 = vmatpush1.bf16.msra.mxu0 %v3840_v18  ;;  %v3788_v16 = vld [vmem:[%s5246_s4 + $0x3cc] ss:$16 sps:$4 sm:$0xff]   ;;  %v3786_v18 = vld [vmem:[%s5246_s4 + $0x3c8] ss:$16 sps:$4 sm:$0xff]  }
 0x111   : > { %2369 = vmatprep.subr.bf16.mxu0 %v3848_v20  ;;  %v3789_v20 = vld [vmem:[%s5246_s4 + $0x3e8] ss:$16 sps:$4 sm:$0xff]  }
 0x113   : > { %1482 = vmatpush1.bf16.msra.mxu1 %v3723_v19  ;;  %v3791_v19 = vld [vmem:[%s5246_s4 + $0x3ec] ss:$16 sps:$4 sm:$0xff]  }
 0x114   : > { %1483 = vmatprep.subr.bf16.mxu1 %v3728_v21  ;;  %2370 = vmatpush1.bf16.msra.mxu0 %v3846_v22  ;;  %v3797_v21 = vld [vmem:[%s5247_s5 + $0xc] ss:$16 sps:$4 sm:$0xff]   ;;  %v3795_v22 = vld [vmem:[%s5247_s5 + $0x8] ss:$16 sps:$4 sm:$0xff]  }
 0x115   : > { %2371 = vmatprep.subr.bf16.mxu0 %v3854_v24  ;;  %v3801_v24 = vld [vmem:[%s5247_s5 + $0x28] ss:$16 sps:$4 sm:$0xff]  }
 0x117   : > { %1484 = vmatpush1.bf16.msra.mxu1 %v3726_v23  ;;  %v3803_v23 = vld [vmem:[%s5247_s5 + $0x2c] ss:$16 sps:$4 sm:$0xff]  }
 0x118   : > { %1485 = vmatprep.subr.bf16.mxu1 %v3731_v25  ;;  %2372 = vmatpush1.bf16.msra.mxu0 %v3852_v26  ;;  %v3809_v25 = vld [vmem:[%s5247_s5 + $0x4c] ss:$16 sps:$4 sm:$0xff]   ;;  %v3807_v26 = vld [vmem:[%s5247_s5 + $0x48] ss:$16 sps:$4 sm:$0xff]  }
 0x119   : > { %2373 = vmatprep.subr.bf16.mxu0 %v3860_v28  ;;  %v3821_v28 = vld [vmem:[%s5247_s5 + $0x8c] ss:$16 sps:$4 sm:$0xff]  }
 0x11b   : > { %1486 = vmatpush1.bf16.msra.mxu1 %v3729_v27  ;;  %v3813_v27 = vld [vmem:[%s5247_s5 + $0x68] ss:$16 sps:$4 sm:$0xff]  }
 0x11c   : > { %1487 = vmatprep.subr.bf16.mxu1 %v3734_v29  ;;  %2374 = vmatpush1.bf16.msra.mxu0 %v3858_v30  ;;  %v3819_v29 = vld [vmem:[%s5247_s5 + $0x88] ss:$16 sps:$4 sm:$0xff]   ;;  %v3827_v30 = vld [vmem:[%s5247_s5 + $0xac] ss:$16 sps:$4 sm:$0xff]  }
 0x11d   : > { %2375 = vmatprep.subr.bf16.mxu0 %v3866_v32  ;;  %v3833_v32 = vld [vmem:[%s5247_s5 + $0xcc] ss:$16 sps:$4 sm:$0xff]  }
 0x11f   : > { %1488 = vmatpush1.bf16.msra.mxu1 %v3732_v31  ;;  %v3825_v31 = vld [vmem:[%s5247_s5 + $0xa8] ss:$16 sps:$4 sm:$0xff]  }
 0x120   : > { %1489 = vmatprep.subr.bf16.mxu1 %v3737_v33  ;;  %2376 = vmatpush1.bf16.msra.mxu0 %v3864_v34  ;;  %v3831_v33 = vld [vmem:[%s5247_s5 + $0xc8] ss:$16 sps:$4 sm:$0xff]   ;;  %v3839_v34 = vld [vmem:[%s5247_s5 + $0xec] ss:$16 sps:$4 sm:$0xff]  }
 0x121   : > { %2377 = vmatprep.subr.bf16.mxu0 %v3872_v54  ;;  %v4819_v54 = vld [vmem:[%s430_s13] sm:$0xf] }
 0x123   : > { %1490 = vmatpush1.bf16.msra.mxu1 %v3735_v35  ;;  %v3837_v35 = vld [vmem:[%s5247_s5 + $0xe8] ss:$16 sps:$4 sm:$0xff]  }
 0x124   : > { %1491 = vmatprep.subr.bf16.mxu1 %v3740_v36  ;;  %2378 = vmatpush1.bf16.msra.mxu0 %v3870_v55  ;;  %v3845_v36 = vld [vmem:[%s5247_s5 + $0x10c] ss:$16 sps:$4 sm:$0xff]   ;;  %v720_v55 = vrot.slane %v4819_v54, %v4404_v15 }
 0x125   : > { %2379 = vmatprep.subr.bf16.mxu0 %v3878_v58 }
 0x127   : > { %1492 = vmatpush1.bf16.msra.mxu1 %v3738_v37  ;;  %v3843_v37 = vld [vmem:[%s5247_s5 + $0x108] ss:$16 sps:$4 sm:$0xff]  }
 0x128   : > { %1493 = vmatprep.subr.bf16.mxu1 %v3743_v40  ;;  %2380 = vmatpush1.bf16.msra.mxu0 %v3876_v59  ;;  %v3851_v40 = vld [vmem:[%s5247_s5 + $0x12c] ss:$16 sps:$4 sm:$0xff]  }
 0x129   : > { %2381 = vmatprep.subr.bf16.mxu0 %v3884_v62 }
 0x12b   : > { %1494 = vmatpush1.bf16.msra.mxu1 %v3741_v42  ;;  %v3849_v42 = vld [vmem:[%s5247_s5 + $0x128] ss:$16 sps:$4 sm:$0xff]  }
 0x12c   : > { %1506 = vmatprep.subr.bf16.mxu1 %v3746_v43  ;;  %2382 = vmatpush1.bf16.msra.mxu0 %v3882_v63  ;;  %v3857_v43 = vld [vmem:[%s5247_s5 + $0x14c] ss:$16 sps:$4 sm:$0xff]  }
 0x12d   : > { %2394 = vmatprep.subr.bf16.mxu0 %v3890_v2 }
 0x12e   : > { %1496 = vmatmul.mubr.bf16.vlgmr.msra.gmra.mrb[8].mxu1 %v4416_v38  ;;  %v3755_v38 = vld [vmem:[%s5246_s4 + $0x26c] ss:$16 sps:$4 sm:$0xff]  }
 0x12f   : > { %1507 = vmatpush1.bf16.msra.mxu1 %v3744_v44  ;;  %1538 = vmatprep.mubr.bf16.mxu1 %v4420_v41  ;;  %v3753_v41 = vld [vmem:[%s5246_s4 + $0x268] ss:$16 sps:$4 sm:$0xff]  }
 0x130   : > { %1508 = vmatprep.subr.bf16.mxu1 %v3749_v45  ;;  %v3855_v44 = vld [vmem:[%s5247_s5 + $0x148] ss:$16 sps:$4 sm:$0xff]   ;;  %v3863_v45 = vld [vmem:[%s5247_s5 + $0x16c] ss:$16 sps:$4 sm:$0xff]  }
 0x133   : > { %1509 = vmatpush1.bf16.msra.mxu1 %v3747_v46  ;;  %v3861_v46 = vld [vmem:[%s5247_s5 + $0x168] ss:$16 sps:$4 sm:$0xff]  }
 0x134   : > { %1510 = vmatprep.subr.bf16.mxu1 %v3752_v47  ;;  %v3869_v47 = vld [vmem:[%s5247_s5 + $0x18c] ss:$16 sps:$4 sm:$0xff]  }
 0x137   : > { %1511 = vmatpush1.bf16.msra.mxu1 %v3750_v48  ;;  %v3867_v48 = vld [vmem:[%s5247_s5 + $0x188] ss:$16 sps:$4 sm:$0xff]  }
 0x138   : > { %1512 = vmatprep.subr.bf16.mxu1 %v3755_v38  ;;  %v3875_v38 = vld [vmem:[%s5247_s5 + $0x1ac] ss:$16 sps:$4 sm:$0xff]  }
 0x13b   : > { %1513 = vmatpush1.bf16.msra.mxu1 %v3753_v41  ;;  %v3873_v41 = vld [vmem:[%s5247_s5 + $0x1a8] ss:$16 sps:$4 sm:$0xff]  }
 0x13c   : > { %1514 = vmatprep.subr.bf16.mxu1 %v3758_v49  ;;  %v3881_v49 = vld [vmem:[%s5247_s5 + $0x1cc] ss:$16 sps:$4 sm:$0xff]  }
 0x13f   : > { %1515 = vmatpush1.bf16.msra.mxu1 %v3756_v50  ;;  %v3879_v50 = vld [vmem:[%s5247_s5 + $0x1c8] ss:$16 sps:$4 sm:$0xff]  }
 0x140   : > { %1516 = vmatprep.subr.bf16.mxu1 %v3761_v51  ;;  %v3887_v51 = vld [vmem:[%s5247_s5 + $0x1ec] ss:$16 sps:$4 sm:$0xff]  }
 0x143   : > { %1517 = vmatpush1.bf16.msra.mxu1 %v3759_v52  ;;  %v3885_v52 = vld [vmem:[%s5247_s5 + $0x1e8] ss:$16 sps:$4 sm:$0xff]  }
 0x144   : > { %1518 = vmatprep.subr.bf16.mxu1 %v3764_v53  ;;  %v3893_v53 = vld [vmem:[%s5247_s5 + $0x20c] ss:$16 sps:$4 sm:$0xff]  }
 0x147   : > { %1519 = vmatpush1.bf16.msra.mxu1 %v3762_v56  ;;  %v724_v56 = vrot.slane %v4819_v54, %v4410_v17 }
 0x148   : > { %1520 = vmatprep.subr.bf16.mxu1 %v3767_v57 }
 0x14b   : > { %1521 = vmatpush1.bf16.msra.mxu1 %v3765_v60 }
 0x14c   : > { %1522 = vmatprep.subr.bf16.mxu1 %v3770_v61 }
 0x14f   : > { %1523 = vmatpush1.bf16.msra.mxu1 %v3768_v0 }
 0x150   : > { %1524 = vmatprep.subr.bf16.mxu1 %v3773_v1 }
 0x153   : > { %1525 = vmatpush1.bf16.msra.mxu1 %v3771_v3 }
 0x154   : > { %1526 = vmatprep.subr.bf16.mxu1 %v3776_v4 }
 0x157   : > { %1527 = vmatpush1.bf16.msra.mxu1 %v3774_v5 }
 0x158   : > { %1528 = vmatprep.subr.bf16.mxu1 %v3779_v6 }
 0x15b   : > { %1529 = vmatpush1.bf16.msra.mxu1 %v3777_v7 }
 0x15c   : > { %1530 = vmatprep.subr.bf16.mxu1 %v3782_v8 }
 0x15f   : > { %1531 = vmatpush1.bf16.msra.mxu1 %v3780_v9 }
 0x160   : > { %1532 = vmatprep.subr.bf16.mxu1 %v3785_v10 }
 0x163   : > { %1533 = vmatpush1.bf16.msra.mxu1 %v3783_v11 }
 0x164   : > { %1534 = vmatprep.subr.bf16.mxu1 %v3788_v16 }
 0x167   : > { %1535 = vmatpush1.bf16.msra.mxu1 %v3786_v18 }
 0x168   : > { %1536 = vmatprep.subr.bf16.mxu1 %v3791_v19 }
 0x16b   : > { %1537 = vmatpush1.bf16.msra.mxu1 %v3789_v20  ;;  %v3888_v20 = vld [vmem:[%s5247_s5 + $0x200] ss:$16 sps:$4 sm:$0xff]  }
 0x16c   : > { %2437 = vmatprep.subr.bf16.mxu1 %v3797_v21  ;;  %v3891_v21 = vld [vmem:[%s5247_s5 + $0x208] ss:$16 sps:$4 sm:$0xff]  }
 0x16e   : > { %1539 = vmatmul.mubr.bf16.vlgmr.msra.gmra.mrb[8].mxu1 %v4418_v39  ;;  %v3815_v39 = vld [vmem:[%s5247_s5 + $0x6c] ss:$16 sps:$4 sm:$0xff]  }
 0x16f   : > { %2438 = vmatpush1.bf16.msra.mxu1 %v3795_v22  ;;  %v3896_v22 = vld [vmem:[%s5247_s5 + $0x224] ss:$16 sps:$4 sm:$0xff]  }
 0x170   : > { %2439 = vmatprep.subr.bf16.mxu1 %v3803_v23  ;;  %v3899_v23 = vld [vmem:[%s5247_s5 + $0x22c] ss:$16 sps:$4 sm:$0xff]  }
 0x173   : > { %2440 = vmatpush1.bf16.msra.mxu1 %v3801_v24  ;;  %v3894_v24 = vld [vmem:[%s5247_s5 + $0x220] ss:$16 sps:$4 sm:$0xff]  }
 0x174   : > { %2441 = vmatprep.subr.bf16.mxu1 %v3809_v25  ;;  %v3897_v25 = vld [vmem:[%s5247_s5 + $0x228] ss:$16 sps:$4 sm:$0xff]  }
 0x177   : > { %2442 = vmatpush1.bf16.msra.mxu1 %v3807_v26  ;;  %v3902_v26 = vld [vmem:[%s5247_s5 + $0x244] ss:$16 sps:$4 sm:$0xff]  }
 0x178   : > { %2443 = vmatprep.subr.bf16.mxu1 %v3815_v39  ;;  %v3905_v39 = vld [vmem:[%s5247_s5 + $0x24c] ss:$16 sps:$4 sm:$0xff]  }
 0x17b   : > { %2444 = vmatpush1.bf16.msra.mxu1 %v3813_v27  ;;  %v3900_v27 = vld [vmem:[%s5247_s5 + $0x240] ss:$16 sps:$4 sm:$0xff]  }
 0x17c   : > { %2445 = vmatprep.subr.bf16.mxu1 %v3821_v28  ;;  %v3903_v28 = vld [vmem:[%s5247_s5 + $0x248] ss:$16 sps:$4 sm:$0xff]  }
 0x17f   : > { %2446 = vmatpush1.bf16.msra.mxu1 %v3819_v29  ;;  %v3908_v29 = vld [vmem:[%s5247_s5 + $0x264] ss:$16 sps:$4 sm:$0xff]  }
 0x180   : > { %2447 = vmatprep.subr.bf16.mxu1 %v3827_v30  ;;  %v3911_v30 = vld [vmem:[%s5247_s5 + $0x26c] ss:$16 sps:$4 sm:$0xff]  }
 0x183   : > { %2448 = vmatpush1.bf16.msra.mxu1 %v3825_v31  ;;  %v3906_v31 = vld [vmem:[%s5247_s5 + $0x260] ss:$16 sps:$4 sm:$0xff]  }
 0x184   : > { %2449 = vmatprep.subr.bf16.mxu1 %v3833_v32  ;;  %v3909_v32 = vld [vmem:[%s5247_s5 + $0x268] ss:$16 sps:$4 sm:$0xff]  }
 0x187   : > { %2450 = vmatpush1.bf16.msra.mxu1 %v3831_v33  ;;  %v3914_v33 = vld [vmem:[%s5247_s5 + $0x284] ss:$16 sps:$4 sm:$0xff]  }
 0x188   : > { %2451 = vmatprep.subr.bf16.mxu1 %v3839_v34  ;;  %v3917_v34 = vld [vmem:[%s5247_s5 + $0x28c] ss:$16 sps:$4 sm:$0xff]  }
 0x18b   : > { %2452 = vmatpush1.bf16.msra.mxu1 %v3837_v35  ;;  %v3912_v35 = vld [vmem:[%s5247_s5 + $0x280] ss:$16 sps:$4 sm:$0xff]  }
 0x18c   : > { %2453 = vmatprep.subr.bf16.mxu1 %v3845_v36  ;;  %v3915_v36 = vld [vmem:[%s5247_s5 + $0x288] ss:$16 sps:$4 sm:$0xff]  }
 0x18f   : > { %2454 = vmatpush1.bf16.msra.mxu1 %v3843_v37  ;;  %v3920_v37 = vld [vmem:[%s5247_s5 + $0x2a4] ss:$16 sps:$4 sm:$0xff]  }
 0x190   : > { %2455 = vmatprep.subr.bf16.mxu1 %v3851_v40  ;;  %v3923_v40 = vld [vmem:[%s5247_s5 + $0x2ac] ss:$16 sps:$4 sm:$0xff]  }
 0x193   : > { %2456 = vmatpush1.bf16.msra.mxu1 %v3849_v42  ;;  %v3918_v42 = vld [vmem:[%s5247_s5 + $0x2a0] ss:$16 sps:$4 sm:$0xff]  }
 0x194   : > { %2457 = vmatprep.subr.bf16.mxu1 %v3857_v43  ;;  %v3921_v43 = vld [vmem:[%s5247_s5 + $0x2a8] ss:$16 sps:$4 sm:$0xff]  }
 0x197   : > { %2458 = vmatpush1.bf16.msra.mxu1 %v3855_v44  ;;  %v3926_v44 = vld [vmem:[%s5247_s5 + $0x2c4] ss:$16 sps:$4 sm:$0xff]  }
 0x198   : > { %2459 = vmatprep.subr.bf16.mxu1 %v3863_v45  ;;  %v3929_v45 = vld [vmem:[%s5247_s5 + $0x2cc] ss:$16 sps:$4 sm:$0xff]  }
 0x19b   : > { %2460 = vmatpush1.bf16.msra.mxu1 %v3861_v46  ;;  %v3924_v46 = vld [vmem:[%s5247_s5 + $0x2c0] ss:$16 sps:$4 sm:$0xff]  }
 0x19c   : > { %2461 = vmatprep.subr.bf16.mxu1 %v3869_v47  ;;  %v3927_v47 = vld [vmem:[%s5247_s5 + $0x2c8] ss:$16 sps:$4 sm:$0xff]  }
 0x19f   : > { %2462 = vmatpush1.bf16.msra.mxu1 %v3867_v48  ;;  %v3932_v48 = vld [vmem:[%s5247_s5 + $0x2e4] ss:$16 sps:$4 sm:$0xff]  }
 0x1a0   : > { %2463 = vmatprep.subr.bf16.mxu1 %v3875_v38  ;;  %v3935_v38 = vld [vmem:[%s5247_s5 + $0x2ec] ss:$16 sps:$4 sm:$0xff]  }
 0x1a3   : > { %2464 = vmatpush1.bf16.msra.mxu1 %v3873_v41  ;;  %v3930_v41 = vld [vmem:[%s5247_s5 + $0x2e0] ss:$16 sps:$4 sm:$0xff]  }
 0x1a4   : > { %2465 = vmatprep.subr.bf16.mxu1 %v3881_v49  ;;  %v3933_v49 = vld [vmem:[%s5247_s5 + $0x2e8] ss:$16 sps:$4 sm:$0xff]  }
 0x1a7   : > { %2466 = vmatpush1.bf16.msra.mxu1 %v3879_v50  ;;  %v3938_v50 = vld [vmem:[%s5247_s5 + $0x304] ss:$16 sps:$4 sm:$0xff]  }
 0x1a8   : > { %2467 = vmatprep.subr.bf16.mxu1 %v3887_v51  ;;  %v3941_v51 = vld [vmem:[%s5247_s5 + $0x30c] ss:$16 sps:$4 sm:$0xff]  }
 0x1ab   : > { %2468 = vmatpush1.bf16.msra.mxu1 %v3885_v52  ;;  %v3936_v52 = vld [vmem:[%s5247_s5 + $0x300] ss:$16 sps:$4 sm:$0xff]  }
 0x1ac   : > { %2480 = vmatprep.subr.bf16.mxu1 %v3893_v53  ;;  %v3939_v53 = vld [vmem:[%s5247_s5 + $0x308] ss:$16 sps:$4 sm:$0xff]  }
 0x1c1   : > { %v1411_v57 = vpop.f32.mrb[4].mxu1  ;;  %v1454_v58 = vpop.f32.mrb[4].mxu0 }
 0x1c2   : > { %v1412_v59 = vadd.f32 %v1411_v57, %v720_v55  ;;  %v1413_v60 = vpop.f32.mrb[5].mxu1  ;;  %v1456_v61 = vpop.f32.mrb[5].mxu0  ;;  %v3942_v57 = vld [vmem:[%s5247_s5 + $0x320] ss:$16 sps:$4 sm:$0xff]  }
 0x1c3   : > { %v1414_v62 = vadd.f32 %v1413_v60, %v724_v56  ;;  %v1415_v63 = vpop.f32.mrb[6].mxu1  ;;  %v1458_v0 = vpop.f32.mrb[6].mxu0  ;;  %v3953_v60 = vld [vmem:[%s5247_s5 + $0x34c] ss:$16 sps:$4 sm:$0xff]  }
 0x1c4   : > { %v1416_v1 = vadd.f32 %v1415_v63, %v720_v55  ;;  %v1455_v2 = vadd.f32 %v1454_v58, %v1412_v59  ;;  %v1417_v3 = vpop.f32.mrb[7].mxu1  ;;  %v1460_v4 = vpop.f32.mrb[7].mxu0  ;;  %v3944_v55 = vld [vmem:[%s5247_s5 + $0x324] ss:$16 sps:$4 sm:$0xff]   ;;  %v3945_v58 = vld [vmem:[%s5247_s5 + $0x328] ss:$16 sps:$4 sm:$0xff]  }
 0x1c5   : > { %v1418_v5 = vadd.f32 %v1417_v3, %v724_v56  ;;  %v1457_v6 = vadd.f32 %v1456_v61, %v1414_v62  ;;  %v3947_v56 = vld [vmem:[%s5247_s5 + $0x32c] ss:$16 sps:$4 sm:$0xff]   ;;  %v3950_v59 = vld [vmem:[%s5247_s5 + $0x344] ss:$16 sps:$4 sm:$0xff]   ;;  %v3948_v61 = vld [vmem:[%s5247_s5 + $0x340] ss:$16 sps:$4 sm:$0xff]  }
 0x1c6   : > { %v1459_v7 = vadd.f32 %v1458_v0, %v1416_v1  ;;  %v1549_v9 = vmax.f32 %v1455_v2, 0.0  ;;  %v3951_v62 = vld [vmem:[%s5247_s5 + $0x348] ss:$16 sps:$4 sm:$0xff]   ;;  %v3956_v63 = vld [vmem:[%s5247_s5 + $0x364] ss:$16 sps:$4 sm:$0xff]  }
 0x1c7   : > { %v1461_v8 = vadd.f32 %v1460_v4, %v1418_v5  ;;  %v1550_v11 = vmax.f32 %v1457_v6, 0.0  ;;  %v3959_v0 = vld [vmem:[%s5247_s5 + $0x36c] ss:$16 sps:$4 sm:$0xff]   ;;  %v3954_v1 = vld [vmem:[%s5247_s5 + $0x360] ss:$16 sps:$4 sm:$0xff]  }
 0x1c8   : > { %v1553_v10 = vmax.f32 %v1459_v7, 0.0  ;;  %v3957_v2 = vld [vmem:[%s5247_s5 + $0x368] ss:$16 sps:$4 sm:$0xff]   ;;  %v3962_v3 = vld [vmem:[%s5247_s5 + $0x384] ss:$16 sps:$4 sm:$0xff]  }
 0x1c9   : > { %v1554_v16 = vmax.f32 %v1461_v8, 0.0  ;;  %v3965_v4 = vld [vmem:[%s5247_s5 + $0x38c] ss:$16 sps:$4 sm:$0xff]   ;;  %v3960_v5 = vld [vmem:[%s5247_s5 + $0x380] ss:$16 sps:$4 sm:$0xff]  }
 0x1ca   : > { %v1557_v18 = vpack.c.bf16 %v1553_v10, %v1549_v9  ;;  %v3963_v6 = vld [vmem:[%s5247_s5 + $0x388] ss:$16 sps:$4 sm:$0xff]   ;;  %v3968_v7 = vld [vmem:[%s5247_s5 + $0x3a4] ss:$16 sps:$4 sm:$0xff]   ;;  %v3971_v8 = vld [vmem:[%s5247_s5 + $0x3ac] ss:$16 sps:$4 sm:$0xff]  }
 0x1cb   : > { %v1558_v19 = vpack.c.bf16 %v1554_v16, %v1550_v11  ;;  %v3966_v9 = vld [vmem:[%s5247_s5 + $0x3a0] ss:$16 sps:$4 sm:$0xff]   ;;  %v3969_v10 = vld [vmem:[%s5247_s5 + $0x3a8] ss:$16 sps:$4 sm:$0xff]   ;;  %v3974_v11 = vld [vmem:[%s5247_s5 + $0x3c4] ss:$16 sps:$4 sm:$0xff]  }
 0x1cc   : > { %v3977_v16 = vld [vmem:[%s5247_s5 + $0x3cc] ss:$16 sps:$4 sm:$0xff]  }
 0x1cd   : > { %2383 = vmatprep.mubr.bf16.mxu0 %v1558_v19  ;;  %2469 = vmatprep.mubr.bf16.mxu1 %v1558_v19  ;;  %v3975_v19 = vld [vmem:[%s5247_s5 + $0x3c8] ss:$16 sps:$4 sm:$0xff]  }
 0x1ce   : > { %2384 = vmatmul.mubr.bf16.vlgmr.msra.gmra.mrb[8].mxu0 %v1557_v18  ;;  %2470 = vmatmul.mubr.bf16.vlgmr.msra.gmra.mrb[12].mxu1 %v1557_v18  ;;  %v3972_v18 = vld [vmem:[%s5247_s5 + $0x3c0] ss:$16 sps:$4 sm:$0xff]  }
 0x1cf   : > { %2395 = vmatpush1.bf16.msra.mxu0 %v3888_v20  ;;  %2481 = vmatpush1.bf16.msra.mxu1 %v3891_v21  ;;  %v3980_v20 = vld [vmem:[%s5247_s5 + $0x3e4] ss:$16 sps:$4 sm:$0xff]   ;;  %v3983_v21 = vld [vmem:[%s5247_s5 + $0x3ec] ss:$16 sps:$4 sm:$0xff]  }
 0x1d0   : > { %2396 = vmatprep.subr.bf16.mxu0 %v3896_v22  ;;  %2482 = vmatprep.subr.bf16.mxu1 %v3899_v23  ;;  %v3978_v22 = vld [vmem:[%s5247_s5 + $0x3e0] ss:$16 sps:$4 sm:$0xff]   ;;  %v3981_v23 = vld [vmem:[%s5247_s5 + $0x3e8] ss:$16 sps:$4 sm:$0xff]  }
 0x1d3   : > { %2397 = vmatpush1.bf16.msra.mxu0 %v3894_v24  ;;  %2483 = vmatpush1.bf16.msra.mxu1 %v3897_v25  ;;  %v3986_v24 = vld [vmem:[%s5249_s7 + $0x4] ss:$8 sps:$4 sm:$0xff]   ;;  %v728_v25 = vrot.slane %v4819_v54, %v4398_v13 }
 0x1d4   : > { %2398 = vmatprep.subr.bf16.mxu0 %v3902_v26  ;;  %2484 = vmatprep.subr.bf16.mxu1 %v3905_v39  ;;  %v732_v26 = vrot.slane %v4819_v54, %v4401_v14  ;;  %v3989_v54 = vld [vmem:[%s5249_s7 + $0x14] ss:$8 sps:$4 sm:$0xff]  }
 0x1d7   : > { %2399 = vmatpush1.bf16.msra.mxu0 %v3900_v27  ;;  %2485 = vmatpush1.bf16.msra.mxu1 %v3903_v28 }
 0x1d8   : > { %2400 = vmatprep.subr.bf16.mxu0 %v3908_v29  ;;  %2486 = vmatprep.subr.bf16.mxu1 %v3911_v30 }
 0x1db   : > { %2401 = vmatpush1.bf16.msra.mxu0 %v3906_v31  ;;  %2487 = vmatpush1.bf16.msra.mxu1 %v3909_v32 }
 0x1dc   : > { %2402 = vmatprep.subr.bf16.mxu0 %v3914_v33  ;;  %2488 = vmatprep.subr.bf16.mxu1 %v3917_v34 }
 0x1df   : > { %2403 = vmatpush1.bf16.msra.mxu0 %v3912_v35  ;;  %2489 = vmatpush1.bf16.msra.mxu1 %v3915_v36 }
 0x1e0   : > { %2404 = vmatprep.subr.bf16.mxu0 %v3920_v37  ;;  %2490 = vmatprep.subr.bf16.mxu1 %v3923_v40 }
 0x1e3   : > { %2405 = vmatpush1.bf16.msra.mxu0 %v3918_v42  ;;  %2491 = vmatpush1.bf16.msra.mxu1 %v3921_v43  ;;  %v3984_v43 = vld [vmem:[%s5249_s7] ss:$8 sps:$4 sm:$0xff]  }
 0x1e4   : > { %2406 = vmatprep.subr.bf16.mxu0 %v3926_v44  ;;  %2492 = vmatprep.subr.bf16.mxu1 %v3929_v45  ;;  %v3987_v44 = vld [vmem:[%s5249_s7 + $0x10] ss:$8 sps:$4 sm:$0xff]   ;;  %v3992_v45 = vld [vmem:[%s5249_s7 + $0x24] ss:$8 sps:$4 sm:$0xff]  }
 0x1e7   : > { %2407 = vmatpush1.bf16.msra.mxu0 %v3924_v46  ;;  %2493 = vmatpush1.bf16.msra.mxu1 %v3927_v47  ;;  %v3990_v46 = vld [vmem:[%s5249_s7 + $0x20] ss:$8 sps:$4 sm:$0xff]   ;;  %v3995_v47 = vld [vmem:[%s5249_s7 + $0x34] ss:$8 sps:$4 sm:$0xff]  }
 0x1e8   : > { %2408 = vmatprep.subr.bf16.mxu0 %v3932_v48  ;;  %2494 = vmatprep.subr.bf16.mxu1 %v3935_v38  ;;  %v3993_v48 = vld [vmem:[%s5249_s7 + $0x30] ss:$8 sps:$4 sm:$0xff]   ;;  %v3998_v38 = vld [vmem:[%s5249_s7 + $0x44] ss:$8 sps:$4 sm:$0xff]  }
 0x1eb   : > { %2409 = vmatpush1.bf16.msra.mxu0 %v3930_v41  ;;  %2495 = vmatpush1.bf16.msra.mxu1 %v3933_v49  ;;  %v3996_v41 = vld [vmem:[%s5249_s7 + $0x40] ss:$8 sps:$4 sm:$0xff]   ;;  %v4001_v49 = vld [vmem:[%s5249_s7 + $0x54] ss:$8 sps:$4 sm:$0xff]  }
 0x1ec   : > { %2410 = vmatprep.subr.bf16.mxu0 %v3938_v50  ;;  %2496 = vmatprep.subr.bf16.mxu1 %v3941_v51  ;;  %v3999_v50 = vld [vmem:[%s5249_s7 + $0x50] ss:$8 sps:$4 sm:$0xff]   ;;  %v4004_v51 = vld [vmem:[%s5249_s7 + $0x64] ss:$8 sps:$4 sm:$0xff]  }
 0x1ef   : > { %2411 = vmatpush1.bf16.msra.mxu0 %v3936_v52  ;;  %2497 = vmatpush1.bf16.msra.mxu1 %v3939_v53  ;;  %v4002_v52 = vld [vmem:[%s5249_s7 + $0x60] ss:$8 sps:$4 sm:$0xff]   ;;  %v4007_v53 = vld [vmem:[%s5249_s7 + $0x74] ss:$8 sps:$4 sm:$0xff]  }
 0x1f0   : > { %2412 = vmatprep.subr.bf16.mxu0 %v3944_v55  ;;  %2498 = vmatprep.subr.bf16.mxu1 %v3947_v56  ;;  %v4005_v55 = vld [vmem:[%s5249_s7 + $0x70] ss:$8 sps:$4 sm:$0xff]   ;;  %v4010_v56 = vld [vmem:[%s5249_s7 + $0x84] ss:$8 sps:$4 sm:$0xff]  }
 0x1f3   : > { %2413 = vmatpush1.bf16.msra.mxu0 %v3942_v57  ;;  %2499 = vmatpush1.bf16.msra.mxu1 %v3945_v58  ;;  %v4008_v57 = vld [vmem:[%s5249_s7 + $0x80] ss:$8 sps:$4 sm:$0xff]   ;;  %v4013_v58 = vld [vmem:[%s5249_s7 + $0x94] ss:$8 sps:$4 sm:$0xff]  }
 0x1f4   : > { %2414 = vmatprep.subr.bf16.mxu0 %v3950_v59  ;;  %2500 = vmatprep.subr.bf16.mxu1 %v3953_v60  ;;  %v4011_v59 = vld [vmem:[%s5249_s7 + $0x90] ss:$8 sps:$4 sm:$0xff]   ;;  %v4016_v60 = vld [vmem:[%s5249_s7 + $0xa4] ss:$8 sps:$4 sm:$0xff]  }
 0x1f7   : > { %2415 = vmatpush1.bf16.msra.mxu0 %v3948_v61  ;;  %2501 = vmatpush1.bf16.msra.mxu1 %v3951_v62  ;;  %v4014_v61 = vld [vmem:[%s5249_s7 + $0xa0] ss:$8 sps:$4 sm:$0xff]   ;;  %v4019_v62 = vld [vmem:[%s5249_s7 + $0xb4] ss:$8 sps:$4 sm:$0xff]  }
 0x1f8   : > { %2416 = vmatprep.subr.bf16.mxu0 %v3956_v63  ;;  %2502 = vmatprep.subr.bf16.mxu1 %v3959_v0  ;;  %v4017_v63 = vld [vmem:[%s5249_s7 + $0xb0] ss:$8 sps:$4 sm:$0xff]   ;;  %v4022_v0 = vld [vmem:[%s5249_s7 + $0xc4] ss:$8 sps:$4 sm:$0xff]  }
 0x1fb   : > { %2417 = vmatpush1.bf16.msra.mxu0 %v3954_v1  ;;  %2503 = vmatpush1.bf16.msra.mxu1 %v3957_v2  ;;  %v4020_v1 = vld [vmem:[%s5249_s7 + $0xc0] ss:$8 sps:$4 sm:$0xff]   ;;  %v4025_v2 = vld [vmem:[%s5249_s7 + $0xd4] ss:$8 sps:$4 sm:$0xff]  }
 0x1fc   : > { %2418 = vmatprep.subr.bf16.mxu0 %v3962_v3  ;;  %2504 = vmatprep.subr.bf16.mxu1 %v3965_v4  ;;  %v4023_v3 = vld [vmem:[%s5249_s7 + $0xd0] ss:$8 sps:$4 sm:$0xff]   ;;  %v4028_v4 = vld [vmem:[%s5249_s7 + $0xe4] ss:$8 sps:$4 sm:$0xff]  }
 0x1ff   : > { %2419 = vmatpush1.bf16.msra.mxu0 %v3960_v5  ;;  %2505 = vmatpush1.bf16.msra.mxu1 %v3963_v6  ;;  %v4026_v5 = vld [vmem:[%s5249_s7 + $0xe0] ss:$8 sps:$4 sm:$0xff]   ;;  %v4031_v6 = vld [vmem:[%s5249_s7 + $0xf4] ss:$8 sps:$4 sm:$0xff]  }
 0x200   : > { %2420 = vmatprep.subr.bf16.mxu0 %v3968_v7  ;;  %2506 = vmatprep.subr.bf16.mxu1 %v3971_v8  ;;  %v4029_v7 = vld [vmem:[%s5249_s7 + $0xf0] ss:$8 sps:$4 sm:$0xff]   ;;  %v4034_v8 = vld [vmem:[%s5249_s7 + $0x104] ss:$8 sps:$4 sm:$0xff]  }
 0x203   : > { %2421 = vmatpush1.bf16.msra.mxu0 %v3966_v9  ;;  %2507 = vmatpush1.bf16.msra.mxu1 %v3969_v10  ;;  %v1689_v9 = vld [vmem:[%s5248_s6] sm:$0xf] }
 0x204   : > { %2422 = vmatprep.subr.bf16.mxu0 %v3974_v11  ;;  %2508 = vmatprep.subr.bf16.mxu1 %v3977_v16  ;;  %v1694_v10 = vrot.slane %v1689_v9, %v4404_v15  ;;  %v1702_v11 = vrot.slane %v1689_v9, %v4398_v13  ;;  %v1698_v16 = vrot.slane %v1689_v9, %v4410_v17 }
 0x207   : > { %2423 = vmatpush1.bf16.msra.mxu0 %v3972_v18  ;;  %2509 = vmatpush1.bf16.msra.mxu1 %v3975_v19  ;;  %v1706_v18 = vrot.slane %v1689_v9, %v4401_v14  ;;  %v4074_v9 = vld [vmem:[%s5249_s7 + $0x1e0] ss:$8 sps:$4 sm:$0xff]  }
 0x208   : > { %2424 = vmatprep.subr.bf16.mxu0 %v3980_v20  ;;  %2510 = vmatprep.subr.bf16.mxu1 %v3983_v21 }
 0x20b   : > { %2425 = vmatpush1.bf16.msra.mxu0 %v3978_v22  ;;  %2511 = vmatpush1.bf16.msra.mxu1 %v3981_v23 }
 0x20c   : > { %2931 = vmatprep.subr.bf16.mxu0 %v3986_v24 }
 0x241   : > { %v1540_v39 = vpop.f32.mrb[8].mxu1 }
 0x242   : > { %v3536_v27 = vadd.f32 %v1540_v39, %v728_v25  ;;  %v1542_v28 = vpop.f32.mrb[9].mxu1 }
 0x243   : > { %v3537_v29 = vadd.f32 %v1542_v28, %v732_v26  ;;  %v1544_v30 = vpop.f32.mrb[10].mxu1 }
 0x244   : > { %v3538_v31 = vadd.f32 %v1544_v30, %v728_v25  ;;  %v1546_v32 = vpop.f32.mrb[11].mxu1  ;;  %v1551_v34 = vmax.f32 %v3536_v27, 0.0 }
 0x245   : > { %v3539_v33 = vadd.f32 %v1546_v32, %v732_v26  ;;  %v1552_v36 = vmax.f32 %v3537_v29, 0.0 }
 0x246   : > { %v1555_v35 = vmax.f32 %v3538_v31, 0.0 }
 0x247   : > { %v1556_v37 = vmax.f32 %v3539_v33, 0.0 }
 0x248   : > { %v1559_v40 = vpack.c.bf16 %v1555_v35, %v1551_v34 }
 0x249   : > { %v1560_v42 = vpack.c.bf16 %v1556_v37, %v1552_v36 }
 0x24b   : > { %2426 = vmatprep.mubr.bf16.mxu0 %v1560_v42  ;;  %2512 = vmatprep.mubr.bf16.mxu1 %v1560_v42 }
 0x24c   : > { %2427 = vmatmul.mubr.bf16.vlgmr.msra.gmra.mrb[8].mxu0 %v1559_v40  ;;  %2513 = vmatmul.mubr.bf16.vlgmr.msra.gmra.mrb[12].mxu1 %v1559_v40 }
 0x24d   : > { %2932 = vmatpush1.bf16.msra.mxu0 %v3984_v43 }
 0x24e   : > { %2933 = vmatprep.subr.bf16.mxu0 %v3989_v54 }
 0x251   : > { %2934 = vmatpush1.bf16.msra.mxu0 %v3987_v44 }
 0x252   : > { %2935 = vmatprep.subr.bf16.mxu0 %v3992_v45 }
 0x255   : > { %2936 = vmatpush1.bf16.msra.mxu0 %v3990_v46  ;;  %v4032_v46 = vld [vmem:[%s5249_s7 + $0x100] ss:$8 sps:$4 sm:$0xff]  }
 0x256   : > { %2937 = vmatprep.subr.bf16.mxu0 %v3995_v47  ;;  %v4037_v47 = vld [vmem:[%s5249_s7 + $0x114] ss:$8 sps:$4 sm:$0xff]  }
 0x259   : > { %2938 = vmatpush1.bf16.msra.mxu0 %v3993_v48  ;;  %v4035_v48 = vld [vmem:[%s5249_s7 + $0x110] ss:$8 sps:$4 sm:$0xff]  }
 0x25a   : > { %2939 = vmatprep.subr.bf16.mxu0 %v3998_v38  ;;  %v4040_v38 = vld [vmem:[%s5249_s7 + $0x124] ss:$8 sps:$4 sm:$0xff]  }
 0x25d   : > { %2940 = vmatpush1.bf16.msra.mxu0 %v3996_v41  ;;  %v4038_v41 = vld [vmem:[%s5249_s7 + $0x120] ss:$8 sps:$4 sm:$0xff]  }
 0x25e   : > { %2941 = vmatprep.subr.bf16.mxu0 %v4001_v49  ;;  %v4043_v49 = vld [vmem:[%s5249_s7 + $0x134] ss:$8 sps:$4 sm:$0xff]  }
 0x261   : > { %2942 = vmatpush1.bf16.msra.mxu0 %v3999_v50  ;;  %v4041_v50 = vld [vmem:[%s5249_s7 + $0x130] ss:$8 sps:$4 sm:$0xff]  }
 0x262   : > { %2943 = vmatprep.subr.bf16.mxu0 %v4004_v51  ;;  %v4046_v51 = vld [vmem:[%s5249_s7 + $0x144] ss:$8 sps:$4 sm:$0xff]  }
 0x265   : > { %2944 = vmatpush1.bf16.msra.mxu0 %v4002_v52  ;;  %v4044_v52 = vld [vmem:[%s5249_s7 + $0x140] ss:$8 sps:$4 sm:$0xff]  }
 0x266   : > { %2945 = vmatprep.subr.bf16.mxu0 %v4007_v53  ;;  %v4049_v53 = vld [vmem:[%s5249_s7 + $0x154] ss:$8 sps:$4 sm:$0xff]  }
 0x269   : > { %2946 = vmatpush1.bf16.msra.mxu0 %v4005_v55  ;;  %v4047_v55 = vld [vmem:[%s5249_s7 + $0x150] ss:$8 sps:$4 sm:$0xff]  }
 0x26a   : > { %2947 = vmatprep.subr.bf16.mxu0 %v4010_v56  ;;  %v4052_v56 = vld [vmem:[%s5249_s7 + $0x164] ss:$8 sps:$4 sm:$0xff]  }
 0x26d   : > { %2948 = vmatpush1.bf16.msra.mxu0 %v4008_v57  ;;  %v4050_v57 = vld [vmem:[%s5249_s7 + $0x160] ss:$8 sps:$4 sm:$0xff]  }
 0x26e   : > { %2949 = vmatprep.subr.bf16.mxu0 %v4013_v58  ;;  %v4055_v58 = vld [vmem:[%s5249_s7 + $0x174] ss:$8 sps:$4 sm:$0xff]  }
 0x271   : > { %2950 = vmatpush1.bf16.msra.mxu0 %v4011_v59  ;;  %v4053_v59 = vld [vmem:[%s5249_s7 + $0x170] ss:$8 sps:$4 sm:$0xff]  }
 0x272   : > { %2951 = vmatprep.subr.bf16.mxu0 %v4016_v60  ;;  %v4058_v60 = vld [vmem:[%s5249_s7 + $0x184] ss:$8 sps:$4 sm:$0xff]  }
 0x275   : > { %2952 = vmatpush1.bf16.msra.mxu0 %v4014_v61  ;;  %v4056_v61 = vld [vmem:[%s5249_s7 + $0x180] ss:$8 sps:$4 sm:$0xff]  }
 0x276   : > { %2953 = vmatprep.subr.bf16.mxu0 %v4019_v62  ;;  %v4061_v62 = vld [vmem:[%s5249_s7 + $0x194] ss:$8 sps:$4 sm:$0xff]  }
 0x279   : > { %2954 = vmatpush1.bf16.msra.mxu0 %v4017_v63  ;;  %v4059_v63 = vld [vmem:[%s5249_s7 + $0x190] ss:$8 sps:$4 sm:$0xff]  }
 0x27a   : > { %2955 = vmatprep.subr.bf16.mxu0 %v4022_v0  ;;  %v4064_v0 = vld [vmem:[%s5249_s7 + $0x1a4] ss:$8 sps:$4 sm:$0xff]  }
 0x27d   : > { %2956 = vmatpush1.bf16.msra.mxu0 %v4020_v1  ;;  %v4062_v1 = vld [vmem:[%s5249_s7 + $0x1a0] ss:$8 sps:$4 sm:$0xff]  }
 0x27e   : > { %2957 = vmatprep.subr.bf16.mxu0 %v4025_v2  ;;  %v4067_v2 = vld [vmem:[%s5249_s7 + $0x1b4] ss:$8 sps:$4 sm:$0xff]  }
 0x281   : > { %2958 = vmatpush1.bf16.msra.mxu0 %v4023_v3  ;;  %v4065_v3 = vld [vmem:[%s5249_s7 + $0x1b0] ss:$8 sps:$4 sm:$0xff]  }
 0x282   : > { %2959 = vmatprep.subr.bf16.mxu0 %v4028_v4  ;;  %v4070_v4 = vld [vmem:[%s5249_s7 + $0x1c4] ss:$8 sps:$4 sm:$0xff]  }
 0x285   : > { %2960 = vmatpush1.bf16.msra.mxu0 %v4026_v5  ;;  %v4068_v5 = vld [vmem:[%s5249_s7 + $0x1c0] ss:$8 sps:$4 sm:$0xff]  }
 0x286   : > { %2961 = vmatprep.subr.bf16.mxu0 %v4031_v6  ;;  %v4073_v6 = vld [vmem:[%s5249_s7 + $0x1d4] ss:$8 sps:$4 sm:$0xff]  }
 0x289   : > { %2962 = vmatpush1.bf16.msra.mxu0 %v4029_v7  ;;  %v4071_v7 = vld [vmem:[%s5249_s7 + $0x1d0] ss:$8 sps:$4 sm:$0xff]  }
 0x28a   : > { %2974 = vmatprep.subr.bf16.mxu0 %v4034_v8  ;;  %v4076_v8 = vld [vmem:[%s5249_s7 + $0x1e4] ss:$8 sps:$4 sm:$0xff]  }
 0x31f   : > { %v2428_v19 = vpop.f32.mrb[8].mxu0  ;;  %v2514_v20 = vpop.f32.mrb[12].mxu1 }
 0x320   : > { %v3540_v21 = vadd.f32 %v2428_v19, %v1694_v10  ;;  %v3544_v22 = vadd.f32 %v2514_v20, %v1702_v11  ;;  %v2430_v23 = vpop.f32.mrb[9].mxu0  ;;  %v2516_v24 = vpop.f32.mrb[13].mxu1  ;;  %v3524_v19 = vld.sshfl [vmem:[%s5251_s9] sm:$0x11 pattern:$0x75316420] }
 0x321   : > { %v3541_v25 = vadd.f32 %v2430_v23, %v1698_v16  ;;  %v3545_v26 = vadd.f32 %v2516_v24, %v1706_v18  ;;  %v2432_v39 = vpop.f32.mrb[10].mxu0  ;;  %v2518_v27 = vpop.f32.mrb[14].mxu1 }
 0x322   : > { %v3542_v28 = vadd.f32 %v2432_v39, %v1694_v10  ;;  %v3546_v29 = vadd.f32 %v2518_v27, %v1702_v11  ;;  %v2434_v30 = vpop.f32.mrb[11].mxu0  ;;  %v2520_v31 = vpop.f32.mrb[15].mxu1  ;;  %v2523_v33 = vmax.f32 %v3540_v21, 0.0  ;;  %v2525_v34 = vmax.f32 %v3544_v22, 0.0  ;;  %v4079_v10 = vld [vmem:[%s5249_s7 + $0x1f4] ss:$8 sps:$4 sm:$0xff]  }
 0x323   : > { %v3543_v32 = vadd.f32 %v2434_v30, %v1698_v16  ;;  %v3547_v13 = vadd.f32 %v2520_v31, %v1706_v18  ;;  %v2524_v36 = vmax.f32 %v3541_v25, 0.0  ;;  %v2526_v37 = vmax.f32 %v3545_v26, 0.0  ;;  %v4077_v11 = vld [vmem:[%s5249_s7 + $0x1f0] ss:$8 sps:$4 sm:$0xff]   ;;  %v3024_v25 = vld [vmem:[%s5252_s10] sm:$0x3] }
 0x324   : > { %v2527_v35 = vmax.f32 %v3542_v28, 0.0  ;;  %v2529_v14 = vmax.f32 %v3546_v29, 0.0  ;;  %v4105_v16 = vmov 1966171168   ;;  %v3038_v21 = vcombine.high %v3524_v19, %v3524_v19  ;;  %3027 = vperm.xlu0 %3594, %v3024_v25   ;;  %v2599_v26 = vld [vmem:[%s5250_s8] sm:$0x3] }
 0x325   : > { %v2528_v40 = vmax.f32 %v3543_v32, 0.0  ;;  %v2530_v42 = vmax.f32 %v3547_v13, 0.0  ;;  %v3040_v18 = vunpack.c.l.s4 %v4105_v16  ;;  %v2604_v39 = vrot.slane %v2599_v26, %v4404_v15 }
 0x326   : > { %v2531_v43 = vpack.c.bf16 %v2527_v35, %v2523_v33  ;;  %v5121_v54 = vpack.c.bf16 %v2529_v14, %v2525_v34  ;;  %v2608_v27 = vrot.slane %v2599_v26, %v4410_v17 }
 0x327   : > { %v2532_v44 = vpack.c.bf16 %v2528_v40, %v2524_v36  ;;  %v2534_v45 = vpack.c.bf16 %v2530_v42, %v2526_v37  ;;  %v3041_v20 = vunpack.c.0.s8 %v3040_v18 }
 0x329   : > { %2963 = vmatprep.mubr.bf16.mxu0 %v2532_v44  ;;  %v3044_v22 = vsub.s32 %v3041_v20, %v4395_v12 }
 0x32a   : > { %2964 = vmatmul.mubr.bf16.vlgmr.msra.gmra.mrb[12].mxu0 %v2531_v43 }
 0x32b   : > { %2975 = vmatpush1.bf16.msra.mxu0 %v4032_v46  ;;  %3006 = vmatprep.mubr.bf16.mxu0 %v2534_v45  ;;  %v3052_v23 = vrot.slane %v3038_v21, %v3044_v22  ;;  %v3045_v24 = vrot.slane %v3524_v19, %v3044_v22 }
 0x32c   : > { %2976 = vmatprep.subr.bf16.mxu0 %v4037_v47 }
 0x32d   : > { %3087 = vmatprep.mubr.bf16.mxu1 %v3052_v23 }
 0x32f   : > { %2977 = vmatpush1.bf16.msra.mxu0 %v4035_v48 }
 0x330   : > { %2978 = vmatprep.subr.bf16.mxu0 %v4040_v38 }
 0x333   : > { %2979 = vmatpush1.bf16.msra.mxu0 %v4038_v41 }
 0x334   : > { %2980 = vmatprep.subr.bf16.mxu0 %v4043_v49 }
 0x337   : > { %2981 = vmatpush1.bf16.msra.mxu0 %v4041_v50 }
 0x338   : > { %2982 = vmatprep.subr.bf16.mxu0 %v4046_v51 }
 0x33b   : > { %2983 = vmatpush1.bf16.msra.mxu0 %v4044_v52 }
 0x33c   : > { %2984 = vmatprep.subr.bf16.mxu0 %v4049_v53 }
 0x33f   : > { %2985 = vmatpush1.bf16.msra.mxu0 %v4047_v55 }
 0x340   : > { %2986 = vmatprep.subr.bf16.mxu0 %v4052_v56 }
 0x343   : > { %2987 = vmatpush1.bf16.msra.mxu0 %v4050_v57 }
 0x344   : > { %2988 = vmatprep.subr.bf16.mxu0 %v4055_v58 }
 0x347   : > { %2989 = vmatpush1.bf16.msra.mxu0 %v4053_v59 }
 0x348   : > { %2990 = vmatprep.subr.bf16.mxu0 %v4058_v60 }
 0x34b   : > { %2991 = vmatpush1.bf16.msra.mxu0 %v4056_v61 }
 0x34c   : > { %2992 = vmatprep.subr.bf16.mxu0 %v4061_v62 }
 0x34f   : > { %2993 = vmatpush1.bf16.msra.mxu0 %v4059_v63 }
 0x350   : > { %2994 = vmatprep.subr.bf16.mxu0 %v4064_v0 }
 0x353   : > { %2995 = vmatpush1.bf16.msra.mxu0 %v4062_v1 }
 0x354   : > { %2996 = vmatprep.subr.bf16.mxu0 %v4067_v2 }
 0x357   : > { %2997 = vmatpush1.bf16.msra.mxu0 %v4065_v3 }
 0x358   : > { %2998 = vmatprep.subr.bf16.mxu0 %v4070_v4 }
 0x35b   : > { %2999 = vmatpush1.bf16.msra.mxu0 %v4068_v5 }
 0x35c   : > { %3000 = vmatprep.subr.bf16.mxu0 %v4073_v6 }
 0x35f   : > { %3001 = vmatpush1.bf16.msra.mxu0 %v4071_v7 }
 0x360   : > { %3002 = vmatprep.subr.bf16.mxu0 %v4076_v8 }
 0x363   : > { %3003 = vmatpush1.bf16.msra.mxu0 %v4074_v9 }
 0x364   : > { %3004 = vmatprep.subr.bf16.mxu0 %v4079_v10 }
 0x367   : > { %3005 = vmatpush1.bf16.msra.mxu0 %v4077_v11 }
 0x36a   : > { %3007 = vmatmul.mubr.bf16.vlgmr.msra.gmra.mrb[12].mxu0 %v5121_v54 }
 0x3a3   : > { %v3028_v15 = vpop.permute.xlu0 %3027 }
 0x43d   : > { %v3008_v28 = vpop.f32.mrb[12].mxu0 }
 0x43e   : > { %v3548_v29 = vadd.f32 %v3008_v28, %v2604_v39  ;;  %v3010_v12 = vpop.f32.mrb[13].mxu0 }
 0x43f   : > { %v3549_v30 = vadd.f32 %v3010_v12, %v2608_v27  ;;  %v3012_v31 = vpop.f32.mrb[14].mxu0 }
 0x440   : > { %v3550_v32 = vadd.f32 %v3012_v31, %v2604_v39  ;;  %v3014_v13 = vpop.f32.mrb[15].mxu0  ;;  %v3017_v34 = vmax.f32 %v3548_v29, 0.0 }
 0x441   : > { %v3551_v33 = vadd.f32 %v3014_v13, %v2608_v27  ;;  %v3018_v14 = vmax.f32 %v3549_v30, 0.0 }
 0x442   : > { %v3019_v35 = vmax.f32 %v3550_v32, 0.0 }
 0x443   : > { %v3020_v36 = vmax.f32 %v3551_v33, 0.0 }
 0x444   : > { %v3022_v37 = vpack.c.bf16 %v3019_v35, %v3017_v34 }
 0x445   : > { %v3023_v40 = vpack.c.bf16 %v3020_v36, %v3018_v14 }
 0x447   : > { %3055 = vmatprep.subr.bf16.mxu1 %v3023_v40 }
 0x448   : > { %3056 = vmatpush1.bf16.xpose.msra.mxu1 %v3022_v37 }
 0x44f   : > { %3088 = vmatmul.mubr.bf16.vlgmr.msra.gmra.mrb[16].mxu1 %v3045_v24 }
 0x522   : > { %v3089_v17 = vpop.f32.mrb[16].mxu1 }
 0x523   : > { %v3090_v42 = vadd.f32 %v3089_v17, %v3028_v15  ;;  %v3091_v43 = vpop.f32.mrb[17].mxu1 }
 0x524   : > { %v3092_v54 = vpop.f32.mrb[18].mxu1 }
 0x525   : > { %3096 = vst.msk [vmem:[%s437_s26] sm:$0x3] %vm3095_vm2, %v3090_v42  ;;  %v3093_v44 = vpop.f32.mrb[19].mxu1 }
 0x526 PF: > { %s21_s19 = sadd.s32 1, %s4102_s19   ;;  %s5254_s17 = smov %s4098_s18 }
 0x527   : > { %p18_p5 = scmp.ge.s32.totalorder %s21_s19, 6   ;;  %s5255_s18 = smov %s5257_s20 }
 0x529   :  { %20 = sbr.rel (!%p18_p5) target bundleno = 2 (0x2), region = 97 }

// kernel: cg_forward.4
= control target key start
LH: loop header
LB: loop body
LE: loop exit
PB: predicated region body
PF: predicated region fallthrough
CT: control target
= control target key end

     0   :  { %s6901_s0 = inlined_call_operand.vmem [shape: f32[4,512], index: 0, kind: input, shape index: {}]   ;;  %s6902_s1 = inlined_call_operand.vmem [shape: f32[4,4], index: 1, kind: input, shape index: {}]   ;;  %s6903_s2 = inlined_call_operand.vmem [shape: f32[512,32], index: 2, kind: input, shape index: {}]   ;;  %s6904_s3 = inlined_call_operand.vmem [shape: f32[1,32], index: 3, kind: input, shape index: {}]   ;;  %s6905_s4 = inlined_call_operand.vmem [shape: f32[32,512], index: 4, kind: input, shape index: {}]   ;;  %s6906_s5 = inlined_call_operand.vmem [shape: f32[1,512], index: 5, kind: input, shape index: {}]   ;;  %s6907_s6 = inlined_call_operand.hbm [shape: f32[512,512], index: 6, kind: input, shape index: {}]   ;;  %s6908_s7 = inlined_call_operand.hbm [shape: f32[512,512], index: 7, kind: input, shape index: {}]   ;;  %s6909_s8 = inlined_call_operand.vmem [shape: f32[1,512], index: 8, kind: input, shape index: {}]   ;;  %s6910_s9 = inlined_call_operand.hbm [shape: f32[512,512], index: 9, kind: input, shape index: {}]   ;;  %s6911_s10 = inlined_call_operand.vmem [shape: f32[1,512], index: 10, kind: input, shape index: {}]   ;;  %s6912_s11 = inlined_call_operand.vmem [shape: f32[512,256], index: 11, kind: input, shape index: {}]   ;;  %s6913_s12 = inlined_call_operand.hbm [shape: f32[1,256], index: 12, kind: input, shape index: {}]   ;;  %s6914_s13 = inlined_call_operand.vmem [shape: f32[256,7], index: 13, kind: input, shape index: {}]   ;;  %s6915_s14 = inlined_call_operand.hbm [shape: f32[1,7], index: 14, kind: input, shape index: {}]   ;;  %s6916_s15 = inlined_call_operand.hbm [shape: f32[512,512], index: 15, kind: input, shape index: {}]   ;;  %s6917_s16 = inlined_call_operand.hbm [shape: f32[512,512], index: 16, kind: input, shape index: {}]   ;;  %s6918_s17 = inlined_call_operand.vmem [shape: f32[1,512], index: 17, kind: input, shape index: {}]   ;;  %s6919_s18 = inlined_call_operand.vmem [shape: f32[4,7], index: 18, kind: output, shape index: {0}]   ;;  %s6920_s19 = inlined_call_operand.vmem [shape: f32[4,512], index: 19, kind: output, shape index: {1}]  }
   0x1   :  { %6923 = sst [smem:[#allocation17_spill]] %s6901_s0 }
   0x2   :  { %6924 = sst [smem:[#allocation18_spill]] %s6902_s1 }
   0x3   :  { %6925 = sst [smem:[#allocation19_spill]] %s6903_s2 }
   0x4   :  { %6926 = sst [smem:[#allocation20_spill]] %s6904_s3 }
   0x5   :  { %25 = vsyncpa [#allocation3], 0 }
   0x6   :  { %26 = vsyncpa [#allocation5], 0 }
   0x7   :  { %27 = vsyncpa [#allocation8], 0 }
   0x8   :  { %28 = vsyncpa [#allocation11], 0  ;;  %s5816_s0 = smov [#allocation4]   ;;  %s5817_s20 = smov [#allocation7]  }
   0x9   :  { %s58_s30 = sshll.u32 %s5816_s0, 4  ;;  %s89_s21 = sshll.u32 %s5817_s20, 4  ;;  %s59_s30 = int_to_ptr.vmem [resolvable:$true] %s58_s30  ;;  %s90_s21 = int_to_ptr.vmem [resolvable:$true] %s89_s21 }
   0xa   :  { %s5654_s2 = scalar_lea.hbm %s6908_s7, 32768 }
   0xb   :  { %p5655_p0 = scmp.ne.s32.totalorder %s6908_s7, %s5654_s2  ;;  %p5658_p1 = scmp.lt.u32.totalorder %s5654_s2, %s6908_s7 }
   0xd   :  { %p5660_p2 = pnand %p5658_p1, %p5655_p0 }
   0xf   :  { %5663 = shalt.err (!%p5660_p2)
}
  0x10   :  { %s5664_s26 = scalar_lea.vmem %s59_s30, 32768  ;;  %p5669_p4 = scmp.lt.s32.totalorder %s59_s30, %s59_s30 }
  0x11   :  { %p5665_p3 = scmp.ne.s32.totalorder %s59_s30, %s5664_s26  ;;  %p5670_p5 = scmp.lt.s32.totalorder %s5664_s26, %s5664_s26 }
  0x13   :  { %p5671_p6 = por %p5670_p5, %p5669_p4 }
  0x15   :  { %p5672_p7 = pnand %p5671_p6, %p5665_p3 }
  0x17   :  { %5675 = shalt.err (!%p5672_p7)
}
  0x18   :  { %s5818_s27 = smov 512   ;;  %s5819_s28 = smov 32  }
  0x19   :  { %64 = dma.hbm_to_vmem [thread:$0]  %s6908_s7, 32768, %s59_s30, [#allocation5], %s5818_s27, %s5818_s27, %s5819_s28  }
  0x1a   :  { %s5676_s22 = scalar_lea.hbm %s6913_s12, 32 }
  0x1b   :  { %p5677_p8 = scmp.ne.s32.totalorder %s6913_s12, %s5676_s22  ;;  %p5680_p9 = scmp.lt.u32.totalorder %s5676_s22, %s6913_s12 }
  0x1d   :  { %p5682_p10 = pnand %p5680_p9, %p5677_p8 }
  0x1f   :  { %5685 = shalt.err (!%p5682_p10)
}
  0x20   :  { %s5686_s3 = scalar_lea.vmem %s90_s21, 32  ;;  %p5691_p12 = scmp.lt.s32.totalorder %s90_s21, %s90_s21 }
  0x21   :  { %p5687_p11 = scmp.ne.s32.totalorder %s90_s21, %s5686_s3  ;;  %p5692_p13 = scmp.lt.s32.totalorder %s5686_s3, %s5686_s3 }
  0x23   :  { %p5693_p0 = por %p5692_p13, %p5691_p12 }
  0x25   :  { %p5694_p1 = pnand %p5693_p0, %p5687_p11 }
  0x27   :  { %5697 = shalt.err (!%p5694_p1)
}
  0x28   :  { %92 = dma.hbm_to_vmem [thread:$0]  %s6913_s12, 32, %s90_s21, [#allocation8]  }
  0x29   :  { %s5820_s26 = smov [#allocation10]   ;;  %s5821_s0 = smov [#allocation2]  }
  0x2a   :  { %s110_s29 = sshll.u32 %s5820_s26, 4  ;;  %s46_s20 = sshll.u32 %s5821_s0, 4  ;;  %s111_s29 = int_to_ptr.vmem [resolvable:$true] %s110_s29  ;;  %s5953_s20 = int_to_ptr.vmem [resolvable:$true] %s46_s20 }
  0x2b   :  { %s5698_s2 = scalar_lea.hbm %s6916_s15, 32768 }
  0x2c   :  { %p5699_p2 = scmp.ne.s32.totalorder %s6916_s15, %s5698_s2  ;;  %p5702_p3 = scmp.lt.u32.totalorder %s5698_s2, %s6916_s15 }
  0x2e   :  { %p5704_p4 = pnand %p5702_p3, %p5699_p2 }
  0x30   :  { %5707 = shalt.err (!%p5704_p4)
}
  0x31   :  { %s5708_s12 = scalar_lea.vmem %s111_s29, 32768  ;;  %p5713_p6 = scmp.lt.s32.totalorder %s111_s29, %s111_s29 }
  0x32   :  { %p5709_p5 = scmp.ne.s32.totalorder %s111_s29, %s5708_s12  ;;  %p5714_p7 = scmp.lt.s32.totalorder %s5708_s12, %s5708_s12 }
  0x34   :  { %p5715_p8 = por %p5714_p7, %p5713_p6 }
  0x36   :  { %p5716_p9 = pnand %p5715_p8, %p5709_p5 }
  0x38   :  { %5719 = shalt.err (!%p5716_p9)
}
  0x39   :  { %116 = dma.hbm_to_vmem [thread:$0]  %s6916_s15, 32768, %s111_s29, [#allocation11], %s5818_s27, %s5818_s27, %s5819_s28  }
  0x3a   :  { %s5720_s0 = scalar_lea.hbm %s6907_s6, 32768 }
  0x3b   :  { %p5721_p10 = scmp.ne.s32.totalorder %s6907_s6, %s5720_s0  ;;  %p5724_p11 = scmp.lt.u32.totalorder %s5720_s0, %s6907_s6 }
  0x3d   :  { %p5726_p12 = pnand %p5724_p11, %p5721_p10 }
  0x3f   :  { %5729 = shalt.err (!%p5726_p12)
}
  0x40   :  { %s5730_s24 = scalar_lea.vmem %s5953_s20, 32768  ;;  %p5735_p0 = scmp.lt.s32.totalorder %s5953_s20, %s5953_s20 }
  0x41   :  { %p5731_p13 = scmp.ne.s32.totalorder %s5953_s20, %s5730_s24  ;;  %p5736_p1 = scmp.lt.s32.totalorder %s5730_s24, %s5730_s24 }
  0x43   :  { %p5737_p2 = por %p5736_p1, %p5735_p0 }
  0x45   :  { %p5738_p3 = pnand %p5737_p2, %p5731_p13 }
  0x47   :  { %5741 = shalt.err (!%p5738_p3)
}
  0x48   :  { %52 = dma.hbm_to_vmem [thread:$0]  %s6907_s6, 32768, %s5953_s20, [#allocation3], %s5818_s27, %s5818_s27, %s5819_s28  }
  0x49   :  { %s5822_s25 = smov [#allocation6]   ;;  %s5823_s12 = smov [#allocation9]  }
  0x4a   :  { %s72_s3 = sshll.u32 %s5822_s25, 4  ;;  %s101_s21 = sshll.u32 %s5823_s12, 4  ;;  %s73_s3 = int_to_ptr.vmem [resolvable:$true] %s72_s3  ;;  %s102_s21 = int_to_ptr.vmem [resolvable:$true] %s101_s21 }
  0x4b   :  { %s5742_s26 = scalar_lea.hbm %s6910_s9, 32768 }
  0x4c   :  { %p5743_p4 = scmp.ne.s32.totalorder %s6910_s9, %s5742_s26  ;;  %p5746_p5 = scmp.lt.u32.totalorder %s5742_s26, %s6910_s9 }
  0x4e   :  { %p5748_p6 = pnand %p5746_p5, %p5743_p4 }
  0x50   :  { %5751 = shalt.err (!%p5748_p6)
}
  0x51   :  { %s5752_s6 = scalar_lea.vmem %s73_s3, 32768  ;;  %p5757_p8 = scmp.lt.s32.totalorder %s73_s3, %s73_s3 }
  0x52   :  { %p5753_p7 = scmp.ne.s32.totalorder %s73_s3, %s5752_s6  ;;  %p5758_p9 = scmp.lt.s32.totalorder %s5752_s6, %s5752_s6 }
  0x54   :  { %p5759_p10 = por %p5758_p9, %p5757_p8 }
  0x56   :  { %p5760_p11 = pnand %p5759_p10, %p5753_p7 }
  0x58   :  { %5763 = shalt.err (!%p5760_p11)
}
  0x59   :  { %78 = dma.hbm_to_vmem [thread:$0]  %s6910_s9, 32768, %s73_s3, [#allocation5], %s5818_s27, %s5818_s27, %s5819_s28  }
  0x5a   :  { %s5764_s29 = scalar_lea.hbm %s6915_s14, 16 }
  0x5b   :  { %p5765_p12 = scmp.ne.s32.totalorder %s6915_s14, %s5764_s29  ;;  %p5768_p13 = scmp.lt.u32.totalorder %s5764_s29, %s6915_s14 }
  0x5d   :  { %p5770_p0 = pnand %p5768_p13, %p5765_p12 }
  0x5f   :  { %5773 = shalt.err (!%p5770_p0)
}
  0x60   :  { %s5774_s26 = scalar_lea.vmem %s102_s21, 16  ;;  %s5778_s0 = scalar_lea.vmem %s102_s21, 32 }
  0x61   :  { %p5775_p1 = scmp.ne.s32.totalorder %s102_s21, %s5774_s26  ;;  %p5779_p2 = scmp.lt.s32.totalorder %s102_s21, %s102_s21 }
  0x62   :  { %p5780_p3 = scmp.lt.s32.totalorder %s5778_s0, %s5774_s26 }
  0x64   :  { %p5781_p4 = por %p5780_p3, %p5779_p2 }
  0x66   :  { %p5782_p5 = pnand %p5781_p4, %p5775_p1 }
  0x68   :  { %5785 = shalt.err (!%p5782_p5)
}
  0x69   :  { %104 = dma.hbm_to_vmem [thread:$0]  %s6915_s14, 16, %s102_s21, [#allocation8]  }
  0x6a   :  { %s5824_s1 = smov [#allocation12]   ;;  %s5786_s20 = scalar_lea.hbm %s6917_s16, 32768 }
  0x6b   :  { %s122_s22 = sshll.u32 %s5824_s1, 4  ;;  %p5787_p6 = scmp.ne.s32.totalorder %s6917_s16, %s5786_s20  ;;  %s123_s22 = int_to_ptr.vmem [resolvable:$true] %s122_s22 }
  0x6c   :  { %p5790_p7 = scmp.lt.u32.totalorder %s5786_s20, %s6917_s16 }
  0x6e   :  { %p5792_p8 = pnand %p5790_p7, %p5787_p6 }
  0x70   :  { %5795 = shalt.err (!%p5792_p8)
}
  0x71   :  { %s5796_s25 = scalar_lea.vmem %s123_s22, 32768  ;;  %p5801_p10 = scmp.lt.s32.totalorder %s123_s22, %s123_s22 }
  0x72   :  { %p5797_p9 = scmp.ne.s32.totalorder %s123_s22, %s5796_s25  ;;  %p5802_p11 = scmp.lt.s32.totalorder %s5796_s25, %s5796_s25 }
  0x74   :  { %p5803_p12 = por %p5802_p11, %p5801_p10 }
  0x76   :  { %p5804_p13 = pnand %p5803_p12, %p5797_p9 }
  0x78   :  { %5807 = shalt.err (!%p5804_p13)
}
  0x79   :  { %128 = dma.hbm_to_vmem [thread:$0]  %s6917_s16, 32768, %s123_s22, [#allocation11], %s5818_s27, %s5818_s27, %s5819_s28  }
  0x7a   :  { %5808 = dma.done.wait [#allocation3], 32768  }
  0x7b   :  { %5809 = vsyncadd [#allocation3], 4294934528 }
  0x7c   :  { %5810 = dma.done.wait [#allocation5], 65536  }
  0x7d   :  { %5811 = vsyncadd [#allocation5], 4294901760 }
  0x7e   :  { %5812 = dma.done.wait [#allocation8], 48  }
  0x7f   :  { %5813 = vsyncadd [#allocation8], 4294967248 }
  0x80   :  { %5814 = dma.done.wait [#allocation11], 65536  }
  0x81   :  { %5815 = vsyncadd [#allocation11], 4294901760  ;;  %s6927_s30 = sld [smem:[#allocation19_spill]]  ;;  %s6928_s29 = sld [smem:[#allocation17_spill]]  ;;  %vm410_vm0 = vcmask 261120   ;;  %vm599_vm1 = vcmask 1043456  }
  0x82   :  { %s6929_s28 = sld [smem:[#allocation20_spill]]  ;;  %s6930_s7 = sld [smem:[#allocation18_spill]]  ;;  %vm595_vm2 = vcmask 31744   ;;  %vm2821_vm3 = vcmask 52224  }
  0x87   :  { %v170_v0 = vld [vmem:[%s6927_s30 + $0x80] sm:$0xff]  ;;  %v171_v1 = vld [vmem:[%s6927_s30 + $0x88] sm:$0xff]  ;;  %v172_v5 = vld [vmem:[%s6927_s30 + $0x90] sm:$0xff] }
  0x88   :  { %v154_v2 = vld [vmem:[%s6927_s30] sm:$0xff]  ;;  %v4070_v3 = vpack.c.bf16 %v171_v1, %v170_v0  ;;  %v155_v4 = vld [vmem:[%s6927_s30 + $0x8] sm:$0xff]  ;;  %v173_v6 = vld [vmem:[%s6927_s30 + $0x98] sm:$0xff] }
  0x89   :  { %v4072_v7 = vpack.c.bf16 %v155_v4, %v154_v2  ;;  %v4074_v8 = vpack.c.bf16 %v173_v6, %v172_v5  ;;  %v156_v9 = vld [vmem:[%s6927_s30 + $0x10] sm:$0xff]  ;;  %v157_v10 = vld [vmem:[%s6927_s30 + $0x18] sm:$0xff]  ;;  %v174_v11 = vld [vmem:[%s6927_s30 + $0xa0] sm:$0xff] }
  0x8a   :  { %4071 = vmatprep.subr.bf16.mxu1 %v4070_v3  ;;  %v175_v12 = vld [vmem:[%s6927_s30 + $0xa8] sm:$0xff]  ;;  %v4076_v13 = vpack.c.bf16 %v157_v10, %v156_v9  ;;  %v158_v15 = vld [vmem:[%s6927_s30 + $0x20] sm:$0xff]  ;;  %v176_v17 = vld [vmem:[%s6927_s30 + $0xb0] sm:$0xff] }
  0x8b   :  { %4073 = vmatpush3.bf16.msra.mxu1 %v4072_v7  ;;  %v4078_v14 = vpack.c.bf16 %v175_v12, %v174_v11  ;;  %v159_v16 = vld [vmem:[%s6927_s30 + $0x28] sm:$0xff]  ;;  %v177_v18 = vld [vmem:[%s6927_s30 + $0xb8] sm:$0xff]  ;;  %v160_v21 = vld [vmem:[%s6927_s30 + $0x30] sm:$0xff] }
  0x8c   :  { %4075 = vmatprep.subr.bf16.mxu1 %v4074_v8  ;;  %v4080_v19 = vpack.c.bf16 %v159_v16, %v158_v15  ;;  %v4082_v20 = vpack.c.bf16 %v177_v18, %v176_v17  ;;  %v161_v22 = vld [vmem:[%s6927_s30 + $0x38] sm:$0xff]  ;;  %v178_v23 = vld [vmem:[%s6927_s30 + $0xc0] sm:$0xff]  ;;  %v179_v24 = vld [vmem:[%s6927_s30 + $0xc8] sm:$0xff] }
  0x8d   :  { %v6089_v25 = vld [vmem:[%s6928_s29] sm:$0xff]  ;;  %v4084_v27 = vpack.c.bf16 %v161_v22, %v160_v21  ;;  %v4086_v28 = vpack.c.bf16 %v179_v24, %v178_v23  ;;  %v163_v30 = vld [vmem:[%s6927_s30 + $0x48] sm:$0xff]  ;;  %v180_v31 = vld [vmem:[%s6927_s30 + $0xd0] sm:$0xff] }
  0x8e   :  { %v227_v26 = vcombine.high %v6089_v25, %v6089_v25  ;;  %v162_v29 = vld [vmem:[%s6927_s30 + $0x40] sm:$0xff]  ;;  %v181_v32 = vld [vmem:[%s6927_s30 + $0xd8] sm:$0xff]  ;;  %v164_v35 = vld [vmem:[%s6927_s30 + $0x50] sm:$0xff] }
  0x8f   :  { %4077 = vmatpush3.bf16.msra.mxu1 %v4076_v13  ;;  %v4088_v33 = vpack.c.bf16 %v163_v30, %v162_v29  ;;  %v4090_v34 = vpack.c.bf16 %v181_v32, %v180_v31  ;;  %v165_v36 = vld [vmem:[%s6927_s30 + $0x58] sm:$0xff]  ;;  %v182_v37 = vld [vmem:[%s6927_s30 + $0xe0] sm:$0xff]  ;;  %v183_v38 = vld [vmem:[%s6927_s30 + $0xe8] sm:$0xff] }
  0x90   :  { %4079 = vmatprep.subr.bf16.mxu1 %v4078_v14  ;;  %295 = vmatprep.mubr.f32.mxu1 %v227_v26  ;;  %v4092_v39 = vpack.c.bf16 %v165_v36, %v164_v35  ;;  %v4094_v40 = vpack.c.bf16 %v183_v38, %v182_v37  ;;  %v166_v41 = vld [vmem:[%s6927_s30 + $0x60] sm:$0xff]  ;;  %v167_v42 = vld [vmem:[%s6927_s30 + $0x68] sm:$0xff]  ;;  %v184_v43 = vld [vmem:[%s6927_s30 + $0xf0] sm:$0xff] }
  0x91   :  { %v185_v44 = vld [vmem:[%s6927_s30 + $0xf8] sm:$0xff]  ;;  %v4096_v45 = vpack.c.bf16 %v167_v42, %v166_v41  ;;  %v168_v47 = vld [vmem:[%s6927_s30 + $0x70] sm:$0xff]  ;;  %v202_v49 = vld [vmem:[%s6927_s30 + $0x180] sm:$0xff] }
  0x92   :  { %v4098_v46 = vpack.c.bf16 %v185_v44, %v184_v43  ;;  %v169_v48 = vld [vmem:[%s6927_s30 + $0x78] sm:$0xff]  ;;  %v203_v50 = vld [vmem:[%s6927_s30 + $0x188] sm:$0xff]  ;;  %v186_v53 = vld [vmem:[%s6927_s30 + $0x100] sm:$0xff] }
  0x93   :  { %4081 = vmatpush3.bf16.msra.mxu1 %v4080_v19  ;;  %v4100_v51 = vpack.c.bf16 %v169_v48, %v168_v47  ;;  %v4102_v52 = vpack.c.bf16 %v203_v50, %v202_v49  ;;  %v187_v54 = vld [vmem:[%s6927_s30 + $0x108] sm:$0xff]  ;;  %v204_v56 = vld [vmem:[%s6927_s30 + $0x190] sm:$0xff]  ;;  %v205_v57 = vld [vmem:[%s6927_s30 + $0x198] sm:$0xff] }
  0x94   :  { %4083 = vmatprep.subr.bf16.mxu1 %v4082_v20  ;;  %v6150_v55 = vld [vmem:[%s6928_s29 + $0x8] sm:$0xff]  ;;  %v4104_v58 = vpack.c.bf16 %v187_v54, %v186_v53  ;;  %v4106_v60 = vpack.c.bf16 %v205_v57, %v204_v56  ;;  %v188_v61 = vld [vmem:[%s6927_s30 + $0x110] sm:$0xff]  ;;  %v189_v62 = vld [vmem:[%s6927_s30 + $0x118] sm:$0xff] }
  0x95   :  { %v228_v59 = vcombine.high %v6150_v55, %v6150_v55  ;;  %v206_v63 = vld [vmem:[%s6927_s30 + $0x1a0] sm:$0xff]  ;;  %v207_v0 = vld [vmem:[%s6927_s30 + $0x1a8] sm:$0xff]  ;;  %v4108_v1 = vpack.c.bf16 %v189_v62, %v188_v61  ;;  %v208_v5 = vld [vmem:[%s6927_s30 + $0x1b0] sm:$0xff] }
  0x96   :  { %v4110_v2 = vpack.c.bf16 %v207_v0, %v206_v63  ;;  %v190_v3 = vld [vmem:[%s6927_s30 + $0x120] sm:$0xff]  ;;  %v191_v4 = vld [vmem:[%s6927_s30 + $0x128] sm:$0xff]  ;;  %v209_v6 = vld [vmem:[%s6927_s30 + $0x1b8] sm:$0xff] }
  0x97   :  { %4085 = vmatpush3.bf16.msra.mxu1 %v4084_v27  ;;  %v4112_v7 = vpack.c.bf16 %v191_v4, %v190_v3  ;;  %v4114_v8 = vpack.c.bf16 %v209_v6, %v208_v5  ;;  %v192_v9 = vld [vmem:[%s6927_s30 + $0x130] sm:$0xff]  ;;  %v193_v10 = vld [vmem:[%s6927_s30 + $0x138] sm:$0xff]  ;;  %v210_v11 = vld [vmem:[%s6927_s30 + $0x1c0] sm:$0xff] }
  0x98   :  { %4087 = vmatprep.subr.bf16.mxu1 %v4086_v28  ;;  %v211_v12 = vld [vmem:[%s6927_s30 + $0x1c8] sm:$0xff]  ;;  %v4116_v13 = vpack.c.bf16 %v193_v10, %v192_v9  ;;  %v194_v15 = vld [vmem:[%s6927_s30 + $0x140] sm:$0xff]  ;;  %v212_v17 = vld [vmem:[%s6927_s30 + $0x1d0] sm:$0xff] }
  0x99   :  { %v4118_v14 = vpack.c.bf16 %v211_v12, %v210_v11  ;;  %v195_v16 = vld [vmem:[%s6927_s30 + $0x148] sm:$0xff]  ;;  %v213_v18 = vld [vmem:[%s6927_s30 + $0x1d8] sm:$0xff]  ;;  %v196_v21 = vld [vmem:[%s6927_s30 + $0x150] sm:$0xff] }
  0x9a   :  { %v4120_v19 = vpack.c.bf16 %v195_v16, %v194_v15  ;;  %v4122_v20 = vpack.c.bf16 %v213_v18, %v212_v17  ;;  %v197_v22 = vld [vmem:[%s6927_s30 + $0x158] sm:$0xff]  ;;  %v214_v23 = vld [vmem:[%s6927_s30 + $0x1e0] sm:$0xff]  ;;  %v215_v24 = vld [vmem:[%s6927_s30 + $0x1e8] sm:$0xff] }
  0x9b   :  { %4089 = vmatpush3.bf16.msra.mxu1 %v4088_v33  ;;  %v4124_v26 = vpack.c.bf16 %v197_v22, %v196_v21  ;;  %v4126_v27 = vpack.c.bf16 %v215_v24, %v214_v23  ;;  %v198_v28 = vld [vmem:[%s6927_s30 + $0x160] sm:$0xff]  ;;  %v199_v29 = vld [vmem:[%s6927_s30 + $0x168] sm:$0xff]  ;;  %v216_v30 = vld [vmem:[%s6927_s30 + $0x1f0] sm:$0xff] }
  0x9c   :  { %4091 = vmatprep.subr.bf16.mxu1 %v4090_v34  ;;  %v217_v31 = vld [vmem:[%s6927_s30 + $0x1f8] sm:$0xff]  ;;  %v4128_v32 = vpack.c.bf16 %v199_v29, %v198_v28  ;;  %v200_v34 = vld [vmem:[%s6927_s30 + $0x170] sm:$0xff]  ;;  %v373_v37 = vld [vmem:[%s6905_s4 + $0x8] sm:$0xff] }
  0x9d   :  { %v4130_v33 = vpack.c.bf16 %v217_v31, %v216_v30  ;;  %v201_v35 = vld [vmem:[%s6927_s30 + $0x178] sm:$0xff]  ;;  %v377_v38 = vld [vmem:[%s6905_s4 + $0x28] sm:$0xff]  ;;  %v376_v41 = vld [vmem:[%s6905_s4 + $0x20] sm:$0xff] }
  0x9e   :  { %v4132_v36 = vpack.c.bf16 %v201_v35, %v200_v34  ;;  %v381_v43 = vld [vmem:[%s6905_s4 + $0x48] sm:$0xff]  ;;  %v384_v47 = vld [vmem:[%s6905_s4 + $0x60] sm:$0xff]  ;;  %v375_v49 = vld [vmem:[%s6905_s4 + $0x18] sm:$0xff] }
  0x9f   :  { %4093 = vmatpush3.bf16.msra.mxu1 %v4092_v39  ;;  %v4134_v39 = vpack.c.bf16 %v377_v38, %v373_v37  ;;  %v385_v44 = vld [vmem:[%s6905_s4 + $0x68] sm:$0xff]  ;;  %v379_v50 = vld [vmem:[%s6905_s4 + $0x38] sm:$0xff]  ;;  %v3951_v57 = vld [vmem:[%s6929_s28] ss:$0 sm:$0xff] }
  0xa0   :  { %4095 = vmatprep.subr.bf16.mxu1 %v4094_v40  ;;  %v372_v40 = vld [vmem:[%s6905_s4] sm:$0xff]  ;;  %v374_v62 = vld [vmem:[%s6905_s4 + $0x10] sm:$0xff]  ;;  %v383_v0 = vld [vmem:[%s6905_s4 + $0x58] sm:$0xff] }
  0xa1   :  { %v4136_v42 = vpack.c.bf16 %v376_v41, %v372_v40  ;;  %v378_v63 = vld [vmem:[%s6905_s4 + $0x30] sm:$0xff]  ;;  %v1007_v9 = vld [vmem:[#allocation4 + $0x8] sm:$0xff]  ;;  %v1006_v12 = vld [vmem:[#allocation4] sm:$0xff] }
  0xa2   :  { %v4144_v3 = vpack.c.bf16 %v378_v63, %v374_v62  ;;  %v382_v6 = vld [vmem:[%s6905_s4 + $0x50] sm:$0xff]  ;;  %v1011_v10 = vld [vmem:[#allocation4 + $0x28] sm:$0xff]  ;;  %v1014_v18 = vld [vmem:[#allocation4 + $0x40] sm:$0xff] }
  0xa3   :  { %4097 = vmatpush3.bf16.msra.mxu1 %v4096_v45  ;;  %v4138_v45 = vpack.c.bf16 %v385_v44, %v381_v43  ;;  %v4150_v11 = vpack.c.bf16 %v1011_v10, %v1007_v9  ;;  %v1015_v15 = vld [vmem:[#allocation4 + $0x48] sm:$0xff]  ;;  %v1022_v24 = vld [vmem:[#allocation4 + $0x80] sm:$0xff] }
  0xa4   :  { %4099 = vmatprep.subr.bf16.mxu1 %v4098_v46  ;;  %v380_v46 = vld [vmem:[%s6905_s4 + $0x40] sm:$0xff]  ;;  %v1019_v16 = vld [vmem:[#allocation4 + $0x68] sm:$0xff] }
  0xa5   :  { %v4140_v48 = vpack.c.bf16 %v384_v47, %v380_v46  ;;  %4151 = vmatprep.subr.bf16.mxu0 %v4150_v11  ;;  %v4154_v17 = vpack.c.bf16 %v1019_v16, %v1015_v15  ;;  %v1023_v21 = vld [vmem:[#allocation4 + $0x88] sm:$0xff]  ;;  %v1030_v31 = vld [vmem:[#allocation4 + $0xc0] sm:$0xff] }
  0xa6   :  { %v1027_v22 = vld [vmem:[#allocation4 + $0xa8] sm:$0xff]  ;;  %v1038_v37 = vld [vmem:[#allocation4 + $0x100] sm:$0xff] }
  0xa7   :  { %4101 = vmatpush3.bf16.msra.mxu1 %v4100_v51  ;;  %v4142_v51 = vpack.c.bf16 %v379_v50, %v375_v49  ;;  %v4158_v23 = vpack.c.bf16 %v1027_v22, %v1023_v21  ;;  %v1031_v28 = vld [vmem:[#allocation4 + $0xc8] sm:$0xff]  ;;  %v1042_v38 = vld [vmem:[#allocation4 + $0x120] sm:$0xff] }
  0xa8   :  { %4103 = vmatprep.subr.bf16.mxu1 %v4102_v52  ;;  %v5825_v52 = vmov 0.0   ;;  %v1035_v29 = vld [vmem:[#allocation4 + $0xe8] sm:$0xff]  ;;  %v1046_v43 = vld [vmem:[#allocation4 + $0x140] sm:$0xff] }
  0xa9   :  { %v4162_v30 = vpack.c.bf16 %v1035_v29, %v1031_v28  ;;  %v1039_v34 = vld [vmem:[#allocation4 + $0x108] sm:$0xff]  ;;  %v1050_v44 = vld [vmem:[#allocation4 + $0x160] sm:$0xff] }
  0xaa   :  { %296 = vmatmul.mubr.f32.vlgmr.msra.gmra.mrb[0].mxu1 %v6089_v25  ;;  %v1043_v35 = vld [vmem:[#allocation4 + $0x128] sm:$0xff]  ;;  %v1054_v49 = vld [vmem:[#allocation4 + $0x180] sm:$0xff] }
  0xab   :  { %4105 = vmatpush3.bf16.msra.mxu1 %v4104_v58  ;;  %365 = vmatprep.mubr.f32.mxu1 %v228_v59  ;;  %v1047_v40 = vld [vmem:[#allocation4 + $0x148] sm:$0xff]  ;;  %v1058_v50 = vld [vmem:[#allocation4 + $0x1a0] sm:$0xff] }
  0xac   :  { %4107 = vmatprep.subr.bf16.mxu1 %v4106_v60  ;;  %v1051_v41 = vld [vmem:[#allocation4 + $0x168] sm:$0xff]  ;;  %v1070_v63 = vld [vmem:[#allocation4 + $0x200] sm:$0xff] }
  0xad   :  { %v1055_v46 = vld [vmem:[#allocation4 + $0x188] sm:$0xff]  ;;  %v1086_v11 = vld [vmem:[#allocation4 + $0x280] sm:$0xff] }
  0xae   :  { %v1059_v47 = vld [vmem:[#allocation4 + $0x1a8] sm:$0xff] }
  0xaf   :  { %4109 = vmatpush3.bf16.msra.mxu1 %v4108_v1  ;;  %v387_v1 = vld [vmem:[%s6905_s4 + $0x78] sm:$0xff]  ;;  %v1091_v9 = vld [vmem:[#allocation4 + $0x2a8] sm:$0xff] }
  0xb0   :  { %4111 = vmatprep.subr.bf16.mxu1 %v4110_v2  ;;  %v4146_v5 = vpack.c.bf16 %v387_v1, %v383_v0  ;;  %v1074_v0 = vld [vmem:[#allocation4 + $0x220] sm:$0xff]  ;;  %v1099_v15 = vld [vmem:[#allocation4 + $0x2e8] sm:$0xff] }
  0xb1   :  { %v4184_v1 = vpack.c.bf16 %v1074_v0, %v1070_v63  ;;  %v1107_v21 = vld [vmem:[#allocation4 + $0x328] sm:$0xff] }
  0xb2   :  { %v1115_v28 = vld [vmem:[#allocation4 + $0x368] sm:$0xff] }
  0xb3   :  { %4113 = vmatpush3.bf16.msra.mxu1 %v4112_v7  ;;  %v386_v7 = vld [vmem:[%s6905_s4 + $0x70] sm:$0xff] }
  0xb4   :  { %4115 = vmatprep.subr.bf16.mxu1 %v4114_v8  ;;  %v4148_v8 = vpack.c.bf16 %v386_v7, %v382_v6  ;;  %v1082_v6 = vld [vmem:[#allocation4 + $0x260] sm:$0xff] }
  0xb7   :  { %4117 = vmatpush3.bf16.msra.mxu1 %v4116_v13  ;;  %v1010_v13 = vld [vmem:[#allocation4 + $0x20] sm:$0xff] }
  0xb8   :  { %4119 = vmatprep.subr.bf16.mxu1 %v4118_v14  ;;  %v4152_v14 = vpack.c.bf16 %v1010_v13, %v1006_v12  ;;  %v1090_v12 = vld [vmem:[#allocation4 + $0x2a0] sm:$0xff] }
  0xb9   :  { %v4192_v13 = vpack.c.bf16 %v1090_v12, %v1086_v11 }
  0xba   :  { %4153 = vmatpush1.bf16.msra.mxu0 %v4152_v14  ;;  %v1095_v14 = vld [vmem:[#allocation4 + $0x2c8] sm:$0xff] }
  0xbb   :  { %4121 = vmatpush3.bf16.msra.mxu1 %v4120_v19  ;;  %v1018_v19 = vld [vmem:[#allocation4 + $0x60] sm:$0xff]  ;;  %4155 = vmatprep.subr.bf16.mxu0 %v4154_v17  ;;  %v4194_v16 = vpack.c.bf16 %v1099_v15, %v1095_v14 }
  0xbc   :  { %4123 = vmatprep.subr.bf16.mxu1 %v4122_v20  ;;  %v4156_v20 = vpack.c.bf16 %v1018_v19, %v1014_v18  ;;  %v1094_v17 = vld [vmem:[#allocation4 + $0x2c0] sm:$0xff] }
  0xbd   :  { %v1098_v18 = vld [vmem:[#allocation4 + $0x2e0] sm:$0xff] }
  0xbe   :  { %4157 = vmatpush1.bf16.msra.mxu0 %v4156_v20  ;;  %v4196_v19 = vpack.c.bf16 %v1098_v18, %v1094_v17  ;;  %v1103_v20 = vld [vmem:[#allocation4 + $0x308] sm:$0xff] }
  0xbf   :  { %4125 = vmatpush3.bf16.msra.mxu1 %v4124_v26  ;;  %v1026_v26 = vld [vmem:[#allocation4 + $0xa0] sm:$0xff]  ;;  %4159 = vmatprep.subr.bf16.mxu0 %v4158_v23  ;;  %v4198_v22 = vpack.c.bf16 %v1107_v21, %v1103_v20 }
  0xc0   :  { %4127 = vmatprep.subr.bf16.mxu1 %v4126_v27  ;;  %v4160_v27 = vpack.c.bf16 %v1026_v26, %v1022_v24  ;;  %v1102_v23 = vld [vmem:[#allocation4 + $0x300] sm:$0xff] }
  0xc1   :  { %v1106_v24 = vld [vmem:[#allocation4 + $0x320] sm:$0xff] }
  0xc2   :  { %4161 = vmatpush1.bf16.msra.mxu0 %v4160_v27  ;;  %v4200_v26 = vpack.c.bf16 %v1106_v24, %v1102_v23  ;;  %v1111_v27 = vld [vmem:[#allocation4 + $0x348] sm:$0xff]  ;;  %v1013_v23 = vld [vmem:[#allocation4 + $0x38] sm:$0xff] }
  0xc3   :  { %4129 = vmatpush3.bf16.msra.mxu1 %v4128_v32  ;;  %v1034_v32 = vld [vmem:[#allocation4 + $0xe0] sm:$0xff]  ;;  %4163 = vmatprep.subr.bf16.mxu0 %v4162_v30  ;;  %v4202_v29 = vpack.c.bf16 %v1115_v28, %v1111_v27  ;;  %v1012_v27 = vld [vmem:[#allocation4 + $0x30] sm:$0xff]  ;;  %v1017_v28 = vld [vmem:[#allocation4 + $0x58] sm:$0xff] }
  0xc4   :  { %4131 = vmatprep.subr.bf16.mxu1 %v4130_v33  ;;  %v4164_v33 = vpack.c.bf16 %v1034_v32, %v1030_v31  ;;  %v1110_v30 = vld [vmem:[#allocation4 + $0x340] sm:$0xff] }
  0xc5   :  { %v1114_v31 = vld [vmem:[#allocation4 + $0x360] sm:$0xff] }
  0xc6   :  { %4165 = vmatpush1.bf16.msra.mxu0 %v4164_v33  ;;  %v4204_v32 = vpack.c.bf16 %v1114_v31, %v1110_v30  ;;  %v1119_v33 = vld [vmem:[#allocation4 + $0x388] sm:$0xff] }
  0xc7   :  { %4133 = vmatpush3.bf16.msra.mxu1 %v4132_v36  ;;  %v4166_v36 = vpack.c.bf16 %v1043_v35, %v1039_v34  ;;  %v1123_v34 = vld [vmem:[#allocation4 + $0x3a8] sm:$0xff] }
  0xc8   :  { %4135 = vmatprep.subr.bf16.mxu1 %v4134_v39  ;;  %v4168_v39 = vpack.c.bf16 %v1042_v38, %v1038_v37  ;;  %v4206_v35 = vpack.c.bf16 %v1123_v34, %v1119_v33  ;;  %v1122_v37 = vld [vmem:[#allocation4 + $0x3a0] sm:$0xff]  ;;  %v1020_v34 = vld [vmem:[#allocation4 + $0x70] sm:$0xff] }
  0xc9   :  { %4167 = vmatprep.subr.bf16.mxu0 %v4166_v36  ;;  %v1118_v36 = vld [vmem:[#allocation4 + $0x380] sm:$0xff] }
  0xca   :  { %366 = vmatmul.mubr.f32.vlgmr.msra.gmra.mrb[2].mxu1 %v6150_v55  ;;  %4169 = vmatpush1.bf16.msra.mxu0 %v4168_v39  ;;  %v4208_v38 = vpack.c.bf16 %v1122_v37, %v1118_v36  ;;  %v1127_v39 = vld [vmem:[#allocation4 + $0x3c8] sm:$0xff] }
  0xcb   :  { %4137 = vmatpush1.bf16.msra.mxu1 %v4136_v42  ;;  %478 = vmatprep.mubr.f32.mxu1 %v5825_v52  ;;  %v4170_v42 = vpack.c.bf16 %v1051_v41, %v1047_v40  ;;  %v1131_v40 = vld [vmem:[#allocation4 + $0x3e8] sm:$0xff] }
  0xcc   :  { %4139 = vmatprep.subr.bf16.mxu1 %v4138_v45  ;;  %v4172_v45 = vpack.c.bf16 %v1050_v44, %v1046_v43  ;;  %v4210_v41 = vpack.c.bf16 %v1131_v40, %v1127_v39  ;;  %v1130_v43 = vld [vmem:[#allocation4 + $0x3e0] sm:$0xff]  ;;  %v1028_v39 = vld [vmem:[#allocation4 + $0xb0] sm:$0xff]  ;;  %v1033_v40 = vld [vmem:[#allocation4 + $0xd8] sm:$0xff] }
  0xcd   :  { %4171 = vmatprep.subr.bf16.mxu0 %v4170_v42  ;;  %v1126_v42 = vld [vmem:[#allocation4 + $0x3c0] sm:$0xff] }
  0xce   :  { %4173 = vmatpush1.bf16.msra.mxu0 %v4172_v45  ;;  %v4212_v44 = vpack.c.bf16 %v1130_v43, %v1126_v42  ;;  %v390_v45 = vlaneseq }
  0xcf   :  { %4141 = vmatpush1.bf16.msra.mxu1 %v4140_v48  ;;  %v4174_v48 = vpack.c.bf16 %v1059_v47, %v1055_v46 }
  0xd0   :  { %4143 = vmatprep.subr.bf16.mxu1 %v4142_v51  ;;  %v4176_v51 = vpack.c.bf16 %v1058_v50, %v1054_v49  ;;  %v391_v46 = vshrl.u32 %v390_v45, 7  ;;  %v1036_v45 = vld [vmem:[#allocation4 + $0xf0] sm:$0xff] }
  0xd1   :  { %4175 = vmatprep.subr.bf16.mxu0 %v4174_v48  ;;  %v388_v48 = vld [vmem:[%s6906_s5] sm:$0xf] }
  0xd2   :  { %4177 = vmatpush1.bf16.msra.mxu0 %v4176_v51  ;;  %v6294_v47 = vsub.s32 0, %v391_v46  ;;  %v6299_v49 = vsub.s32 1, %v391_v46 }
  0xd4   :  { %v393_v50 = vrot.slane %v388_v48, %v6294_v47  ;;  %v397_v51 = vrot.slane %v388_v48, %v6299_v49 }
 0x17d   :  { %v3997_v53 = vpop.f32.mrb[0].mxu1 }
 0x17e   :  { %v3998_v54 = vpop.f32.mrb[1].mxu1 }
 0x17f   :  { %v3999_v56 = vadd.f32 %v3998_v54, %v3997_v53  ;;  %v1063_v53 = vld [vmem:[#allocation4 + $0x1c8] sm:$0xff] }
 0x180   :  { %v1067_v54 = vld [vmem:[#allocation4 + $0x1e8] sm:$0xff] }
 0x181   :  { %v298_v60 = vadd.f32 %v3999_v56, %v3951_v57  ;;  %v4178_v56 = vpack.c.bf16 %v1067_v54, %v1063_v53  ;;  %v1062_v57 = vld [vmem:[#allocation4 + $0x1c0] sm:$0xff] }
 0x183   :  { %4179 = vmatprep.subr.bf16.mxu0 %v4178_v56 }
 0x19d   :  { %v4032_v58 = vpop.f32.mrb[2].mxu1 }
 0x19e   :  { %v4033_v59 = vpop.f32.mrb[3].mxu1 }
 0x19f   :  { %v4034_v61 = vadd.f32 %v4033_v59, %v4032_v58  ;;  %v1066_v58 = vld [vmem:[#allocation4 + $0x1e0] sm:$0xff] }
 0x1a0   :  { %v4180_v59 = vpack.c.bf16 %v1066_v58, %v1062_v57  ;;  %v6303_v57 = vsub.s32 2, %v391_v46 }
 0x1a1   :  { %v368_v2 = vadd.f32 %v4034_v61, %v298_v60  ;;  %v1071_v60 = vld [vmem:[#allocation4 + $0x208] sm:$0xff] }
 0x1a2   :  { %v1075_v61 = vld [vmem:[#allocation4 + $0x228] sm:$0xff]  ;;  %4181 = vmatpush1.bf16.msra.mxu0 %v4180_v59  ;;  %v6305_v59 = vsub.s32 3, %v391_v46  ;;  %v1041_v46 = vld [vmem:[#allocation4 + $0x118] sm:$0xff] }
 0x1a3   :  { %v371_v4 = vmax.f32 %v368_v2, 0.0  ;;  %v4182_v62 = vpack.c.bf16 %v1075_v61, %v1071_v60  ;;  %v1079_v2 = vld [vmem:[#allocation4 + $0x248] sm:$0xff] }
 0x1a4   :  { %v405_v63 = vrot.slane %v388_v48, %v6305_v59 }
 0x1a5   :  { %3952 = vmatmul.mubr.msk.f32.vlgmr.msra.gmra.mrb[4].mxu1 %vm410_vm0, %v371_v4  ;;  %4183 = vmatprep.subr.bf16.mxu0 %v4182_v62  ;;  %v401_v62 = vrot.slane %v388_v48, %v6303_v57  ;;  %v1045_v48 = vld [vmem:[#allocation4 + $0x138] sm:$0xff] }
 0x1a6   :  { %4145 = vmatpush1.bf16.msra.mxu1 %v4144_v3  ;;  %549 = vmatprep.mubr.f32.mxu1 %v5825_v52  ;;  %v1083_v3 = vld [vmem:[#allocation4 + $0x268] sm:$0xff] }
 0x1a7   :  { %4147 = vmatprep.subr.bf16.mxu1 %v4146_v5  ;;  %v1078_v5 = vld [vmem:[#allocation4 + $0x240] sm:$0xff]  ;;  %4185 = vmatpush1.bf16.msra.mxu0 %v4184_v1 }
 0x1a8   :  { %v4188_v7 = vpack.c.bf16 %v1082_v6, %v1078_v5 }
 0x1aa   :  { %4149 = vmatpush1.bf16.msra.mxu1 %v4148_v8  ;;  %v1087_v8 = vld [vmem:[#allocation4 + $0x288] sm:$0xff] }
 0x1ab   :  { %v4190_v10 = vpack.c.bf16 %v1091_v9, %v1087_v8 }
 0x1ad   :  { %3953 = vmatmul.mubr.msk.f32.vlgmr.msra.gmra.mrb[6].mxu1 %vm410_vm0, %v371_v4  ;;  %v4186_v4 = vpack.c.bf16 %v1083_v3, %v1079_v2 }
 0x1ae   :  { %672 = vmatprep.mubr.f32.mxu1 %v5825_v52 }
 0x1af   :  { %4187 = vmatprep.subr.bf16.mxu0 %v4186_v4 }
 0x1b0   :  { %4189 = vmatpush1.bf16.msra.mxu0 %v4188_v7 }
 0x1b1   :  { %4191 = vmatprep.subr.bf16.mxu0 %v4190_v10 }
 0x1b4   :  { %4193 = vmatpush1.bf16.msra.mxu0 %v4192_v13 }
 0x1b5   :  { %4195 = vmatprep.subr.bf16.mxu0 %v4194_v16 }
 0x1b8   :  { %4197 = vmatpush1.bf16.msra.mxu0 %v4196_v19  ;;  %v590_v19 = vld [vmem:[%s6930_s7] sm:$0xf] }
 0x1b9   :  { %4199 = vmatprep.subr.bf16.mxu0 %v4198_v22  ;;  %v1009_v22 = vld [vmem:[#allocation4 + $0x18] sm:$0xff] }
 0x1ba   :  { %v4278_v31 = vpack.c.bf16 %v1013_v23, %v1009_v22  ;;  %v1080_v23 = vld [vmem:[#allocation4 + $0x250] sm:$0xff] }
 0x1bc   :  { %4201 = vmatpush1.bf16.msra.mxu0 %v4200_v26  ;;  %v1008_v26 = vld [vmem:[#allocation4 + $0x10] sm:$0xff] }
 0x1bd   :  { %4203 = vmatprep.subr.bf16.mxu0 %v4202_v29  ;;  %v1021_v29 = vld [vmem:[#allocation4 + $0x78] sm:$0xff] }
 0x1be   :  { %v4282_v33 = vpack.c.bf16 %v1021_v29, %v1017_v28  ;;  %v1093_v28 = vld [vmem:[#allocation4 + $0x2b8] sm:$0xff] }
 0x1c0   :  { %4205 = vmatpush1.bf16.msra.mxu0 %v4204_v32  ;;  %v4280_v32 = vpack.c.bf16 %v1012_v27, %v1008_v26  ;;  %v1084_v26 = vld [vmem:[#allocation4 + $0x270] sm:$0xff]  ;;  %v1089_v27 = vld [vmem:[#allocation4 + $0x298] sm:$0xff] }
 0x1c1   :  { %4207 = vmatprep.subr.bf16.mxu0 %v4206_v35  ;;  %v1029_v35 = vld [vmem:[#allocation4 + $0xb8] sm:$0xff]  ;;  %v4316_v29 = vpack.c.bf16 %v1084_v26, %v1080_v23  ;;  %v1142_v23 = vld [vmem:[#allocation4 + $0x440] sm:$0xff] }
 0x1c2   :  { %v1146_v26 = vld [vmem:[#allocation4 + $0x460] sm:$0xff] }
 0x1c4   :  { %4209 = vmatpush1.bf16.msra.mxu0 %v4208_v38  ;;  %v1024_v38 = vld [vmem:[#allocation4 + $0x90] sm:$0xff] }
 0x1c5   :  { %4211 = vmatprep.subr.bf16.mxu0 %v4210_v41  ;;  %v1037_v41 = vld [vmem:[#allocation4 + $0xf8] sm:$0xff]  ;;  %v4288_v42 = vpack.c.bf16 %v1028_v39, %v1024_v38 }
 0x1c6   :  { %v4290_v43 = vpack.c.bf16 %v1037_v41, %v1033_v40  ;;  %v1105_v38 = vld [vmem:[#allocation4 + $0x318] sm:$0xff] }
 0x1c7   :  { %v1109_v39 = vld [vmem:[#allocation4 + $0x338] sm:$0xff] }
 0x1c8   :  { %4213 = vmatpush1.bf16.msra.mxu0 %v4212_v44  ;;  %v1032_v44 = vld [vmem:[#allocation4 + $0xd0] sm:$0xff]  ;;  %v4326_v41 = vpack.c.bf16 %v1109_v39, %v1105_v38  ;;  %v1154_v38 = vld [vmem:[#allocation4 + $0x4a0] sm:$0xff] }
 0x278   :  { %v480_v53 = vpop.f32.mrb[4].mxu1 }
 0x279   :  { %v481_v54 = vadd.f32 %v480_v53, %v393_v50  ;;  %v482_v56 = vpop.f32.mrb[5].mxu1  ;;  %v4292_v50 = vpack.c.bf16 %v1036_v45, %v1032_v44  ;;  %v1040_v53 = vld [vmem:[#allocation4 + $0x110] sm:$0xff]  ;;  %v1113_v44 = vld [vmem:[#allocation4 + $0x358] sm:$0xff] }
 0x27a   :  { %v483_v58 = vadd.f32 %v482_v56, %v397_v51  ;;  %v4294_v51 = vpack.c.bf16 %v1045_v48, %v1041_v46  ;;  %v1049_v56 = vld [vmem:[#allocation4 + $0x158] sm:$0xff] }
 0x27b   :  { %v3954_v60 = vmul.f32 -1.442695, %v481_v54  ;;  %v1044_v54 = vld [vmem:[#allocation4 + $0x130] sm:$0xff]  ;;  %v1117_v45 = vld [vmem:[#allocation4 + $0x378] sm:$0xff] }
 0x27c   :  { %v3955_v61 = vmul.f32 -1.442695, %v483_v58  ;;  %v1053_v58 = vld [vmem:[#allocation4 + $0x178] sm:$0xff]  ;;  %v4330_v48 = vpack.c.bf16 %v1117_v45, %v1113_v44  ;;  %v1163_v44 = vld [vmem:[#allocation4 + $0x4e8] sm:$0xff] }
 0x27d   :  { %5638 = vpow2.f32 %v3954_v60  ;;  %v4296_v60 = vpack.c.bf16 %v1044_v54, %v1040_v53  ;;  %v1121_v53 = vld [vmem:[#allocation4 + $0x398] sm:$0xff] }
 0x27e   :  { %5640 = vpow2.f32 %v3955_v61  ;;  %v4298_v61 = vpack.c.bf16 %v1053_v58, %v1049_v56  ;;  %v1125_v54 = vld [vmem:[#allocation4 + $0x3b8] sm:$0xff] }
 0x27f   :  { %v4334_v58 = vpack.c.bf16 %v1125_v54, %v1121_v53  ;;  %v1161_v45 = vld [vmem:[#allocation4 + $0x4d8] sm:$0xff]  ;;  %v1162_v53 = vld [vmem:[#allocation4 + $0x4e0] sm:$0xff] }
 0x280   :  { %v551_v0 = vpop.f32.mrb[6].mxu1 }
 0x281   :  { %v552_v1 = vadd.f32 %v551_v0, %v401_v62  ;;  %v553_v2 = vpop.f32.mrb[7].mxu1  ;;  %v1048_v62 = vld [vmem:[#allocation4 + $0x150] sm:$0xff]  ;;  %v1057_v0 = vld [vmem:[#allocation4 + $0x198] sm:$0xff] }
 0x282   :  { %v554_v3 = vadd.f32 %v553_v2, %v405_v63  ;;  %v1052_v63 = vld [vmem:[#allocation4 + $0x170] sm:$0xff] }
 0x283   :  { %v3956_v4 = vmul.f32 -1.442695, %v552_v1  ;;  %v1061_v1 = vld [vmem:[#allocation4 + $0x1b8] sm:$0xff]  ;;  %v4300_v2 = vpack.c.bf16 %v1052_v63, %v1048_v62 }
 0x284   :  { %v3957_v5 = vmul.f32 -1.442695, %v554_v3  ;;  %v4302_v3 = vpack.c.bf16 %v1061_v1, %v1057_v0  ;;  %v1129_v62 = vld [vmem:[#allocation4 + $0x3d8] sm:$0xff] }
 0x285   :  { %5642 = vpow2.f32 %v3956_v4  ;;  %v1056_v4 = vld [vmem:[#allocation4 + $0x190] sm:$0xff]  ;;  %v1133_v63 = vld [vmem:[#allocation4 + $0x3f8] sm:$0xff] }
 0x286   :  { %5644 = vpow2.f32 %v3957_v5  ;;  %v1060_v5 = vld [vmem:[#allocation4 + $0x1b0] sm:$0xff]  ;;  %v4338_v1 = vpack.c.bf16 %v1133_v63, %v1129_v62  ;;  %v1167_v62 = vld [vmem:[#allocation4 + $0x508] sm:$0xff] }
 0x287   :  { %v5639_v6 = vpop.eup %5638 }
 0x288   :  { %v5641_v7 = vpop.eup %5640  ;;  %v568_v8 = vadd.f32 1.0, %v5639_v6  ;;  %v1065_v6 = vld [vmem:[#allocation4 + $0x1d8] sm:$0xff] }
 0x289   :  { %v569_v9 = vadd.f32 1.0, %v5641_v7  ;;  %v1069_v7 = vld [vmem:[#allocation4 + $0x1f8] sm:$0xff] }
 0x28a   :  { %5646 = vrcp.f32 %v568_v8  ;;  %v4304_v8 = vpack.c.bf16 %v1060_v5, %v1056_v4  ;;  %v1135_v5 = vld [vmem:[#allocation4 + $0x408] sm:$0xff] }
 0x28b   :  { %5648 = vrcp.f32 %v569_v9  ;;  %v4306_v9 = vpack.c.bf16 %v1069_v7, %v1065_v6  ;;  %v1139_v6 = vld [vmem:[#allocation4 + $0x428] sm:$0xff]  ;;  %v1137_v7 = vld [vmem:[#allocation4 + $0x418] sm:$0xff] }
 0x28f   :  { %v5643_v10 = vpop.eup %5642 }
 0x290   :  { %v5645_v11 = vpop.eup %5644  ;;  %v570_v12 = vadd.f32 1.0, %v5643_v10  ;;  %v1064_v10 = vld [vmem:[#allocation4 + $0x1d0] sm:$0xff] }
 0x291   :  { %v571_v13 = vadd.f32 1.0, %v5645_v11  ;;  %v1068_v11 = vld [vmem:[#allocation4 + $0x1f0] sm:$0xff] }
 0x292   :  { %5650 = vrcp.f32 %v570_v12  ;;  %v1073_v12 = vld [vmem:[#allocation4 + $0x218] sm:$0xff] }
 0x293   :  { %5652 = vrcp.f32 %v571_v13  ;;  %v1077_v13 = vld [vmem:[#allocation4 + $0x238] sm:$0xff] }
 0x294   :  { %v5647_v14 = vpop.eup %5646 }
 0x295   :  { %v5649_v15 = vpop.eup %5648 }
 0x296   :  { %v584_v16 = vcombine.low %v5647_v14, %v5649_v15  ;;  %v4308_v14 = vpack.c.bf16 %v1068_v11, %v1064_v10  ;;  %v4310_v15 = vpack.c.bf16 %v1077_v13, %v1073_v12  ;;  %v1134_v11 = vld [vmem:[#allocation4 + $0x400] sm:$0xff]  ;;  %v1136_v13 = vld [vmem:[#allocation4 + $0x410] sm:$0xff] }
 0x297   :  { %v1138_v12 = vld [vmem:[#allocation4 + $0x420] sm:$0xff] }
 0x298   :  { %v6310_v17 = vmul.f32 %v584_v16, %v6089_v25  ;;  %v1072_v16 = vld [vmem:[#allocation4 + $0x210] sm:$0xff] }
 0x29a   :  { %v6314_v18 = vcombine.high %v6310_v17, %v6310_v17 }
 0x29c   :  { %v5651_v20 = vpop.eup %5650  ;;  %3958 = vmatprep.subr.msk.mxu1 %vm599_vm1, %v6314_v18 }
 0x29d   :  { %v5653_v21 = vpop.eup %5652  ;;  %3959 = vmatpush1.msk.msra.mxu1 %vm599_vm1, %v6310_v17 }
 0x29e   :  { %v585_v25 = vcombine.low %v5651_v20, %v5653_v21  ;;  %3960 = vmatmul.mubr.msk.f32.vlgmr.msra.gmra.mrb[8].mxu1 %vm595_vm2, %v590_v19  ;;  %v1081_v20 = vld [vmem:[#allocation4 + $0x258] sm:$0xff] }
 0x29f   :  { %743 = vmatprep.mubr.f32.mxu1 %v5825_v52  ;;  %v1016_v52 = vld [vmem:[#allocation4 + $0x50] sm:$0xff]  ;;  %v1085_v21 = vld [vmem:[#allocation4 + $0x278] sm:$0xff] }
 0x2a0   :  { %v6326_v24 = vmul.f32 %v585_v25, %v6150_v55  ;;  %v1025_v55 = vld [vmem:[#allocation4 + $0x98] sm:$0xff]  ;;  %v4284_v36 = vpack.c.bf16 %v1020_v34, %v1016_v52  ;;  %v4314_v22 = vpack.c.bf16 %v1085_v21, %v1081_v20 }
 0x2a1   :  { %v4286_v37 = vpack.c.bf16 %v1029_v35, %v1025_v55  ;;  %v1097_v52 = vld [vmem:[#allocation4 + $0x2d8] sm:$0xff] }
 0x2a2   :  { %v6330_v30 = vcombine.high %v6326_v24, %v6326_v24  ;;  %v1101_v34 = vld [vmem:[#allocation4 + $0x2f8] sm:$0xff] }
 0x2a3   :  { %v4322_v35 = vpack.c.bf16 %v1101_v34, %v1097_v52  ;;  %v1149_v20 = vld [vmem:[#allocation4 + $0x478] sm:$0xff]  ;;  %v1155_v52 = vld [vmem:[#allocation4 + $0x4a8] sm:$0xff] }
 0x2a4   :  { %3961 = vmatprep.subr.msk.mxu1 %vm599_vm1, %v6330_v30  ;;  %v1153_v34 = vld [vmem:[#allocation4 + $0x498] sm:$0xff] }
 0x2a5   :  { %3962 = vmatpush1.msk.msra.mxu1 %vm599_vm1, %v6326_v24 }
 0x2a6   :  { %3963 = vmatmul.mubr.msk.f32.vlgmr.msra.gmra.mrb[10].mxu1 %vm595_vm2, %v590_v19  ;;  %4279 = vmatprep.subr.bf16.mxu1 %v4278_v31  ;;  %v1076_v19 = vld [vmem:[#allocation4 + $0x230] sm:$0xff]  ;;  %v4318_v31 = vpack.c.bf16 %v1093_v28, %v1089_v27 }
 0x2a7   :  { %4281 = vmatpush1.bf16.msra.mxu1 %v4280_v32  ;;  %v4312_v25 = vpack.c.bf16 %v1076_v19, %v1072_v16  ;;  %v1088_v32 = vld [vmem:[#allocation4 + $0x290] sm:$0xff]  ;;  %v1147_v16 = vld [vmem:[#allocation4 + $0x468] sm:$0xff]  ;;  %v1145_v19 = vld [vmem:[#allocation4 + $0x458] sm:$0xff] }
 0x2a8   :  { %4283 = vmatprep.subr.bf16.mxu1 %v4282_v33  ;;  %v1092_v33 = vld [vmem:[#allocation4 + $0x2b0] sm:$0xff] }
 0x2a9   :  { %v4320_v55 = vpack.c.bf16 %v1092_v33, %v1088_v32  ;;  %v1148_v32 = vld [vmem:[#allocation4 + $0x470] sm:$0xff]  ;;  %v1151_v33 = vld [vmem:[#allocation4 + $0x488] sm:$0xff] }
 0x2aa   :  { %v4222_v39 = vpack.c.bf16 %v1155_v52, %v1151_v33 }
 0x2ab   :  { %4285 = vmatpush1.bf16.msra.mxu1 %v4284_v36  ;;  %v1096_v36 = vld [vmem:[#allocation4 + $0x2d0] sm:$0xff] }
 0x2ac   :  { %4287 = vmatprep.subr.bf16.mxu1 %v4286_v37  ;;  %v1100_v37 = vld [vmem:[#allocation4 + $0x2f0] sm:$0xff] }
 0x2ad   :  { %v4324_v40 = vpack.c.bf16 %v1100_v37, %v1096_v36  ;;  %v1150_v37 = vld [vmem:[#allocation4 + $0x480] sm:$0xff] }
 0x2af   :  { %4289 = vmatpush1.bf16.msra.mxu1 %v4288_v42  ;;  %v1104_v42 = vld [vmem:[#allocation4 + $0x310] sm:$0xff] }
 0x2b0   :  { %4291 = vmatprep.subr.bf16.mxu1 %v4290_v43  ;;  %v1108_v43 = vld [vmem:[#allocation4 + $0x330] sm:$0xff] }
 0x2b1   :  { %v4328_v46 = vpack.c.bf16 %v1108_v43, %v1104_v42  ;;  %v1156_v42 = vld [vmem:[#allocation4 + $0x4b0] sm:$0xff]  ;;  %v1159_v43 = vld [vmem:[#allocation4 + $0x4c8] sm:$0xff] }
 0x2b3   :  { %4293 = vmatpush1.bf16.msra.mxu1 %v4292_v50  ;;  %v1112_v50 = vld [vmem:[#allocation4 + $0x350] sm:$0xff] }
 0x2b4   :  { %4295 = vmatprep.subr.bf16.mxu1 %v4294_v51  ;;  %v1116_v51 = vld [vmem:[#allocation4 + $0x370] sm:$0xff] }
 0x2b5   :  { %v4332_v56 = vpack.c.bf16 %v1116_v51, %v1112_v50  ;;  %v1158_v51 = vld [vmem:[#allocation4 + $0x4c0] sm:$0xff] }
 0x2b7   :  { %4297 = vmatpush1.bf16.msra.mxu1 %v4296_v60  ;;  %v1120_v60 = vld [vmem:[#allocation4 + $0x390] sm:$0xff] }
 0x2b8   :  { %4299 = vmatprep.subr.bf16.mxu1 %v4298_v61  ;;  %v1124_v61 = vld [vmem:[#allocation4 + $0x3b0] sm:$0xff] }
 0x2b9   :  { %v4336_v0 = vpack.c.bf16 %v1124_v61, %v1120_v60  ;;  %v1160_v60 = vld [vmem:[#allocation4 + $0x4d0] sm:$0xff] }
 0x2ba   :  { %v1164_v61 = vld [vmem:[#allocation4 + $0x4f0] sm:$0xff] }
 0x2bb   :  { %4301 = vmatpush1.bf16.msra.mxu1 %v4300_v2  ;;  %v1128_v2 = vld [vmem:[#allocation4 + $0x3d0] sm:$0xff] }
 0x2bc   :  { %4303 = vmatprep.subr.bf16.mxu1 %v4302_v3  ;;  %v1132_v3 = vld [vmem:[#allocation4 + $0x3f0] sm:$0xff] }
 0x2bd   :  { %v4340_v4 = vpack.c.bf16 %v1132_v3, %v1128_v2  ;;  %v1173_v2 = vld [vmem:[#allocation4 + $0x538] sm:$0xff]  ;;  %v4228_v3 = vpack.c.bf16 %v1162_v53, %v1158_v51  ;;  %v1192_v51 = vld [vmem:[#allocation4 + $0x5d0] sm:$0xff] }
 0x2be   :  { %v1196_v53 = vld [vmem:[#allocation4 + $0x5f0] sm:$0xff] }
 0x2bf   :  { %4305 = vmatpush1.bf16.msra.mxu1 %v4304_v8  ;;  %v4214_v8 = vpack.c.bf16 %v1139_v6, %v1135_v5  ;;  %v1166_v5 = vld [vmem:[#allocation4 + $0x500] sm:$0xff] }
 0x2c0   :  { %4307 = vmatprep.subr.bf16.mxu1 %v4306_v9  ;;  %v1141_v9 = vld [vmem:[#allocation4 + $0x438] sm:$0xff]  ;;  %v1170_v6 = vld [vmem:[#allocation4 + $0x520] sm:$0xff] }
 0x2c1   :  { %v4342_v10 = vpack.c.bf16 %v1141_v9, %v1137_v7  ;;  %4215 = vmatprep.subr.bf16.mxu0 %v4214_v8  ;;  %v1168_v9 = vld [vmem:[#allocation4 + $0x510] sm:$0xff] }
 0x2c3   :  { %4309 = vmatpush1.bf16.msra.mxu1 %v4308_v14  ;;  %v1140_v14 = vld [vmem:[#allocation4 + $0x430] sm:$0xff] }
 0x2c4   :  { %4311 = vmatprep.subr.bf16.mxu1 %v4310_v15  ;;  %v1143_v15 = vld [vmem:[#allocation4 + $0x448] sm:$0xff] }
 0x2c5   :  { %v4218_v28 = vpack.c.bf16 %v1147_v16, %v1143_v15  ;;  %v4232_v15 = vpack.c.bf16 %v1170_v6, %v1166_v5  ;;  %v1200_v5 = vld [vmem:[#allocation4 + $0x610] sm:$0xff] }
 0x2c6   :  { %v1204_v6 = vld [vmem:[#allocation4 + $0x630] sm:$0xff] }
 0x2c7   :  { %4313 = vmatpush1.bf16.msra.mxu1 %v4312_v25  ;;  %v4216_v25 = vpack.c.bf16 %v1138_v12, %v1134_v11  ;;  %v1175_v11 = vld [vmem:[#allocation4 + $0x548] sm:$0xff] }
 0x2c8   :  { %4315 = vmatprep.subr.bf16.mxu1 %v4314_v22  ;;  %v4344_v22 = vpack.c.bf16 %v1140_v14, %v1136_v13  ;;  %v1179_v12 = vld [vmem:[#allocation4 + $0x568] sm:$0xff]  ;;  %v1177_v13 = vld [vmem:[#allocation4 + $0x558] sm:$0xff] }
 0x2c9   :  { %v1181_v14 = vld [vmem:[#allocation4 + $0x578] sm:$0xff] }
 0x2cb   :  { %4317 = vmatpush1.bf16.msra.mxu1 %v4316_v29  ;;  %v4346_v29 = vpack.c.bf16 %v1149_v20, %v1145_v19  ;;  %v1174_v19 = vld [vmem:[#allocation4 + $0x540] sm:$0xff] }
 0x2cc   :  { %4319 = vmatprep.subr.bf16.mxu1 %v4318_v31  ;;  %v1144_v31 = vld [vmem:[#allocation4 + $0x450] sm:$0xff]  ;;  %v1178_v20 = vld [vmem:[#allocation4 + $0x560] sm:$0xff] }
 0x2cd   :  { %v4348_v36 = vpack.c.bf16 %v1148_v32, %v1144_v31  ;;  %v1185_v31 = vld [vmem:[#allocation4 + $0x598] sm:$0xff]  ;;  %v4236_v33 = vpack.c.bf16 %v1178_v20, %v1174_v19  ;;  %v1208_v19 = vld [vmem:[#allocation4 + $0x650] sm:$0xff] }
 0x2ce   :  { %v1189_v32 = vld [vmem:[#allocation4 + $0x5b8] sm:$0xff]  ;;  %v1212_v20 = vld [vmem:[#allocation4 + $0x670] sm:$0xff] }
 0x2cf   :  { %4321 = vmatpush1.bf16.msra.mxu1 %v4320_v55  ;;  %v1157_v55 = vld [vmem:[#allocation4 + $0x4b8] sm:$0xff] }
 0x2d0   :  { %4323 = vmatprep.subr.bf16.mxu1 %v4322_v35  ;;  %v4220_v35 = vpack.c.bf16 %v1146_v26, %v1142_v23  ;;  %v1176_v23 = vld [vmem:[#allocation4 + $0x550] sm:$0xff] }
 0x2d1   :  { %v1180_v26 = vld [vmem:[#allocation4 + $0x570] sm:$0xff] }
 0x2d2   :  { %v4364_v52 = vpack.c.bf16 %v1180_v26, %v1176_v23  ;;  %v1217_v23 = vld [vmem:[#allocation4 + $0x698] sm:$0xff] }
 0x2d3   :  { %4325 = vmatpush1.bf16.msra.mxu1 %v4324_v40  ;;  %v4350_v40 = vpack.c.bf16 %v1157_v55, %v1153_v34  ;;  %v1182_v34 = vld [vmem:[#allocation4 + $0x580] sm:$0xff]  ;;  %v1221_v26 = vld [vmem:[#allocation4 + $0x6b8] sm:$0xff] }
 0x2d4   :  { %4327 = vmatprep.subr.bf16.mxu1 %v4326_v41  ;;  %v1152_v41 = vld [vmem:[#allocation4 + $0x490] sm:$0xff]  ;;  %v1186_v55 = vld [vmem:[#allocation4 + $0x5a0] sm:$0xff] }
 0x2d5   :  { %v4352_v50 = vpack.c.bf16 %v1156_v42, %v1152_v41  ;;  %v1193_v41 = vld [vmem:[#allocation4 + $0x5d8] sm:$0xff] }
 0x2d6   :  { %v1197_v42 = vld [vmem:[#allocation4 + $0x5f8] sm:$0xff] }
 0x2d7   :  { %4329 = vmatpush1.bf16.msra.mxu1 %v4328_v46  ;;  %v1165_v46 = vld [vmem:[#allocation4 + $0x4f8] sm:$0xff] }
 0x2d8   :  { %4331 = vmatprep.subr.bf16.mxu1 %v4330_v48  ;;  %v4224_v48 = vpack.c.bf16 %v1154_v38, %v1150_v37  ;;  %v1184_v37 = vld [vmem:[#allocation4 + $0x590] sm:$0xff] }
 0x2d9   :  { %v1188_v38 = vld [vmem:[#allocation4 + $0x5b0] sm:$0xff] }
 0x2db   :  { %4333 = vmatpush1.bf16.msra.mxu1 %v4332_v56  ;;  %v4226_v56 = vpack.c.bf16 %v1163_v44, %v1159_v43  ;;  %v4240_v43 = vpack.c.bf16 %v1186_v55, %v1182_v34  ;;  %v4368_v44 = vpack.c.bf16 %v1188_v38, %v1184_v37  ;;  %v1216_v34 = vld [vmem:[#allocation4 + $0x690] sm:$0xff]  ;;  %v1225_v37 = vld [vmem:[#allocation4 + $0x6d8] sm:$0xff] }
 0x2dc   :  { %4335 = vmatprep.subr.bf16.mxu1 %v4334_v58  ;;  %v4354_v58 = vpack.c.bf16 %v1165_v46, %v1161_v45  ;;  %v1190_v45 = vld [vmem:[#allocation4 + $0x5c0] sm:$0xff]  ;;  %v1220_v55 = vld [vmem:[#allocation4 + $0x6b0] sm:$0xff]  ;;  %v1229_v38 = vld [vmem:[#allocation4 + $0x6f8] sm:$0xff] }
 0x2dd   :  { %v1194_v46 = vld [vmem:[#allocation4 + $0x5e0] sm:$0xff] }
 0x2df   :  { %4337 = vmatpush1.bf16.msra.mxu1 %v4336_v0  ;;  %v1171_v0 = vld [vmem:[#allocation4 + $0x528] sm:$0xff] }
 0x2e0   :  { %4339 = vmatprep.subr.bf16.mxu1 %v4338_v1  ;;  %v1169_v1 = vld [vmem:[#allocation4 + $0x518] sm:$0xff]  ;;  %v4230_v7 = vpack.c.bf16 %v1171_v0, %v1167_v62  ;;  %v4244_v62 = vpack.c.bf16 %v1194_v46, %v1190_v45  ;;  %v4372_v0 = vpack.c.bf16 %v1196_v53, %v1192_v51  ;;  %v1224_v45 = vld [vmem:[#allocation4 + $0x6d0] sm:$0xff] }
 0x2e1   :  { %v4358_v8 = vpack.c.bf16 %v1173_v2, %v1169_v1  ;;  %v1198_v1 = vld [vmem:[#allocation4 + $0x600] sm:$0xff]  ;;  %v1228_v46 = vld [vmem:[#allocation4 + $0x6f0] sm:$0xff]  ;;  %v1233_v51 = vld [vmem:[#allocation4 + $0x718] sm:$0xff] }
 0x2e2   :  { %v1202_v2 = vld [vmem:[#allocation4 + $0x620] sm:$0xff]  ;;  %v1237_v53 = vld [vmem:[#allocation4 + $0x738] sm:$0xff] }
 0x2e3   :  { %4341 = vmatpush1.bf16.msra.mxu1 %v4340_v4  ;;  %v4356_v4 = vpack.c.bf16 %v1164_v61, %v1160_v60  ;;  %v1201_v60 = vld [vmem:[#allocation4 + $0x618] sm:$0xff] }
 0x2e4   :  { %4343 = vmatprep.subr.bf16.mxu1 %v4342_v10  ;;  %v1172_v10 = vld [vmem:[#allocation4 + $0x530] sm:$0xff]  ;;  %v1205_v61 = vld [vmem:[#allocation4 + $0x638] sm:$0xff] }
 0x2e5   :  { %v4360_v16 = vpack.c.bf16 %v1172_v10, %v1168_v9  ;;  %v1209_v9 = vld [vmem:[#allocation4 + $0x658] sm:$0xff] }
 0x2e6   :  { %v1213_v10 = vld [vmem:[#allocation4 + $0x678] sm:$0xff] }
 0x371   :  { %v6337_v21 = vpop.f32.mrb[8].mxu1 }
 0x372   :  { %v6339_v27 = vpop.f32.mrb[9].mxu1 }
 0x373   :  { %1326 = vmatprep.mubr.f32.mxu0 %v6339_v27  ;;  %1468 = vmatprep.mubr.f32.mxu1 %v6339_v27 }
 0x374   :  { %1327 = vmatmul.mubr.f32.vlgmr.msra.gmra.mrb[0].mxu0 %v6337_v21  ;;  %1469 = vmatmul.mubr.f32.vlgmr.msra.gmra.mrb[12].mxu1 %v6337_v21 }
 0x375   :  { %4217 = vmatpush1.bf16.msra.mxu0 %v4216_v25  ;;  %4345 = vmatpush1.bf16.msra.mxu1 %v4344_v22  ;;  %v4234_v25 = vpack.c.bf16 %v1179_v12, %v1175_v11  ;;  %v4362_v22 = vpack.c.bf16 %v1181_v14, %v1177_v13  ;;  %v4248_v11 = vpack.c.bf16 %v1202_v2, %v1198_v1  ;;  %v1206_v13 = vld [vmem:[#allocation4 + $0x640] sm:$0xff]  ;;  %v1232_v1 = vld [vmem:[#allocation4 + $0x710] sm:$0xff] }
 0x376   :  { %4219 = vmatprep.subr.bf16.mxu0 %v4218_v28  ;;  %4347 = vmatprep.subr.bf16.mxu1 %v4346_v29  ;;  %v1183_v28 = vld [vmem:[#allocation4 + $0x588] sm:$0xff]  ;;  %v4376_v12 = vpack.c.bf16 %v1204_v6, %v1200_v5  ;;  %v1210_v14 = vld [vmem:[#allocation4 + $0x660] sm:$0xff]  ;;  %v1236_v2 = vld [vmem:[#allocation4 + $0x730] sm:$0xff] }
 0x377   :  { %v1187_v29 = vld [vmem:[#allocation4 + $0x5a8] sm:$0xff]  ;;  %v1241_v5 = vld [vmem:[#allocation4 + $0x758] sm:$0xff] }
 0x378   :  { %v1245_v6 = vld [vmem:[#allocation4 + $0x778] sm:$0xff] }
 0x379   :  { %4221 = vmatpush1.bf16.msra.mxu0 %v4220_v35  ;;  %4349 = vmatpush1.bf16.msra.mxu1 %v4348_v36  ;;  %v6345_v54 = vpop.f32.mrb[10].mxu1  ;;  %v4238_v35 = vpack.c.bf16 %v1187_v29, %v1183_v28  ;;  %v4366_v36 = vpack.c.bf16 %v1189_v32, %v1185_v31  ;;  %v4252_v28 = vpack.c.bf16 %v1210_v14, %v1206_v13  ;;  %v1214_v31 = vld [vmem:[#allocation4 + $0x680] sm:$0xff]  ;;  %v1240_v13 = vld [vmem:[#allocation4 + $0x750] sm:$0xff] }
 0x37a   :  { %4223 = vmatprep.subr.bf16.mxu0 %v4222_v39  ;;  %4351 = vmatprep.subr.bf16.mxu1 %v4350_v40  ;;  %v6347_v63 = vpop.f32.mrb[11].mxu1  ;;  %v1191_v39 = vld [vmem:[#allocation4 + $0x5c8] sm:$0xff]  ;;  %v4380_v29 = vpack.c.bf16 %v1212_v20, %v1208_v19  ;;  %v1218_v32 = vld [vmem:[#allocation4 + $0x6a0] sm:$0xff]  ;;  %v1244_v14 = vld [vmem:[#allocation4 + $0x770] sm:$0xff] }
 0x37b   :  { %1397 = vmatprep.mubr.f32.mxu0 %v6347_v63  ;;  %1539 = vmatprep.mubr.f32.mxu1 %v6347_v63  ;;  %v1195_v40 = vld [vmem:[#allocation4 + $0x5e8] sm:$0xff]  ;;  %v1249_v19 = vld [vmem:[#allocation4 + $0x798] sm:$0xff] }
 0x37c   :  { %v1253_v20 = vld [vmem:[#allocation4 + $0x7b8] sm:$0xff] }
 0x37d   :  { %4225 = vmatpush1.bf16.msra.mxu0 %v4224_v48  ;;  %4353 = vmatpush1.bf16.msra.mxu1 %v4352_v50  ;;  %v4242_v48 = vpack.c.bf16 %v1195_v40, %v1191_v39  ;;  %v4370_v50 = vpack.c.bf16 %v1197_v42, %v1193_v41  ;;  %v4256_v39 = vpack.c.bf16 %v1218_v32, %v1214_v31  ;;  %v1222_v41 = vld [vmem:[#allocation4 + $0x6c0] sm:$0xff]  ;;  %v1248_v31 = vld [vmem:[#allocation4 + $0x790] sm:$0xff] }
 0x37e   :  { %4227 = vmatprep.subr.bf16.mxu0 %v4226_v56  ;;  %4355 = vmatprep.subr.bf16.mxu1 %v4354_v58  ;;  %v1199_v56 = vld [vmem:[#allocation4 + $0x608] sm:$0xff]  ;;  %v4384_v40 = vpack.c.bf16 %v1220_v55, %v1216_v34  ;;  %v1226_v42 = vld [vmem:[#allocation4 + $0x6e0] sm:$0xff]  ;;  %v1252_v32 = vld [vmem:[#allocation4 + $0x7b0] sm:$0xff] }
 0x37f   :  { %v1203_v58 = vld [vmem:[#allocation4 + $0x628] sm:$0xff]  ;;  %v1257_v34 = vld [vmem:[#allocation4 + $0x7d8] sm:$0xff] }
 0x380   :  { %v1261_v55 = vld [vmem:[#allocation4 + $0x7f8] sm:$0xff] }
 0x381   :  { %4229 = vmatpush1.bf16.msra.mxu0 %v4228_v3  ;;  %4357 = vmatpush1.bf16.msra.mxu1 %v4356_v4  ;;  %v4246_v3 = vpack.c.bf16 %v1203_v58, %v1199_v56  ;;  %v4374_v4 = vpack.c.bf16 %v1205_v61, %v1201_v60  ;;  %v4260_v56 = vpack.c.bf16 %v1226_v42, %v1222_v41  ;;  %v1230_v60 = vld [vmem:[#allocation4 + $0x700] sm:$0xff]  ;;  %v1256_v41 = vld [vmem:[#allocation4 + $0x7d0] sm:$0xff] }
 0x382   :  { %4231 = vmatprep.subr.bf16.mxu0 %v4230_v7  ;;  %4359 = vmatprep.subr.bf16.mxu1 %v4358_v8  ;;  %v1207_v7 = vld [vmem:[#allocation4 + $0x648] sm:$0xff]  ;;  %v4388_v58 = vpack.c.bf16 %v1228_v46, %v1224_v45  ;;  %v1234_v61 = vld [vmem:[#allocation4 + $0x720] sm:$0xff]  ;;  %v1260_v42 = vld [vmem:[#allocation4 + $0x7f0] sm:$0xff] }
 0x383   :  { %v1211_v8 = vld [vmem:[#allocation4 + $0x668] sm:$0xff]  ;;  %v753_v45 = vld [vmem:[#allocation2 + $0x18] sm:$0xff] }
 0x384   :  { %v757_v46 = vld [vmem:[#allocation2 + $0x38] sm:$0xff] }
 0x385   :  { %4233 = vmatpush1.bf16.msra.mxu0 %v4232_v15  ;;  %4361 = vmatpush1.bf16.msra.mxu1 %v4360_v16  ;;  %v4250_v15 = vpack.c.bf16 %v1211_v8, %v1207_v7  ;;  %v4378_v16 = vpack.c.bf16 %v1213_v10, %v1209_v9  ;;  %v4264_v7 = vpack.c.bf16 %v1234_v61, %v1230_v60  ;;  %v1238_v9 = vld [vmem:[#allocation4 + $0x740] sm:$0xff]  ;;  %v752_v60 = vld [vmem:[#allocation2 + $0x10] sm:$0xff] }
 0x386   :  { %4235 = vmatprep.subr.bf16.mxu0 %v4234_v25  ;;  %4363 = vmatprep.subr.bf16.mxu1 %v4362_v22  ;;  %v1215_v25 = vld [vmem:[#allocation4 + $0x688] sm:$0xff]  ;;  %v4392_v8 = vpack.c.bf16 %v1236_v2, %v1232_v1  ;;  %v1242_v10 = vld [vmem:[#allocation4 + $0x760] sm:$0xff]  ;;  %v756_v61 = vld [vmem:[#allocation2 + $0x30] sm:$0xff] }
 0x387   :  { %v1219_v22 = vld [vmem:[#allocation4 + $0x6a8] sm:$0xff]  ;;  %v761_v1 = vld [vmem:[#allocation2 + $0x58] sm:$0xff] }
 0x388   :  { %v765_v2 = vld [vmem:[#allocation2 + $0x78] sm:$0xff] }
 0x389   :  { %4237 = vmatpush1.bf16.msra.mxu0 %v4236_v33  ;;  %4365 = vmatpush1.bf16.msra.mxu1 %v4364_v52  ;;  %v4254_v33 = vpack.c.bf16 %v1219_v22, %v1215_v25  ;;  %v4382_v52 = vpack.c.bf16 %v1221_v26, %v1217_v23  ;;  %v4268_v25 = vpack.c.bf16 %v1242_v10, %v1238_v9  ;;  %v1246_v23 = vld [vmem:[#allocation4 + $0x780] sm:$0xff]  ;;  %v764_v10 = vld [vmem:[#allocation2 + $0x70] sm:$0xff] }
 0x38a   :  { %4239 = vmatprep.subr.bf16.mxu0 %v4238_v35  ;;  %4367 = vmatprep.subr.bf16.mxu1 %v4366_v36  ;;  %v1223_v35 = vld [vmem:[#allocation4 + $0x6c8] sm:$0xff]  ;;  %v4396_v22 = vpack.c.bf16 %v1244_v14, %v1240_v13  ;;  %v1250_v26 = vld [vmem:[#allocation4 + $0x7a0] sm:$0xff]  ;;  %v4538_v9 = vpack.c.bf16 %v765_v2, %v761_v1  ;;  %v769_v13 = vld [vmem:[#allocation2 + $0x98] sm:$0xff] }
 0x38b   :  { %v1227_v36 = vld [vmem:[#allocation4 + $0x6e8] sm:$0xff]  ;;  %v773_v14 = vld [vmem:[#allocation2 + $0xb8] sm:$0xff]  ;;  %v790_v2 = vld [vmem:[#allocation2 + $0x140] sm:$0xff] }
 0x38d   :  { %4241 = vmatpush1.bf16.msra.mxu0 %v4240_v43  ;;  %4369 = vmatpush1.bf16.msra.mxu1 %v4368_v44  ;;  %v4258_v43 = vpack.c.bf16 %v1227_v36, %v1223_v35  ;;  %v4386_v44 = vpack.c.bf16 %v1229_v38, %v1225_v37  ;;  %v4272_v35 = vpack.c.bf16 %v1250_v26, %v1246_v23  ;;  %v1254_v37 = vld [vmem:[#allocation4 + $0x7c0] sm:$0xff]  ;;  %v772_v26 = vld [vmem:[#allocation2 + $0xb0] sm:$0xff] }
 0x38e   :  { %4243 = vmatprep.subr.bf16.mxu0 %v4242_v48  ;;  %4371 = vmatprep.subr.bf16.mxu1 %v4370_v50  ;;  %v1231_v48 = vld [vmem:[#allocation4 + $0x708] sm:$0xff]  ;;  %v4400_v36 = vpack.c.bf16 %v1252_v32, %v1248_v31  ;;  %v1258_v38 = vld [vmem:[#allocation4 + $0x7e0] sm:$0xff]  ;;  %v4542_v23 = vpack.c.bf16 %v773_v14, %v769_v13  ;;  %v777_v31 = vld [vmem:[#allocation2 + $0xd8] sm:$0xff] }
 0x38f   :  { %v1235_v50 = vld [vmem:[#allocation4 + $0x728] sm:$0xff]  ;;  %v781_v32 = vld [vmem:[#allocation2 + $0xf8] sm:$0xff]  ;;  %v798_v14 = vld [vmem:[#allocation2 + $0x180] sm:$0xff] }
 0x391   :  { %4245 = vmatpush1.bf16.msra.mxu0 %v4244_v62  ;;  %4373 = vmatpush1.bf16.msra.mxu1 %v4372_v0  ;;  %v4262_v62 = vpack.c.bf16 %v1235_v50, %v1231_v48  ;;  %v4390_v0 = vpack.c.bf16 %v1237_v53, %v1233_v51  ;;  %v4276_v48 = vpack.c.bf16 %v1258_v38, %v1254_v37  ;;  %v780_v38 = vld [vmem:[#allocation2 + $0xf0] sm:$0xff] }
 0x392   :  { %4247 = vmatprep.subr.bf16.mxu0 %v4246_v3  ;;  %4375 = vmatprep.subr.bf16.mxu1 %v4374_v4  ;;  %v1239_v3 = vld [vmem:[#allocation4 + $0x748] sm:$0xff]  ;;  %v4404_v50 = vpack.c.bf16 %v1260_v42, %v1256_v41  ;;  %v4534_v53 = vpack.c.bf16 %v757_v46, %v753_v45  ;;  %v4546_v37 = vpack.c.bf16 %v781_v32, %v777_v31  ;;  %v785_v41 = vld [vmem:[#allocation2 + $0x118] sm:$0xff]  ;;  %v782_v46 = vld [vmem:[#allocation2 + $0x100] sm:$0xff] }
 0x393   :  { %v1243_v4 = vld [vmem:[#allocation4 + $0x768] sm:$0xff]  ;;  %v789_v42 = vld [vmem:[#allocation2 + $0x138] sm:$0xff]  ;;  %v806_v32 = vld [vmem:[#allocation2 + $0x1c0] sm:$0xff] }
 0x395   :  { %4249 = vmatpush1.bf16.msra.mxu0 %v4248_v11  ;;  %4377 = vmatpush1.bf16.msra.mxu1 %v4376_v12  ;;  %v4266_v11 = vpack.c.bf16 %v1243_v4, %v1239_v3  ;;  %v4394_v12 = vpack.c.bf16 %v1245_v6, %v1241_v5  ;;  %v4536_v4 = vpack.c.bf16 %v756_v61, %v752_v60  ;;  %v758_v5 = vld [vmem:[#allocation2 + $0x40] sm:$0xff]  ;;  %v793_v60 = vld [vmem:[#allocation2 + $0x158] sm:$0xff] }
 0x396   :  { %4251 = vmatprep.subr.bf16.mxu0 %v4250_v15  ;;  %4379 = vmatprep.subr.bf16.mxu1 %v4378_v16  ;;  %v1247_v15 = vld [vmem:[#allocation4 + $0x788] sm:$0xff]  ;;  %v762_v6 = vld [vmem:[#allocation2 + $0x60] sm:$0xff]  ;;  %v797_v61 = vld [vmem:[#allocation2 + $0x178] sm:$0xff] }
 0x397   :  { %v1251_v16 = vld [vmem:[#allocation4 + $0x7a8] sm:$0xff] }
 0x399   :  { %4253 = vmatpush1.bf16.msra.mxu0 %v4252_v28  ;;  %4381 = vmatpush1.bf16.msra.mxu1 %v4380_v29  ;;  %v4270_v28 = vpack.c.bf16 %v1251_v16, %v1247_v15  ;;  %v4398_v29 = vpack.c.bf16 %v1253_v20, %v1249_v19  ;;  %v4412_v15 = vpack.c.bf16 %v762_v6, %v758_v5  ;;  %v766_v20 = vld [vmem:[#allocation2 + $0x80] sm:$0xff]  ;;  %v796_v6 = vld [vmem:[#allocation2 + $0x170] sm:$0xff] }
 0x39a   :  { %4255 = vmatprep.subr.bf16.mxu0 %v4254_v33  ;;  %4383 = vmatprep.subr.bf16.mxu1 %v4382_v52  ;;  %v1255_v33 = vld [vmem:[#allocation4 + $0x7c8] sm:$0xff]  ;;  %v4554_v5 = vpack.c.bf16 %v797_v61, %v793_v60  ;;  %v822_v61 = vld [vmem:[#allocation2 + $0x240] sm:$0xff] }
 0x39b   :  { %v1259_v52 = vld [vmem:[#allocation4 + $0x7e8] sm:$0xff] }
 0x39d   :  { %4257 = vmatpush1.bf16.msra.mxu0 %v4256_v39  ;;  %4385 = vmatpush1.bf16.msra.mxu1 %v4384_v40  ;;  %v4274_v39 = vpack.c.bf16 %v1259_v52, %v1255_v33  ;;  %v4402_v40 = vpack.c.bf16 %v1261_v55, %v1257_v34  ;;  %v774_v55 = vld [vmem:[#allocation2 + $0xc0] sm:$0xff] }
 0x39e   :  { %4259 = vmatprep.subr.bf16.mxu0 %v4258_v43  ;;  %4387 = vmatprep.subr.bf16.mxu1 %v4386_v44  ;;  %v751_v43 = vld [vmem:[#allocation2 + $0x8] sm:$0xff] }
 0x39f   :  { %v755_v44 = vld [vmem:[#allocation2 + $0x28] sm:$0xff] }
 0x3a0   :  { %v4406_v51 = vpack.c.bf16 %v755_v44, %v751_v43 }
 0x3a1   :  { %4261 = vmatpush1.bf16.msra.mxu0 %v4260_v56  ;;  %4389 = vmatpush1.bf16.msra.mxu1 %v4388_v58  ;;  %v750_v56 = vld [vmem:[#allocation2] sm:$0xff] }
 0x3a2   :  { %4263 = vmatprep.subr.bf16.mxu0 %v4262_v62  ;;  %4391 = vmatprep.subr.bf16.mxu1 %v4390_v0  ;;  %v754_v58 = vld [vmem:[#allocation2 + $0x20] sm:$0xff]  ;;  %v759_v62 = vld [vmem:[#allocation2 + $0x48] sm:$0xff] }
 0x3a3   :  { %v763_v0 = vld [vmem:[#allocation2 + $0x68] sm:$0xff]  ;;  %v4408_v3 = vpack.c.bf16 %v754_v58, %v750_v56 }
 0x3a4   :  { %v791_v56 = vld [vmem:[#allocation2 + $0x148] sm:$0xff] }
 0x3a5   :  { %4265 = vmatpush1.bf16.msra.mxu0 %v4264_v7  ;;  %4393 = vmatpush1.bf16.msra.mxu1 %v4392_v8  ;;  %v760_v7 = vld [vmem:[#allocation2 + $0x50] sm:$0xff]  ;;  %v4410_v8 = vpack.c.bf16 %v763_v0, %v759_v62  ;;  %v795_v58 = vld [vmem:[#allocation2 + $0x168] sm:$0xff] }
 0x3a6   :  { %4267 = vmatprep.subr.bf16.mxu0 %v4266_v11  ;;  %4395 = vmatprep.subr.bf16.mxu1 %v4394_v12  ;;  %v767_v11 = vld [vmem:[#allocation2 + $0x88] sm:$0xff]  ;;  %v4540_v16 = vpack.c.bf16 %v764_v10, %v760_v7  ;;  %v4426_v1 = vpack.c.bf16 %v795_v58, %v791_v56  ;;  %v805_v10 = vld [vmem:[#allocation2 + $0x1b8] sm:$0xff] }
 0x3a7   :  { %v771_v12 = vld [vmem:[#allocation2 + $0xa8] sm:$0xff] }
 0x3a8   :  { %v4414_v19 = vpack.c.bf16 %v771_v12, %v767_v11  ;;  %v799_v7 = vld [vmem:[#allocation2 + $0x188] sm:$0xff] }
 0x3a9   :  { %4269 = vmatpush1.bf16.msra.mxu0 %v4268_v25  ;;  %4397 = vmatpush1.bf16.msra.mxu1 %v4396_v22  ;;  %v770_v25 = vld [vmem:[#allocation2 + $0xa0] sm:$0xff]  ;;  %v768_v22 = vld [vmem:[#allocation2 + $0x90] sm:$0xff] }
 0x3aa   :  { %4271 = vmatprep.subr.bf16.mxu0 %v4270_v28  ;;  %4399 = vmatprep.subr.bf16.mxu1 %v4398_v29  ;;  %v775_v28 = vld [vmem:[#allocation2 + $0xc8] sm:$0xff]  ;;  %v4416_v33 = vpack.c.bf16 %v770_v25, %v766_v20  ;;  %v4544_v52 = vpack.c.bf16 %v772_v26, %v768_v22  ;;  %v804_v20 = vld [vmem:[#allocation2 + $0x1b0] sm:$0xff]  ;;  %v813_v26 = vld [vmem:[#allocation2 + $0x1f8] sm:$0xff] }
 0x3ab   :  { %v779_v29 = vld [vmem:[#allocation2 + $0xe8] sm:$0xff] }
 0x3ac   :  { %v4418_v34 = vpack.c.bf16 %v779_v29, %v775_v28  ;;  %v807_v25 = vld [vmem:[#allocation2 + $0x1c8] sm:$0xff] }
 0x3ad   :  { %4273 = vmatpush1.bf16.msra.mxu0 %v4272_v35  ;;  %4401 = vmatpush1.bf16.msra.mxu1 %v4400_v36  ;;  %v778_v35 = vld [vmem:[#allocation2 + $0xe0] sm:$0xff]  ;;  %v776_v36 = vld [vmem:[#allocation2 + $0xd0] sm:$0xff]  ;;  %v811_v22 = vld [vmem:[#allocation2 + $0x1e8] sm:$0xff] }
 0x3ae   :  { %4275 = vmatprep.subr.bf16.mxu0 %v4274_v39  ;;  %4403 = vmatprep.subr.bf16.mxu1 %v4402_v40  ;;  %v783_v39 = vld [vmem:[#allocation2 + $0x108] sm:$0xff]  ;;  %v4420_v43 = vpack.c.bf16 %v778_v35, %v774_v55  ;;  %v4548_v44 = vpack.c.bf16 %v780_v38, %v776_v36  ;;  %v4434_v31 = vpack.c.bf16 %v811_v22, %v807_v25  ;;  %v812_v55 = vld [vmem:[#allocation2 + $0x1f0] sm:$0xff]  ;;  %v821_v38 = vld [vmem:[#allocation2 + $0x238] sm:$0xff] }
 0x3af   :  { %v787_v40 = vld [vmem:[#allocation2 + $0x128] sm:$0xff] }
 0x3b0   :  { %v4422_v45 = vpack.c.bf16 %v787_v40, %v783_v39  ;;  %v815_v35 = vld [vmem:[#allocation2 + $0x208] sm:$0xff] }
 0x3b1   :  { %4277 = vmatpush1.bf16.msra.mxu0 %v4276_v48  ;;  %4405 = vmatpush1.bf16.msra.mxu1 %v4404_v50  ;;  %v786_v48 = vld [vmem:[#allocation2 + $0x120] sm:$0xff]  ;;  %v784_v50 = vld [vmem:[#allocation2 + $0x110] sm:$0xff]  ;;  %v819_v36 = vld [vmem:[#allocation2 + $0x228] sm:$0xff] }
 0x3b2   :  { %4407 = vmatprep.subr.bf16.mxu0 %v4406_v51  ;;  %4535 = vmatprep.subr.bf16.mxu1 %v4534_v53  ;;  %v4550_v51 = vpack.c.bf16 %v789_v42, %v785_v41  ;;  %v788_v53 = vld [vmem:[#allocation2 + $0x130] sm:$0xff]  ;;  %v4424_v62 = vpack.c.bf16 %v786_v48, %v782_v46  ;;  %v4438_v41 = vpack.c.bf16 %v819_v36, %v815_v35  ;;  %v814_v42 = vld [vmem:[#allocation2 + $0x200] sm:$0xff]  ;;  %v823_v48 = vld [vmem:[#allocation2 + $0x248] sm:$0xff] }
 0x3b3   :  { %v4552_v0 = vpack.c.bf16 %v788_v53, %v784_v50  ;;  %v820_v46 = vld [vmem:[#allocation2 + $0x230] sm:$0xff]  ;;  %v827_v50 = vld [vmem:[#allocation2 + $0x268] sm:$0xff]  ;;  %v829_v53 = vld [vmem:[#allocation2 + $0x278] sm:$0xff] }
 0x3b4   :  { %1398 = vmatmul.mubr.f32.vlgmr.msra.gmra.mrb[0].mxu0 %v6345_v54  ;;  %1540 = vmatmul.mubr.f32.vlgmr.msra.gmra.mrb[12].mxu1 %v6345_v54  ;;  %v4442_v60 = vpack.c.bf16 %v827_v50, %v823_v48 }
 0x3b5   :  { %4409 = vmatpush1.bf16.msra.mxu0 %v4408_v3  ;;  %1612 = vmatprep.mubr.f32.mxu0 %v6314_v18  ;;  %v794_v3 = vld [vmem:[#allocation2 + $0x160] sm:$0xff] }
 0x3b6   :  { %4537 = vmatpush1.bf16.msra.mxu1 %v4536_v4  ;;  %1754 = vmatprep.mubr.f32.mxu1 %v6314_v18  ;;  %v792_v4 = vld [vmem:[#allocation2 + $0x150] sm:$0xff]  ;;  %v4428_v11 = vpack.c.bf16 %v794_v3, %v790_v2  ;;  %v831_v3 = vld [vmem:[#allocation2 + $0x288] sm:$0xff] }
 0x3b7   :  { %4411 = vmatprep.subr.bf16.mxu0 %v4410_v8  ;;  %4539 = vmatprep.subr.bf16.mxu1 %v4538_v9  ;;  %v803_v8 = vld [vmem:[#allocation2 + $0x1a8] sm:$0xff]  ;;  %v801_v9 = vld [vmem:[#allocation2 + $0x198] sm:$0xff]  ;;  %v4556_v12 = vpack.c.bf16 %v796_v6, %v792_v4  ;;  %v828_v2 = vld [vmem:[#allocation2 + $0x270] sm:$0xff] }
 0x3b8   :  { %v4430_v13 = vpack.c.bf16 %v803_v8, %v799_v7  ;;  %v835_v4 = vld [vmem:[#allocation2 + $0x2a8] sm:$0xff]  ;;  %v837_v6 = vld [vmem:[#allocation2 + $0x2b8] sm:$0xff] }
 0x3b9   :  { %4413 = vmatpush1.bf16.msra.mxu0 %v4412_v15  ;;  %v802_v15 = vld [vmem:[#allocation2 + $0x1a0] sm:$0xff] }
 0x3ba   :  { %4541 = vmatpush1.bf16.msra.mxu1 %v4540_v16  ;;  %4415 = vmatprep.subr.bf16.mxu0 %v4414_v19  ;;  %v800_v16 = vld [vmem:[#allocation2 + $0x190] sm:$0xff]  ;;  %v4558_v19 = vpack.c.bf16 %v805_v10, %v801_v9  ;;  %v4432_v28 = vpack.c.bf16 %v802_v15, %v798_v14  ;;  %v4446_v9 = vpack.c.bf16 %v835_v4, %v831_v3  ;;  %v830_v10 = vld [vmem:[#allocation2 + $0x280] sm:$0xff]  ;;  %v839_v15 = vld [vmem:[#allocation2 + $0x2c8] sm:$0xff] }
 0x3bb   :  { %4543 = vmatprep.subr.bf16.mxu1 %v4542_v23  ;;  %v809_v23 = vld [vmem:[#allocation2 + $0x1d8] sm:$0xff]  ;;  %v4560_v29 = vpack.c.bf16 %v804_v20, %v800_v16  ;;  %v836_v14 = vld [vmem:[#allocation2 + $0x2b0] sm:$0xff]  ;;  %v843_v16 = vld [vmem:[#allocation2 + $0x2e8] sm:$0xff] }
 0x3bc   :  { %v845_v20 = vld [vmem:[#allocation2 + $0x2f8] sm:$0xff] }
 0x3bd   :  { %4417 = vmatpush1.bf16.msra.mxu0 %v4416_v33  ;;  %v810_v33 = vld [vmem:[#allocation2 + $0x1e0] sm:$0xff] }
 0x3be   :  { %4545 = vmatpush1.bf16.msra.mxu1 %v4544_v52  ;;  %4419 = vmatprep.subr.bf16.mxu0 %v4418_v34  ;;  %v808_v52 = vld [vmem:[#allocation2 + $0x1d0] sm:$0xff]  ;;  %v4562_v34 = vpack.c.bf16 %v813_v26, %v809_v23  ;;  %v4436_v39 = vpack.c.bf16 %v810_v33, %v806_v32  ;;  %v4450_v23 = vpack.c.bf16 %v843_v16, %v839_v15  ;;  %v838_v26 = vld [vmem:[#allocation2 + $0x2c0] sm:$0xff]  ;;  %v847_v33 = vld [vmem:[#allocation2 + $0x308] sm:$0xff] }
 0x3bf   :  { %4547 = vmatprep.subr.bf16.mxu1 %v4546_v37  ;;  %v817_v37 = vld [vmem:[#allocation2 + $0x218] sm:$0xff]  ;;  %v4564_v40 = vpack.c.bf16 %v812_v55, %v808_v52  ;;  %v844_v32 = vld [vmem:[#allocation2 + $0x2f0] sm:$0xff]  ;;  %v851_v52 = vld [vmem:[#allocation2 + $0x328] sm:$0xff] }
 0x3c0   :  { %v853_v55 = vld [vmem:[#allocation2 + $0x338] sm:$0xff] }
 0x3c1   :  { %4421 = vmatpush1.bf16.msra.mxu0 %v4420_v43  ;;  %v818_v43 = vld [vmem:[#allocation2 + $0x220] sm:$0xff] }
 0x3c2   :  { %4549 = vmatpush1.bf16.msra.mxu1 %v4548_v44  ;;  %4423 = vmatprep.subr.bf16.mxu0 %v4422_v45  ;;  %v816_v44 = vld [vmem:[#allocation2 + $0x210] sm:$0xff]  ;;  %v4566_v45 = vpack.c.bf16 %v821_v38, %v817_v37  ;;  %v4440_v56 = vpack.c.bf16 %v818_v43, %v814_v42  ;;  %v4454_v37 = vpack.c.bf16 %v851_v52, %v847_v33  ;;  %v846_v38 = vld [vmem:[#allocation2 + $0x300] sm:$0xff]  ;;  %v855_v43 = vld [vmem:[#allocation2 + $0x348] sm:$0xff] }
 0x3c3   :  { %4551 = vmatprep.subr.bf16.mxu1 %v4550_v51  ;;  %v825_v51 = vld [vmem:[#allocation2 + $0x258] sm:$0xff]  ;;  %v4568_v58 = vpack.c.bf16 %v820_v46, %v816_v44  ;;  %v852_v42 = vld [vmem:[#allocation2 + $0x330] sm:$0xff]  ;;  %v859_v44 = vld [vmem:[#allocation2 + $0x368] sm:$0xff] }
 0x3c4   :  { %v861_v46 = vld [vmem:[#allocation2 + $0x378] sm:$0xff] }
 0x3c5   :  { %4425 = vmatpush1.bf16.msra.mxu0 %v4424_v62  ;;  %v826_v62 = vld [vmem:[#allocation2 + $0x260] sm:$0xff] }
 0x3c6   :  { %4553 = vmatpush1.bf16.msra.mxu1 %v4552_v0  ;;  %4427 = vmatprep.subr.bf16.mxu0 %v4426_v1  ;;  %v824_v0 = vld [vmem:[#allocation2 + $0x250] sm:$0xff]  ;;  %v4570_v1 = vpack.c.bf16 %v829_v53, %v825_v51  ;;  %v4444_v7 = vpack.c.bf16 %v826_v62, %v822_v61  ;;  %v4458_v51 = vpack.c.bf16 %v859_v44, %v855_v43  ;;  %v854_v53 = vld [vmem:[#allocation2 + $0x340] sm:$0xff]  ;;  %v863_v62 = vld [vmem:[#allocation2 + $0x388] sm:$0xff] }
 0x3c7   :  { %4555 = vmatprep.subr.bf16.mxu1 %v4554_v5  ;;  %v833_v5 = vld [vmem:[#allocation2 + $0x298] sm:$0xff]  ;;  %v4572_v8 = vpack.c.bf16 %v828_v2, %v824_v0  ;;  %v860_v61 = vld [vmem:[#allocation2 + $0x370] sm:$0xff]  ;;  %v867_v0 = vld [vmem:[#allocation2 + $0x3a8] sm:$0xff] }
 0x3c8   :  { %v869_v2 = vld [vmem:[#allocation2 + $0x3b8] sm:$0xff] }
 0x3c9   :  { %4429 = vmatpush1.bf16.msra.mxu0 %v4428_v11  ;;  %v834_v11 = vld [vmem:[#allocation2 + $0x2a0] sm:$0xff]  ;;  %v893_v43 = vld [vmem:[#allocation2 + $0x478] sm:$0xff] }
 0x3ca   :  { %4557 = vmatpush1.bf16.msra.mxu1 %v4556_v12  ;;  %4431 = vmatprep.subr.bf16.mxu0 %v4430_v13  ;;  %v832_v12 = vld [vmem:[#allocation2 + $0x290] sm:$0xff]  ;;  %v4574_v13 = vpack.c.bf16 %v837_v6, %v833_v5  ;;  %v4448_v25 = vpack.c.bf16 %v834_v11, %v830_v10  ;;  %v4462_v5 = vpack.c.bf16 %v867_v0, %v863_v62  ;;  %v862_v6 = vld [vmem:[#allocation2 + $0x380] sm:$0xff]  ;;  %v871_v11 = vld [vmem:[#allocation2 + $0x3c8] sm:$0xff] }
 0x3cb   :  { %4559 = vmatprep.subr.bf16.mxu1 %v4558_v19  ;;  %v841_v19 = vld [vmem:[#allocation2 + $0x2d8] sm:$0xff]  ;;  %v4576_v22 = vpack.c.bf16 %v836_v14, %v832_v12  ;;  %v868_v10 = vld [vmem:[#allocation2 + $0x3b0] sm:$0xff]  ;;  %v875_v12 = vld [vmem:[#allocation2 + $0x3e8] sm:$0xff] }
 0x3cc   :  { %v877_v14 = vld [vmem:[#allocation2 + $0x3f8] sm:$0xff] }
 0x3cd   :  { %4433 = vmatpush1.bf16.msra.mxu0 %v4432_v28  ;;  %v842_v28 = vld [vmem:[#allocation2 + $0x2e0] sm:$0xff] }
 0x3ce   :  { %4561 = vmatpush1.bf16.msra.mxu1 %v4560_v29  ;;  %4435 = vmatprep.subr.bf16.mxu0 %v4434_v31  ;;  %v840_v29 = vld [vmem:[#allocation2 + $0x2d0] sm:$0xff]  ;;  %v4578_v31 = vpack.c.bf16 %v845_v20, %v841_v19  ;;  %v4452_v35 = vpack.c.bf16 %v842_v28, %v838_v26  ;;  %v4466_v19 = vpack.c.bf16 %v875_v12, %v871_v11  ;;  %v870_v20 = vld [vmem:[#allocation2 + $0x3c0] sm:$0xff]  ;;  %v879_v28 = vld [vmem:[#allocation2 + $0x408] sm:$0xff] }
 0x3cf   :  { %4563 = vmatprep.subr.bf16.mxu1 %v4562_v34  ;;  %v849_v34 = vld [vmem:[#allocation2 + $0x318] sm:$0xff]  ;;  %v4580_v36 = vpack.c.bf16 %v844_v32, %v840_v29  ;;  %v876_v26 = vld [vmem:[#allocation2 + $0x3f0] sm:$0xff]  ;;  %v883_v29 = vld [vmem:[#allocation2 + $0x428] sm:$0xff] }
 0x3d0   :  { %v885_v32 = vld [vmem:[#allocation2 + $0x438] sm:$0xff] }
 0x3d1   :  { %4437 = vmatpush1.bf16.msra.mxu0 %v4436_v39  ;;  %v850_v39 = vld [vmem:[#allocation2 + $0x320] sm:$0xff] }
 0x3d2   :  { %4565 = vmatpush1.bf16.msra.mxu1 %v4564_v40  ;;  %4439 = vmatprep.subr.bf16.mxu0 %v4438_v41  ;;  %v848_v40 = vld [vmem:[#allocation2 + $0x310] sm:$0xff]  ;;  %v4582_v41 = vpack.c.bf16 %v853_v55, %v849_v34  ;;  %v4456_v48 = vpack.c.bf16 %v850_v39, %v846_v38  ;;  %v4470_v34 = vpack.c.bf16 %v883_v29, %v879_v28  ;;  %v878_v55 = vld [vmem:[#allocation2 + $0x400] sm:$0xff]  ;;  %v887_v39 = vld [vmem:[#allocation2 + $0x448] sm:$0xff] }
 0x3d3   :  { %4567 = vmatprep.subr.bf16.mxu1 %v4566_v45  ;;  %v857_v45 = vld [vmem:[#allocation2 + $0x358] sm:$0xff]  ;;  %v4584_v50 = vpack.c.bf16 %v852_v42, %v848_v40  ;;  %v884_v38 = vld [vmem:[#allocation2 + $0x430] sm:$0xff]  ;;  %v891_v40 = vld [vmem:[#allocation2 + $0x468] sm:$0xff] }
 0x3d4   :  { %v889_v42 = vld [vmem:[#allocation2 + $0x458] sm:$0xff] }
 0x3d5   :  { %4441 = vmatpush1.bf16.msra.mxu0 %v4440_v56  ;;  %v858_v56 = vld [vmem:[#allocation2 + $0x360] sm:$0xff] }
 0x3d6   :  { %4569 = vmatpush1.bf16.msra.mxu1 %v4568_v58  ;;  %4443 = vmatprep.subr.bf16.mxu0 %v4442_v60  ;;  %v856_v58 = vld [vmem:[#allocation2 + $0x350] sm:$0xff]  ;;  %v4586_v60 = vpack.c.bf16 %v861_v46, %v857_v45  ;;  %v4460_v3 = vpack.c.bf16 %v858_v56, %v854_v53  ;;  %v886_v45 = vld [vmem:[#allocation2 + $0x440] sm:$0xff]  ;;  %v895_v53 = vld [vmem:[#allocation2 + $0x488] sm:$0xff] }
 0x3d7   :  { %4571 = vmatprep.subr.bf16.mxu1 %v4570_v1  ;;  %v865_v1 = vld [vmem:[#allocation2 + $0x398] sm:$0xff]  ;;  %v4588_v4 = vpack.c.bf16 %v860_v61, %v856_v58  ;;  %v890_v46 = vld [vmem:[#allocation2 + $0x460] sm:$0xff]  ;;  %v899_v56 = vld [vmem:[#allocation2 + $0x4a8] sm:$0xff]  ;;  %v4602_v58 = vpack.c.bf16 %v893_v43, %v889_v42 }
 0x3d8   :  { %v901_v61 = vld [vmem:[#allocation2 + $0x4b8] sm:$0xff]  ;;  %v4476_v62 = vpack.c.bf16 %v890_v46, %v886_v45  ;;  %v918_v42 = vld [vmem:[#allocation2 + $0x540] sm:$0xff]  ;;  %v924_v46 = vld [vmem:[#allocation2 + $0x570] sm:$0xff] }
 0x3d9   :  { %4445 = vmatpush1.bf16.msra.mxu0 %v4444_v7  ;;  %v866_v7 = vld [vmem:[#allocation2 + $0x3a0] sm:$0xff] }
 0x3da   :  { %4573 = vmatpush1.bf16.msra.mxu1 %v4572_v8  ;;  %4447 = vmatprep.subr.bf16.mxu0 %v4446_v9  ;;  %v864_v8 = vld [vmem:[#allocation2 + $0x390] sm:$0xff]  ;;  %v4590_v9 = vpack.c.bf16 %v869_v2, %v865_v1  ;;  %v4464_v15 = vpack.c.bf16 %v866_v7, %v862_v6  ;;  %v4478_v1 = vpack.c.bf16 %v899_v56, %v895_v53  ;;  %v894_v2 = vld [vmem:[#allocation2 + $0x480] sm:$0xff]  ;;  %v903_v7 = vld [vmem:[#allocation2 + $0x4c8] sm:$0xff] }
 0x3db   :  { %4575 = vmatprep.subr.bf16.mxu1 %v4574_v13  ;;  %v873_v13 = vld [vmem:[#allocation2 + $0x3d8] sm:$0xff]  ;;  %v4592_v16 = vpack.c.bf16 %v868_v10, %v864_v8  ;;  %v900_v6 = vld [vmem:[#allocation2 + $0x4b0] sm:$0xff]  ;;  %v907_v8 = vld [vmem:[#allocation2 + $0x4e8] sm:$0xff] }
 0x3dc   :  { %v909_v10 = vld [vmem:[#allocation2 + $0x4f8] sm:$0xff]  ;;  %v922_v43 = vld [vmem:[#allocation2 + $0x560] sm:$0xff] }
 0x3dd   :  { %4449 = vmatpush1.bf16.msra.mxu0 %v4448_v25  ;;  %v874_v25 = vld [vmem:[#allocation2 + $0x3e0] sm:$0xff]  ;;  %v933_v53 = vld [vmem:[#allocation2 + $0x5b8] sm:$0xff]  ;;  %v4492_v56 = vpack.c.bf16 %v922_v43, %v918_v42  ;;  %v956_v42 = vld [vmem:[#allocation2 + $0x670] sm:$0xff] }
 0x3de   :  { %4577 = vmatpush1.bf16.msra.mxu1 %v4576_v22  ;;  %4451 = vmatprep.subr.bf16.mxu0 %v4450_v23  ;;  %v872_v22 = vld [vmem:[#allocation2 + $0x3d0] sm:$0xff]  ;;  %v4594_v23 = vpack.c.bf16 %v877_v14, %v873_v13  ;;  %v4468_v33 = vpack.c.bf16 %v874_v25, %v870_v20  ;;  %v4482_v13 = vpack.c.bf16 %v907_v8, %v903_v7  ;;  %v902_v14 = vld [vmem:[#allocation2 + $0x4c0] sm:$0xff]  ;;  %v911_v25 = vld [vmem:[#allocation2 + $0x508] sm:$0xff] }
 0x3df   :  { %4579 = vmatprep.subr.bf16.mxu1 %v4578_v31  ;;  %v881_v31 = vld [vmem:[#allocation2 + $0x418] sm:$0xff]  ;;  %v4596_v52 = vpack.c.bf16 %v876_v26, %v872_v22  ;;  %v908_v20 = vld [vmem:[#allocation2 + $0x4f0] sm:$0xff]  ;;  %v915_v22 = vld [vmem:[#allocation2 + $0x528] sm:$0xff] }
 0x3e0   :  { %v917_v26 = vld [vmem:[#allocation2 + $0x538] sm:$0xff]  ;;  %v959_v43 = vld [vmem:[#allocation2 + $0x688] sm:$0xff] }
 0x3e1   :  { %4453 = vmatpush1.bf16.msra.mxu0 %v4452_v35  ;;  %v882_v35 = vld [vmem:[#allocation2 + $0x420] sm:$0xff] }
 0x3e2   :  { %4581 = vmatpush1.bf16.msra.mxu1 %v4580_v36  ;;  %4455 = vmatprep.subr.bf16.mxu0 %v4454_v37  ;;  %v4598_v36 = vpack.c.bf16 %v885_v32, %v881_v31  ;;  %v880_v37 = vld [vmem:[#allocation2 + $0x410] sm:$0xff]  ;;  %v4486_v31 = vpack.c.bf16 %v915_v22, %v911_v25  ;;  %v910_v32 = vld [vmem:[#allocation2 + $0x500] sm:$0xff] }
 0x3e3   :  { %4583 = vmatprep.subr.bf16.mxu1 %v4582_v41  ;;  %v4472_v41 = vpack.c.bf16 %v882_v35, %v878_v55  ;;  %v4600_v44 = vpack.c.bf16 %v884_v38, %v880_v37  ;;  %v916_v55 = vld [vmem:[#allocation2 + $0x530] sm:$0xff]  ;;  %v919_v35 = vld [vmem:[#allocation2 + $0x548] sm:$0xff]  ;;  %v921_v37 = vld [vmem:[#allocation2 + $0x558] sm:$0xff] }
 0x3e4   :  { %v925_v38 = vld [vmem:[#allocation2 + $0x578] sm:$0xff] }
 0x3e5   :  { %4457 = vmatpush1.bf16.msra.mxu0 %v4456_v48  ;;  %v888_v48 = vld [vmem:[#allocation2 + $0x450] sm:$0xff]  ;;  %v4618_v45 = vpack.c.bf16 %v925_v38, %v921_v37  ;;  %v950_v38 = vld [vmem:[#allocation2 + $0x640] sm:$0xff] }
 0x3e6   :  { %4585 = vmatpush1.bf16.msra.mxu1 %v4584_v50  ;;  %4459 = vmatprep.subr.bf16.mxu0 %v4458_v51  ;;  %v4474_v50 = vpack.c.bf16 %v891_v40, %v887_v39  ;;  %v892_v51 = vld [vmem:[#allocation2 + $0x470] sm:$0xff] }
 0x3e7   :  { %4587 = vmatprep.subr.bf16.mxu1 %v4586_v60  ;;  %v897_v60 = vld [vmem:[#allocation2 + $0x498] sm:$0xff]  ;;  %v4604_v0 = vpack.c.bf16 %v892_v51, %v888_v48  ;;  %v927_v48 = vld [vmem:[#allocation2 + $0x588] sm:$0xff] }
 0x3e8   :  { %v929_v51 = vld [vmem:[#allocation2 + $0x598] sm:$0xff] }
 0x3e9   :  { %4461 = vmatpush1.bf16.msra.mxu0 %v4460_v3  ;;  %v898_v3 = vld [vmem:[#allocation2 + $0x4a0] sm:$0xff] }
 0x3ea   :  { %4589 = vmatpush1.bf16.msra.mxu1 %v4588_v4  ;;  %4463 = vmatprep.subr.bf16.mxu0 %v4462_v5  ;;  %v896_v4 = vld [vmem:[#allocation2 + $0x490] sm:$0xff]  ;;  %v4606_v5 = vpack.c.bf16 %v901_v61, %v897_v60  ;;  %v4480_v11 = vpack.c.bf16 %v898_v3, %v894_v2  ;;  %v926_v61 = vld [vmem:[#allocation2 + $0x580] sm:$0xff]  ;;  %v935_v3 = vld [vmem:[#allocation2 + $0x5c8] sm:$0xff] }
 0x3eb   :  { %4591 = vmatprep.subr.bf16.mxu1 %v4590_v9  ;;  %v905_v9 = vld [vmem:[#allocation2 + $0x4d8] sm:$0xff]  ;;  %v4608_v12 = vpack.c.bf16 %v900_v6, %v896_v4  ;;  %v932_v2 = vld [vmem:[#allocation2 + $0x5b0] sm:$0xff]  ;;  %v939_v4 = vld [vmem:[#allocation2 + $0x5e8] sm:$0xff] }
 0x3ec   :  { %v941_v6 = vld [vmem:[#allocation2 + $0x5f8] sm:$0xff] }
 0x3ed   :  { %4465 = vmatpush1.bf16.msra.mxu0 %v4464_v15  ;;  %v906_v15 = vld [vmem:[#allocation2 + $0x4e0] sm:$0xff] }
 0x3ee   :  { %4593 = vmatpush1.bf16.msra.mxu1 %v4592_v16  ;;  %4467 = vmatprep.subr.bf16.mxu0 %v4466_v19  ;;  %v904_v16 = vld [vmem:[#allocation2 + $0x4d0] sm:$0xff]  ;;  %v4610_v19 = vpack.c.bf16 %v909_v10, %v905_v9  ;;  %v4484_v28 = vpack.c.bf16 %v906_v15, %v902_v14  ;;  %v4498_v9 = vpack.c.bf16 %v939_v4, %v935_v3  ;;  %v934_v10 = vld [vmem:[#allocation2 + $0x5c0] sm:$0xff]  ;;  %v943_v15 = vld [vmem:[#allocation2 + $0x608] sm:$0xff] }
 0x3ef   :  { %4595 = vmatprep.subr.bf16.mxu1 %v4594_v23  ;;  %v913_v23 = vld [vmem:[#allocation2 + $0x518] sm:$0xff]  ;;  %v4612_v29 = vpack.c.bf16 %v908_v20, %v904_v16  ;;  %v940_v14 = vld [vmem:[#allocation2 + $0x5f0] sm:$0xff]  ;;  %v947_v16 = vld [vmem:[#allocation2 + $0x628] sm:$0xff] }
 0x3f0   :  { %v949_v20 = vld [vmem:[#allocation2 + $0x638] sm:$0xff] }
 0x3f1   :  { %4469 = vmatpush1.bf16.msra.mxu0 %v4468_v33  ;;  %v914_v33 = vld [vmem:[#allocation2 + $0x520] sm:$0xff] }
 0x3f2   :  { %4597 = vmatpush1.bf16.msra.mxu1 %v4596_v52  ;;  %4471 = vmatprep.subr.bf16.mxu0 %v4470_v34  ;;  %v912_v52 = vld [vmem:[#allocation2 + $0x510] sm:$0xff]  ;;  %v4614_v34 = vpack.c.bf16 %v917_v26, %v913_v23  ;;  %v4488_v39 = vpack.c.bf16 %v914_v33, %v910_v32  ;;  %v4502_v23 = vpack.c.bf16 %v947_v16, %v943_v15  ;;  %v942_v26 = vld [vmem:[#allocation2 + $0x600] sm:$0xff]  ;;  %v951_v33 = vld [vmem:[#allocation2 + $0x648] sm:$0xff] }
 0x3f3   :  { %4599 = vmatprep.subr.bf16.mxu1 %v4598_v36  ;;  %v923_v36 = vld [vmem:[#allocation2 + $0x568] sm:$0xff]  ;;  %v4616_v40 = vpack.c.bf16 %v916_v55, %v912_v52  ;;  %v948_v32 = vld [vmem:[#allocation2 + $0x630] sm:$0xff]  ;;  %v957_v55 = vld [vmem:[#allocation2 + $0x678] sm:$0xff] }
 0x3f4   :  { %1613 = vmatmul.mubr.f32.vlgmr.msra.gmra.mrb[0].mxu0 %v6310_v17  ;;  %v955_v52 = vld [vmem:[#allocation2 + $0x668] sm:$0xff] }
 0x3f5   :  { %1755 = vmatmul.mubr.f32.vlgmr.msra.gmra.mrb[12].mxu1 %v6310_v17  ;;  %4473 = vmatpush1.bf16.msra.mxu0 %v4472_v41  ;;  %v4490_v41 = vpack.c.bf16 %v923_v36, %v919_v35  ;;  %v4506_v37 = vpack.c.bf16 %v955_v52, %v951_v33 }
 0x3f6   :  { %1683 = vmatprep.mubr.f32.mxu0 %v6330_v30  ;;  %4601 = vmatpush1.bf16.msra.mxu1 %v4600_v44  ;;  %v920_v44 = vld [vmem:[#allocation2 + $0x550] sm:$0xff] }
 0x3f7   :  { %1825 = vmatprep.mubr.f32.mxu1 %v6330_v30  ;;  %4475 = vmatprep.subr.bf16.mxu0 %v4474_v50  ;;  %v931_v50 = vld [vmem:[#allocation2 + $0x5a8] sm:$0xff] }
 0x3f8   :  { %4603 = vmatprep.subr.bf16.mxu1 %v4602_v58  ;;  %v4620_v58 = vpack.c.bf16 %v924_v46, %v920_v44  ;;  %v4494_v60 = vpack.c.bf16 %v931_v50, %v927_v48  ;;  %v963_v44 = vld [vmem:[#allocation2 + $0x6a8] sm:$0xff]  ;;  %v965_v46 = vld [vmem:[#allocation2 + $0x6b8] sm:$0xff] }
 0x3f9   :  { %4477 = vmatpush1.bf16.msra.mxu0 %v4476_v62  ;;  %v930_v62 = vld [vmem:[#allocation2 + $0x5a0] sm:$0xff] }
 0x3fa   :  { %4605 = vmatpush1.bf16.msra.mxu1 %v4604_v0  ;;  %4479 = vmatprep.subr.bf16.mxu0 %v4478_v1  ;;  %v928_v0 = vld [vmem:[#allocation2 + $0x590] sm:$0xff]  ;;  %v4622_v1 = vpack.c.bf16 %v933_v53, %v929_v51  ;;  %v4496_v7 = vpack.c.bf16 %v930_v62, %v926_v61  ;;  %v4510_v51 = vpack.c.bf16 %v963_v44, %v959_v43  ;;  %v958_v53 = vld [vmem:[#allocation2 + $0x680] sm:$0xff]  ;;  %v967_v62 = vld [vmem:[#allocation2 + $0x6c8] sm:$0xff] }
 0x3fb   :  { %4607 = vmatprep.subr.bf16.mxu1 %v4606_v5  ;;  %v937_v5 = vld [vmem:[#allocation2 + $0x5d8] sm:$0xff]  ;;  %v4624_v8 = vpack.c.bf16 %v932_v2, %v928_v0  ;;  %v964_v61 = vld [vmem:[#allocation2 + $0x6b0] sm:$0xff]  ;;  %v971_v0 = vld [vmem:[#allocation2 + $0x6e8] sm:$0xff] }
 0x3fc   :  { %v973_v2 = vld [vmem:[#allocation2 + $0x6f8] sm:$0xff] }
 0x3fd   :  { %4481 = vmatpush1.bf16.msra.mxu0 %v4480_v11  ;;  %v938_v11 = vld [vmem:[#allocation2 + $0x5e0] sm:$0xff] }
 0x3fe   :  { %4609 = vmatpush1.bf16.msra.mxu1 %v4608_v12  ;;  %4483 = vmatprep.subr.bf16.mxu0 %v4482_v13  ;;  %v936_v12 = vld [vmem:[#allocation2 + $0x5d0] sm:$0xff]  ;;  %v4626_v13 = vpack.c.bf16 %v941_v6, %v937_v5  ;;  %v4500_v25 = vpack.c.bf16 %v938_v11, %v934_v10  ;;  %v4514_v5 = vpack.c.bf16 %v971_v0, %v967_v62  ;;  %v966_v6 = vld [vmem:[#allocation2 + $0x6c0] sm:$0xff]  ;;  %v975_v11 = vld [vmem:[#allocation2 + $0x708] sm:$0xff] }
 0x3ff   :  { %4611 = vmatprep.subr.bf16.mxu1 %v4610_v19  ;;  %v945_v19 = vld [vmem:[#allocation2 + $0x618] sm:$0xff]  ;;  %v4628_v22 = vpack.c.bf16 %v940_v14, %v936_v12  ;;  %v972_v10 = vld [vmem:[#allocation2 + $0x6f0] sm:$0xff]  ;;  %v979_v12 = vld [vmem:[#allocation2 + $0x728] sm:$0xff] }
 0x400   :  { %v981_v14 = vld [vmem:[#allocation2 + $0x738] sm:$0xff] }
 0x401   :  { %4485 = vmatpush1.bf16.msra.mxu0 %v4484_v28  ;;  %v946_v28 = vld [vmem:[#allocation2 + $0x620] sm:$0xff] }
 0x402   :  { %4613 = vmatpush1.bf16.msra.mxu1 %v4612_v29  ;;  %4487 = vmatprep.subr.bf16.mxu0 %v4486_v31  ;;  %v944_v29 = vld [vmem:[#allocation2 + $0x610] sm:$0xff]  ;;  %v4630_v31 = vpack.c.bf16 %v949_v20, %v945_v19  ;;  %v4504_v35 = vpack.c.bf16 %v946_v28, %v942_v26  ;;  %v4518_v19 = vpack.c.bf16 %v979_v12, %v975_v11  ;;  %v974_v20 = vld [vmem:[#allocation2 + $0x700] sm:$0xff]  ;;  %v983_v28 = vld [vmem:[#allocation2 + $0x748] sm:$0xff] }
 0x403   :  { %4615 = vmatprep.subr.bf16.mxu1 %v4614_v34  ;;  %v953_v34 = vld [vmem:[#allocation2 + $0x658] sm:$0xff]  ;;  %v4632_v36 = vpack.c.bf16 %v948_v32, %v944_v29  ;;  %v980_v26 = vld [vmem:[#allocation2 + $0x730] sm:$0xff]  ;;  %v987_v29 = vld [vmem:[#allocation2 + $0x768] sm:$0xff] }
 0x404   :  { %v989_v32 = vld [vmem:[#allocation2 + $0x778] sm:$0xff] }
 0x405   :  { %4489 = vmatpush1.bf16.msra.mxu0 %v4488_v39  ;;  %v954_v39 = vld [vmem:[#allocation2 + $0x660] sm:$0xff] }
 0x406   :  { %4617 = vmatpush1.bf16.msra.mxu1 %v4616_v40  ;;  %4491 = vmatprep.subr.bf16.mxu0 %v4490_v41  ;;  %v952_v40 = vld [vmem:[#allocation2 + $0x650] sm:$0xff]  ;;  %v4634_v41 = vpack.c.bf16 %v957_v55, %v953_v34  ;;  %v4508_v48 = vpack.c.bf16 %v954_v39, %v950_v38  ;;  %v4522_v34 = vpack.c.bf16 %v987_v29, %v983_v28  ;;  %v982_v55 = vld [vmem:[#allocation2 + $0x740] sm:$0xff]  ;;  %v991_v39 = vld [vmem:[#allocation2 + $0x788] sm:$0xff] }
 0x407   :  { %4619 = vmatprep.subr.bf16.mxu1 %v4618_v45  ;;  %v961_v45 = vld [vmem:[#allocation2 + $0x698] sm:$0xff]  ;;  %v4636_v50 = vpack.c.bf16 %v956_v42, %v952_v40  ;;  %v988_v38 = vld [vmem:[#allocation2 + $0x770] sm:$0xff]  ;;  %v995_v40 = vld [vmem:[#allocation2 + $0x7a8] sm:$0xff] }
 0x408   :  { %v997_v42 = vld [vmem:[#allocation2 + $0x7b8] sm:$0xff] }
 0x409   :  { %4493 = vmatpush1.bf16.msra.mxu0 %v4492_v56  ;;  %v962_v56 = vld [vmem:[#allocation2 + $0x6a0] sm:$0xff] }
 0x40a   :  { %4621 = vmatpush1.bf16.msra.mxu1 %v4620_v58  ;;  %4495 = vmatprep.subr.bf16.mxu0 %v4494_v60  ;;  %v960_v58 = vld [vmem:[#allocation2 + $0x690] sm:$0xff]  ;;  %v4638_v60 = vpack.c.bf16 %v965_v46, %v961_v45  ;;  %v4512_v3 = vpack.c.bf16 %v962_v56, %v958_v53  ;;  %v4526_v45 = vpack.c.bf16 %v995_v40, %v991_v39  ;;  %v990_v46 = vld [vmem:[#allocation2 + $0x780] sm:$0xff]  ;;  %v999_v56 = vld [vmem:[#allocation2 + $0x7c8] sm:$0xff] }
 0x40b   :  { %4623 = vmatprep.subr.bf16.mxu1 %v4622_v1  ;;  %v969_v1 = vld [vmem:[#allocation2 + $0x6d8] sm:$0xff]  ;;  %v4640_v4 = vpack.c.bf16 %v964_v61, %v960_v58  ;;  %v996_v53 = vld [vmem:[#allocation2 + $0x7b0] sm:$0xff]  ;;  %v1003_v58 = vld [vmem:[#allocation2 + $0x7e8] sm:$0xff] }
 0x40c   :  { %v1005_v61 = vld [vmem:[#allocation2 + $0x7f8] sm:$0xff] }
 0x40d   :  { %4497 = vmatpush1.bf16.msra.mxu0 %v4496_v7  ;;  %v970_v7 = vld [vmem:[#allocation2 + $0x6e0] sm:$0xff] }
 0x40e   :  { %4625 = vmatpush1.bf16.msra.mxu1 %v4624_v8  ;;  %4499 = vmatprep.subr.bf16.mxu0 %v4498_v9  ;;  %v968_v8 = vld [vmem:[#allocation2 + $0x6d0] sm:$0xff]  ;;  %v4642_v9 = vpack.c.bf16 %v973_v2, %v969_v1  ;;  %v4516_v15 = vpack.c.bf16 %v970_v7, %v966_v6  ;;  %v4530_v1 = vpack.c.bf16 %v1003_v58, %v999_v56  ;;  %v998_v2 = vld [vmem:[#allocation2 + $0x7c0] sm:$0xff]  ;;  %v1863_v7 = vld [vmem:[#allocation6 + $0x8] sm:$0xff] }
 0x40f   :  { %4627 = vmatprep.subr.bf16.mxu1 %v4626_v13  ;;  %v977_v13 = vld [vmem:[#allocation2 + $0x718] sm:$0xff]  ;;  %v4644_v16 = vpack.c.bf16 %v972_v10, %v968_v8  ;;  %v1004_v6 = vld [vmem:[#allocation2 + $0x7f0] sm:$0xff]  ;;  %v1867_v8 = vld [vmem:[#allocation6 + $0x28] sm:$0xff] }
 0x410   :  { %v1869_v10 = vld [vmem:[#allocation6 + $0x38] sm:$0xff] }
 0x411   :  { %4501 = vmatpush1.bf16.msra.mxu0 %v4500_v25  ;;  %v978_v25 = vld [vmem:[#allocation2 + $0x720] sm:$0xff] }
 0x412   :  { %4629 = vmatpush1.bf16.msra.mxu1 %v4628_v22  ;;  %4503 = vmatprep.subr.bf16.mxu0 %v4502_v23  ;;  %v976_v22 = vld [vmem:[#allocation2 + $0x710] sm:$0xff]  ;;  %v4646_v23 = vpack.c.bf16 %v981_v14, %v977_v13  ;;  %v4520_v33 = vpack.c.bf16 %v978_v25, %v974_v20  ;;  %v4662_v13 = vpack.c.bf16 %v1867_v8, %v1863_v7  ;;  %v1862_v14 = vld [vmem:[#allocation6] sm:$0xff]  ;;  %v1871_v25 = vld [vmem:[#allocation6 + $0x48] sm:$0xff] }
 0x413   :  { %4631 = vmatprep.subr.bf16.mxu1 %v4630_v31  ;;  %v985_v31 = vld [vmem:[#allocation2 + $0x758] sm:$0xff]  ;;  %v4648_v52 = vpack.c.bf16 %v980_v26, %v976_v22  ;;  %v1868_v20 = vld [vmem:[#allocation6 + $0x30] sm:$0xff]  ;;  %v1875_v22 = vld [vmem:[#allocation6 + $0x68] sm:$0xff] }
 0x414   :  { %v1877_v26 = vld [vmem:[#allocation6 + $0x78] sm:$0xff] }
 0x415   :  { %4505 = vmatpush1.bf16.msra.mxu0 %v4504_v35  ;;  %v986_v35 = vld [vmem:[#allocation2 + $0x760] sm:$0xff] }
 0x416   :  { %4633 = vmatpush1.bf16.msra.mxu1 %v4632_v36  ;;  %4507 = vmatprep.subr.bf16.mxu0 %v4506_v37  ;;  %v984_v36 = vld [vmem:[#allocation2 + $0x750] sm:$0xff]  ;;  %v4650_v37 = vpack.c.bf16 %v989_v32, %v985_v31  ;;  %v4524_v43 = vpack.c.bf16 %v986_v35, %v982_v55  ;;  %v4666_v31 = vpack.c.bf16 %v1875_v22, %v1871_v25  ;;  %v1870_v32 = vld [vmem:[#allocation6 + $0x40] sm:$0xff]  ;;  %v1879_v35 = vld [vmem:[#allocation6 + $0x88] sm:$0xff] }
 0x417   :  { %4635 = vmatprep.subr.bf16.mxu1 %v4634_v41  ;;  %v993_v41 = vld [vmem:[#allocation2 + $0x798] sm:$0xff]  ;;  %v4652_v44 = vpack.c.bf16 %v988_v38, %v984_v36  ;;  %v1876_v55 = vld [vmem:[#allocation6 + $0x70] sm:$0xff]  ;;  %v1883_v36 = vld [vmem:[#allocation6 + $0xa8] sm:$0xff] }
 0x418   :  { %v1885_v38 = vld [vmem:[#allocation6 + $0xb8] sm:$0xff] }
 0x419   :  { %4509 = vmatpush1.bf16.msra.mxu0 %v4508_v48  ;;  %v994_v48 = vld [vmem:[#allocation2 + $0x7a0] sm:$0xff] }
 0x41a   :  { %4637 = vmatpush1.bf16.msra.mxu1 %v4636_v50  ;;  %4511 = vmatprep.subr.bf16.mxu0 %v4510_v51  ;;  %v992_v50 = vld [vmem:[#allocation2 + $0x790] sm:$0xff]  ;;  %v4654_v51 = vpack.c.bf16 %v997_v42, %v993_v41  ;;  %v4528_v62 = vpack.c.bf16 %v994_v48, %v990_v46  ;;  %v4670_v41 = vpack.c.bf16 %v1883_v36, %v1879_v35  ;;  %v1878_v42 = vld [vmem:[#allocation6 + $0x80] sm:$0xff]  ;;  %v1887_v48 = vld [vmem:[#allocation6 + $0xc8] sm:$0xff] }
 0x41b   :  { %4639 = vmatprep.subr.bf16.mxu1 %v4638_v60  ;;  %v1001_v60 = vld [vmem:[#allocation2 + $0x7d8] sm:$0xff]  ;;  %v4656_v0 = vpack.c.bf16 %v996_v53, %v992_v50  ;;  %v1884_v46 = vld [vmem:[#allocation6 + $0xb0] sm:$0xff]  ;;  %v1891_v50 = vld [vmem:[#allocation6 + $0xe8] sm:$0xff] }
 0x41c   :  { %v1893_v53 = vld [vmem:[#allocation6 + $0xf8] sm:$0xff] }
 0x41d   :  { %4513 = vmatpush1.bf16.msra.mxu0 %v4512_v3  ;;  %v1002_v3 = vld [vmem:[#allocation2 + $0x7e0] sm:$0xff] }
 0x41e   :  { %4641 = vmatpush1.bf16.msra.mxu1 %v4640_v4  ;;  %4515 = vmatprep.subr.bf16.mxu0 %v4514_v5  ;;  %v1000_v4 = vld [vmem:[#allocation2 + $0x7d0] sm:$0xff]  ;;  %v4658_v5 = vpack.c.bf16 %v1005_v61, %v1001_v60  ;;  %v4532_v11 = vpack.c.bf16 %v1002_v3, %v998_v2  ;;  %v4674_v60 = vpack.c.bf16 %v1891_v50, %v1887_v48  ;;  %v1886_v61 = vld [vmem:[#allocation6 + $0xc0] sm:$0xff]  ;;  %v1895_v3 = vld [vmem:[#allocation6 + $0x108] sm:$0xff] }
 0x41f   :  { %4643 = vmatprep.subr.bf16.mxu1 %v4642_v9  ;;  %v1865_v9 = vld [vmem:[#allocation6 + $0x18] sm:$0xff]  ;;  %v4660_v12 = vpack.c.bf16 %v1004_v6, %v1000_v4  ;;  %v1892_v2 = vld [vmem:[#allocation6 + $0xf0] sm:$0xff]  ;;  %v1899_v4 = vld [vmem:[#allocation6 + $0x128] sm:$0xff] }
 0x420   :  { %v1901_v6 = vld [vmem:[#allocation6 + $0x138] sm:$0xff] }
 0x421   :  { %4517 = vmatpush1.bf16.msra.mxu0 %v4516_v15  ;;  %v1866_v15 = vld [vmem:[#allocation6 + $0x20] sm:$0xff] }
 0x422   :  { %4645 = vmatpush1.bf16.msra.mxu1 %v4644_v16  ;;  %4519 = vmatprep.subr.bf16.mxu0 %v4518_v19  ;;  %v1864_v16 = vld [vmem:[#allocation6 + $0x10] sm:$0xff]  ;;  %v4790_v19 = vpack.c.bf16 %v1869_v10, %v1865_v9  ;;  %v4664_v28 = vpack.c.bf16 %v1866_v15, %v1862_v14  ;;  %v4678_v9 = vpack.c.bf16 %v1899_v4, %v1895_v3  ;;  %v1894_v10 = vld [vmem:[#allocation6 + $0x100] sm:$0xff]  ;;  %v1903_v15 = vld [vmem:[#allocation6 + $0x148] sm:$0xff] }
 0x423   :  { %4647 = vmatprep.subr.bf16.mxu1 %v4646_v23  ;;  %v1873_v23 = vld [vmem:[#allocation6 + $0x58] sm:$0xff]  ;;  %v4792_v29 = vpack.c.bf16 %v1868_v20, %v1864_v16  ;;  %v1900_v14 = vld [vmem:[#allocation6 + $0x130] sm:$0xff]  ;;  %v1907_v16 = vld [vmem:[#allocation6 + $0x168] sm:$0xff] }
 0x424   :  { %v1909_v20 = vld [vmem:[#allocation6 + $0x178] sm:$0xff] }
 0x425   :  { %4521 = vmatpush1.bf16.msra.mxu0 %v4520_v33  ;;  %v1874_v33 = vld [vmem:[#allocation6 + $0x60] sm:$0xff] }
 0x426   :  { %4649 = vmatpush1.bf16.msra.mxu1 %v4648_v52  ;;  %4523 = vmatprep.subr.bf16.mxu0 %v4522_v34  ;;  %v1872_v52 = vld [vmem:[#allocation6 + $0x50] sm:$0xff]  ;;  %v4794_v34 = vpack.c.bf16 %v1877_v26, %v1873_v23  ;;  %v4668_v39 = vpack.c.bf16 %v1874_v33, %v1870_v32  ;;  %v4682_v23 = vpack.c.bf16 %v1907_v16, %v1903_v15  ;;  %v1902_v26 = vld [vmem:[#allocation6 + $0x140] sm:$0xff]  ;;  %v1911_v33 = vld [vmem:[#allocation6 + $0x188] sm:$0xff] }
 0x427   :  { %4651 = vmatprep.subr.bf16.mxu1 %v4650_v37  ;;  %v1881_v37 = vld [vmem:[#allocation6 + $0x98] sm:$0xff]  ;;  %v4796_v40 = vpack.c.bf16 %v1876_v55, %v1872_v52  ;;  %v1908_v32 = vld [vmem:[#allocation6 + $0x170] sm:$0xff]  ;;  %v1915_v52 = vld [vmem:[#allocation6 + $0x1a8] sm:$0xff] }
 0x428   :  { %v1917_v55 = vld [vmem:[#allocation6 + $0x1b8] sm:$0xff] }
 0x429   :  { %4525 = vmatpush1.bf16.msra.mxu0 %v4524_v43  ;;  %v1882_v43 = vld [vmem:[#allocation6 + $0xa0] sm:$0xff] }
 0x42a   :  { %4653 = vmatpush1.bf16.msra.mxu1 %v4652_v44  ;;  %4527 = vmatprep.subr.bf16.mxu0 %v4526_v45  ;;  %v1880_v44 = vld [vmem:[#allocation6 + $0x90] sm:$0xff]  ;;  %v4798_v45 = vpack.c.bf16 %v1885_v38, %v1881_v37  ;;  %v4672_v56 = vpack.c.bf16 %v1882_v43, %v1878_v42  ;;  %v4686_v37 = vpack.c.bf16 %v1915_v52, %v1911_v33  ;;  %v1910_v38 = vld [vmem:[#allocation6 + $0x180] sm:$0xff]  ;;  %v1919_v43 = vld [vmem:[#allocation6 + $0x1c8] sm:$0xff] }
 0x42b   :  { %4655 = vmatprep.subr.bf16.mxu1 %v4654_v51  ;;  %v1889_v51 = vld [vmem:[#allocation6 + $0xd8] sm:$0xff]  ;;  %v4800_v58 = vpack.c.bf16 %v1884_v46, %v1880_v44  ;;  %v1916_v42 = vld [vmem:[#allocation6 + $0x1b0] sm:$0xff]  ;;  %v1923_v44 = vld [vmem:[#allocation6 + $0x1e8] sm:$0xff] }
 0x42c   :  { %v1925_v46 = vld [vmem:[#allocation6 + $0x1f8] sm:$0xff] }
 0x42d   :  { %4529 = vmatpush1.bf16.msra.mxu0 %v4528_v62  ;;  %v1890_v62 = vld [vmem:[#allocation6 + $0xe0] sm:$0xff] }
 0x42e   :  { %4657 = vmatpush1.bf16.msra.mxu1 %v4656_v0  ;;  %4531 = vmatprep.subr.bf16.mxu0 %v4530_v1  ;;  %v1888_v0 = vld [vmem:[#allocation6 + $0xd0] sm:$0xff]  ;;  %v4802_v1 = vpack.c.bf16 %v1893_v53, %v1889_v51  ;;  %v4676_v7 = vpack.c.bf16 %v1890_v62, %v1886_v61  ;;  %v4690_v51 = vpack.c.bf16 %v1923_v44, %v1919_v43  ;;  %v1918_v53 = vld [vmem:[#allocation6 + $0x1c0] sm:$0xff]  ;;  %v1927_v62 = vld [vmem:[#allocation6 + $0x208] sm:$0xff] }
 0x42f   :  { %4659 = vmatprep.subr.bf16.mxu1 %v4658_v5  ;;  %v1897_v5 = vld [vmem:[#allocation6 + $0x118] sm:$0xff]  ;;  %v4804_v8 = vpack.c.bf16 %v1892_v2, %v1888_v0  ;;  %v1924_v61 = vld [vmem:[#allocation6 + $0x1f0] sm:$0xff]  ;;  %v1931_v0 = vld [vmem:[#allocation6 + $0x228] sm:$0xff] }
 0x430   :  { %v1933_v2 = vld [vmem:[#allocation6 + $0x238] sm:$0xff] }
 0x431   :  { %4533 = vmatpush1.bf16.msra.mxu0 %v4532_v11  ;;  %v1898_v11 = vld [vmem:[#allocation6 + $0x120] sm:$0xff] }
 0x432   :  { %4661 = vmatpush1.bf16.msra.mxu1 %v4660_v12  ;;  %4663 = vmatprep.subr.bf16.mxu0 %v4662_v13  ;;  %v1896_v12 = vld [vmem:[#allocation6 + $0x110] sm:$0xff]  ;;  %v4806_v13 = vpack.c.bf16 %v1901_v6, %v1897_v5  ;;  %v4680_v25 = vpack.c.bf16 %v1898_v11, %v1894_v10  ;;  %v4694_v5 = vpack.c.bf16 %v1931_v0, %v1927_v62  ;;  %v1926_v6 = vld [vmem:[#allocation6 + $0x200] sm:$0xff]  ;;  %v1935_v11 = vld [vmem:[#allocation6 + $0x248] sm:$0xff] }
 0x433   :  { %4791 = vmatprep.subr.bf16.mxu1 %v4790_v19  ;;  %v1905_v19 = vld [vmem:[#allocation6 + $0x158] sm:$0xff]  ;;  %v4808_v22 = vpack.c.bf16 %v1900_v14, %v1896_v12  ;;  %v1932_v10 = vld [vmem:[#allocation6 + $0x230] sm:$0xff]  ;;  %v1939_v12 = vld [vmem:[#allocation6 + $0x268] sm:$0xff] }
 0x434   :  { %1684 = vmatmul.mubr.f32.vlgmr.msra.gmra.mrb[0].mxu0 %v6326_v24  ;;  %v1941_v14 = vld [vmem:[#allocation6 + $0x278] sm:$0xff] }
 0x435   :  { %1826 = vmatmul.mubr.f32.vlgmr.msra.gmra.mrb[12].mxu1 %v6326_v24  ;;  %4665 = vmatpush1.bf16.msra.mxu0 %v4664_v28  ;;  %v1906_v28 = vld [vmem:[#allocation6 + $0x160] sm:$0xff] }
 0x436   :  { %4793 = vmatpush1.bf16.msra.mxu1 %v4792_v29  ;;  %4667 = vmatprep.subr.bf16.mxu0 %v4666_v31  ;;  %v1904_v29 = vld [vmem:[#allocation6 + $0x150] sm:$0xff]  ;;  %v4810_v31 = vpack.c.bf16 %v1909_v20, %v1905_v19  ;;  %v4684_v35 = vpack.c.bf16 %v1906_v28, %v1902_v26  ;;  %v4698_v19 = vpack.c.bf16 %v1939_v12, %v1935_v11  ;;  %v1934_v20 = vld [vmem:[#allocation6 + $0x240] sm:$0xff]  ;;  %v1943_v28 = vld [vmem:[#allocation6 + $0x288] sm:$0xff] }
 0x437   :  { %4795 = vmatprep.subr.bf16.mxu1 %v4794_v34  ;;  %v1913_v34 = vld [vmem:[#allocation6 + $0x198] sm:$0xff]  ;;  %v4812_v36 = vpack.c.bf16 %v1908_v32, %v1904_v29  ;;  %v1940_v26 = vld [vmem:[#allocation6 + $0x270] sm:$0xff]  ;;  %v1947_v29 = vld [vmem:[#allocation6 + $0x2a8] sm:$0xff] }
 0x438   :  { %v1949_v32 = vld [vmem:[#allocation6 + $0x2b8] sm:$0xff] }
 0x439   :  { %4669 = vmatpush1.bf16.msra.mxu0 %v4668_v39  ;;  %v1914_v39 = vld [vmem:[#allocation6 + $0x1a0] sm:$0xff] }
 0x43a   :  { %4797 = vmatpush1.bf16.msra.mxu1 %v4796_v40  ;;  %4671 = vmatprep.subr.bf16.mxu0 %v4670_v41  ;;  %v1912_v40 = vld [vmem:[#allocation6 + $0x190] sm:$0xff]  ;;  %v4814_v41 = vpack.c.bf16 %v1917_v55, %v1913_v34  ;;  %v4688_v48 = vpack.c.bf16 %v1914_v39, %v1910_v38  ;;  %v4702_v34 = vpack.c.bf16 %v1947_v29, %v1943_v28  ;;  %v1942_v55 = vld [vmem:[#allocation6 + $0x280] sm:$0xff]  ;;  %v1951_v39 = vld [vmem:[#allocation6 + $0x2c8] sm:$0xff] }
 0x43b   :  { %4799 = vmatprep.subr.bf16.mxu1 %v4798_v45  ;;  %v1921_v45 = vld [vmem:[#allocation6 + $0x1d8] sm:$0xff]  ;;  %v4816_v50 = vpack.c.bf16 %v1916_v42, %v1912_v40  ;;  %v1948_v38 = vld [vmem:[#allocation6 + $0x2b0] sm:$0xff]  ;;  %v1955_v40 = vld [vmem:[#allocation6 + $0x2e8] sm:$0xff] }
 0x43c   :  { %v1957_v42 = vld [vmem:[#allocation6 + $0x2f8] sm:$0xff] }
 0x43d   :  { %4673 = vmatpush1.bf16.msra.mxu0 %v4672_v56  ;;  %v1922_v56 = vld [vmem:[#allocation6 + $0x1e0] sm:$0xff] }
 0x43e   :  { %4801 = vmatpush1.bf16.msra.mxu1 %v4800_v58  ;;  %4675 = vmatprep.subr.bf16.mxu0 %v4674_v60  ;;  %v1920_v58 = vld [vmem:[#allocation6 + $0x1d0] sm:$0xff]  ;;  %v4818_v60 = vpack.c.bf16 %v1925_v46, %v1921_v45  ;;  %v4692_v3 = vpack.c.bf16 %v1922_v56, %v1918_v53  ;;  %v4706_v45 = vpack.c.bf16 %v1955_v40, %v1951_v39  ;;  %v1950_v46 = vld [vmem:[#allocation6 + $0x2c0] sm:$0xff]  ;;  %v1959_v56 = vld [vmem:[#allocation6 + $0x308] sm:$0xff] }
 0x43f   :  { %4803 = vmatprep.subr.bf16.mxu1 %v4802_v1  ;;  %v1929_v1 = vld [vmem:[#allocation6 + $0x218] sm:$0xff]  ;;  %v4820_v4 = vpack.c.bf16 %v1924_v61, %v1920_v58  ;;  %v1956_v53 = vld [vmem:[#allocation6 + $0x2f0] sm:$0xff]  ;;  %v1963_v58 = vld [vmem:[#allocation6 + $0x328] sm:$0xff] }
 0x440   :  { %v1965_v61 = vld [vmem:[#allocation6 + $0x338] sm:$0xff] }
 0x441   :  { %4677 = vmatpush1.bf16.msra.mxu0 %v4676_v7  ;;  %v1930_v7 = vld [vmem:[#allocation6 + $0x220] sm:$0xff]  ;;  %v1985_v39 = vld [vmem:[#allocation6 + $0x3d8] sm:$0xff] }
 0x442   :  { %4805 = vmatpush1.bf16.msra.mxu1 %v4804_v8  ;;  %4679 = vmatprep.subr.bf16.mxu0 %v4678_v9  ;;  %v1928_v8 = vld [vmem:[#allocation6 + $0x210] sm:$0xff]  ;;  %v4822_v9 = vpack.c.bf16 %v1933_v2, %v1929_v1  ;;  %v4696_v15 = vpack.c.bf16 %v1930_v7, %v1926_v6  ;;  %v4710_v1 = vpack.c.bf16 %v1963_v58, %v1959_v56  ;;  %v1958_v2 = vld [vmem:[#allocation6 + $0x300] sm:$0xff]  ;;  %v1967_v7 = vld [vmem:[#allocation6 + $0x348] sm:$0xff] }
 0x443   :  { %4807 = vmatprep.subr.bf16.mxu1 %v4806_v13  ;;  %v1937_v13 = vld [vmem:[#allocation6 + $0x258] sm:$0xff]  ;;  %v4824_v16 = vpack.c.bf16 %v1932_v10, %v1928_v8  ;;  %v1964_v6 = vld [vmem:[#allocation6 + $0x330] sm:$0xff]  ;;  %v1971_v8 = vld [vmem:[#allocation6 + $0x368] sm:$0xff] }
 0x444   :  { %v1973_v10 = vld [vmem:[#allocation6 + $0x378] sm:$0xff] }
 0x445   :  { %4681 = vmatpush1.bf16.msra.mxu0 %v4680_v25  ;;  %v1938_v25 = vld [vmem:[#allocation6 + $0x260] sm:$0xff]  ;;  %v1993_v56 = vld [vmem:[#allocation6 + $0x418] sm:$0xff] }
 0x446   :  { %4809 = vmatpush1.bf16.msra.mxu1 %v4808_v22  ;;  %4683 = vmatprep.subr.bf16.mxu0 %v4682_v23  ;;  %v1936_v22 = vld [vmem:[#allocation6 + $0x250] sm:$0xff]  ;;  %v4826_v23 = vpack.c.bf16 %v1941_v14, %v1937_v13  ;;  %v4700_v33 = vpack.c.bf16 %v1938_v25, %v1934_v20  ;;  %v4714_v13 = vpack.c.bf16 %v1971_v8, %v1967_v7  ;;  %v1966_v14 = vld [vmem:[#allocation6 + $0x340] sm:$0xff]  ;;  %v1975_v25 = vld [vmem:[#allocation6 + $0x388] sm:$0xff] }
 0x447   :  { %4811 = vmatprep.subr.bf16.mxu1 %v4810_v31  ;;  %v1945_v31 = vld [vmem:[#allocation6 + $0x298] sm:$0xff]  ;;  %v4828_v52 = vpack.c.bf16 %v1940_v26, %v1936_v22  ;;  %v1972_v20 = vld [vmem:[#allocation6 + $0x370] sm:$0xff]  ;;  %v1979_v22 = vld [vmem:[#allocation6 + $0x3a8] sm:$0xff] }
 0x448   :  { %v1981_v26 = vld [vmem:[#allocation6 + $0x3b8] sm:$0xff] }
 0x449   :  { %4685 = vmatpush1.bf16.msra.mxu0 %v4684_v35  ;;  %v1946_v35 = vld [vmem:[#allocation6 + $0x2a0] sm:$0xff] }
 0x44a   :  { %4813 = vmatpush1.bf16.msra.mxu1 %v4812_v36  ;;  %4687 = vmatprep.subr.bf16.mxu0 %v4686_v37  ;;  %v1944_v36 = vld [vmem:[#allocation6 + $0x290] sm:$0xff]  ;;  %v4830_v37 = vpack.c.bf16 %v1949_v32, %v1945_v31  ;;  %v4704_v43 = vpack.c.bf16 %v1946_v35, %v1942_v55  ;;  %v4718_v31 = vpack.c.bf16 %v1979_v22, %v1975_v25  ;;  %v1974_v32 = vld [vmem:[#allocation6 + $0x380] sm:$0xff]  ;;  %v2005_v25 = vld [vmem:[#allocation6 + $0x478] sm:$0xff] }
 0x44b   :  { %4815 = vmatprep.subr.bf16.mxu1 %v4814_v41  ;;  %v1953_v41 = vld [vmem:[#allocation6 + $0x2d8] sm:$0xff]  ;;  %v4832_v44 = vpack.c.bf16 %v1948_v38, %v1944_v36  ;;  %v1980_v55 = vld [vmem:[#allocation6 + $0x3b0] sm:$0xff]  ;;  %v1987_v38 = vld [vmem:[#allocation6 + $0x3e8] sm:$0xff] }
 0x44d   :  { %4689 = vmatpush1.bf16.msra.mxu0 %v4688_v48  ;;  %v1954_v48 = vld [vmem:[#allocation6 + $0x2e0] sm:$0xff] }
 0x44e   :  { %4817 = vmatpush1.bf16.msra.mxu1 %v4816_v50  ;;  %4691 = vmatprep.subr.bf16.mxu0 %v4690_v51  ;;  %v1952_v50 = vld [vmem:[#allocation6 + $0x2d0] sm:$0xff]  ;;  %v4834_v51 = vpack.c.bf16 %v1957_v42, %v1953_v41  ;;  %v4708_v62 = vpack.c.bf16 %v1954_v48, %v1950_v46  ;;  %v1989_v41 = vld [vmem:[#allocation6 + $0x3f8] sm:$0xff]  ;;  %v1982_v42 = vld [vmem:[#allocation6 + $0x3c0] sm:$0xff] }
 0x44f   :  { %4819 = vmatprep.subr.bf16.mxu1 %v4818_v60  ;;  %v1961_v60 = vld [vmem:[#allocation6 + $0x318] sm:$0xff]  ;;  %v4836_v0 = vpack.c.bf16 %v1956_v53, %v1952_v50  ;;  %v1984_v46 = vld [vmem:[#allocation6 + $0x3d0] sm:$0xff]  ;;  %v1995_v53 = vld [vmem:[#allocation6 + $0x428] sm:$0xff] }
 0x450   :  { %v1988_v48 = vld [vmem:[#allocation6 + $0x3f0] sm:$0xff] }
 0x451   :  { %4693 = vmatpush1.bf16.msra.mxu0 %v4692_v3  ;;  %v1962_v3 = vld [vmem:[#allocation6 + $0x320] sm:$0xff]  ;;  %v4852_v50 = vpack.c.bf16 %v1988_v48, %v1984_v46  ;;  %v2012_v46 = vld [vmem:[#allocation6 + $0x4b0] sm:$0xff]  ;;  %v2015_v48 = vld [vmem:[#allocation6 + $0x4c8] sm:$0xff] }
 0x452   :  { %4821 = vmatpush1.bf16.msra.mxu1 %v4820_v4  ;;  %4695 = vmatprep.subr.bf16.mxu0 %v4694_v5  ;;  %v1960_v4 = vld [vmem:[#allocation6 + $0x310] sm:$0xff]  ;;  %v4838_v5 = vpack.c.bf16 %v1965_v61, %v1961_v60  ;;  %v4712_v11 = vpack.c.bf16 %v1962_v3, %v1958_v2  ;;  %v1997_v60 = vld [vmem:[#allocation6 + $0x438] sm:$0xff] }
 0x453   :  { %4823 = vmatprep.subr.bf16.mxu1 %v4822_v9  ;;  %v1969_v9 = vld [vmem:[#allocation6 + $0x358] sm:$0xff]  ;;  %v4840_v12 = vpack.c.bf16 %v1964_v6, %v1960_v4  ;;  %v4854_v61 = vpack.c.bf16 %v1997_v60, %v1993_v56  ;;  %v2014_v60 = vld [vmem:[#allocation6 + $0x4c0] sm:$0xff] }
 0x455   :  { %4697 = vmatpush1.bf16.msra.mxu0 %v4696_v15  ;;  %v1970_v15 = vld [vmem:[#allocation6 + $0x360] sm:$0xff] }
 0x456   :  { %4825 = vmatpush1.bf16.msra.mxu1 %v4824_v16  ;;  %4699 = vmatprep.subr.bf16.mxu0 %v4698_v19  ;;  %v1968_v16 = vld [vmem:[#allocation6 + $0x350] sm:$0xff]  ;;  %v4842_v19 = vpack.c.bf16 %v1973_v10, %v1969_v9  ;;  %v4716_v28 = vpack.c.bf16 %v1970_v15, %v1966_v14  ;;  %v1994_v9 = vld [vmem:[#allocation6 + $0x420] sm:$0xff]  ;;  %v1999_v15 = vld [vmem:[#allocation6 + $0x448] sm:$0xff] }
 0x457   :  { %4827 = vmatprep.subr.bf16.mxu1 %v4826_v23  ;;  %v1977_v23 = vld [vmem:[#allocation6 + $0x398] sm:$0xff]  ;;  %v4844_v29 = vpack.c.bf16 %v1972_v20, %v1968_v16  ;;  %v1992_v10 = vld [vmem:[#allocation6 + $0x410] sm:$0xff] }
 0x458   :  { %v2001_v20 = vld [vmem:[#allocation6 + $0x458] sm:$0xff] }
 0x459   :  { %4701 = vmatpush1.bf16.msra.mxu0 %v4700_v33  ;;  %v1978_v33 = vld [vmem:[#allocation6 + $0x3a0] sm:$0xff] }
 0x45a   :  { %4829 = vmatpush1.bf16.msra.mxu1 %v4828_v52  ;;  %4703 = vmatprep.subr.bf16.mxu0 %v4702_v34  ;;  %v4846_v52 = vpack.c.bf16 %v1981_v26, %v1977_v23  ;;  %v1976_v34 = vld [vmem:[#allocation6 + $0x390] sm:$0xff]  ;;  %v4720_v35 = vpack.c.bf16 %v1978_v33, %v1974_v32 }
 0x45b   :  { %4831 = vmatprep.subr.bf16.mxu1 %v4830_v37  ;;  %v4848_v36 = vpack.c.bf16 %v1980_v55, %v1976_v34  ;;  %v1983_v37 = vld [vmem:[#allocation6 + $0x3c8] sm:$0xff]  ;;  %v2000_v32 = vld [vmem:[#allocation6 + $0x450] sm:$0xff]  ;;  %v4858_v55 = vpack.c.bf16 %v2005_v25, %v2001_v20  ;;  %v2033_v20 = vld [vmem:[#allocation6 + $0x558] sm:$0xff] }
 0x45c   :  { %v4722_v40 = vpack.c.bf16 %v1987_v38, %v1983_v37  ;;  %v2004_v33 = vld [vmem:[#allocation6 + $0x470] sm:$0xff]  ;;  %v2013_v37 = vld [vmem:[#allocation6 + $0x4b8] sm:$0xff] }
 0x45d   :  { %4705 = vmatpush1.bf16.msra.mxu0 %v4704_v43  ;;  %v1986_v43 = vld [vmem:[#allocation6 + $0x3e0] sm:$0xff]  ;;  %v2037_v25 = vld [vmem:[#allocation6 + $0x578] sm:$0xff] }
 0x45e   :  { %4833 = vmatpush1.bf16.msra.mxu1 %v4832_v44  ;;  %4707 = vmatprep.subr.bf16.mxu0 %v4706_v45  ;;  %v4850_v44 = vpack.c.bf16 %v1989_v41, %v1985_v39  ;;  %v4724_v45 = vpack.c.bf16 %v1986_v43, %v1982_v42  ;;  %v2006_v41 = vld [vmem:[#allocation6 + $0x480] sm:$0xff] }
 0x45f   :  { %4835 = vmatprep.subr.bf16.mxu1 %v4834_v51  ;;  %v1991_v51 = vld [vmem:[#allocation6 + $0x408] sm:$0xff]  ;;  %v2010_v42 = vld [vmem:[#allocation6 + $0x4a0] sm:$0xff] }
 0x460   :  { %v4726_v58 = vpack.c.bf16 %v1995_v53, %v1991_v51  ;;  %v2017_v51 = vld [vmem:[#allocation6 + $0x4d8] sm:$0xff]  ;;  %v4736_v56 = vpack.c.bf16 %v2010_v42, %v2006_v41  ;;  %v2040_v42 = vld [vmem:[#allocation6 + $0x590] sm:$0xff] }
 0x461   :  { %4709 = vmatpush1.bf16.msra.mxu0 %v4708_v62  ;;  %v1832_v62 = vld [vmem:[%s6909_s8] sm:$0xf]  ;;  %v2021_v53 = vld [vmem:[#allocation6 + $0x4f8] sm:$0xff] }
 0x462   :  { %4837 = vmatpush1.bf16.msra.mxu1 %v4836_v0  ;;  %4711 = vmatprep.subr.bf16.mxu0 %v4710_v1  ;;  %v1837_v0 = vrot.slane %v1832_v62, %v6294_v47  ;;  %v1845_v1 = vrot.slane %v1832_v62, %v6303_v57  ;;  %v1841_v2 = vrot.slane %v1832_v62, %v6299_v49 }
 0x463   :  { %4839 = vmatprep.subr.bf16.mxu1 %v4838_v5  ;;  %v1849_v3 = vrot.slane %v1832_v62, %v6305_v59  ;;  %v1990_v5 = vld [vmem:[#allocation6 + $0x400] sm:$0xff] }
 0x464   :  { %v4728_v23 = vpack.c.bf16 %v1994_v9, %v1990_v5  ;;  %v2025_v5 = vld [vmem:[#allocation6 + $0x518] sm:$0xff]  ;;  %v2022_v9 = vld [vmem:[#allocation6 + $0x500] sm:$0xff] }
 0x465   :  { %4713 = vmatpush1.bf16.msra.mxu0 %v4712_v11  ;;  %v1996_v11 = vld [vmem:[#allocation6 + $0x430] sm:$0xff] }
 0x466   :  { %4841 = vmatpush1.bf16.msra.mxu1 %v4840_v12  ;;  %4715 = vmatprep.subr.bf16.mxu0 %v4714_v13  ;;  %v4856_v26 = vpack.c.bf16 %v1996_v11, %v1992_v10  ;;  %v2026_v10 = vld [vmem:[#allocation6 + $0x520] sm:$0xff] }
 0x467   :  { %4843 = vmatprep.subr.bf16.mxu1 %v4842_v19  ;;  %v2003_v19 = vld [vmem:[#allocation6 + $0x468] sm:$0xff] }
 0x468   :  { %v4730_v34 = vpack.c.bf16 %v2003_v19, %v1999_v15  ;;  %v2028_v15 = vld [vmem:[#allocation6 + $0x530] sm:$0xff]  ;;  %v2035_v19 = vld [vmem:[#allocation6 + $0x568] sm:$0xff] }
 0x469   :  { %4717 = vmatpush1.bf16.msra.mxu0 %v4716_v28  ;;  %v1998_v28 = vld [vmem:[#allocation6 + $0x440] sm:$0xff] }
 0x46a   :  { %4845 = vmatpush1.bf16.msra.mxu1 %v4844_v29  ;;  %4719 = vmatprep.subr.bf16.mxu0 %v4718_v31  ;;  %v2002_v29 = vld [vmem:[#allocation6 + $0x460] sm:$0xff] }
 0x46b   :  { %4847 = vmatprep.subr.bf16.mxu1 %v4846_v52  ;;  %v2007_v52 = vld [vmem:[#allocation6 + $0x488] sm:$0xff]  ;;  %v4732_v39 = vpack.c.bf16 %v2002_v29, %v1998_v28  ;;  %v2034_v28 = vld [vmem:[#allocation6 + $0x560] sm:$0xff] }
 0x46d   :  { %4721 = vmatpush1.bf16.msra.mxu0 %v4720_v35  ;;  %v2011_v35 = vld [vmem:[#allocation6 + $0x4a8] sm:$0xff] }
 0x46e   :  { %4849 = vmatpush1.bf16.msra.mxu1 %v4848_v36  ;;  %4723 = vmatprep.subr.bf16.mxu0 %v4722_v40  ;;  %v2009_v36 = vld [vmem:[#allocation6 + $0x498] sm:$0xff]  ;;  %v4860_v40 = vpack.c.bf16 %v2004_v33, %v2000_v32  ;;  %v4734_v43 = vpack.c.bf16 %v2011_v35, %v2007_v52  ;;  %v2032_v32 = vld [vmem:[#allocation6 + $0x550] sm:$0xff]  ;;  %v2039_v52 = vld [vmem:[#allocation6 + $0x588] sm:$0xff] }
 0x46f   :  { %4851 = vmatprep.subr.bf16.mxu1 %v4850_v44  ;;  %v4862_v44 = vpack.c.bf16 %v2013_v37, %v2009_v36  ;;  %v2036_v33 = vld [vmem:[#allocation6 + $0x570] sm:$0xff]  ;;  %v2045_v35 = vld [vmem:[#allocation6 + $0x5b8] sm:$0xff] }
 0x470   :  { %v4876_v37 = vpack.c.bf16 %v2036_v33, %v2032_v32  ;;  %v2075_v32 = vld [vmem:[#allocation6 + $0x6a8] sm:$0xff]  ;;  %v2073_v33 = vld [vmem:[#allocation6 + $0x698] sm:$0xff] }
 0x471   :  { %4725 = vmatpush1.bf16.msra.mxu0 %v4724_v45  ;;  %v2008_v45 = vld [vmem:[#allocation6 + $0x490] sm:$0xff] }
 0x472   :  { %4853 = vmatpush1.bf16.msra.mxu1 %v4852_v50  ;;  %4727 = vmatprep.subr.bf16.mxu0 %v4726_v58  ;;  %v2019_v50 = vld [vmem:[#allocation6 + $0x4e8] sm:$0xff]  ;;  %v4864_v58 = vpack.c.bf16 %v2012_v46, %v2008_v45  ;;  %v2049_v46 = vld [vmem:[#allocation6 + $0x5d8] sm:$0xff] }
 0x473   :  { %4855 = vmatprep.subr.bf16.mxu1 %v4854_v61  ;;  %v2018_v61 = vld [vmem:[#allocation6 + $0x4e0] sm:$0xff]  ;;  %v4738_v62 = vpack.c.bf16 %v2019_v50, %v2015_v48  ;;  %v2051_v45 = vld [vmem:[#allocation6 + $0x5e8] sm:$0xff]  ;;  %v2053_v48 = vld [vmem:[#allocation6 + $0x5f8] sm:$0xff] }
 0x507   :  { %v1685_v4 = vpop.f32.mrb[0].mxu0 }
 0x508   :  { %v1854_v6 = vadd.f32 %v1837_v0, %v1685_v4  ;;  %v1827_v7 = vpop.f32.mrb[12].mxu1  ;;  %v1687_v8 = vpop.f32.mrb[1].mxu0  ;;  %v4866_v0 = vpack.c.bf16 %v2021_v53, %v2017_v51  ;;  %v2027_v4 = vld [vmem:[#allocation6 + $0x528] sm:$0xff]  ;;  %v2046_v53 = vld [vmem:[#allocation6 + $0x5c0] sm:$0xff] }
 0x509   :  { %v6368_v12 = vadd.f32 %v1845_v1, %v1827_v7  ;;  %v1855_v13 = vadd.f32 %v1841_v2, %v1687_v8  ;;  %v1829_v14 = vpop.f32.mrb[13].mxu1  ;;  %v2016_v1 = vld [vmem:[#allocation6 + $0x4d0] sm:$0xff]  ;;  %v4740_v7 = vpack.c.bf16 %v2018_v61, %v2014_v60  ;;  %v4882_v60 = vpack.c.bf16 %v2053_v48, %v2049_v46  ;;  %v2078_v48 = vld [vmem:[#allocation6 + $0x6c0] sm:$0xff] }
 0x50a   :  { %v1857_v16 = vadd.f32 %v1849_v3, %v1829_v14  ;;  %v1858_v31 = vmax.f32 %v1854_v6, 0.0  ;;  %v2020_v2 = vld [vmem:[#allocation6 + $0x4f0] sm:$0xff]  ;;  %v2023_v3 = vld [vmem:[#allocation6 + $0x508] sm:$0xff]  ;;  %v2029_v6 = vld [vmem:[#allocation6 + $0x538] sm:$0xff] }
 0x50b   :  { %v1859_v22 = vmax.f32 %v1855_v13, 0.0  ;;  %v4868_v8 = vpack.c.bf16 %v2020_v2, %v2016_v1  ;;  %v4742_v11 = vpack.c.bf16 %v2027_v4, %v2023_v3  ;;  %v4870_v13 = vpack.c.bf16 %v2029_v6, %v2025_v5  ;;  %v2024_v14 = vld [vmem:[#allocation6 + $0x510] sm:$0xff]  ;;  %v2059_v1 = vld [vmem:[#allocation6 + $0x628] sm:$0xff]  ;;  %v2057_v2 = vld [vmem:[#allocation6 + $0x618] sm:$0xff] }
 0x50c   :  { %v1861_v38 = vmax.f32 %v1857_v16, 0.0  ;;  %v2031_v16 = vld [vmem:[#allocation6 + $0x548] sm:$0xff]  ;;  %v2048_v61 = vld [vmem:[#allocation6 + $0x5d0] sm:$0xff]  ;;  %v2061_v3 = vld [vmem:[#allocation6 + $0x638] sm:$0xff] }
 0x50d   :  { %2204 = vmatprep.mubr.f32.mxu0 %v1859_v22  ;;  %2346 = vmatprep.mubr.f32.mxu1 %v1859_v22  ;;  %v4744_v22 = vpack.c.bf16 %v2026_v10, %v2022_v9  ;;  %v4746_v29 = vpack.c.bf16 %v2035_v19, %v2031_v16  ;;  %v2054_v6 = vld [vmem:[#allocation6 + $0x600] sm:$0xff]  ;;  %v4886_v9 = vpack.c.bf16 %v2061_v3, %v2057_v2  ;;  %v2056_v10 = vld [vmem:[#allocation6 + $0x610] sm:$0xff]  ;;  %v2069_v16 = vld [vmem:[#allocation6 + $0x678] sm:$0xff] }
 0x50e   :  { %2205 = vmatmul.mubr.f32.vlgmr.msra.gmra.mrb[2].mxu0 %v1858_v31  ;;  %2347 = vmatmul.mubr.f32.vlgmr.msra.gmra.mrb[14].mxu1 %v1858_v31  ;;  %v4874_v31 = vpack.c.bf16 %v2037_v25, %v2033_v20  ;;  %v2062_v25 = vld [vmem:[#allocation6 + $0x640] sm:$0xff] }
 0x50f   :  { %4729 = vmatpush1.bf16.msra.mxu0 %v4728_v23  ;;  %4857 = vmatpush1.bf16.msra.mxu1 %v4856_v26  ;;  %v4872_v23 = vpack.c.bf16 %v2028_v15, %v2024_v14  ;;  %v2030_v26 = vld [vmem:[#allocation6 + $0x540] sm:$0xff]  ;;  %v2067_v14 = vld [vmem:[#allocation6 + $0x668] sm:$0xff]  ;;  %v2065_v15 = vld [vmem:[#allocation6 + $0x658] sm:$0xff] }
 0x510   :  { %2275 = vmatprep.mubr.f32.mxu0 %v1861_v38  ;;  %2417 = vmatprep.mubr.f32.mxu1 %v1861_v38  ;;  %v4748_v36 = vpack.c.bf16 %v2034_v28, %v2030_v26  ;;  %v2038_v38 = vld [vmem:[#allocation6 + $0x580] sm:$0xff]  ;;  %v4890_v26 = vpack.c.bf16 %v2069_v16, %v2065_v15  ;;  %v2064_v28 = vld [vmem:[#allocation6 + $0x650] sm:$0xff] }
 0x511   :  { %4731 = vmatprep.subr.bf16.mxu0 %v4730_v34  ;;  %4859 = vmatprep.subr.bf16.mxu1 %v4858_v55  ;;  %v2043_v34 = vld [vmem:[#allocation6 + $0x5a8] sm:$0xff]  ;;  %v2041_v55 = vld [vmem:[#allocation6 + $0x598] sm:$0xff]  ;;  %v2086_v3 = vld [vmem:[#allocation6 + $0x700] sm:$0xff] }
 0x512   :  { %v4878_v41 = vpack.c.bf16 %v2045_v35, %v2041_v55  ;;  %v2070_v35 = vld [vmem:[#allocation6 + $0x680] sm:$0xff] }
 0x513   :  { %4733 = vmatpush1.bf16.msra.mxu0 %v4732_v39  ;;  %4861 = vmatpush1.bf16.msra.mxu1 %v4860_v40  ;;  %v2042_v39 = vld [vmem:[#allocation6 + $0x5a0] sm:$0xff]  ;;  %v4750_v40 = vpack.c.bf16 %v2043_v34, %v2039_v52  ;;  %v2077_v52 = vld [vmem:[#allocation6 + $0x6b8] sm:$0xff] }
 0x514   :  { %4735 = vmatprep.subr.bf16.mxu0 %v4734_v43  ;;  %4863 = vmatprep.subr.bf16.mxu1 %v4862_v44  ;;  %v2044_v43 = vld [vmem:[#allocation6 + $0x5b0] sm:$0xff]  ;;  %v2047_v44 = vld [vmem:[#allocation6 + $0x5c8] sm:$0xff]  ;;  %v4752_v50 = vpack.c.bf16 %v2042_v39, %v2038_v38  ;;  %v4894_v38 = vpack.c.bf16 %v2077_v52, %v2073_v33  ;;  %v2094_v16 = vld [vmem:[#allocation6 + $0x740] sm:$0xff] }
 0x515   :  { %v4880_v51 = vpack.c.bf16 %v2044_v43, %v2040_v42  ;;  %v2072_v39 = vld [vmem:[#allocation6 + $0x690] sm:$0xff]  ;;  %v2083_v42 = vld [vmem:[#allocation6 + $0x6e8] sm:$0xff]  ;;  %v2081_v43 = vld [vmem:[#allocation6 + $0x6d8] sm:$0xff] }
 0x516   :  { %v2102_v52 = vld [vmem:[#allocation6 + $0x780] sm:$0xff] }
 0x517   :  { %4737 = vmatpush1.bf16.msra.mxu0 %v4736_v56  ;;  %4865 = vmatpush1.bf16.msra.mxu1 %v4864_v58  ;;  %v2050_v56 = vld [vmem:[#allocation6 + $0x5e0] sm:$0xff]  ;;  %v4754_v58 = vpack.c.bf16 %v2051_v45, %v2047_v44  ;;  %v2085_v44 = vld [vmem:[#allocation6 + $0x6f8] sm:$0xff] }
 0x518   :  { %4739 = vmatprep.subr.bf16.mxu0 %v4738_v62  ;;  %4867 = vmatprep.subr.bf16.mxu1 %v4866_v0  ;;  %v2052_v62 = vld [vmem:[#allocation6 + $0x5f0] sm:$0xff]  ;;  %v2055_v0 = vld [vmem:[#allocation6 + $0x608] sm:$0xff]  ;;  %v4756_v4 = vpack.c.bf16 %v2050_v56, %v2046_v53  ;;  %v4898_v53 = vpack.c.bf16 %v2085_v44, %v2081_v43  ;;  %v2110_v44 = vld [vmem:[#allocation6 + $0x7c0] sm:$0xff] }
 0x519   :  { %v4884_v5 = vpack.c.bf16 %v2052_v62, %v2048_v61  ;;  %v2080_v56 = vld [vmem:[#allocation6 + $0x6d0] sm:$0xff]  ;;  %v2091_v61 = vld [vmem:[#allocation6 + $0x728] sm:$0xff]  ;;  %v2089_v62 = vld [vmem:[#allocation6 + $0x718] sm:$0xff] }
 0x51b   :  { %4741 = vmatpush1.bf16.msra.mxu0 %v4740_v7  ;;  %4869 = vmatpush1.bf16.msra.mxu1 %v4868_v8  ;;  %v2058_v7 = vld [vmem:[#allocation6 + $0x620] sm:$0xff]  ;;  %v4758_v8 = vpack.c.bf16 %v2059_v1, %v2055_v0  ;;  %v2093_v0 = vld [vmem:[#allocation6 + $0x738] sm:$0xff] }
 0x51c   :  { %4743 = vmatprep.subr.bf16.mxu0 %v4742_v11  ;;  %4871 = vmatprep.subr.bf16.mxu1 %v4870_v13  ;;  %v2060_v11 = vld [vmem:[#allocation6 + $0x630] sm:$0xff]  ;;  %v2063_v13 = vld [vmem:[#allocation6 + $0x648] sm:$0xff]  ;;  %v4760_v19 = vpack.c.bf16 %v2058_v7, %v2054_v6  ;;  %v4902_v6 = vpack.c.bf16 %v2093_v0, %v2089_v62  ;;  %v2428_v62 = vld [vmem:[%s6912_s11] sm:$0xff] }
 0x51d   :  { %v4888_v20 = vpack.c.bf16 %v2060_v11, %v2056_v10  ;;  %v2088_v7 = vld [vmem:[#allocation6 + $0x710] sm:$0xff]  ;;  %v2099_v10 = vld [vmem:[#allocation6 + $0x768] sm:$0xff]  ;;  %v2097_v11 = vld [vmem:[#allocation6 + $0x758] sm:$0xff] }
 0x51e   :  { %v2430_v0 = vld [vmem:[%s6912_s11 + $0x10] sm:$0xff] }
 0x51f   :  { %4745 = vmatpush1.bf16.msra.mxu0 %v4744_v22  ;;  %4873 = vmatpush1.bf16.msra.mxu1 %v4872_v23  ;;  %v2066_v22 = vld [vmem:[#allocation6 + $0x660] sm:$0xff]  ;;  %v4762_v23 = vpack.c.bf16 %v2067_v14, %v2063_v13  ;;  %v2101_v13 = vld [vmem:[#allocation6 + $0x778] sm:$0xff] }
 0x520   :  { %4747 = vmatprep.subr.bf16.mxu0 %v4746_v29  ;;  %4875 = vmatprep.subr.bf16.mxu1 %v4874_v31  ;;  %v2068_v29 = vld [vmem:[#allocation6 + $0x670] sm:$0xff]  ;;  %v2071_v31 = vld [vmem:[#allocation6 + $0x688] sm:$0xff]  ;;  %v4764_v34 = vpack.c.bf16 %v2066_v22, %v2062_v25  ;;  %v4906_v25 = vpack.c.bf16 %v2101_v13, %v2097_v11  ;;  %v2436_v11 = vld [vmem:[%s6912_s11 + $0x40] sm:$0xff] }
 0x521   :  { %v4892_v55 = vpack.c.bf16 %v2068_v29, %v2064_v28  ;;  %v2096_v22 = vld [vmem:[#allocation6 + $0x750] sm:$0xff]  ;;  %v2107_v28 = vld [vmem:[#allocation6 + $0x7a8] sm:$0xff]  ;;  %v2105_v29 = vld [vmem:[#allocation6 + $0x798] sm:$0xff] }
 0x522   :  { %v2438_v13 = vld [vmem:[%s6912_s11 + $0x50] sm:$0xff] }
 0x523   :  { %4749 = vmatpush1.bf16.msra.mxu0 %v4748_v36  ;;  %4877 = vmatpush1.bf16.msra.mxu1 %v4876_v37  ;;  %v2074_v36 = vld [vmem:[#allocation6 + $0x6a0] sm:$0xff]  ;;  %v4766_v37 = vpack.c.bf16 %v2075_v32, %v2071_v31  ;;  %v2109_v31 = vld [vmem:[#allocation6 + $0x7b8] sm:$0xff] }
 0x524   :  { %4751 = vmatprep.subr.bf16.mxu0 %v4750_v40  ;;  %4879 = vmatprep.subr.bf16.mxu1 %v4878_v41  ;;  %v2076_v40 = vld [vmem:[#allocation6 + $0x6b0] sm:$0xff]  ;;  %v2079_v41 = vld [vmem:[#allocation6 + $0x6c8] sm:$0xff]  ;;  %v4768_v45 = vpack.c.bf16 %v2074_v36, %v2070_v35  ;;  %v4910_v35 = vpack.c.bf16 %v2109_v31, %v2105_v29  ;;  %v2444_v29 = vld [vmem:[%s6912_s11 + $0x80] sm:$0xff] }
 0x525   :  { %v4896_v46 = vpack.c.bf16 %v2076_v40, %v2072_v39  ;;  %v2104_v36 = vld [vmem:[#allocation6 + $0x790] sm:$0xff]  ;;  %v2115_v39 = vld [vmem:[#allocation6 + $0x7e8] sm:$0xff]  ;;  %v2113_v40 = vld [vmem:[#allocation6 + $0x7d8] sm:$0xff] }
 0x526   :  { %v2446_v31 = vld [vmem:[%s6912_s11 + $0x90] sm:$0xff] }
 0x527   :  { %4753 = vmatpush1.bf16.msra.mxu0 %v4752_v50  ;;  %4881 = vmatpush1.bf16.msra.mxu1 %v4880_v51  ;;  %v2082_v50 = vld [vmem:[#allocation6 + $0x6e0] sm:$0xff]  ;;  %v4770_v51 = vpack.c.bf16 %v2083_v42, %v2079_v41  ;;  %v2117_v41 = vld [vmem:[#allocation6 + $0x7f8] sm:$0xff] }
 0x528   :  { %4755 = vmatprep.subr.bf16.mxu0 %v4754_v58  ;;  %4883 = vmatprep.subr.bf16.mxu1 %v4882_v60  ;;  %v2084_v58 = vld [vmem:[#allocation6 + $0x6f0] sm:$0xff]  ;;  %v2087_v60 = vld [vmem:[#allocation6 + $0x708] sm:$0xff]  ;;  %v4772_v1 = vpack.c.bf16 %v2082_v50, %v2078_v48  ;;  %v2114_v48 = vld [vmem:[#allocation6 + $0x7e0] sm:$0xff] }
 0x529   :  { %v4900_v2 = vpack.c.bf16 %v2084_v58, %v2080_v56  ;;  %v2112_v50 = vld [vmem:[#allocation6 + $0x7d0] sm:$0xff]  ;;  %v2431_v56 = vld [vmem:[%s6912_s11 + $0x18] sm:$0xff]  ;;  %v4788_v58 = vpack.c.bf16 %v2114_v48, %v2110_v44 }
 0x52a   :  { %v2458_v48 = vld [vmem:[%s6912_s11 + $0xf0] sm:$0xff] }
 0x52b   :  { %4757 = vmatpush1.bf16.msra.mxu0 %v4756_v4  ;;  %4885 = vmatpush1.bf16.msra.mxu1 %v4884_v5  ;;  %v2090_v4 = vld [vmem:[#allocation6 + $0x720] sm:$0xff]  ;;  %v4774_v5 = vpack.c.bf16 %v2091_v61, %v2087_v60 }
 0x52c   :  { %4759 = vmatprep.subr.bf16.mxu0 %v4758_v8  ;;  %4887 = vmatprep.subr.bf16.mxu1 %v4886_v9  ;;  %v2092_v8 = vld [vmem:[#allocation6 + $0x730] sm:$0xff]  ;;  %v2095_v9 = vld [vmem:[#allocation6 + $0x748] sm:$0xff]  ;;  %v4776_v14 = vpack.c.bf16 %v2090_v4, %v2086_v3  ;;  %v4920_v3 = vpack.c.bf16 %v2430_v0, %v2428_v62  ;;  %v1860_v4 = vmax.f32 %v6368_v12, 0.0  ;;  %v2467_v62 = vld [vmem:[%s6912_s11 + $0x138] sm:$0xff] }
 0x52d   :  { %v4904_v15 = vpack.c.bf16 %v2092_v8, %v2088_v7  ;;  %v2434_v7 = vld [vmem:[%s6912_s11 + $0x30] sm:$0xff]  ;;  %v2437_v8 = vld [vmem:[%s6912_s11 + $0x48] sm:$0xff] }
 0x52f   :  { %4761 = vmatpush1.bf16.msra.mxu0 %v4760_v19  ;;  %4889 = vmatpush1.bf16.msra.mxu1 %v4888_v20  ;;  %v2098_v19 = vld [vmem:[#allocation6 + $0x760] sm:$0xff]  ;;  %v4778_v20 = vpack.c.bf16 %v2099_v10, %v2095_v9  ;;  %v2439_v9 = vld [vmem:[%s6912_s11 + $0x58] sm:$0xff] }
 0x530   :  { %4763 = vmatprep.subr.bf16.mxu0 %v4762_v23  ;;  %4891 = vmatprep.subr.bf16.mxu1 %v4890_v26  ;;  %v2100_v23 = vld [vmem:[#allocation6 + $0x770] sm:$0xff]  ;;  %v2103_v26 = vld [vmem:[#allocation6 + $0x788] sm:$0xff]  ;;  %v4780_v32 = vpack.c.bf16 %v2098_v19, %v2094_v16  ;;  %v4926_v10 = vpack.c.bf16 %v2439_v9, %v2437_v8  ;;  %v4928_v16 = vpack.c.bf16 %v2438_v13, %v2436_v11  ;;  %v2468_v8 = vld [vmem:[%s6912_s11 + $0x140] sm:$0xff] }
 0x531   :  { %v4908_v33 = vpack.c.bf16 %v2100_v23, %v2096_v22  ;;  %v2445_v22 = vld [vmem:[%s6912_s11 + $0x88] sm:$0xff]  ;;  %v2447_v23 = vld [vmem:[%s6912_s11 + $0x98] sm:$0xff]  ;;  %v2470_v9 = vld [vmem:[%s6912_s11 + $0x150] sm:$0xff] }
 0x532   :  { %v4960_v11 = vpack.c.bf16 %v2470_v9, %v2468_v8 }
 0x533   :  { %4765 = vmatpush1.bf16.msra.mxu0 %v4764_v34  ;;  %4893 = vmatpush1.bf16.msra.mxu1 %v4892_v55  ;;  %v2106_v34 = vld [vmem:[#allocation6 + $0x7a0] sm:$0xff]  ;;  %v4782_v55 = vpack.c.bf16 %v2107_v28, %v2103_v26  ;;  %v4934_v28 = vpack.c.bf16 %v2447_v23, %v2445_v22  ;;  %v2478_v23 = vld [vmem:[%s6912_s11 + $0x190] sm:$0xff] }
 0x534   :  { %4767 = vmatprep.subr.bf16.mxu0 %v4766_v37  ;;  %4895 = vmatprep.subr.bf16.mxu1 %v4894_v38  ;;  %v2108_v37 = vld [vmem:[#allocation6 + $0x7b0] sm:$0xff]  ;;  %v2111_v38 = vld [vmem:[#allocation6 + $0x7c8] sm:$0xff]  ;;  %v4784_v42 = vpack.c.bf16 %v2106_v34, %v2102_v52  ;;  %v4936_v52 = vpack.c.bf16 %v2446_v31, %v2444_v29  ;;  %v2476_v22 = vld [vmem:[%s6912_s11 + $0x180] sm:$0xff] }
 0x535   :  { %v4912_v43 = vpack.c.bf16 %v2108_v37, %v2104_v36  ;;  %v2453_v36 = vld [vmem:[%s6912_s11 + $0xc8] sm:$0xff]  ;;  %v2455_v37 = vld [vmem:[%s6912_s11 + $0xd8] sm:$0xff]  ;;  %v4968_v29 = vpack.c.bf16 %v2478_v23, %v2476_v22 }
 0x536   :  { %v2505_v22 = vld [vmem:[%s6912_s11 + $0x268] sm:$0xff]  ;;  %v2507_v23 = vld [vmem:[%s6912_s11 + $0x278] sm:$0xff] }
 0x537   :  { %4769 = vmatpush1.bf16.msra.mxu0 %v4768_v45  ;;  %4897 = vmatpush1.bf16.msra.mxu1 %v4896_v46  ;;  %v4786_v45 = vpack.c.bf16 %v2115_v39, %v2111_v38  ;;  %v4914_v46 = vpack.c.bf16 %v2117_v41, %v2113_v40  ;;  %v4942_v39 = vpack.c.bf16 %v2455_v37, %v2453_v36  ;;  %v2452_v40 = vld [vmem:[%s6912_s11 + $0xc0] sm:$0xff]  ;;  %v2454_v41 = vld [vmem:[%s6912_s11 + $0xd0] sm:$0xff] }
 0x538   :  { %4771 = vmatprep.subr.bf16.mxu0 %v4770_v51  ;;  %4899 = vmatprep.subr.bf16.mxu1 %v4898_v53  ;;  %v2116_v51 = vld [vmem:[#allocation6 + $0x7f0] sm:$0xff]  ;;  %v2429_v53 = vld [vmem:[%s6912_s11 + $0x8] sm:$0xff]  ;;  %v4944_v44 = vpack.c.bf16 %v2454_v41, %v2452_v40  ;;  %v2484_v36 = vld [vmem:[%s6912_s11 + $0x1c0] sm:$0xff] }
 0x539   :  { %v4916_v60 = vpack.c.bf16 %v2116_v51, %v2112_v50  ;;  %v4918_v61 = vpack.c.bf16 %v2431_v56, %v2429_v53  ;;  %v2461_v50 = vld [vmem:[%s6912_s11 + $0x108] sm:$0xff]  ;;  %v2463_v51 = vld [vmem:[%s6912_s11 + $0x118] sm:$0xff]  ;;  %v2486_v37 = vld [vmem:[%s6912_s11 + $0x1d0] sm:$0xff] }
 0x53a   :  { %v4950_v56 = vpack.c.bf16 %v2463_v51, %v2461_v50  ;;  %v2491_v40 = vld [vmem:[%s6912_s11 + $0x1f8] sm:$0xff]  ;;  %v6572_v50 = vld [vmem:[%s6911_s10] sm:$0xf] }
 0x53b   :  { %4773 = vmatpush1.bf16.msra.mxu0 %v4772_v1  ;;  %4901 = vmatpush1.bf16.msra.mxu1 %v4900_v2  ;;  %v2433_v1 = vld [vmem:[%s6912_s11 + $0x28] sm:$0xff]  ;;  %v2435_v2 = vld [vmem:[%s6912_s11 + $0x38] sm:$0xff]  ;;  %v2123_v51 = vrot.slane %v6572_v50, %v6294_v47 }
 0x53c   :  { %4775 = vmatprep.subr.bf16.mxu0 %v4774_v5  ;;  %4903 = vmatprep.subr.bf16.mxu1 %v4902_v6  ;;  %v4922_v5 = vpack.c.bf16 %v2435_v2, %v2433_v1  ;;  %v2432_v6 = vld [vmem:[%s6912_s11 + $0x20] sm:$0xff] }
 0x53d   :  { %v4924_v12 = vpack.c.bf16 %v2434_v7, %v2432_v6  ;;  %v2464_v2 = vld [vmem:[%s6912_s11 + $0x120] sm:$0xff] }
 0x53f   :  { %4777 = vmatpush1.bf16.msra.mxu0 %v4776_v14  ;;  %4905 = vmatpush1.bf16.msra.mxu1 %v4904_v15  ;;  %v2441_v14 = vld [vmem:[%s6912_s11 + $0x68] sm:$0xff]  ;;  %v2443_v15 = vld [vmem:[%s6912_s11 + $0x78] sm:$0xff] }
 0x540   :  { %4779 = vmatprep.subr.bf16.mxu0 %v4778_v20  ;;  %4907 = vmatprep.subr.bf16.mxu1 %v4906_v25  ;;  %v4930_v19 = vpack.c.bf16 %v2443_v15, %v2441_v14  ;;  %v2440_v20 = vld [vmem:[%s6912_s11 + $0x60] sm:$0xff]  ;;  %v2442_v25 = vld [vmem:[%s6912_s11 + $0x70] sm:$0xff] }
 0x541   :  { %v4932_v26 = vpack.c.bf16 %v2442_v25, %v2440_v20  ;;  %v2472_v14 = vld [vmem:[%s6912_s11 + $0x160] sm:$0xff]  ;;  %v2474_v15 = vld [vmem:[%s6912_s11 + $0x170] sm:$0xff] }
 0x542   :  { %v4964_v20 = vpack.c.bf16 %v2474_v15, %v2472_v14  ;;  %v2501_v14 = vld [vmem:[%s6912_s11 + $0x248] sm:$0xff]  ;;  %v2503_v15 = vld [vmem:[%s6912_s11 + $0x258] sm:$0xff] }
 0x543   :  { %4781 = vmatpush1.bf16.msra.mxu0 %v4780_v32  ;;  %4909 = vmatpush1.bf16.msra.mxu1 %v4908_v33  ;;  %v2449_v32 = vld [vmem:[%s6912_s11 + $0xa8] sm:$0xff]  ;;  %v2451_v33 = vld [vmem:[%s6912_s11 + $0xb8] sm:$0xff] }
 0x544   :  { %4783 = vmatprep.subr.bf16.mxu0 %v4782_v55  ;;  %4911 = vmatprep.subr.bf16.mxu1 %v4910_v35  ;;  %v4938_v34 = vpack.c.bf16 %v2451_v33, %v2449_v32  ;;  %v2448_v55 = vld [vmem:[%s6912_s11 + $0xa0] sm:$0xff]  ;;  %v2450_v35 = vld [vmem:[%s6912_s11 + $0xb0] sm:$0xff] }
 0x545   :  { %v4940_v38 = vpack.c.bf16 %v2450_v35, %v2448_v55  ;;  %v2480_v32 = vld [vmem:[%s6912_s11 + $0x1a0] sm:$0xff]  ;;  %v2482_v33 = vld [vmem:[%s6912_s11 + $0x1b0] sm:$0xff] }
 0x546   :  { %v4972_v55 = vpack.c.bf16 %v2482_v33, %v2480_v32  ;;  %v2509_v32 = vld [vmem:[%s6912_s11 + $0x288] sm:$0xff]  ;;  %v2511_v33 = vld [vmem:[%s6912_s11 + $0x298] sm:$0xff] }
 0x547   :  { %4785 = vmatpush1.bf16.msra.mxu0 %v4784_v42  ;;  %4913 = vmatpush1.bf16.msra.mxu1 %v4912_v43  ;;  %v2457_v42 = vld [vmem:[%s6912_s11 + $0xe8] sm:$0xff]  ;;  %v2459_v43 = vld [vmem:[%s6912_s11 + $0xf8] sm:$0xff] }
 0x548   :  { %4787 = vmatprep.subr.bf16.mxu0 %v4786_v45  ;;  %4915 = vmatprep.subr.bf16.mxu1 %v4914_v46  ;;  %v4946_v45 = vpack.c.bf16 %v2459_v43, %v2457_v42  ;;  %v2456_v46 = vld [vmem:[%s6912_s11 + $0xe0] sm:$0xff]  ;;  %v2490_v43 = vld [vmem:[%s6912_s11 + $0x1f0] sm:$0xff] }
 0x549   :  { %v4948_v53 = vpack.c.bf16 %v2458_v48, %v2456_v46  ;;  %v2488_v42 = vld [vmem:[%s6912_s11 + $0x1e0] sm:$0xff]  ;;  %v2495_v46 = vld [vmem:[%s6912_s11 + $0x218] sm:$0xff] }
 0x54b   :  { %4789 = vmatpush1.bf16.msra.mxu0 %v4788_v58  ;;  %4917 = vmatpush1.bf16.msra.mxu1 %v4916_v60  ;;  %v2460_v58 = vld [vmem:[%s6912_s11 + $0x100] sm:$0xff]  ;;  %v2462_v60 = vld [vmem:[%s6912_s11 + $0x110] sm:$0xff] }
 0x54c   :  { %4919 = vmatprep.subr.bf16.mxu0 %v4918_v61  ;;  %v2465_v61 = vld [vmem:[%s6912_s11 + $0x128] sm:$0xff]  ;;  %v4952_v0 = vpack.c.bf16 %v2462_v60, %v2460_v58 }
 0x54d   :  { %v4954_v1 = vpack.c.bf16 %v2467_v62, %v2465_v61 }
 0x54e   :  { %2276 = vmatmul.mubr.f32.vlgmr.msra.gmra.mrb[2].mxu0 %v1860_v4  ;;  %2418 = vmatmul.mubr.f32.vlgmr.msra.gmra.mrb[14].mxu1 %v1860_v4  ;;  %v2469_v4 = vld [vmem:[%s6912_s11 + $0x148] sm:$0xff] }
 0x54f   :  { %4921 = vmatpush1.bf16.msra.mxu0 %v4920_v3  ;;  %v2466_v3 = vld [vmem:[%s6912_s11 + $0x130] sm:$0xff] }
 0x550   :  { %4923 = vmatprep.subr.bf16.mxu0 %v4922_v5  ;;  %v2471_v5 = vld [vmem:[%s6912_s11 + $0x158] sm:$0xff]  ;;  %v4956_v6 = vpack.c.bf16 %v2466_v3, %v2464_v2  ;;  %v2494_v2 = vld [vmem:[%s6912_s11 + $0x210] sm:$0xff] }
 0x551   :  { %v4958_v7 = vpack.c.bf16 %v2471_v5, %v2469_v4  ;;  %v2497_v5 = vld [vmem:[%s6912_s11 + $0x228] sm:$0xff] }
 0x553   :  { %4925 = vmatpush1.bf16.msra.mxu0 %v4924_v12  ;;  %v2473_v12 = vld [vmem:[%s6912_s11 + $0x168] sm:$0xff] }
 0x554   :  { %4927 = vmatprep.subr.bf16.mxu0 %v4926_v10  ;;  %v2475_v10 = vld [vmem:[%s6912_s11 + $0x178] sm:$0xff] }
 0x555   :  { %v4962_v13 = vpack.c.bf16 %v2475_v10, %v2473_v12  ;;  %v2496_v10 = vld [vmem:[%s6912_s11 + $0x220] sm:$0xff] }
 0x557   :  { %4929 = vmatpush1.bf16.msra.mxu0 %v4928_v16  ;;  %v2477_v16 = vld [vmem:[%s6912_s11 + $0x188] sm:$0xff] }
 0x558   :  { %4931 = vmatprep.subr.bf16.mxu0 %v4930_v19  ;;  %v2479_v19 = vld [vmem:[%s6912_s11 + $0x198] sm:$0xff] }
 0x559   :  { %v4966_v25 = vpack.c.bf16 %v2479_v19, %v2477_v16  ;;  %v4990_v19 = vpack.c.bf16 %v2503_v15, %v2501_v14 }
 0x55b   :  { %4933 = vmatpush1.bf16.msra.mxu0 %v4932_v26  ;;  %v2481_v26 = vld [vmem:[%s6912_s11 + $0x1a8] sm:$0xff] }
 0x55c   :  { %4935 = vmatprep.subr.bf16.mxu0 %v4934_v28  ;;  %v2483_v28 = vld [vmem:[%s6912_s11 + $0x1b8] sm:$0xff] }
 0x55d   :  { %v4970_v31 = vpack.c.bf16 %v2483_v28, %v2481_v26  ;;  %v4994_v28 = vpack.c.bf16 %v2507_v23, %v2505_v22 }
 0x55f   :  { %4937 = vmatpush1.bf16.msra.mxu0 %v4936_v52  ;;  %v2485_v52 = vld [vmem:[%s6912_s11 + $0x1c8] sm:$0xff] }
 0x560   :  { %4939 = vmatprep.subr.bf16.mxu0 %v4938_v34  ;;  %v2487_v34 = vld [vmem:[%s6912_s11 + $0x1d8] sm:$0xff] }
 0x561   :  { %v4974_v35 = vpack.c.bf16 %v2487_v34, %v2485_v52  ;;  %v4998_v34 = vpack.c.bf16 %v2511_v33, %v2509_v32 }
 0x563   :  { %4941 = vmatpush1.bf16.msra.mxu0 %v4940_v38  ;;  %v4976_v38 = vpack.c.bf16 %v2486_v37, %v2484_v36  ;;  %v2513_v36 = vld [vmem:[%s6912_s11 + $0x2a8] sm:$0xff]  ;;  %v2515_v37 = vld [vmem:[%s6912_s11 + $0x2b8] sm:$0xff] }
 0x564   :  { %4943 = vmatprep.subr.bf16.mxu0 %v4942_v39  ;;  %v2489_v39 = vld [vmem:[%s6912_s11 + $0x1e8] sm:$0xff] }
 0x565   :  { %v4978_v41 = vpack.c.bf16 %v2491_v40, %v2489_v39  ;;  %v5002_v39 = vpack.c.bf16 %v2515_v37, %v2513_v36  ;;  %v2512_v40 = vld [vmem:[%s6912_s11 + $0x2a0] sm:$0xff] }
 0x567   :  { %4945 = vmatpush1.bf16.msra.mxu0 %v4944_v44  ;;  %v4980_v44 = vpack.c.bf16 %v2490_v43, %v2488_v42  ;;  %v2517_v42 = vld [vmem:[%s6912_s11 + $0x2c8] sm:$0xff]  ;;  %v2519_v43 = vld [vmem:[%s6912_s11 + $0x2d8] sm:$0xff] }
 0x568   :  { %4947 = vmatprep.subr.bf16.mxu0 %v4946_v45  ;;  %v2493_v45 = vld [vmem:[%s6912_s11 + $0x208] sm:$0xff] }
 0x569   :  { %v4982_v48 = vpack.c.bf16 %v2495_v46, %v2493_v45  ;;  %v5006_v45 = vpack.c.bf16 %v2519_v43, %v2517_v42  ;;  %v2516_v46 = vld [vmem:[%s6912_s11 + $0x2c0] sm:$0xff] }
 0x56b   :  { %4949 = vmatpush1.bf16.msra.mxu0 %v4948_v53  ;;  %v2127_v53 = vrot.slane %v6572_v50, %v6299_v49 }
 0x56c   :  { %4951 = vmatprep.subr.bf16.mxu0 %v4950_v56  ;;  %v2135_v56 = vrot.slane %v6572_v50, %v6305_v59 }
 0x56f   :  { %4953 = vmatpush1.bf16.msra.mxu0 %v4952_v0 }
 0x570   :  { %4955 = vmatprep.subr.bf16.mxu0 %v4954_v1  ;;  %v2492_v1 = vld [vmem:[%s6912_s11 + $0x200] sm:$0xff] }
 0x571   :  { %v4984_v8 = vpack.c.bf16 %v2494_v2, %v2492_v1  ;;  %v2527_v1 = vld [vmem:[%s6912_s11 + $0x318] sm:$0xff] }
 0x573   :  { %4957 = vmatpush1.bf16.msra.mxu0 %v4956_v6  ;;  %v2499_v6 = vld [vmem:[%s6912_s11 + $0x238] sm:$0xff] }
 0x574   :  { %4959 = vmatprep.subr.bf16.mxu0 %v4958_v7  ;;  %v4986_v12 = vpack.c.bf16 %v2499_v6, %v2497_v5  ;;  %v2526_v5 = vld [vmem:[%s6912_s11 + $0x310] sm:$0xff]  ;;  %v2529_v6 = vld [vmem:[%s6912_s11 + $0x328] sm:$0xff] }
 0x577   :  { %4961 = vmatpush1.bf16.msra.mxu0 %v4960_v11  ;;  %v2498_v11 = vld [vmem:[%s6912_s11 + $0x230] sm:$0xff] }
 0x578   :  { %4963 = vmatprep.subr.bf16.mxu0 %v4962_v13  ;;  %v4988_v16 = vpack.c.bf16 %v2498_v11, %v2496_v10  ;;  %v2530_v10 = vld [vmem:[%s6912_s11 + $0x330] sm:$0xff]  ;;  %v2533_v11 = vld [vmem:[%s6912_s11 + $0x348] sm:$0xff] }
 0x57b   :  { %4965 = vmatpush1.bf16.msra.mxu0 %v4964_v20  ;;  %v2500_v20 = vld [vmem:[%s6912_s11 + $0x240] sm:$0xff] }
 0x57c   :  { %4967 = vmatprep.subr.bf16.mxu0 %v4966_v25  ;;  %v2502_v25 = vld [vmem:[%s6912_s11 + $0x250] sm:$0xff] }
 0x57d   :  { %v4992_v26 = vpack.c.bf16 %v2502_v25, %v2500_v20  ;;  %v2537_v20 = vld [vmem:[%s6912_s11 + $0x368] sm:$0xff]  ;;  %v2539_v25 = vld [vmem:[%s6912_s11 + $0x378] sm:$0xff] }
 0x57e   :  { %v5026_v23 = vpack.c.bf16 %v2539_v25, %v2537_v20  ;;  %v3110_v20 = vld [vmem:[#allocation12 + $0xf8] sm:$0xff] }
 0x57f   :  { %4969 = vmatpush1.bf16.msra.mxu0 %v4968_v29  ;;  %v2504_v29 = vld [vmem:[%s6912_s11 + $0x260] sm:$0xff] }
 0x580   :  { %4971 = vmatprep.subr.bf16.mxu0 %v4970_v31  ;;  %v2506_v31 = vld [vmem:[%s6912_s11 + $0x270] sm:$0xff] }
 0x581   :  { %v4996_v52 = vpack.c.bf16 %v2506_v31, %v2504_v29  ;;  %v2541_v29 = vld [vmem:[%s6912_s11 + $0x388] sm:$0xff]  ;;  %v2543_v31 = vld [vmem:[%s6912_s11 + $0x398] sm:$0xff] }
 0x582   :  { %v5030_v33 = vpack.c.bf16 %v2543_v31, %v2541_v29  ;;  %v3118_v29 = vld [vmem:[#allocation12 + $0x138] sm:$0xff] }
 0x583   :  { %4973 = vmatpush1.bf16.msra.mxu0 %v4972_v55  ;;  %v2508_v55 = vld [vmem:[%s6912_s11 + $0x280] sm:$0xff] }
 0x584   :  { %4975 = vmatprep.subr.bf16.mxu0 %v4974_v35  ;;  %v2510_v35 = vld [vmem:[%s6912_s11 + $0x290] sm:$0xff] }
 0x587   :  { %4977 = vmatpush1.bf16.msra.mxu0 %v4976_v38  ;;  %v5000_v38 = vpack.c.bf16 %v2510_v35, %v2508_v55  ;;  %v2545_v55 = vld [vmem:[%s6912_s11 + $0x3a8] sm:$0xff]  ;;  %v2547_v35 = vld [vmem:[%s6912_s11 + $0x3b8] sm:$0xff] }
 0x588   :  { %4979 = vmatprep.subr.bf16.mxu0 %v4978_v41  ;;  %v2514_v41 = vld [vmem:[%s6912_s11 + $0x2b0] sm:$0xff]  ;;  %v5034_v37 = vpack.c.bf16 %v2547_v35, %v2545_v55  ;;  %v3126_v55 = vld [vmem:[#allocation12 + $0x178] sm:$0xff] }
 0x58b   :  { %4981 = vmatpush1.bf16.msra.mxu0 %v4980_v44  ;;  %v5004_v44 = vpack.c.bf16 %v2514_v41, %v2512_v40  ;;  %v2549_v40 = vld [vmem:[%s6912_s11 + $0x3c8] sm:$0xff]  ;;  %v2551_v41 = vld [vmem:[%s6912_s11 + $0x3d8] sm:$0xff] }
 0x58c   :  { %4983 = vmatprep.subr.bf16.mxu0 %v4982_v48  ;;  %v2518_v48 = vld [vmem:[%s6912_s11 + $0x2d0] sm:$0xff]  ;;  %v5038_v43 = vpack.c.bf16 %v2551_v41, %v2549_v40  ;;  %v3134_v40 = vld [vmem:[#allocation12 + $0x1b8] sm:$0xff] }
 0x621   :  { %v2277_v58 = vpop.f32.mrb[2].mxu0  ;;  %v6580_v60 = vpop.f32.mrb[14].mxu1 }
 0x622   :  { %v5590_v61 = vadd.f32 %v2277_v58, %v2123_v51  ;;  %v2279_v62 = vpop.f32.mrb[3].mxu0  ;;  %v2421_v0 = vpop.f32.mrb[15].mxu1  ;;  %v2521_v51 = vld [vmem:[%s6912_s11 + $0x2e8] sm:$0xff] }
 0x623   :  { %v5591_v3 = vadd.f32 %v2279_v62, %v2127_v53  ;;  %v5593_v4 = vadd.f32 %v2421_v0, %v2135_v56  ;;  %v2523_v53 = vld [vmem:[%s6912_s11 + $0x2f8] sm:$0xff]  ;;  %v5008_v56 = vpack.c.bf16 %v2518_v48, %v2516_v46  ;;  %v2522_v62 = vld [vmem:[%s6912_s11 + $0x2f0] sm:$0xff]  ;;  %v2525_v0 = vld [vmem:[%s6912_s11 + $0x308] sm:$0xff] }
 0x624   :  { %v2424_v9 = vmax.f32 %v5590_v61, 0.0  ;;  %v5010_v58 = vpack.c.bf16 %v2523_v53, %v2521_v51  ;;  %v2520_v61 = vld [vmem:[%s6912_s11 + $0x2e0] sm:$0xff]  ;;  %v2553_v46 = vld [vmem:[%s6912_s11 + $0x3e8] sm:$0xff]  ;;  %v2555_v48 = vld [vmem:[%s6912_s11 + $0x3f8] sm:$0xff]  ;;  %v2131_v53 = vrot.slane %v6572_v50, %v6303_v57 }
 0x625   :  { %v2425_v7 = vmax.f32 %v5591_v3, 0.0  ;;  %v2427_v13 = vmax.f32 %v5593_v4, 0.0  ;;  %v5012_v2 = vpack.c.bf16 %v2522_v62, %v2520_v61  ;;  %v5014_v3 = vpack.c.bf16 %v2527_v1, %v2525_v0  ;;  %v2524_v4 = vld [vmem:[%s6912_s11 + $0x300] sm:$0xff]  ;;  %v2554_v61 = vld [vmem:[%s6912_s11 + $0x3f0] sm:$0xff] }
 0x626   :  { %v3082_v62 = vld [vmem:[#allocation12 + $0x18] sm:$0xff]  ;;  %v3085_v50 = vld [vmem:[#allocation12 + $0x30] sm:$0xff] }
 0x627   :  { %2632 = vmatprep.mubr.f32.mxu0 %v2425_v7  ;;  %v2531_v7 = vld [vmem:[%s6912_s11 + $0x338] sm:$0xff] }
 0x628   :  { %2633 = vmatmul.mubr.f32.vlgmr.msra.gmra.mrb[4].mxu0 %v2424_v9  ;;  %v5018_v9 = vpack.c.bf16 %v2531_v7, %v2529_v6  ;;  %v3086_v0 = vld [vmem:[#allocation12 + $0x38] sm:$0xff] }
 0x629   :  { %4985 = vmatpush1.bf16.msra.mxu0 %v4984_v8  ;;  %2703 = vmatprep.mubr.f32.mxu0 %v2427_v13  ;;  %v5016_v8 = vpack.c.bf16 %v2526_v5, %v2524_v4  ;;  %v2535_v13 = vld [vmem:[%s6912_s11 + $0x358] sm:$0xff] }
 0x62a   :  { %4987 = vmatprep.subr.bf16.mxu0 %v4986_v12  ;;  %v2528_v12 = vld [vmem:[%s6912_s11 + $0x320] sm:$0xff]  ;;  %v5022_v15 = vpack.c.bf16 %v2535_v13, %v2533_v11  ;;  %v3081_v4 = vld [vmem:[#allocation12 + $0x10] sm:$0xff] }
 0x62b   :  { %v5020_v14 = vpack.c.bf16 %v2530_v10, %v2528_v12  ;;  %v3090_v5 = vld [vmem:[#allocation12 + $0x58] sm:$0xff]  ;;  %v5208_v7 = vpack.c.bf16 %v3085_v50, %v3081_v4  ;;  %v3089_v12 = vld [vmem:[#allocation12 + $0x50] sm:$0xff] }
 0x62c   :  { %v3094_v6 = vld [vmem:[#allocation12 + $0x78] sm:$0xff]  ;;  %v3093_v10 = vld [vmem:[#allocation12 + $0x70] sm:$0xff] }
 0x62d   :  { %4989 = vmatpush1.bf16.msra.mxu0 %v4988_v16  ;;  %v2532_v16 = vld [vmem:[%s6912_s11 + $0x340] sm:$0xff] }
 0x62e   :  { %4991 = vmatprep.subr.bf16.mxu0 %v4990_v19  ;;  %v2534_v19 = vld [vmem:[%s6912_s11 + $0x350] sm:$0xff]  ;;  %v3098_v11 = vld [vmem:[#allocation12 + $0x98] sm:$0xff] }
 0x62f   :  { %v5024_v22 = vpack.c.bf16 %v2534_v19, %v2532_v16  ;;  %v3102_v13 = vld [vmem:[#allocation12 + $0xb8] sm:$0xff]  ;;  %v3101_v16 = vld [vmem:[#allocation12 + $0xb0] sm:$0xff] }
 0x630   :  { %v3106_v19 = vld [vmem:[#allocation12 + $0xd8] sm:$0xff] }
 0x631   :  { %4993 = vmatpush1.bf16.msra.mxu0 %v4992_v26  ;;  %v2536_v26 = vld [vmem:[%s6912_s11 + $0x360] sm:$0xff] }
 0x632   :  { %4995 = vmatprep.subr.bf16.mxu0 %v4994_v28  ;;  %v2538_v28 = vld [vmem:[%s6912_s11 + $0x370] sm:$0xff]  ;;  %v3158_v4 = vld [vmem:[#allocation12 + $0x278] sm:$0xff] }
 0x633   :  { %v5028_v32 = vpack.c.bf16 %v2538_v28, %v2536_v26  ;;  %v3109_v26 = vld [vmem:[#allocation12 + $0xf0] sm:$0xff]  ;;  %v3114_v28 = vld [vmem:[#allocation12 + $0x118] sm:$0xff] }
 0x635   :  { %4997 = vmatpush1.bf16.msra.mxu0 %v4996_v52  ;;  %v2540_v52 = vld [vmem:[%s6912_s11 + $0x380] sm:$0xff] }
 0x636   :  { %4999 = vmatprep.subr.bf16.mxu0 %v4998_v34  ;;  %v2542_v34 = vld [vmem:[%s6912_s11 + $0x390] sm:$0xff] }
 0x637   :  { %v5032_v36 = vpack.c.bf16 %v2542_v34, %v2540_v52  ;;  %v3117_v52 = vld [vmem:[#allocation12 + $0x130] sm:$0xff]  ;;  %v3122_v34 = vld [vmem:[#allocation12 + $0x158] sm:$0xff] }
 0x639   :  { %5001 = vmatpush1.bf16.msra.mxu0 %v5000_v38  ;;  %v2544_v38 = vld [vmem:[%s6912_s11 + $0x3a0] sm:$0xff] }
 0x63a   :  { %5003 = vmatprep.subr.bf16.mxu0 %v5002_v39  ;;  %v2546_v39 = vld [vmem:[%s6912_s11 + $0x3b0] sm:$0xff] }
 0x63b   :  { %v5036_v42 = vpack.c.bf16 %v2546_v39, %v2544_v38  ;;  %v3125_v38 = vld [vmem:[#allocation12 + $0x170] sm:$0xff]  ;;  %v3130_v39 = vld [vmem:[#allocation12 + $0x198] sm:$0xff] }
 0x63d   :  { %5005 = vmatpush1.bf16.msra.mxu0 %v5004_v44  ;;  %v2548_v44 = vld [vmem:[%s6912_s11 + $0x3c0] sm:$0xff] }
 0x63e   :  { %5007 = vmatprep.subr.bf16.mxu0 %v5006_v45  ;;  %v2550_v45 = vld [vmem:[%s6912_s11 + $0x3d0] sm:$0xff] }
 0x63f   :  { %v5040_v51 = vpack.c.bf16 %v2550_v45, %v2548_v44  ;;  %v3133_v44 = vld [vmem:[#allocation12 + $0x1b0] sm:$0xff]  ;;  %v3138_v45 = vld [vmem:[#allocation12 + $0x1d8] sm:$0xff] }
 0x641   :  { %5009 = vmatpush1.bf16.msra.mxu0 %v5008_v56  ;;  %v5042_v56 = vpack.c.bf16 %v2555_v48, %v2553_v46  ;;  %v3142_v46 = vld [vmem:[#allocation12 + $0x1f8] sm:$0xff] }
 0x642   :  { %5011 = vmatprep.subr.bf16.mxu0 %v5010_v58  ;;  %v2552_v58 = vld [vmem:[%s6912_s11 + $0x3e0] sm:$0xff] }
 0x643   :  { %v5044_v1 = vpack.c.bf16 %v2554_v61, %v2552_v58  ;;  %v3146_v58 = vld [vmem:[#allocation12 + $0x218] sm:$0xff] }
 0x644   :  { %v3150_v61 = vld [vmem:[#allocation12 + $0x238] sm:$0xff] }
 0x645   :  { %5013 = vmatpush1.bf16.msra.mxu0 %v5012_v2  ;;  %v5592_v2 = vadd.f32 %v6580_v60, %v2131_v53  ;;  %v5212_v60 = vpack.c.bf16 %v3093_v10, %v3089_v12  ;;  %v3137_v53 = vld [vmem:[#allocation12 + $0x1d0] sm:$0xff] }
 0x646   :  { %5015 = vmatprep.subr.bf16.mxu0 %v5014_v3  ;;  %v5206_v3 = vpack.c.bf16 %v3086_v0, %v3082_v62  ;;  %v5238_v0 = vpack.c.bf16 %v3150_v61, %v3146_v58  ;;  %v2712_v61 = vld [vmem:[%s6914_s13] sm:$0xff] }
 0x649   :  { %5017 = vmatpush1.bf16.msra.mxu0 %v5016_v8  ;;  %v2426_v8 = vmax.f32 %v5592_v2, 0.0  ;;  %v3149_v2 = vld [vmem:[#allocation12 + $0x230] sm:$0xff] }
 0x64a   :  { %5019 = vmatprep.subr.bf16.mxu0 %v5018_v9  ;;  %v5210_v9 = vpack.c.bf16 %v3094_v6, %v3090_v5  ;;  %v3153_v6 = vld [vmem:[#allocation12 + $0x250] sm:$0xff] }
 0x64d   :  { %5021 = vmatpush1.bf16.msra.mxu0 %v5020_v14  ;;  %v5214_v14 = vpack.c.bf16 %v3102_v13, %v3098_v11  ;;  %v3161_v11 = vld [vmem:[#allocation12 + $0x290] sm:$0xff] }
 0x64e   :  { %5023 = vmatprep.subr.bf16.mxu0 %v5022_v15  ;;  %v3097_v15 = vld [vmem:[#allocation12 + $0x90] sm:$0xff] }
 0x64f   :  { %v5216_v25 = vpack.c.bf16 %v3101_v16, %v3097_v15  ;;  %v3165_v13 = vld [vmem:[#allocation12 + $0x2b0] sm:$0xff] }
 0x650   :  { %v5248_v15 = vpack.c.bf16 %v3165_v13, %v3161_v11  ;;  %v3217_v13 = vld [vmem:[#allocation12 + $0x450] sm:$0xff] }
 0x651   :  { %5025 = vmatpush1.bf16.msra.mxu0 %v5024_v22  ;;  %v5218_v22 = vpack.c.bf16 %v3110_v20, %v3106_v19  ;;  %v3169_v19 = vld [vmem:[#allocation12 + $0x2d0] sm:$0xff] }
 0x652   :  { %5027 = vmatprep.subr.bf16.mxu0 %v5026_v23  ;;  %v3105_v23 = vld [vmem:[#allocation12 + $0xd0] sm:$0xff] }
 0x653   :  { %v5220_v31 = vpack.c.bf16 %v3109_v26, %v3105_v23  ;;  %v3173_v20 = vld [vmem:[#allocation12 + $0x2f0] sm:$0xff] }
 0x654   :  { %v5252_v23 = vpack.c.bf16 %v3173_v20, %v3169_v19  ;;  %v2733_v19 = vld [vmem:[%s6914_s13 + $0xa8] sm:$0xff]  ;;  %v3230_v20 = vld [vmem:[#allocation12 + $0x4b8] sm:$0xff] }
 0x655   :  { %5029 = vmatpush1.bf16.msra.mxu0 %v5028_v32  ;;  %v5222_v32 = vpack.c.bf16 %v3118_v29, %v3114_v28  ;;  %v3177_v28 = vld [vmem:[#allocation12 + $0x310] sm:$0xff] }
 0x656   :  { %5031 = vmatprep.subr.bf16.mxu0 %v5030_v33  ;;  %v3113_v33 = vld [vmem:[#allocation12 + $0x110] sm:$0xff] }
 0x657   :  { %v5224_v35 = vpack.c.bf16 %v3117_v52, %v3113_v33  ;;  %v3181_v29 = vld [vmem:[#allocation12 + $0x330] sm:$0xff] }
 0x658   :  { %v5256_v33 = vpack.c.bf16 %v3181_v29, %v3177_v28  ;;  %v3225_v29 = vld [vmem:[#allocation12 + $0x490] sm:$0xff] }
 0x659   :  { %5033 = vmatpush1.bf16.msra.mxu0 %v5032_v36  ;;  %v5226_v36 = vpack.c.bf16 %v3126_v55, %v3122_v34  ;;  %v3185_v34 = vld [vmem:[#allocation12 + $0x350] sm:$0xff] }
 0x65a   :  { %5035 = vmatprep.subr.bf16.mxu0 %v5034_v37  ;;  %v3121_v37 = vld [vmem:[#allocation12 + $0x150] sm:$0xff] }
 0x65b   :  { %v5228_v41 = vpack.c.bf16 %v3125_v38, %v3121_v37  ;;  %v3189_v55 = vld [vmem:[#allocation12 + $0x370] sm:$0xff] }
 0x65c   :  { %v5260_v37 = vpack.c.bf16 %v3189_v55, %v3185_v34  ;;  %v2735_v34 = vld [vmem:[%s6914_s13 + $0xb8] sm:$0xff] }
 0x65d   :  { %5037 = vmatpush1.bf16.msra.mxu0 %v5036_v42  ;;  %v5230_v42 = vpack.c.bf16 %v3134_v40, %v3130_v39  ;;  %v3193_v39 = vld [vmem:[#allocation12 + $0x390] sm:$0xff]  ;;  %v3238_v55 = vld [vmem:[#allocation12 + $0x4f8] sm:$0xff] }
 0x65e   :  { %5039 = vmatprep.subr.bf16.mxu0 %v5038_v43  ;;  %v3129_v43 = vld [vmem:[#allocation12 + $0x190] sm:$0xff] }
 0x65f   :  { %v5232_v48 = vpack.c.bf16 %v3133_v44, %v3129_v43  ;;  %v3197_v40 = vld [vmem:[#allocation12 + $0x3b0] sm:$0xff] }
 0x660   :  { %v5264_v43 = vpack.c.bf16 %v3197_v40, %v3193_v39  ;;  %v3201_v44 = vld [vmem:[#allocation12 + $0x3d0] sm:$0xff] }
 0x661   :  { %5041 = vmatpush1.bf16.msra.mxu0 %v5040_v51  ;;  %v5234_v51 = vpack.c.bf16 %v3142_v46, %v3138_v45  ;;  %v3205_v45 = vld [vmem:[#allocation12 + $0x3f0] sm:$0xff] }
 0x662   :  { %5043 = vmatprep.subr.bf16.mxu0 %v5042_v56  ;;  %v3141_v56 = vld [vmem:[#allocation12 + $0x1f0] sm:$0xff] }
 0x663   :  { %v5236_v62 = vpack.c.bf16 %v3141_v56, %v3137_v53  ;;  %v2729_v53 = vld [vmem:[%s6914_s13 + $0x88] sm:$0xff]  ;;  %v3214_v56 = vld [vmem:[#allocation12 + $0x438] sm:$0xff]  ;;  %v3233_v40 = vld [vmem:[#allocation12 + $0x4d0] sm:$0xff] }
 0x665   :  { %5045 = vmatpush1.bf16.msra.mxu0 %v5044_v1  ;;  %v3145_v1 = vld [vmem:[#allocation12 + $0x210] sm:$0xff] }
 0x666   :  { %5207 = vmatprep.subr.bf16.mxu0 %v5206_v3  ;;  %v3154_v3 = vld [vmem:[#allocation12 + $0x258] sm:$0xff]  ;;  %v5240_v50 = vpack.c.bf16 %v3149_v2, %v3145_v1  ;;  %v5268_v1 = vpack.c.bf16 %v3205_v45, %v3201_v44  ;;  %v3209_v2 = vld [vmem:[#allocation12 + $0x410] sm:$0xff]  ;;  %v2737_v45 = vld [vmem:[%s6914_s13 + $0xc8] sm:$0xff] }
 0x667   :  { %v5242_v5 = vpack.c.bf16 %v3158_v4, %v3154_v3  ;;  %v3213_v3 = vld [vmem:[#allocation12 + $0x430] sm:$0xff]  ;;  %v2736_v44 = vld [vmem:[%s6914_s13 + $0xc0] sm:$0xff] }
 0x668   :  { %2704 = vmatmul.mubr.f32.vlgmr.msra.gmra.mrb[4].mxu0 %v2426_v8  ;;  %v3162_v8 = vld [vmem:[#allocation12 + $0x298] sm:$0xff]  ;;  %v5272_v11 = vpack.c.bf16 %v3213_v3, %v3209_v2  ;;  %v2738_v2 = vld [vmem:[%s6914_s13 + $0xd0] sm:$0xff] }
 0x669   :  { %5209 = vmatpush1.bf16.msra.mxu0 %v5208_v7  ;;  %3541 = vmatprep.mubr.f32.mxu0 %v6339_v27  ;;  %v3157_v7 = vld [vmem:[#allocation12 + $0x270] sm:$0xff] }
 0x66a   :  { %5211 = vmatprep.subr.bf16.mxu0 %v5210_v9  ;;  %v3166_v9 = vld [vmem:[#allocation12 + $0x2b8] sm:$0xff]  ;;  %v5244_v12 = vpack.c.bf16 %v3157_v7, %v3153_v6 }
 0x66b   :  { %v5246_v10 = vpack.c.bf16 %v3166_v9, %v3162_v8  ;;  %v2731_v6 = vld [vmem:[%s6914_s13 + $0x98] sm:$0xff]  ;;  %v2714_v9 = vld [vmem:[%s6914_s13 + $0x10] sm:$0xff] }
 0x66c   :  { %v3222_v7 = vld [vmem:[#allocation12 + $0x478] sm:$0xff] }
 0x66d   :  { %5213 = vmatpush1.bf16.msra.mxu0 %v5212_v60  ;;  %v3170_v60 = vld [vmem:[#allocation12 + $0x2d8] sm:$0xff] }
 0x66e   :  { %5215 = vmatprep.subr.bf16.mxu0 %v5214_v14  ;;  %v3174_v14 = vld [vmem:[#allocation12 + $0x2f8] sm:$0xff] }
 0x66f   :  { %v5250_v16 = vpack.c.bf16 %v3174_v14, %v3170_v60  ;;  %v3221_v60 = vld [vmem:[#allocation12 + $0x470] sm:$0xff] }
 0x670   :  { %v5276_v28 = vpack.c.bf16 %v3221_v60, %v3217_v13  ;;  %v2739_v3 = vld [vmem:[%s6914_s13 + $0xd8] sm:$0xff]  ;;  %v2740_v13 = vld [vmem:[%s6914_s13 + $0xe0] sm:$0xff]  ;;  %v2741_v60 = vld [vmem:[%s6914_s13 + $0xe8] sm:$0xff] }
 0x671   :  { %5217 = vmatpush1.bf16.msra.mxu0 %v5216_v25  ;;  %v3178_v25 = vld [vmem:[#allocation12 + $0x318] sm:$0xff] }
 0x672   :  { %5219 = vmatprep.subr.bf16.mxu0 %v5218_v22  ;;  %v3182_v22 = vld [vmem:[#allocation12 + $0x338] sm:$0xff] }
 0x673   :  { %v5254_v26 = vpack.c.bf16 %v3182_v22, %v3178_v25  ;;  %v2716_v22 = vld [vmem:[%s6914_s13 + $0x20] sm:$0xff] }
 0x675   :  { %5221 = vmatpush1.bf16.msra.mxu0 %v5220_v31  ;;  %v3186_v31 = vld [vmem:[#allocation12 + $0x358] sm:$0xff] }
 0x676   :  { %5223 = vmatprep.subr.bf16.mxu0 %v5222_v32  ;;  %v3190_v32 = vld [vmem:[#allocation12 + $0x378] sm:$0xff] }
 0x677   :  { %v5258_v52 = vpack.c.bf16 %v3190_v32, %v3186_v31  ;;  %v3229_v31 = vld [vmem:[#allocation12 + $0x4b0] sm:$0xff] }
 0x678   :  { %v5280_v39 = vpack.c.bf16 %v3229_v31, %v3225_v29  ;;  %v2742_v29 = vld [vmem:[%s6914_s13 + $0xf0] sm:$0xff]  ;;  %v2743_v31 = vld [vmem:[%s6914_s13 + $0xf8] sm:$0xff] }
 0x679   :  { %5225 = vmatpush1.bf16.msra.mxu0 %v5224_v35  ;;  %v3194_v35 = vld [vmem:[#allocation12 + $0x398] sm:$0xff] }
 0x67a   :  { %5227 = vmatprep.subr.bf16.mxu0 %v5226_v36  ;;  %v3198_v36 = vld [vmem:[#allocation12 + $0x3b8] sm:$0xff] }
 0x67b   :  { %v5262_v38 = vpack.c.bf16 %v3198_v36, %v3194_v35  ;;  %v2718_v36 = vld [vmem:[%s6914_s13 + $0x30] sm:$0xff] }
 0x67d   :  { %5229 = vmatpush1.bf16.msra.mxu0 %v5228_v41  ;;  %v3202_v41 = vld [vmem:[#allocation12 + $0x3d8] sm:$0xff] }
 0x67e   :  { %5231 = vmatprep.subr.bf16.mxu0 %v5230_v42  ;;  %v3206_v42 = vld [vmem:[#allocation12 + $0x3f8] sm:$0xff] }
 0x67f   :  { %v5266_v46 = vpack.c.bf16 %v3206_v42, %v3202_v41  ;;  %v3237_v41 = vld [vmem:[#allocation12 + $0x4f0] sm:$0xff] }
 0x681   :  { %5233 = vmatpush1.bf16.msra.mxu0 %v5232_v48  ;;  %v3210_v48 = vld [vmem:[#allocation12 + $0x418] sm:$0xff] }
 0x682   :  { %5235 = vmatprep.subr.bf16.mxu0 %v5234_v51  ;;  %v2728_v51 = vld [vmem:[%s6914_s13 + $0x80] sm:$0xff]  ;;  %v5270_v4 = vpack.c.bf16 %v3214_v56, %v3210_v48  ;;  %v5062_v48 = vpack.c.bf16 %v2737_v45, %v2736_v44 }
 0x683   :  { %v5046_v58 = vpack.c.bf16 %v2729_v53, %v2728_v51  ;;  %v2720_v51 = vld [vmem:[%s6914_s13 + $0x40] sm:$0xff]  ;;  %v2721_v53 = vld [vmem:[%s6914_s13 + $0x48] sm:$0xff] }
 0x684   :  { %v5064_v56 = vpack.c.bf16 %v2721_v53, %v2720_v51  ;;  %v3282_v51 = vld [vmem:[#allocation12 + $0x658] sm:$0xff] }
 0x685   :  { %5237 = vmatpush1.bf16.msra.mxu0 %v5236_v62  ;;  %v2713_v62 = vld [vmem:[%s6914_s13 + $0x8] sm:$0xff]  ;;  %5047 = vmatprep.subr.bf16.mxu1 %v5046_v58  ;;  %v5284_v58 = vpack.c.bf16 %v3237_v41, %v3233_v40  ;;  %v3274_v41 = vld [vmem:[#allocation12 + $0x618] sm:$0xff] }
 0x686   :  { %5239 = vmatprep.subr.bf16.mxu0 %v5238_v0  ;;  %v5048_v0 = vpack.c.bf16 %v2713_v62, %v2712_v61  ;;  %v3241_v61 = vld [vmem:[#allocation12 + $0x510] sm:$0xff]  ;;  %v3084_v40 = vld [vmem:[#allocation12 + $0x28] sm:$0xff]  ;;  %v3286_v53 = vld [vmem:[#allocation12 + $0x678] sm:$0xff] }
 0x687   :  { %v3245_v62 = vld [vmem:[#allocation12 + $0x530] sm:$0xff] }
 0x688   :  { %5049 = vmatpush3.bf16.msra.mxu1 %v5048_v0 }
 0x689   :  { %5241 = vmatpush1.bf16.msra.mxu0 %v5240_v50  ;;  %v3218_v50 = vld [vmem:[#allocation12 + $0x458] sm:$0xff] }
 0x68a   :  { %5243 = vmatprep.subr.bf16.mxu0 %v5242_v5  ;;  %v2730_v5 = vld [vmem:[%s6914_s13 + $0x90] sm:$0xff]  ;;  %v5274_v14 = vpack.c.bf16 %v3222_v7, %v3218_v50  ;;  %v5066_v50 = vpack.c.bf16 %v2739_v3, %v2738_v2 }
 0x68b   :  { %v5050_v8 = vpack.c.bf16 %v2731_v6, %v2730_v5  ;;  %v2722_v5 = vld [vmem:[%s6914_s13 + $0x50] sm:$0xff]  ;;  %v2723_v6 = vld [vmem:[%s6914_s13 + $0x58] sm:$0xff] }
 0x68c   :  { %v5068_v7 = vpack.c.bf16 %v2723_v6, %v2722_v5  ;;  %v3298_v5 = vld [vmem:[#allocation12 + $0x6d8] sm:$0xff] }
 0x68d   :  { %5245 = vmatpush1.bf16.msra.mxu0 %v5244_v12  ;;  %v2715_v12 = vld [vmem:[%s6914_s13 + $0x18] sm:$0xff]  ;;  %5051 = vmatprep.subr.bf16.mxu1 %v5050_v8  ;;  %v5288_v8 = vpack.c.bf16 %v3245_v62, %v3241_v61 }
 0x68e   :  { %5247 = vmatprep.subr.bf16.mxu0 %v5246_v10  ;;  %v5052_v10 = vpack.c.bf16 %v2715_v12, %v2714_v9  ;;  %v3249_v9 = vld [vmem:[#allocation12 + $0x550] sm:$0xff]  ;;  %v3302_v6 = vld [vmem:[#allocation12 + $0x6f8] sm:$0xff] }
 0x68f   :  { %v3253_v12 = vld [vmem:[#allocation12 + $0x570] sm:$0xff] }
 0x690   :  { %5053 = vmatpush3.bf16.msra.mxu1 %v5052_v10  ;;  %v3281_v61 = vld [vmem:[#allocation12 + $0x650] sm:$0xff] }
 0x691   :  { %5249 = vmatpush1.bf16.msra.mxu0 %v5248_v15  ;;  %v3226_v15 = vld [vmem:[#allocation12 + $0x498] sm:$0xff]  ;;  %v3285_v62 = vld [vmem:[#allocation12 + $0x670] sm:$0xff] }
 0x692   :  { %5251 = vmatprep.subr.bf16.mxu0 %v5250_v16  ;;  %v2732_v16 = vld [vmem:[%s6914_s13 + $0xa0] sm:$0xff]  ;;  %v5278_v32 = vpack.c.bf16 %v3230_v20, %v3226_v15  ;;  %v5070_v15 = vpack.c.bf16 %v2741_v60, %v2740_v13  ;;  %v5308_v2 = vpack.c.bf16 %v3285_v62, %v3281_v61 }
 0x693   :  { %v5054_v25 = vpack.c.bf16 %v2733_v19, %v2732_v16  ;;  %v2724_v16 = vld [vmem:[%s6914_s13 + $0x60] sm:$0xff]  ;;  %v2725_v19 = vld [vmem:[%s6914_s13 + $0x68] sm:$0xff] }
 0x694   :  { %v5072_v20 = vpack.c.bf16 %v2725_v19, %v2724_v16  ;;  %v3314_v16 = vld [vmem:[#allocation12 + $0x758] sm:$0xff] }
 0x695   :  { %5253 = vmatpush1.bf16.msra.mxu0 %v5252_v23  ;;  %v2717_v23 = vld [vmem:[%s6914_s13 + $0x28] sm:$0xff]  ;;  %5055 = vmatprep.subr.bf16.mxu1 %v5054_v25  ;;  %v5292_v25 = vpack.c.bf16 %v3253_v12, %v3249_v9  ;;  %v3297_v9 = vld [vmem:[#allocation12 + $0x6d0] sm:$0xff]  ;;  %v3318_v19 = vld [vmem:[#allocation12 + $0x778] sm:$0xff] }
 0x696   :  { %5255 = vmatprep.subr.bf16.mxu0 %v5254_v26  ;;  %v5056_v26 = vpack.c.bf16 %v2717_v23, %v2716_v22  ;;  %v3257_v22 = vld [vmem:[#allocation12 + $0x590] sm:$0xff] }
 0x697   :  { %v3261_v23 = vld [vmem:[#allocation12 + $0x5b0] sm:$0xff] }
 0x698   :  { %5057 = vmatpush3.bf16.msra.mxu1 %v5056_v26  ;;  %v3301_v12 = vld [vmem:[#allocation12 + $0x6f0] sm:$0xff] }
 0x699   :  { %5257 = vmatpush1.bf16.msra.mxu0 %v5256_v33  ;;  %v3234_v33 = vld [vmem:[#allocation12 + $0x4d8] sm:$0xff]  ;;  %v5316_v13 = vpack.c.bf16 %v3301_v12, %v3297_v9 }
 0x69a   :  { %5259 = vmatprep.subr.bf16.mxu0 %v5258_v52  ;;  %v2734_v52 = vld [vmem:[%s6914_s13 + $0xb0] sm:$0xff]  ;;  %v5282_v42 = vpack.c.bf16 %v3238_v55, %v3234_v33  ;;  %v5074_v33 = vpack.c.bf16 %v2743_v31, %v2742_v29 }
 0x69b   :  { %v5058_v35 = vpack.c.bf16 %v2735_v34, %v2734_v52  ;;  %v2726_v52 = vld [vmem:[%s6914_s13 + $0x70] sm:$0xff]  ;;  %v2727_v34 = vld [vmem:[%s6914_s13 + $0x78] sm:$0xff] }
 0x69c   :  { %v5076_v55 = vpack.c.bf16 %v2727_v34, %v2726_v52  ;;  %v3330_v52 = vld [vmem:[#allocation12 + $0x7d8] sm:$0xff] }
 0x69d   :  { %5261 = vmatpush1.bf16.msra.mxu0 %v5260_v37  ;;  %v2719_v37 = vld [vmem:[%s6914_s13 + $0x38] sm:$0xff]  ;;  %5059 = vmatprep.subr.bf16.mxu1 %v5058_v35  ;;  %v5296_v35 = vpack.c.bf16 %v3261_v23, %v3257_v22 }
 0x69e   :  { %5263 = vmatprep.subr.bf16.mxu0 %v5262_v38  ;;  %v5060_v38 = vpack.c.bf16 %v2719_v37, %v2718_v36  ;;  %v3265_v36 = vld [vmem:[#allocation12 + $0x5d0] sm:$0xff]  ;;  %v3334_v34 = vld [vmem:[#allocation12 + $0x7f8] sm:$0xff] }
 0x69f   :  { %v3313_v22 = vld [vmem:[#allocation12 + $0x750] sm:$0xff] }
 0x6a0   :  { %5061 = vmatpush3.bf16.msra.mxu1 %v5060_v38  ;;  %v3269_v38 = vld [vmem:[#allocation12 + $0x5f0] sm:$0xff] }
 0x6a1   :  { %5265 = vmatpush1.bf16.msra.mxu0 %v5264_v43  ;;  %v3242_v43 = vld [vmem:[#allocation12 + $0x518] sm:$0xff]  ;;  %5063 = vmatprep.subr.bf16.mxu1 %v5062_v48  ;;  %v5300_v44 = vpack.c.bf16 %v3269_v38, %v3265_v36  ;;  %v3277_v48 = vld [vmem:[#allocation12 + $0x630] sm:$0xff] }
 0x6a2   :  { %5267 = vmatprep.subr.bf16.mxu0 %v5266_v46  ;;  %v3246_v46 = vld [vmem:[#allocation12 + $0x538] sm:$0xff]  ;;  %v3317_v23 = vld [vmem:[#allocation12 + $0x770] sm:$0xff] }
 0x6a3   :  { %v5286_v0 = vpack.c.bf16 %v3246_v46, %v3242_v43  ;;  %v3273_v46 = vld [vmem:[#allocation12 + $0x610] sm:$0xff]  ;;  %v5324_v29 = vpack.c.bf16 %v3317_v23, %v3313_v22  ;;  %v2826_v38 = vld [vmem:[#allocation10 + $0x18] sm:$0xff] }
 0x6a4   :  { %5065 = vmatpush3.bf16.msra.mxu1 %v5064_v56  ;;  %v5304_v56 = vpack.c.bf16 %v3277_v48, %v3273_v46  ;;  %v3329_v36 = vld [vmem:[#allocation12 + $0x7d0] sm:$0xff] }
 0x6a5   :  { %5269 = vmatpush1.bf16.msra.mxu0 %v5268_v1  ;;  %v3250_v1 = vld [vmem:[#allocation12 + $0x558] sm:$0xff]  ;;  %5067 = vmatprep.subr.bf16.mxu1 %v5066_v50  ;;  %v3293_v50 = vld [vmem:[#allocation12 + $0x6b0] sm:$0xff] }
 0x6a6   :  { %5271 = vmatprep.subr.bf16.mxu0 %v5270_v4  ;;  %v3254_v4 = vld [vmem:[#allocation12 + $0x578] sm:$0xff] }
 0x6a7   :  { %v5290_v10 = vpack.c.bf16 %v3254_v4, %v3250_v1  ;;  %v3294_v1 = vld [vmem:[#allocation12 + $0x6b8] sm:$0xff]  ;;  %v3289_v4 = vld [vmem:[#allocation12 + $0x690] sm:$0xff] }
 0x6a8   :  { %3542 = vmatmul.mubr.f32.vlgmr.msra.gmra.mrb[6].mxu0 %v6337_v21  ;;  %5069 = vmatpush3.bf16.msra.mxu1 %v5068_v7  ;;  %v5312_v7 = vpack.c.bf16 %v3293_v50, %v3289_v4 }
 0x6a9   :  { %5273 = vmatpush1.bf16.msra.mxu0 %v5272_v11  ;;  %3612 = vmatprep.mubr.f32.mxu0 %v6347_v63  ;;  %v3258_v11 = vld [vmem:[#allocation12 + $0x598] sm:$0xff] }
 0x6aa   :  { %5275 = vmatprep.subr.bf16.mxu0 %v5274_v14  ;;  %v3262_v14 = vld [vmem:[#allocation12 + $0x5b8] sm:$0xff]  ;;  %5071 = vmatprep.subr.bf16.mxu1 %v5070_v15  ;;  %v3309_v15 = vld [vmem:[#allocation12 + $0x730] sm:$0xff] }
 0x6ab   :  { %v5294_v26 = vpack.c.bf16 %v3262_v14, %v3258_v11  ;;  %v3310_v11 = vld [vmem:[#allocation12 + $0x738] sm:$0xff]  ;;  %v3305_v14 = vld [vmem:[#allocation12 + $0x710] sm:$0xff] }
 0x6ac   :  { %5073 = vmatpush3.bf16.msra.mxu1 %v5072_v20  ;;  %v5320_v20 = vpack.c.bf16 %v3309_v15, %v3305_v14 }
 0x6ad   :  { %5277 = vmatpush1.bf16.msra.mxu0 %v5276_v28  ;;  %v3266_v28 = vld [vmem:[#allocation12 + $0x5d8] sm:$0xff]  ;;  %5075 = vmatprep.subr.bf16.mxu1 %v5074_v33  ;;  %v3325_v33 = vld [vmem:[#allocation12 + $0x7b0] sm:$0xff] }
 0x6ae   :  { %5279 = vmatprep.subr.bf16.mxu0 %v5278_v32  ;;  %v3270_v32 = vld [vmem:[#allocation12 + $0x5f8] sm:$0xff] }
 0x6af   :  { %v5298_v37 = vpack.c.bf16 %v3270_v32, %v3266_v28  ;;  %v3326_v28 = vld [vmem:[#allocation12 + $0x7b8] sm:$0xff]  ;;  %v3321_v32 = vld [vmem:[#allocation12 + $0x790] sm:$0xff] }
 0x6b0   :  { %5077 = vmatpush3.bf16.msra.mxu1 %v5076_v55  ;;  %v5328_v55 = vpack.c.bf16 %v3325_v33, %v3321_v32 }
 0x6b1   :  { %5281 = vmatpush1.bf16.msra.mxu0 %v5280_v39  ;;  %v3080_v39 = vld [vmem:[#allocation12 + $0x8] sm:$0xff] }
 0x6b2   :  { %5283 = vmatprep.subr.bf16.mxu0 %v5282_v42  ;;  %v3278_v42 = vld [vmem:[#allocation12 + $0x638] sm:$0xff]  ;;  %v5078_v43 = vpack.c.bf16 %v3084_v40, %v3080_v39 }
 0x6b3   :  { %v5302_v45 = vpack.c.bf16 %v3278_v42, %v3274_v41  ;;  %v2830_v39 = vld [vmem:[#allocation10 + $0x38] sm:$0xff]  ;;  %v2825_v42 = vld [vmem:[#allocation10 + $0x10] sm:$0xff] }
 0x6b4   :  { %5079 = vmatprep.subr.bf16.mxu1 %v5078_v43  ;;  %v5462_v41 = vpack.c.bf16 %v2830_v39, %v2826_v38  ;;  %v2829_v43 = vld [vmem:[#allocation10 + $0x30] sm:$0xff] }
 0x6b5   :  { %5285 = vmatpush1.bf16.msra.mxu0 %v5284_v58  ;;  %v5306_v58 = vpack.c.bf16 %v3286_v53, %v3282_v51  ;;  %v5464_v46 = vpack.c.bf16 %v2829_v43, %v2825_v42  ;;  %v2833_v51 = vld [vmem:[#allocation10 + $0x50] sm:$0xff] }
 0x6b6   :  { %5287 = vmatprep.subr.bf16.mxu0 %v5286_v0  ;;  %v3290_v0 = vld [vmem:[#allocation12 + $0x698] sm:$0xff]  ;;  %v2837_v53 = vld [vmem:[#allocation10 + $0x70] sm:$0xff] }
 0x6b7   :  { %v5310_v3 = vpack.c.bf16 %v3294_v1, %v3290_v0  ;;  %v5468_v61 = vpack.c.bf16 %v2837_v53, %v2833_v51  ;;  %v2841_v0 = vld [vmem:[#allocation10 + $0x90] sm:$0xff] }
 0x6b8   :  { %v2845_v1 = vld [vmem:[#allocation10 + $0xb0] sm:$0xff] }
 0x6b9   :  { %5289 = vmatpush1.bf16.msra.mxu0 %v5288_v8  ;;  %v5314_v8 = vpack.c.bf16 %v3302_v6, %v3298_v5  ;;  %v5472_v4 = vpack.c.bf16 %v2845_v1, %v2841_v0  ;;  %v2849_v5 = vld [vmem:[#allocation10 + $0xd0] sm:$0xff] }
 0x6ba   :  { %5291 = vmatprep.subr.bf16.mxu0 %v5290_v10  ;;  %v3306_v10 = vld [vmem:[#allocation12 + $0x718] sm:$0xff]  ;;  %v2853_v6 = vld [vmem:[#allocation10 + $0xf0] sm:$0xff] }
 0x6bb   :  { %v5318_v60 = vpack.c.bf16 %v3310_v11, %v3306_v10  ;;  %v5476_v9 = vpack.c.bf16 %v2853_v6, %v2849_v5  ;;  %v2857_v10 = vld [vmem:[#allocation10 + $0x110] sm:$0xff] }
 0x6bc   :  { %v2861_v11 = vld [vmem:[#allocation10 + $0x130] sm:$0xff] }
 0x6bd   :  { %5293 = vmatpush1.bf16.msra.mxu0 %v5292_v25  ;;  %v5322_v25 = vpack.c.bf16 %v3318_v19, %v3314_v16  ;;  %v5480_v14 = vpack.c.bf16 %v2861_v11, %v2857_v10  ;;  %v2865_v16 = vld [vmem:[#allocation10 + $0x150] sm:$0xff] }
 0x6be   :  { %5295 = vmatprep.subr.bf16.mxu0 %v5294_v26  ;;  %v3322_v26 = vld [vmem:[#allocation12 + $0x798] sm:$0xff]  ;;  %v2869_v19 = vld [vmem:[#allocation10 + $0x170] sm:$0xff] }
 0x6bf   :  { %v5326_v31 = vpack.c.bf16 %v3326_v28, %v3322_v26  ;;  %v5484_v22 = vpack.c.bf16 %v2869_v19, %v2865_v16  ;;  %v2873_v26 = vld [vmem:[#allocation10 + $0x190] sm:$0xff] }
 0x6c0   :  { %v2877_v28 = vld [vmem:[#allocation10 + $0x1b0] sm:$0xff] }
 0x6c1   :  { %5297 = vmatpush1.bf16.msra.mxu0 %v5296_v35  ;;  %v5330_v35 = vpack.c.bf16 %v3334_v34, %v3330_v52  ;;  %v5488_v32 = vpack.c.bf16 %v2877_v28, %v2873_v26  ;;  %v2881_v52 = vld [vmem:[#allocation10 + $0x1d0] sm:$0xff] }
 0x6c2   :  { %5299 = vmatprep.subr.bf16.mxu0 %v5298_v37  ;;  %v3333_v37 = vld [vmem:[#allocation12 + $0x7f0] sm:$0xff] }
 0x6c3   :  { %v5332_v40 = vpack.c.bf16 %v3333_v37, %v3329_v36  ;;  %v2885_v34 = vld [vmem:[#allocation10 + $0x1f0] sm:$0xff] }
 0x6c4   :  { %v5492_v36 = vpack.c.bf16 %v2885_v34, %v2881_v52  ;;  %v2889_v38 = vld [vmem:[#allocation10 + $0x210] sm:$0xff] }
 0x6c5   :  { %5301 = vmatpush1.bf16.msra.mxu0 %v5300_v44  ;;  %v2834_v44 = vld [vmem:[#allocation10 + $0x58] sm:$0xff]  ;;  %v2893_v39 = vld [vmem:[#allocation10 + $0x230] sm:$0xff] }
 0x6c6   :  { %5303 = vmatprep.subr.bf16.mxu0 %v5302_v45  ;;  %v2838_v45 = vld [vmem:[#allocation10 + $0x78] sm:$0xff]  ;;  %v5496_v42 = vpack.c.bf16 %v2893_v39, %v2889_v38 }
 0x6c7   :  { %v5466_v48 = vpack.c.bf16 %v2838_v45, %v2834_v44  ;;  %v2897_v44 = vld [vmem:[#allocation10 + $0x250] sm:$0xff] }
 0x6c8   :  { %v2901_v45 = vld [vmem:[#allocation10 + $0x270] sm:$0xff] }
 0x6c9   :  { %5305 = vmatpush1.bf16.msra.mxu0 %v5304_v56  ;;  %v2842_v56 = vld [vmem:[#allocation10 + $0x98] sm:$0xff]  ;;  %v5500_v51 = vpack.c.bf16 %v2901_v45, %v2897_v44 }
 0x6ca   :  { %5307 = vmatprep.subr.bf16.mxu0 %v5306_v58  ;;  %v2846_v58 = vld [vmem:[#allocation10 + $0xb8] sm:$0xff] }
 0x6cb   :  { %v5470_v62 = vpack.c.bf16 %v2846_v58, %v2842_v56  ;;  %v2905_v56 = vld [vmem:[#allocation10 + $0x290] sm:$0xff] }
 0x6cc   :  { %v2909_v58 = vld [vmem:[#allocation10 + $0x2b0] sm:$0xff] }
 0x6cd   :  { %5309 = vmatpush1.bf16.msra.mxu0 %v5308_v2  ;;  %v2850_v2 = vld [vmem:[#allocation10 + $0xd8] sm:$0xff]  ;;  %v5504_v0 = vpack.c.bf16 %v2909_v58, %v2905_v56 }
 0x6ce   :  { %5311 = vmatprep.subr.bf16.mxu0 %v5310_v3  ;;  %v2854_v3 = vld [vmem:[#allocation10 + $0xf8] sm:$0xff] }
 0x6cf   :  { %v5474_v50 = vpack.c.bf16 %v2854_v3, %v2850_v2  ;;  %v2913_v2 = vld [vmem:[#allocation10 + $0x2d0] sm:$0xff] }
 0x6d0   :  { %v2917_v3 = vld [vmem:[#allocation10 + $0x2f0] sm:$0xff] }
 0x6d1   :  { %5313 = vmatpush1.bf16.msra.mxu0 %v5312_v7  ;;  %v2858_v7 = vld [vmem:[#allocation10 + $0x118] sm:$0xff]  ;;  %v5508_v5 = vpack.c.bf16 %v2917_v3, %v2913_v2 }
 0x6d2   :  { %5315 = vmatprep.subr.bf16.mxu0 %v5314_v8  ;;  %v2862_v8 = vld [vmem:[#allocation10 + $0x138] sm:$0xff] }
 0x6d3   :  { %v5478_v12 = vpack.c.bf16 %v2862_v8, %v2858_v7  ;;  %v2921_v7 = vld [vmem:[#allocation10 + $0x310] sm:$0xff] }
 0x6d4   :  { %v2925_v8 = vld [vmem:[#allocation10 + $0x330] sm:$0xff] }
 0x6d5   :  { %5317 = vmatpush1.bf16.msra.mxu0 %v5316_v13  ;;  %v2866_v13 = vld [vmem:[#allocation10 + $0x158] sm:$0xff]  ;;  %v5512_v10 = vpack.c.bf16 %v2925_v8, %v2921_v7 }
 0x6d6   :  { %5319 = vmatprep.subr.bf16.mxu0 %v5318_v60  ;;  %v2870_v60 = vld [vmem:[#allocation10 + $0x178] sm:$0xff] }
 0x6d7   :  { %v5482_v15 = vpack.c.bf16 %v2870_v60, %v2866_v13  ;;  %v2929_v13 = vld [vmem:[#allocation10 + $0x350] sm:$0xff]  ;;  %v2556_v8 = vld [vmem:[#allocation7] sm:$0x3] }
 0x6d8   :  { %v2933_v60 = vld [vmem:[#allocation10 + $0x370] sm:$0xff] }
 0x6d9   :  { %5321 = vmatpush1.bf16.msra.mxu0 %v5320_v20  ;;  %v2874_v20 = vld [vmem:[#allocation10 + $0x198] sm:$0xff]  ;;  %v5516_v16 = vpack.c.bf16 %v2933_v60, %v2929_v13  ;;  %v2561_v60 = vrot.slane %v2556_v8, %v6294_v47 }
 0x6da   :  { %5323 = vmatprep.subr.bf16.mxu0 %v5322_v25  ;;  %v2878_v25 = vld [vmem:[#allocation10 + $0x1b8] sm:$0xff] }
 0x6db   :  { %v5486_v23 = vpack.c.bf16 %v2878_v25, %v2874_v20  ;;  %v2937_v20 = vld [vmem:[#allocation10 + $0x390] sm:$0xff]  ;;  %v3006_v13 = vld [vmem:[#allocation10 + $0x5b8] sm:$0xff] }
 0x6dc   :  { %v2941_v25 = vld [vmem:[#allocation10 + $0x3b0] sm:$0xff] }
 0x6dd   :  { %5325 = vmatpush1.bf16.msra.mxu0 %v5324_v29  ;;  %v2882_v29 = vld [vmem:[#allocation10 + $0x1d8] sm:$0xff]  ;;  %v5520_v26 = vpack.c.bf16 %v2941_v25, %v2937_v20  ;;  %v3005_v20 = vld [vmem:[#allocation10 + $0x5b0] sm:$0xff] }
 0x6de   :  { %5327 = vmatprep.subr.bf16.mxu0 %v5326_v31  ;;  %v2886_v31 = vld [vmem:[#allocation10 + $0x1f8] sm:$0xff] }
 0x6df   :  { %v5490_v33 = vpack.c.bf16 %v2886_v31, %v2882_v29  ;;  %v2945_v29 = vld [vmem:[#allocation10 + $0x3d0] sm:$0xff] }
 0x6e0   :  { %v2949_v31 = vld [vmem:[#allocation10 + $0x3f0] sm:$0xff] }
 0x6e1   :  { %5329 = vmatpush1.bf16.msra.mxu0 %v5328_v55  ;;  %v2890_v55 = vld [vmem:[#allocation10 + $0x218] sm:$0xff]  ;;  %v5524_v52 = vpack.c.bf16 %v2949_v31, %v2945_v29  ;;  %v3079_v29 = vld [vmem:[#allocation12] sm:$0xff] }
 0x6e2   :  { %5331 = vmatprep.subr.bf16.mxu0 %v5330_v35  ;;  %v2894_v35 = vld [vmem:[#allocation10 + $0x238] sm:$0xff]  ;;  %v3083_v31 = vld [vmem:[#allocation12 + $0x20] sm:$0xff] }
 0x6e3   :  { %v5494_v37 = vpack.c.bf16 %v2894_v35, %v2890_v55  ;;  %v2953_v55 = vld [vmem:[#allocation10 + $0x410] sm:$0xff] }
 0x6e4   :  { %v2957_v35 = vld [vmem:[#allocation10 + $0x430] sm:$0xff] }
 0x6e5   :  { %5333 = vmatpush1.bf16.msra.mxu0 %v5332_v40  ;;  %v2898_v40 = vld [vmem:[#allocation10 + $0x258] sm:$0xff]  ;;  %v5528_v38 = vpack.c.bf16 %v2957_v35, %v2953_v55  ;;  %v3009_v35 = vld [vmem:[#allocation10 + $0x5d0] sm:$0xff] }
 0x6e6   :  { %5463 = vmatprep.subr.bf16.mxu0 %v5462_v41  ;;  %v2902_v41 = vld [vmem:[#allocation10 + $0x278] sm:$0xff] }
 0x6e7   :  { %v5498_v43 = vpack.c.bf16 %v2902_v41, %v2898_v40  ;;  %v2961_v40 = vld [vmem:[#allocation10 + $0x450] sm:$0xff] }
 0x6e8   :  { %3613 = vmatmul.mubr.f32.vlgmr.msra.gmra.mrb[6].mxu0 %v6345_v54  ;;  %v2965_v41 = vld [vmem:[#allocation10 + $0x470] sm:$0xff] }
 0x6e9   :  { %5465 = vmatpush1.bf16.msra.mxu0 %v5464_v46  ;;  %3825 = vmatprep.mubr.f32.mxu0 %v6314_v18  ;;  %v2906_v46 = vld [vmem:[#allocation10 + $0x298] sm:$0xff]  ;;  %v5532_v44 = vpack.c.bf16 %v2965_v41, %v2961_v40 }
 0x6ea   :  { %5467 = vmatprep.subr.bf16.mxu0 %v5466_v48  ;;  %v2910_v48 = vld [vmem:[#allocation10 + $0x2b8] sm:$0xff] }
 0x6eb   :  { %v5502_v53 = vpack.c.bf16 %v2910_v48, %v2906_v46  ;;  %v2969_v46 = vld [vmem:[#allocation10 + $0x490] sm:$0xff]  ;;  %v3022_v40 = vld [vmem:[#allocation10 + $0x638] sm:$0xff] }
 0x6ec   :  { %v2973_v48 = vld [vmem:[#allocation10 + $0x4b0] sm:$0xff] }
 0x6ed   :  { %5469 = vmatpush1.bf16.msra.mxu0 %v5468_v61  ;;  %v2914_v61 = vld [vmem:[#allocation10 + $0x2d8] sm:$0xff]  ;;  %v5536_v56 = vpack.c.bf16 %v2973_v48, %v2969_v46  ;;  %v3096_v46 = vld [vmem:[#allocation12 + $0x88] sm:$0xff] }
 0x6ee   :  { %5471 = vmatprep.subr.bf16.mxu0 %v5470_v62  ;;  %v2918_v62 = vld [vmem:[#allocation10 + $0x2f8] sm:$0xff]  ;;  %v3100_v48 = vld [vmem:[#allocation12 + $0xa8] sm:$0xff] }
 0x6ef   :  { %v5506_v1 = vpack.c.bf16 %v2918_v62, %v2914_v61  ;;  %v2977_v61 = vld [vmem:[#allocation10 + $0x4d0] sm:$0xff] }
 0x6f0   :  { %v2981_v62 = vld [vmem:[#allocation10 + $0x4f0] sm:$0xff] }
 0x6f1   :  { %5473 = vmatpush1.bf16.msra.mxu0 %v5472_v4  ;;  %v2922_v4 = vld [vmem:[#allocation10 + $0x318] sm:$0xff]  ;;  %v5540_v2 = vpack.c.bf16 %v2981_v62, %v2977_v61 }
 0x6f2   :  { %5475 = vmatprep.subr.bf16.mxu0 %v5474_v50  ;;  %v2926_v50 = vld [vmem:[#allocation10 + $0x338] sm:$0xff] }
 0x6f3   :  { %v5510_v6 = vpack.c.bf16 %v2926_v50, %v2922_v4  ;;  %v2985_v4 = vld [vmem:[#allocation10 + $0x510] sm:$0xff]  ;;  %v3026_v61 = vld [vmem:[#allocation10 + $0x658] sm:$0xff] }
 0x6f4   :  { %v2989_v50 = vld [vmem:[#allocation10 + $0x530] sm:$0xff]  ;;  %v3030_v62 = vld [vmem:[#allocation10 + $0x678] sm:$0xff] }
 0x6f5   :  { %5477 = vmatpush1.bf16.msra.mxu0 %v5476_v9  ;;  %v2930_v9 = vld [vmem:[#allocation10 + $0x358] sm:$0xff]  ;;  %v5544_v7 = vpack.c.bf16 %v2989_v50, %v2985_v4  ;;  %v3104_v4 = vld [vmem:[#allocation12 + $0xc8] sm:$0xff] }
 0x6f6   :  { %5479 = vmatprep.subr.bf16.mxu0 %v5478_v12  ;;  %v2934_v12 = vld [vmem:[#allocation10 + $0x378] sm:$0xff]  ;;  %v3108_v50 = vld [vmem:[#allocation12 + $0xe8] sm:$0xff] }
 0x6f7   :  { %v5514_v11 = vpack.c.bf16 %v2934_v12, %v2930_v9  ;;  %v2993_v12 = vld [vmem:[#allocation10 + $0x550] sm:$0xff] }
 0x6f9   :  { %5481 = vmatpush1.bf16.msra.mxu0 %v5480_v14  ;;  %v2938_v14 = vld [vmem:[#allocation10 + $0x398] sm:$0xff] }
 0x6fa   :  { %5483 = vmatprep.subr.bf16.mxu0 %v5482_v15  ;;  %v2942_v15 = vld [vmem:[#allocation10 + $0x3b8] sm:$0xff] }
 0x6fb   :  { %v5518_v19 = vpack.c.bf16 %v2942_v15, %v2938_v14  ;;  %v2565_v14 = vrot.slane %v2556_v8, %v6299_v49 }
 0x6fd   :  { %5485 = vmatpush1.bf16.msra.mxu0 %v5484_v22  ;;  %v2946_v22 = vld [vmem:[#allocation10 + $0x3d8] sm:$0xff] }
 0x6fe   :  { %5487 = vmatprep.subr.bf16.mxu0 %v5486_v23  ;;  %v2950_v23 = vld [vmem:[#allocation10 + $0x3f8] sm:$0xff] }
 0x6ff   :  { %v5522_v28 = vpack.c.bf16 %v2950_v23, %v2946_v22  ;;  %v3010_v22 = vld [vmem:[#allocation10 + $0x5d8] sm:$0xff] }
 0x700   :  { %v3014_v23 = vld [vmem:[#allocation10 + $0x5f8] sm:$0xff] }
 0x701   :  { %5489 = vmatpush1.bf16.msra.mxu0 %v5488_v32  ;;  %v2954_v32 = vld [vmem:[#allocation10 + $0x418] sm:$0xff]  ;;  %v5554_v55 = vpack.c.bf16 %v3014_v23, %v3010_v22 }
 0x702   :  { %5491 = vmatprep.subr.bf16.mxu0 %v5490_v33  ;;  %v2958_v33 = vld [vmem:[#allocation10 + $0x438] sm:$0xff] }
 0x703   :  { %v5526_v34 = vpack.c.bf16 %v2958_v33, %v2954_v32  ;;  %v3046_v22 = vld [vmem:[#allocation10 + $0x6f8] sm:$0xff] }
 0x705   :  { %5493 = vmatpush1.bf16.msra.mxu0 %v5492_v36  ;;  %v2962_v36 = vld [vmem:[#allocation10 + $0x458] sm:$0xff] }
 0x706   :  { %5495 = vmatprep.subr.bf16.mxu0 %v5494_v37  ;;  %v2966_v37 = vld [vmem:[#allocation10 + $0x478] sm:$0xff] }
 0x707   :  { %v5530_v39 = vpack.c.bf16 %v2966_v37, %v2962_v36  ;;  %v3013_v36 = vld [vmem:[#allocation10 + $0x5f0] sm:$0xff] }
 0x709   :  { %5497 = vmatpush1.bf16.msra.mxu0 %v5496_v42  ;;  %v2970_v42 = vld [vmem:[#allocation10 + $0x498] sm:$0xff] }
 0x70a   :  { %5499 = vmatprep.subr.bf16.mxu0 %v5498_v43  ;;  %v2974_v43 = vld [vmem:[#allocation10 + $0x4b8] sm:$0xff] }
 0x70b   :  { %v5534_v45 = vpack.c.bf16 %v2974_v43, %v2970_v42  ;;  %v3087_v43 = vld [vmem:[#allocation12 + $0x40] sm:$0xff] }
 0x70d   :  { %5501 = vmatpush1.bf16.msra.mxu0 %v5500_v51  ;;  %v2978_v51 = vld [vmem:[#allocation10 + $0x4d8] sm:$0xff] }
 0x70e   :  { %5503 = vmatprep.subr.bf16.mxu0 %v5502_v53  ;;  %v2982_v53 = vld [vmem:[#allocation10 + $0x4f8] sm:$0xff] }
 0x70f   :  { %v5538_v58 = vpack.c.bf16 %v2982_v53, %v2978_v51  ;;  %v3017_v53 = vld [vmem:[#allocation10 + $0x610] sm:$0xff] }
 0x711   :  { %5505 = vmatpush1.bf16.msra.mxu0 %v5504_v0  ;;  %v2986_v0 = vld [vmem:[#allocation10 + $0x518] sm:$0xff] }
 0x712   :  { %5507 = vmatprep.subr.bf16.mxu0 %v5506_v1  ;;  %v2990_v1 = vld [vmem:[#allocation10 + $0x538] sm:$0xff] }
 0x713   :  { %v5542_v3 = vpack.c.bf16 %v2990_v1, %v2986_v0  ;;  %v5086_v0 = vpack.c.bf16 %v3100_v48, %v3096_v46  ;;  %v3095_v1 = vld [vmem:[#allocation12 + $0x80] sm:$0xff]  ;;  %v3058_v48 = vld [vmem:[#allocation10 + $0x758] sm:$0xff] }
 0x715   :  { %5509 = vmatpush1.bf16.msra.mxu0 %v5508_v5  ;;  %v2994_v5 = vld [vmem:[#allocation10 + $0x558] sm:$0xff] }
 0x716   :  { %5511 = vmatprep.subr.bf16.mxu0 %v5510_v6  ;;  %v2998_v6 = vld [vmem:[#allocation10 + $0x578] sm:$0xff] }
 0x717   :  { %v5546_v9 = vpack.c.bf16 %v2998_v6, %v2994_v5  ;;  %v5562_v5 = vpack.c.bf16 %v3030_v62, %v3026_v61  ;;  %v3025_v6 = vld [vmem:[#allocation10 + $0x650] sm:$0xff]  ;;  %v3136_v62 = vld [vmem:[#allocation12 + $0x1c8] sm:$0xff] }
 0x719   :  { %5513 = vmatpush1.bf16.msra.mxu0 %v5512_v10  ;;  %v2997_v10 = vld [vmem:[#allocation10 + $0x570] sm:$0xff] }
 0x71a   :  { %5515 = vmatprep.subr.bf16.mxu0 %v5514_v11  ;;  %v3002_v11 = vld [vmem:[#allocation10 + $0x598] sm:$0xff]  ;;  %v5548_v15 = vpack.c.bf16 %v2997_v10, %v2993_v12  ;;  %v3103_v10 = vld [vmem:[#allocation12 + $0xc0] sm:$0xff] }
 0x71b   :  { %v3038_v12 = vld [vmem:[#allocation10 + $0x6b8] sm:$0xff] }
 0x71d   :  { %5517 = vmatpush1.bf16.msra.mxu0 %v5516_v16  ;;  %v5550_v16 = vpack.c.bf16 %v3006_v13, %v3002_v11  ;;  %v3107_v11 = vld [vmem:[#allocation12 + $0xe0] sm:$0xff] }
 0x71e   :  { %5519 = vmatprep.subr.bf16.mxu0 %v5518_v19  ;;  %v3001_v19 = vld [vmem:[#allocation10 + $0x590] sm:$0xff] }
 0x71f   :  { %v5552_v33 = vpack.c.bf16 %v3005_v20, %v3001_v19  ;;  %v3037_v19 = vld [vmem:[#allocation10 + $0x6b0] sm:$0xff]  ;;  %v5092_v20 = vpack.c.bf16 %v3107_v11, %v3103_v10 }
 0x720   :  { %v3065_v11 = vld [vmem:[#allocation10 + $0x790] sm:$0xff] }
 0x721   :  { %5521 = vmatpush1.bf16.msra.mxu0 %v5520_v26 }
 0x722   :  { %5523 = vmatprep.subr.bf16.mxu0 %v5522_v28 }
 0x725   :  { %5525 = vmatpush1.bf16.msra.mxu0 %v5524_v52  ;;  %v3088_v52 = vld [vmem:[#allocation12 + $0x48] sm:$0xff] }
 0x726   :  { %5527 = vmatprep.subr.bf16.mxu0 %v5526_v34  ;;  %v3092_v34 = vld [vmem:[#allocation12 + $0x68] sm:$0xff] }
 0x727   :  { %v5082_v42 = vpack.c.bf16 %v3092_v34, %v3088_v52  ;;  %v3041_v52 = vld [vmem:[#allocation10 + $0x6d0] sm:$0xff] }
 0x728   :  { %3826 = vmatmul.mubr.f32.vlgmr.msra.gmra.mrb[6].mxu0 %v6310_v17  ;;  %v3045_v34 = vld [vmem:[#allocation10 + $0x6f0] sm:$0xff] }
 0x729   :  { %5529 = vmatpush1.bf16.msra.mxu0 %v5528_v38  ;;  %3896 = vmatprep.mubr.f32.mxu0 %v6330_v30  ;;  %v5080_v38 = vpack.c.bf16 %v3083_v31, %v3079_v29  ;;  %v3120_v31 = vld [vmem:[#allocation12 + $0x148] sm:$0xff] }
 0x72a   :  { %5531 = vmatprep.subr.bf16.mxu0 %v5530_v39  ;;  %v3018_v39 = vld [vmem:[#allocation10 + $0x618] sm:$0xff] }
 0x72b   :  { %v5558_v51 = vpack.c.bf16 %v3022_v40, %v3018_v39  ;;  %v3123_v39 = vld [vmem:[#allocation12 + $0x160] sm:$0xff]  ;;  %v5572_v40 = vpack.c.bf16 %v3045_v34, %v3041_v52 }
 0x72c   :  { %v3155_v52 = vld [vmem:[#allocation12 + $0x260] sm:$0xff] }
 0x72d   :  { %5533 = vmatpush1.bf16.msra.mxu0 %v5532_v44  ;;  %v3091_v44 = vld [vmem:[#allocation12 + $0x60] sm:$0xff] }
 0x72e   :  { %5535 = vmatprep.subr.bf16.mxu0 %v5534_v45  ;;  %v5556_v45 = vpack.c.bf16 %v3013_v36, %v3009_v35  ;;  %v3050_v35 = vld [vmem:[#allocation10 + $0x718] sm:$0xff] }
 0x72f   :  { %v3054_v36 = vld [vmem:[#allocation10 + $0x738] sm:$0xff] }
 0x731   :  { %5537 = vmatpush1.bf16.msra.mxu0 %v5536_v56  ;;  %v3021_v56 = vld [vmem:[#allocation10 + $0x630] sm:$0xff] }
 0x732   :  { %5539 = vmatprep.subr.bf16.mxu0 %v5538_v58  ;;  %v5084_v58 = vpack.c.bf16 %v3091_v44, %v3087_v43  ;;  %v5574_v43 = vpack.c.bf16 %v3054_v36, %v3050_v35  ;;  %v3049_v44 = vld [vmem:[#allocation10 + $0x710] sm:$0xff]  ;;  %v3164_v35 = vld [vmem:[#allocation12 + $0x2a8] sm:$0xff] }
 0x735   :  { %5541 = vmatpush1.bf16.msra.mxu0 %v5540_v2  ;;  %v3099_v2 = vld [vmem:[#allocation12 + $0xa0] sm:$0xff] }
 0x736   :  { %5543 = vmatprep.subr.bf16.mxu0 %v5542_v3  ;;  %v5560_v3 = vpack.c.bf16 %v3021_v56, %v3017_v53  ;;  %v5088_v8 = vpack.c.bf16 %v3099_v2, %v3095_v1  ;;  %v3127_v56 = vld [vmem:[#allocation12 + $0x180] sm:$0xff]  ;;  %v3057_v2 = vld [vmem:[#allocation10 + $0x750] sm:$0xff] }
 0x739   :  { %5545 = vmatpush1.bf16.msra.mxu0 %v5544_v7  ;;  %v3029_v7 = vld [vmem:[#allocation10 + $0x670] sm:$0xff] }
 0x73a   :  { %5547 = vmatprep.subr.bf16.mxu0 %v5546_v9  ;;  %v3034_v9 = vld [vmem:[#allocation10 + $0x698] sm:$0xff]  ;;  %v5564_v13 = vpack.c.bf16 %v3029_v7, %v3025_v6  ;;  %v3135_v7 = vld [vmem:[#allocation12 + $0x1c0] sm:$0xff] }
 0x73b   :  { %v2705_v25 = vpop.f32.mrb[4].mxu0 }
 0x73c   :  { %v5594_v26 = vadd.f32 %v2705_v25, %v2561_v60  ;;  %v2707_v28 = vpop.f32.mrb[5].mxu0  ;;  %v3112_v60 = vld [vmem:[#allocation12 + $0x108] sm:$0xff]  ;;  %v3042_v25 = vld [vmem:[#allocation10 + $0x6d8] sm:$0xff] }
 0x73d   :  { %v5595_v32 = vadd.f32 %v2707_v28, %v2565_v14  ;;  %5549 = vmatpush1.bf16.msra.mxu0 %v5548_v15  ;;  %v3116_v14 = vld [vmem:[#allocation12 + $0x128] sm:$0xff]  ;;  %v5566_v15 = vpack.c.bf16 %v3038_v12, %v3034_v9  ;;  %v3115_v28 = vld [vmem:[#allocation12 + $0x120] sm:$0xff] }
 0x73e   :  { %5551 = vmatprep.subr.bf16.mxu0 %v5550_v16  ;;  %v2710_v41 = vmax.f32 %v5594_v26, 0.0  ;;  %v3033_v16 = vld [vmem:[#allocation10 + $0x690] sm:$0xff]  ;;  %v5094_v23 = vpack.c.bf16 %v3116_v14, %v3112_v60  ;;  %v3111_v26 = vld [vmem:[#allocation12 + $0x100] sm:$0xff]  ;;  %v3144_v12 = vld [vmem:[#allocation12 + $0x208] sm:$0xff] }
 0x73f   :  { %v2711_v37 = vmax.f32 %v5595_v32, 0.0  ;;  %v5568_v29 = vpack.c.bf16 %v3037_v19, %v3033_v16  ;;  %v3124_v32 = vld [vmem:[#allocation12 + $0x168] sm:$0xff]  ;;  %v3074_v14 = vld [vmem:[#allocation10 + $0x7d8] sm:$0xff]  ;;  %v3143_v19 = vld [vmem:[#allocation12 + $0x200] sm:$0xff] }
 0x741   :  { %2815 = vmatprep.mubr.f32.mxu1 %v2711_v37  ;;  %5553 = vmatpush1.bf16.msra.mxu0 %v5552_v33  ;;  %v5570_v33 = vpack.c.bf16 %v3046_v22, %v3042_v25  ;;  %v5098_v37 = vpack.c.bf16 %v3124_v32, %v3120_v31  ;;  %v3152_v22 = vld [vmem:[#allocation12 + $0x248] sm:$0xff] }
 0x742   :  { %2816 = vmatmul.mubr.f32.vlgmr.msra.gmra.mrb[16].mxu1 %v2710_v41  ;;  %5555 = vmatprep.subr.bf16.mxu0 %v5554_v55  ;;  %v5096_v55 = vpack.c.bf16 %v3115_v28, %v3111_v26  ;;  %v3128_v41 = vld [vmem:[#allocation12 + $0x188] sm:$0xff]  ;;  %v3073_v28 = vld [vmem:[#allocation10 + $0x7d0] sm:$0xff] }
 0x743   :  { %5081 = vmatpush1.bf16.msra.mxu1 %v5080_v38  ;;  %3399 = vmatprep.mubr.f32.mxu1 %v6339_v27  ;;  %v5090_v27 = vpack.c.bf16 %v3108_v50, %v3104_v4  ;;  %v3119_v38 = vld [vmem:[#allocation12 + $0x140] sm:$0xff]  ;;  %v3066_v50 = vld [vmem:[#allocation10 + $0x798] sm:$0xff] }
 0x744   :  { %5083 = vmatprep.subr.bf16.mxu1 %v5082_v42  ;;  %v3132_v42 = vld [vmem:[#allocation12 + $0x1a8] sm:$0xff]  ;;  %v5100_v46 = vpack.c.bf16 %v3123_v39, %v3119_v38  ;;  %v3159_v38 = vld [vmem:[#allocation12 + $0x280] sm:$0xff] }
 0x745   :  { %5557 = vmatpush1.bf16.msra.mxu0 %v5556_v45  ;;  %v3053_v45 = vld [vmem:[#allocation10 + $0x730] sm:$0xff]  ;;  %v5102_v53 = vpack.c.bf16 %v3132_v42, %v3128_v41  ;;  %v3163_v39 = vld [vmem:[#allocation12 + $0x2a0] sm:$0xff]  ;;  %v3172_v41 = vld [vmem:[#allocation12 + $0x2e8] sm:$0xff] }
 0x746   :  { %5559 = vmatprep.subr.bf16.mxu0 %v5558_v51  ;;  %v3062_v51 = vld [vmem:[#allocation10 + $0x778] sm:$0xff]  ;;  %v5576_v61 = vpack.c.bf16 %v3053_v45, %v3049_v44  ;;  %v5120_v42 = vpack.c.bf16 %v3163_v39, %v3159_v38  ;;  %v3167_v44 = vld [vmem:[#allocation12 + $0x2c0] sm:$0xff] }
 0x747   :  { %5085 = vmatpush1.bf16.msra.mxu1 %v5084_v58  ;;  %v3131_v58 = vld [vmem:[#allocation12 + $0x1a0] sm:$0xff]  ;;  %v5578_v1 = vpack.c.bf16 %v3062_v51, %v3058_v48  ;;  %v3180_v48 = vld [vmem:[#allocation12 + $0x328] sm:$0xff] }
 0x748   :  { %5087 = vmatprep.subr.bf16.mxu1 %v5086_v0  ;;  %v3140_v0 = vld [vmem:[#allocation12 + $0x1e8] sm:$0xff]  ;;  %v5104_v4 = vpack.c.bf16 %v3131_v58, %v3127_v56  ;;  %v3171_v45 = vld [vmem:[#allocation12 + $0x2e0] sm:$0xff] }
 0x749   :  { %5561 = vmatpush1.bf16.msra.mxu0 %v5560_v3  ;;  %v3061_v3 = vld [vmem:[#allocation10 + $0x770] sm:$0xff]  ;;  %v5106_v6 = vpack.c.bf16 %v3140_v0, %v3136_v62  ;;  %v5124_v51 = vpack.c.bf16 %v3171_v45, %v3167_v44  ;;  %v3175_v56 = vld [vmem:[#allocation12 + $0x300] sm:$0xff]  ;;  %v3188_v62 = vld [vmem:[#allocation12 + $0x368] sm:$0xff] }
 0x74a   :  { %5563 = vmatprep.subr.bf16.mxu0 %v5562_v5  ;;  %v3070_v5 = vld [vmem:[#allocation10 + $0x7b8] sm:$0xff]  ;;  %v5580_v9 = vpack.c.bf16 %v3061_v3, %v3057_v2  ;;  %v3179_v58 = vld [vmem:[#allocation12 + $0x320] sm:$0xff]  ;;  %v3248_v45 = vld [vmem:[#allocation12 + $0x548] sm:$0xff] }
 0x74b   :  { %5089 = vmatpush1.bf16.msra.mxu1 %v5088_v8  ;;  %v3139_v8 = vld [vmem:[#allocation12 + $0x1e0] sm:$0xff]  ;;  %v5582_v10 = vpack.c.bf16 %v3070_v5, %v3066_v50  ;;  %v5128_v0 = vpack.c.bf16 %v3179_v58, %v3175_v56  ;;  %v3196_v50 = vld [vmem:[#allocation12 + $0x3a8] sm:$0xff] }
 0x74c   :  { %5091 = vmatprep.subr.bf16.mxu1 %v5090_v27  ;;  %v3148_v27 = vld [vmem:[#allocation12 + $0x228] sm:$0xff]  ;;  %v5108_v60 = vpack.c.bf16 %v3139_v8, %v3135_v7  ;;  %v3183_v2 = vld [vmem:[#allocation12 + $0x340] sm:$0xff] }
 0x74d   :  { %5565 = vmatpush1.bf16.msra.mxu0 %v5564_v13  ;;  %v3069_v13 = vld [vmem:[#allocation10 + $0x7b0] sm:$0xff]  ;;  %v5110_v16 = vpack.c.bf16 %v3148_v27, %v3144_v12  ;;  %v3187_v3 = vld [vmem:[#allocation12 + $0x360] sm:$0xff]  ;;  %v3204_v12 = vld [vmem:[#allocation12 + $0x3e8] sm:$0xff] }
 0x74e   :  { %5567 = vmatprep.subr.bf16.mxu0 %v5566_v15  ;;  %v3078_v15 = vld [vmem:[#allocation10 + $0x7f8] sm:$0xff]  ;;  %v5584_v25 = vpack.c.bf16 %v3069_v13, %v3065_v11  ;;  %v5132_v5 = vpack.c.bf16 %v3187_v3, %v3183_v2  ;;  %v3191_v7 = vld [vmem:[#allocation12 + $0x380] sm:$0xff]  ;;  %v3256_v58 = vld [vmem:[#allocation12 + $0x588] sm:$0xff] }
 0x74f   :  { %5093 = vmatpush1.bf16.msra.mxu1 %v5092_v20  ;;  %v3147_v20 = vld [vmem:[#allocation12 + $0x220] sm:$0xff]  ;;  %v5586_v26 = vpack.c.bf16 %v3078_v15, %v3074_v14  ;;  %v3212_v14 = vld [vmem:[#allocation12 + $0x428] sm:$0xff] }
 0x750   :  { %5095 = vmatprep.subr.bf16.mxu1 %v5094_v23  ;;  %v3156_v23 = vld [vmem:[#allocation12 + $0x268] sm:$0xff]  ;;  %v5112_v31 = vpack.c.bf16 %v3147_v20, %v3143_v19  ;;  %v3195_v8 = vld [vmem:[#allocation12 + $0x3a0] sm:$0xff] }
 0x751   :  { %5569 = vmatpush1.bf16.msra.mxu0 %v5568_v29  ;;  %v3077_v29 = vld [vmem:[#allocation10 + $0x7f0] sm:$0xff]  ;;  %v5114_v32 = vpack.c.bf16 %v3156_v23, %v3152_v22  ;;  %v5136_v27 = vpack.c.bf16 %v3195_v8, %v3191_v7  ;;  %v3199_v11 = vld [vmem:[#allocation12 + $0x3c0] sm:$0xff]  ;;  %v3220_v22 = vld [vmem:[#allocation12 + $0x468] sm:$0xff] }
 0x752   :  { %5571 = vmatprep.subr.bf16.mxu0 %v5570_v33  ;;  %v3151_v33 = vld [vmem:[#allocation12 + $0x240] sm:$0xff]  ;;  %v5588_v34 = vpack.c.bf16 %v3077_v29, %v3073_v28  ;;  %v3264_v3 = vld [vmem:[#allocation12 + $0x5c8] sm:$0xff] }
 0x753   :  { %5097 = vmatpush1.bf16.msra.mxu1 %v5096_v55  ;;  %v3160_v55 = vld [vmem:[#allocation12 + $0x288] sm:$0xff]  ;;  %v5116_v36 = vpack.c.bf16 %v3155_v52, %v3151_v33  ;;  %v3203_v13 = vld [vmem:[#allocation12 + $0x3e0] sm:$0xff] }
 0x754   :  { %5099 = vmatprep.subr.bf16.mxu1 %v5098_v37  ;;  %v5118_v37 = vpack.c.bf16 %v3164_v35, %v3160_v55  ;;  %v5140_v15 = vpack.c.bf16 %v3203_v13, %v3199_v11  ;;  %v3207_v19 = vld [vmem:[#allocation12 + $0x400] sm:$0xff]  ;;  %v3232_v35 = vld [vmem:[#allocation12 + $0x4c8] sm:$0xff] }
 0x755   :  { %5573 = vmatpush1.bf16.msra.mxu0 %v5572_v40  ;;  %v3168_v40 = vld [vmem:[#allocation12 + $0x2c8] sm:$0xff]  ;;  %v3211_v20 = vld [vmem:[#allocation12 + $0x420] sm:$0xff] }
 0x756   :  { %5575 = vmatprep.subr.bf16.mxu0 %v5574_v43  ;;  %v5122_v43 = vpack.c.bf16 %v3172_v41, %v3168_v40  ;;  %v5144_v23 = vpack.c.bf16 %v3211_v20, %v3207_v19  ;;  %v3215_v28 = vld [vmem:[#allocation12 + $0x440] sm:$0xff]  ;;  %v3240_v41 = vld [vmem:[#allocation12 + $0x508] sm:$0xff] }
 0x757   :  { %5101 = vmatpush1.bf16.msra.mxu1 %v5100_v46  ;;  %v3176_v46 = vld [vmem:[#allocation12 + $0x308] sm:$0xff]  ;;  %v3219_v29 = vld [vmem:[#allocation12 + $0x460] sm:$0xff] }
 0x758   :  { %5103 = vmatprep.subr.bf16.mxu1 %v5102_v53  ;;  %v5126_v53 = vpack.c.bf16 %v3180_v48, %v3176_v46  ;;  %v5148_v33 = vpack.c.bf16 %v3219_v29, %v3215_v28  ;;  %v3227_v55 = vld [vmem:[#allocation12 + $0x4a0] sm:$0xff]  ;;  %v3252_v46 = vld [vmem:[#allocation12 + $0x568] sm:$0xff] }
 0x759   :  { %5577 = vmatpush1.bf16.msra.mxu0 %v5576_v61  ;;  %v3184_v61 = vld [vmem:[#allocation12 + $0x348] sm:$0xff]  ;;  %v3231_v39 = vld [vmem:[#allocation12 + $0x4c0] sm:$0xff] }
 0x75a   :  { %5579 = vmatprep.subr.bf16.mxu0 %v5578_v1  ;;  %v5130_v1 = vpack.c.bf16 %v3188_v62, %v3184_v61  ;;  %v3235_v40 = vld [vmem:[#allocation12 + $0x4e0] sm:$0xff]  ;;  %v3260_v61 = vld [vmem:[#allocation12 + $0x5a8] sm:$0xff] }
 0x75b   :  { %5105 = vmatpush1.bf16.msra.mxu1 %v5104_v4  ;;  %v3192_v4 = vld [vmem:[#allocation12 + $0x388] sm:$0xff]  ;;  %v3243_v44 = vld [vmem:[#allocation12 + $0x520] sm:$0xff] }
 0x75c   :  { %5107 = vmatprep.subr.bf16.mxu1 %v5106_v6  ;;  %v5134_v6 = vpack.c.bf16 %v3196_v50, %v3192_v4  ;;  %v3251_v56 = vld [vmem:[#allocation12 + $0x560] sm:$0xff]  ;;  %v3268_v4 = vld [vmem:[#allocation12 + $0x5e8] sm:$0xff] }
 0x75d   :  { %5581 = vmatpush1.bf16.msra.mxu0 %v5580_v9  ;;  %v3200_v9 = vld [vmem:[#allocation12 + $0x3c8] sm:$0xff]  ;;  %v3259_v2 = vld [vmem:[#allocation12 + $0x5a0] sm:$0xff] }
 0x75e   :  { %5583 = vmatprep.subr.bf16.mxu0 %v5582_v10  ;;  %v5138_v10 = vpack.c.bf16 %v3204_v12, %v3200_v9  ;;  %v3267_v7 = vld [vmem:[#allocation12 + $0x5e0] sm:$0xff]  ;;  %v3272_v8 = vld [vmem:[#allocation12 + $0x608] sm:$0xff] }
 0x75f   :  { %5109 = vmatpush1.bf16.msra.mxu1 %v5108_v60  ;;  %v3208_v60 = vld [vmem:[#allocation12 + $0x408] sm:$0xff]  ;;  %v3275_v11 = vld [vmem:[#allocation12 + $0x620] sm:$0xff] }
 0x760   :  { %5111 = vmatprep.subr.bf16.mxu1 %v5110_v16  ;;  %v5142_v16 = vpack.c.bf16 %v3212_v14, %v3208_v60  ;;  %v3276_v9 = vld [vmem:[#allocation12 + $0x628] sm:$0xff]  ;;  %v3283_v19 = vld [vmem:[#allocation12 + $0x660] sm:$0xff] }
 0x761   :  { %5585 = vmatpush1.bf16.msra.mxu0 %v5584_v25  ;;  %v3216_v25 = vld [vmem:[#allocation12 + $0x448] sm:$0xff]  ;;  %v3291_v28 = vld [vmem:[#allocation12 + $0x6a0] sm:$0xff] }
 0x762   :  { %5587 = vmatprep.subr.bf16.mxu0 %v5586_v26  ;;  %v5146_v26 = vpack.c.bf16 %v3220_v22, %v3216_v25  ;;  %v3280_v13 = vld [vmem:[#allocation12 + $0x648] sm:$0xff] }
 0x763   :  { %5113 = vmatpush1.bf16.msra.mxu1 %v5112_v31  ;;  %v3224_v31 = vld [vmem:[#allocation12 + $0x488] sm:$0xff] }
 0x764   :  { %5115 = vmatprep.subr.bf16.mxu1 %v5114_v32  ;;  %v3228_v32 = vld [vmem:[#allocation12 + $0x4a8] sm:$0xff] }
 0x765   :  { %5589 = vmatpush1.bf16.msra.mxu0 %v5588_v34  ;;  %v5150_v52 = vpack.c.bf16 %v3228_v32, %v3224_v31  ;;  %v3223_v34 = vld [vmem:[#allocation12 + $0x480] sm:$0xff]  ;;  %v3284_v60 = vld [vmem:[#allocation12 + $0x668] sm:$0xff] }
 0x766   :  { %v3288_v20 = vld [vmem:[#allocation12 + $0x688] sm:$0xff] }
 0x767   :  { %5117 = vmatpush1.bf16.msra.mxu1 %v5116_v36  ;;  %v3236_v36 = vld [vmem:[#allocation12 + $0x4e8] sm:$0xff] }
 0x768   :  { %3897 = vmatmul.mubr.f32.vlgmr.msra.gmra.mrb[6].mxu0 %v6326_v24  ;;  %5119 = vmatprep.subr.bf16.mxu1 %v5118_v37  ;;  %v5152_v37 = vpack.c.bf16 %v3227_v55, %v3223_v34  ;;  %v5154_v38 = vpack.c.bf16 %v3236_v36, %v3232_v35  ;;  %v3292_v25 = vld [vmem:[#allocation12 + $0x6a8] sm:$0xff]  ;;  %v3299_v34 = vld [vmem:[#allocation12 + $0x6e0] sm:$0xff] }
 0x769   :  { %v3296_v29 = vld [vmem:[#allocation12 + $0x6c8] sm:$0xff] }
 0x76a   :  { %v3300_v31 = vld [vmem:[#allocation12 + $0x6e8] sm:$0xff] }
 0x76b   :  { %5121 = vmatpush1.bf16.msra.mxu1 %v5120_v42  ;;  %v3244_v42 = vld [vmem:[#allocation12 + $0x528] sm:$0xff] }
 0x76c   :  { %5123 = vmatprep.subr.bf16.mxu1 %v5122_v43  ;;  %v5158_v43 = vpack.c.bf16 %v3244_v42, %v3240_v41  ;;  %v3304_v55 = vld [vmem:[#allocation12 + $0x708] sm:$0xff] }
 0x76d   :  { %v3308_v35 = vld [vmem:[#allocation12 + $0x728] sm:$0xff] }
 0x76e   :  { %v3316_v41 = vld [vmem:[#allocation12 + $0x768] sm:$0xff] }
 0x76f   :  { %5125 = vmatpush1.bf16.msra.mxu1 %v5124_v51  ;;  %v5162_v51 = vpack.c.bf16 %v3252_v46, %v3248_v45  ;;  %v3324_v45 = vld [vmem:[#allocation12 + $0x7a8] sm:$0xff] }
 0x770   :  { %5127 = vmatprep.subr.bf16.mxu1 %v5126_v53  ;;  %v3247_v53 = vld [vmem:[#allocation12 + $0x540] sm:$0xff] }
 0x771   :  { %v5164_v62 = vpack.c.bf16 %v3251_v56, %v3247_v53  ;;  %v3323_v53 = vld [vmem:[#allocation12 + $0x7a0] sm:$0xff]  ;;  %v3328_v56 = vld [vmem:[#allocation12 + $0x7c8] sm:$0xff] }
 0x773   :  { %5129 = vmatpush1.bf16.msra.mxu1 %v5128_v0  ;;  %v5166_v0 = vpack.c.bf16 %v3260_v61, %v3256_v58  ;;  %v3332_v58 = vld [vmem:[#allocation12 + $0x7e8] sm:$0xff] }
 0x774   :  { %5131 = vmatprep.subr.bf16.mxu1 %v5130_v1  ;;  %v3255_v1 = vld [vmem:[#allocation12 + $0x580] sm:$0xff] }
 0x775   :  { %v5168_v50 = vpack.c.bf16 %v3259_v2, %v3255_v1  ;;  %v3331_v1 = vld [vmem:[#allocation12 + $0x7e0] sm:$0xff]  ;;  %v2824_v2 = vld [vmem:[#allocation10 + $0x8] sm:$0xff] }
 0x777   :  { %5133 = vmatpush1.bf16.msra.mxu1 %v5132_v5  ;;  %v5170_v5 = vpack.c.bf16 %v3268_v4, %v3264_v3  ;;  %v2828_v3 = vld [vmem:[#allocation10 + $0x28] sm:$0xff] }
 0x778   :  { %5135 = vmatprep.subr.bf16.mxu1 %v5134_v6  ;;  %v3263_v6 = vld [vmem:[#allocation12 + $0x5c0] sm:$0xff] }
 0x779   :  { %v5172_v12 = vpack.c.bf16 %v3267_v7, %v3263_v6  ;;  %v2827_v6 = vld [vmem:[#allocation10 + $0x20] sm:$0xff]  ;;  %v2832_v7 = vld [vmem:[#allocation10 + $0x48] sm:$0xff] }
 0x77b   :  { %5137 = vmatpush1.bf16.msra.mxu1 %v5136_v27  ;;  %v5174_v27 = vpack.c.bf16 %v3276_v9, %v3272_v8  ;;  %v2836_v8 = vld [vmem:[#allocation10 + $0x68] sm:$0xff] }
 0x77c   :  { %5139 = vmatprep.subr.bf16.mxu1 %v5138_v10  ;;  %v3271_v10 = vld [vmem:[#allocation12 + $0x600] sm:$0xff] }
 0x77d   :  { %v5176_v14 = vpack.c.bf16 %v3275_v11, %v3271_v10  ;;  %v2835_v10 = vld [vmem:[#allocation10 + $0x60] sm:$0xff]  ;;  %v2840_v11 = vld [vmem:[#allocation10 + $0x88] sm:$0xff] }
 0x77f   :  { %5141 = vmatpush1.bf16.msra.mxu1 %v5140_v15  ;;  %v5178_v15 = vpack.c.bf16 %v3284_v60, %v3280_v13  ;;  %v2844_v13 = vld [vmem:[#allocation10 + $0xa8] sm:$0xff] }
 0x780   :  { %5143 = vmatprep.subr.bf16.mxu1 %v5142_v16  ;;  %v3279_v16 = vld [vmem:[#allocation12 + $0x640] sm:$0xff] }
 0x781   :  { %v5180_v22 = vpack.c.bf16 %v3283_v19, %v3279_v16  ;;  %v2843_v16 = vld [vmem:[#allocation10 + $0xa0] sm:$0xff]  ;;  %v2848_v19 = vld [vmem:[#allocation10 + $0xc8] sm:$0xff] }
 0x782   :  { %3400 = vmatmul.mubr.f32.vlgmr.msra.gmra.mrb[18].mxu1 %v6337_v21  ;;  %v5156_v21 = vpack.c.bf16 %v3235_v40, %v3231_v39  ;;  %v3307_v39 = vld [vmem:[#allocation12 + $0x720] sm:$0xff]  ;;  %v3312_v40 = vld [vmem:[#allocation12 + $0x748] sm:$0xff] }
 0x783   :  { %5145 = vmatpush1.bf16.msra.mxu1 %v5144_v23  ;;  %3470 = vmatprep.mubr.f32.mxu1 %v6347_v63  ;;  %v3239_v63 = vld [vmem:[#allocation12 + $0x500] sm:$0xff]  ;;  %v5182_v23 = vpack.c.bf16 %v3292_v25, %v3288_v20  ;;  %v2852_v20 = vld [vmem:[#allocation10 + $0xe8] sm:$0xff] }
 0x784   :  { %5147 = vmatprep.subr.bf16.mxu1 %v5146_v26  ;;  %v5160_v48 = vpack.c.bf16 %v3243_v44, %v3239_v63  ;;  %v3287_v26 = vld [vmem:[#allocation12 + $0x680] sm:$0xff]  ;;  %v3320_v44 = vld [vmem:[#allocation12 + $0x788] sm:$0xff] }
 0x785   :  { %v5184_v32 = vpack.c.bf16 %v3291_v28, %v3287_v26  ;;  %v3315_v63 = vld [vmem:[#allocation12 + $0x760] sm:$0xff]  ;;  %v2856_v28 = vld [vmem:[#allocation10 + $0x108] sm:$0xff] }
 0x786   :  { %v2851_v26 = vld [vmem:[#allocation10 + $0xe0] sm:$0xff] }
 0x787   :  { %5149 = vmatpush1.bf16.msra.mxu1 %v5148_v33  ;;  %v5186_v33 = vpack.c.bf16 %v3300_v31, %v3296_v29  ;;  %v2860_v29 = vld [vmem:[#allocation10 + $0x128] sm:$0xff] }
 0x788   :  { %5151 = vmatprep.subr.bf16.mxu1 %v5150_v52  ;;  %v3295_v52 = vld [vmem:[#allocation12 + $0x6c0] sm:$0xff]  ;;  %v5350_v31 = vpack.c.bf16 %v2860_v29, %v2856_v28 }
 0x789   :  { %v5188_v36 = vpack.c.bf16 %v3299_v34, %v3295_v52  ;;  %v2868_v52 = vld [vmem:[#allocation10 + $0x168] sm:$0xff]  ;;  %v2927_v29 = vld [vmem:[#allocation10 + $0x340] sm:$0xff] }
 0x78b   :  { %5153 = vmatpush1.bf16.msra.mxu1 %v5152_v37  ;;  %v5190_v37 = vpack.c.bf16 %v3308_v35, %v3304_v55  ;;  %v2863_v35 = vld [vmem:[#allocation10 + $0x140] sm:$0xff] }
 0x78c   :  { %5155 = vmatprep.subr.bf16.mxu1 %v5154_v38  ;;  %v3303_v38 = vld [vmem:[#allocation12 + $0x700] sm:$0xff] }
 0x78d   :  { %v5192_v42 = vpack.c.bf16 %v3307_v39, %v3303_v38  ;;  %v2876_v38 = vld [vmem:[#allocation10 + $0x1a8] sm:$0xff] }
 0x78f   :  { %5157 = vmatpush1.bf16.msra.mxu1 %v5156_v21  ;;  %v5194_v21 = vpack.c.bf16 %v3316_v41, %v3312_v40  ;;  %v2871_v41 = vld [vmem:[#allocation10 + $0x180] sm:$0xff] }
 0x790   :  { %5159 = vmatprep.subr.bf16.mxu1 %v5158_v43  ;;  %v3311_v43 = vld [vmem:[#allocation12 + $0x740] sm:$0xff] }
 0x791   :  { %v5196_v46 = vpack.c.bf16 %v3315_v63, %v3311_v43  ;;  %v2884_v43 = vld [vmem:[#allocation10 + $0x1e8] sm:$0xff] }
 0x793   :  { %5161 = vmatpush1.bf16.msra.mxu1 %v5160_v48  ;;  %v5198_v48 = vpack.c.bf16 %v3324_v45, %v3320_v44  ;;  %v2879_v45 = vld [vmem:[#allocation10 + $0x1c0] sm:$0xff] }
 0x794   :  { %5163 = vmatprep.subr.bf16.mxu1 %v5162_v51  ;;  %v3319_v51 = vld [vmem:[#allocation12 + $0x780] sm:$0xff] }
 0x795   :  { %v5200_v61 = vpack.c.bf16 %v3323_v53, %v3319_v51  ;;  %v2892_v51 = vld [vmem:[#allocation10 + $0x228] sm:$0xff] }
 0x797   :  { %5165 = vmatpush1.bf16.msra.mxu1 %v5164_v62  ;;  %v5202_v62 = vpack.c.bf16 %v3332_v58, %v3328_v56  ;;  %v2887_v58 = vld [vmem:[#allocation10 + $0x200] sm:$0xff] }
 0x798   :  { %5167 = vmatprep.subr.bf16.mxu1 %v5166_v0  ;;  %v3327_v0 = vld [vmem:[#allocation12 + $0x7c0] sm:$0xff] }
 0x799   :  { %v5204_v4 = vpack.c.bf16 %v3331_v1, %v3327_v0  ;;  %v2900_v0 = vld [vmem:[#allocation10 + $0x268] sm:$0xff] }
 0x79b   :  { %5169 = vmatpush1.bf16.msra.mxu1 %v5168_v50  ;;  %v5334_v50 = vpack.c.bf16 %v2828_v3, %v2824_v2  ;;  %v2895_v3 = vld [vmem:[#allocation10 + $0x240] sm:$0xff] }
 0x79c   :  { %5171 = vmatprep.subr.bf16.mxu1 %v5170_v5  ;;  %v2823_v5 = vld [vmem:[#allocation10] sm:$0xff] }
 0x79d   :  { %v5336_v9 = vpack.c.bf16 %v2827_v6, %v2823_v5  ;;  %v2908_v5 = vld [vmem:[#allocation10 + $0x2a8] sm:$0xff] }
 0x79f   :  { %5173 = vmatpush1.bf16.msra.mxu1 %v5172_v12  ;;  %v5338_v12 = vpack.c.bf16 %v2836_v8, %v2832_v7  ;;  %v2903_v8 = vld [vmem:[#allocation10 + $0x280] sm:$0xff] }
 0x7a0   :  { %5175 = vmatprep.subr.bf16.mxu1 %v5174_v27  ;;  %v2831_v27 = vld [vmem:[#allocation10 + $0x40] sm:$0xff] }
 0x7a1   :  { %v5340_v60 = vpack.c.bf16 %v2835_v10, %v2831_v27  ;;  %v2916_v27 = vld [vmem:[#allocation10 + $0x2e8] sm:$0xff] }
 0x7a3   :  { %5177 = vmatpush1.bf16.msra.mxu1 %v5176_v14  ;;  %v5342_v14 = vpack.c.bf16 %v2844_v13, %v2840_v11  ;;  %v2911_v13 = vld [vmem:[#allocation10 + $0x2c0] sm:$0xff] }
 0x7a4   :  { %5179 = vmatprep.subr.bf16.mxu1 %v5178_v15  ;;  %v2839_v15 = vld [vmem:[#allocation10 + $0x80] sm:$0xff] }
 0x7a5   :  { %v5344_v25 = vpack.c.bf16 %v2843_v16, %v2839_v15  ;;  %v2924_v15 = vld [vmem:[#allocation10 + $0x328] sm:$0xff] }
 0x7a7   :  { %5181 = vmatpush1.bf16.msra.mxu1 %v5180_v22  ;;  %v5346_v22 = vpack.c.bf16 %v2852_v20, %v2848_v19  ;;  %v2919_v20 = vld [vmem:[#allocation10 + $0x300] sm:$0xff] }
 0x7a8   :  { %5183 = vmatprep.subr.bf16.mxu1 %v5182_v23  ;;  %v2847_v23 = vld [vmem:[#allocation10 + $0xc0] sm:$0xff] }
 0x7ab   :  { %5185 = vmatpush1.bf16.msra.mxu1 %v5184_v32  ;;  %v2859_v32 = vld [vmem:[#allocation10 + $0x120] sm:$0xff] }
 0x7ac   :  { %5187 = vmatprep.subr.bf16.mxu1 %v5186_v33  ;;  %v2864_v33 = vld [vmem:[#allocation10 + $0x148] sm:$0xff] }
 0x7ad   :  { %v5354_v55 = vpack.c.bf16 %v2868_v52, %v2864_v33  ;;  %v2935_v52 = vld [vmem:[#allocation10 + $0x380] sm:$0xff] }
 0x7af   :  { %5189 = vmatpush1.bf16.msra.mxu1 %v5188_v36  ;;  %v2867_v36 = vld [vmem:[#allocation10 + $0x160] sm:$0xff] }
 0x7b0   :  { %5191 = vmatprep.subr.bf16.mxu1 %v5190_v37  ;;  %v2872_v37 = vld [vmem:[#allocation10 + $0x188] sm:$0xff]  ;;  %v5356_v39 = vpack.c.bf16 %v2867_v36, %v2863_v35 }
 0x7b1   :  { %v5358_v40 = vpack.c.bf16 %v2876_v38, %v2872_v37  ;;  %v2948_v35 = vld [vmem:[#allocation10 + $0x3e8] sm:$0xff]  ;;  %v2943_v38 = vld [vmem:[#allocation10 + $0x3c0] sm:$0xff] }
 0x7b3   :  { %5193 = vmatpush1.bf16.msra.mxu1 %v5192_v42  ;;  %v2875_v42 = vld [vmem:[#allocation10 + $0x1a0] sm:$0xff] }
 0x7b4   :  { %5195 = vmatprep.subr.bf16.mxu1 %v5194_v21  ;;  %v2880_v21 = vld [vmem:[#allocation10 + $0x1c8] sm:$0xff]  ;;  %v5360_v63 = vpack.c.bf16 %v2875_v42, %v2871_v41 }
 0x7b5   :  { %v5362_v44 = vpack.c.bf16 %v2884_v43, %v2880_v21  ;;  %v2956_v41 = vld [vmem:[#allocation10 + $0x428] sm:$0xff]  ;;  %v2951_v43 = vld [vmem:[#allocation10 + $0x400] sm:$0xff] }
 0x7b7   :  { %5197 = vmatpush1.bf16.msra.mxu1 %v5196_v46  ;;  %v2883_v46 = vld [vmem:[#allocation10 + $0x1e0] sm:$0xff] }
 0x7b8   :  { %5199 = vmatprep.subr.bf16.mxu1 %v5198_v48  ;;  %v2888_v48 = vld [vmem:[#allocation10 + $0x208] sm:$0xff]  ;;  %v5364_v53 = vpack.c.bf16 %v2883_v46, %v2879_v45 }
 0x7b9   :  { %v5366_v56 = vpack.c.bf16 %v2892_v51, %v2888_v48  ;;  %v2964_v45 = vld [vmem:[#allocation10 + $0x468] sm:$0xff]  ;;  %v2959_v51 = vld [vmem:[#allocation10 + $0x440] sm:$0xff] }
 0x7bb   :  { %5201 = vmatpush1.bf16.msra.mxu1 %v5200_v61  ;;  %v2891_v61 = vld [vmem:[#allocation10 + $0x220] sm:$0xff] }
 0x7bc   :  { %5203 = vmatprep.subr.bf16.mxu1 %v5202_v62  ;;  %v2896_v62 = vld [vmem:[#allocation10 + $0x248] sm:$0xff]  ;;  %v5368_v1 = vpack.c.bf16 %v2891_v61, %v2887_v58 }
 0x7bd   :  { %v5370_v2 = vpack.c.bf16 %v2900_v0, %v2896_v62  ;;  %v2972_v58 = vld [vmem:[#allocation10 + $0x4a8] sm:$0xff]  ;;  %v2967_v0 = vld [vmem:[#allocation10 + $0x480] sm:$0xff] }
 0x7bf   :  { %5205 = vmatpush1.bf16.msra.mxu1 %v5204_v4  ;;  %v2899_v4 = vld [vmem:[#allocation10 + $0x260] sm:$0xff] }
 0x7c0   :  { %5335 = vmatprep.subr.bf16.mxu1 %v5334_v50  ;;  %v2904_v50 = vld [vmem:[#allocation10 + $0x288] sm:$0xff]  ;;  %v5372_v6 = vpack.c.bf16 %v2899_v4, %v2895_v3 }
 0x7c1   :  { %v5374_v7 = vpack.c.bf16 %v2908_v5, %v2904_v50  ;;  %v2980_v3 = vld [vmem:[#allocation10 + $0x4e8] sm:$0xff]  ;;  %v2975_v5 = vld [vmem:[#allocation10 + $0x4c0] sm:$0xff] }
 0x7c2   :  { %3471 = vmatmul.mubr.f32.vlgmr.msra.gmra.mrb[18].mxu1 %v6345_v54  ;;  %v5348_v54 = vpack.c.bf16 %v2851_v26, %v2847_v23  ;;  %v2932_v23 = vld [vmem:[#allocation10 + $0x368] sm:$0xff] }
 0x7c3   :  { %5337 = vmatpush1.bf16.msra.mxu1 %v5336_v9  ;;  %3683 = vmatprep.mubr.f32.mxu1 %v6314_v18  ;;  %v2855_v18 = vld [vmem:[#allocation10 + $0x100] sm:$0xff] }
 0x7c4   :  { %5339 = vmatprep.subr.bf16.mxu1 %v5338_v12  ;;  %v5352_v34 = vpack.c.bf16 %v2859_v32, %v2855_v18  ;;  %v2907_v9 = vld [vmem:[#allocation10 + $0x2a0] sm:$0xff]  ;;  %v2912_v12 = vld [vmem:[#allocation10 + $0x2c8] sm:$0xff] }
 0x7c5   :  { %v5376_v10 = vpack.c.bf16 %v2907_v9, %v2903_v8  ;;  %v5378_v11 = vpack.c.bf16 %v2916_v27, %v2912_v12  ;;  %v2940_v18 = vld [vmem:[#allocation10 + $0x3a8] sm:$0xff]  ;;  %v2987_v12 = vld [vmem:[#allocation10 + $0x520] sm:$0xff] }
 0x7c6   :  { %v2988_v8 = vld [vmem:[#allocation10 + $0x528] sm:$0xff] }
 0x7c7   :  { %5341 = vmatpush1.bf16.msra.mxu1 %v5340_v60  ;;  %v2915_v60 = vld [vmem:[#allocation10 + $0x2e0] sm:$0xff]  ;;  %v2992_v27 = vld [vmem:[#allocation10 + $0x548] sm:$0xff] }
 0x7c8   :  { %5343 = vmatprep.subr.bf16.mxu1 %v5342_v14  ;;  %v2920_v14 = vld [vmem:[#allocation10 + $0x308] sm:$0xff]  ;;  %v5380_v16 = vpack.c.bf16 %v2915_v60, %v2911_v13  ;;  %v2991_v60 = vld [vmem:[#allocation10 + $0x540] sm:$0xff] }
 0x7c9   :  { %v5382_v19 = vpack.c.bf16 %v2924_v15, %v2920_v14  ;;  %v2995_v14 = vld [vmem:[#allocation10 + $0x560] sm:$0xff]  ;;  %v3000_v15 = vld [vmem:[#allocation10 + $0x588] sm:$0xff] }
 0x7cb   :  { %5345 = vmatpush1.bf16.msra.mxu1 %v5344_v25  ;;  %v2923_v25 = vld [vmem:[#allocation10 + $0x320] sm:$0xff] }
 0x7cc   :  { %5347 = vmatprep.subr.bf16.mxu1 %v5346_v22  ;;  %v2928_v22 = vld [vmem:[#allocation10 + $0x348] sm:$0xff]  ;;  %v5384_v26 = vpack.c.bf16 %v2923_v25, %v2919_v20  ;;  %v2999_v25 = vld [vmem:[#allocation10 + $0x580] sm:$0xff] }
 0x7cd   :  { %v5386_v28 = vpack.c.bf16 %v2932_v23, %v2928_v22  ;;  %v3003_v22 = vld [vmem:[#allocation10 + $0x5a0] sm:$0xff] }
 0x7cf   :  { %5349 = vmatpush1.bf16.msra.mxu1 %v5348_v54  ;;  %v2931_v54 = vld [vmem:[#allocation10 + $0x360] sm:$0xff] }
 0x7d0   :  { %5351 = vmatprep.subr.bf16.mxu1 %v5350_v31  ;;  %v2936_v31 = vld [vmem:[#allocation10 + $0x388] sm:$0xff]  ;;  %v5388_v32 = vpack.c.bf16 %v2931_v54, %v2927_v29  ;;  %v3964_v29 = vld [vmem:[#allocation9] ss:$0 sm:$0xff] }
 0x7d1   :  { %v5390_v33 = vpack.c.bf16 %v2940_v18, %v2936_v31  ;;  %v5424_v18 = vpack.c.bf16 %v3003_v22, %v2999_v25 }
 0x7d3   :  { %5353 = vmatpush1.bf16.msra.mxu1 %v5352_v34  ;;  %v2939_v34 = vld [vmem:[#allocation10 + $0x3a0] sm:$0xff] }
 0x7d4   :  { %5355 = vmatprep.subr.bf16.mxu1 %v5354_v55  ;;  %v2944_v55 = vld [vmem:[#allocation10 + $0x3c8] sm:$0xff]  ;;  %v5392_v36 = vpack.c.bf16 %v2939_v34, %v2935_v52  ;;  %v3011_v52 = vld [vmem:[#allocation10 + $0x5e0] sm:$0xff] }
 0x7d5   :  { %v5394_v37 = vpack.c.bf16 %v2948_v35, %v2944_v55  ;;  %v3016_v55 = vld [vmem:[#allocation10 + $0x608] sm:$0xff] }
 0x7d6   :  { %v3020_v35 = vld [vmem:[#allocation10 + $0x628] sm:$0xff] }
 0x7d7   :  { %5357 = vmatpush1.bf16.msra.mxu1 %v5356_v39  ;;  %v2947_v39 = vld [vmem:[#allocation10 + $0x3e0] sm:$0xff] }
 0x7d8   :  { %5359 = vmatprep.subr.bf16.mxu1 %v5358_v40  ;;  %v2952_v40 = vld [vmem:[#allocation10 + $0x408] sm:$0xff]  ;;  %v5396_v42 = vpack.c.bf16 %v2947_v39, %v2943_v38  ;;  %v3015_v38 = vld [vmem:[#allocation10 + $0x600] sm:$0xff] }
 0x7d9   :  { %v5398_v21 = vpack.c.bf16 %v2956_v41, %v2952_v40  ;;  %v3019_v39 = vld [vmem:[#allocation10 + $0x620] sm:$0xff]  ;;  %v3024_v40 = vld [vmem:[#allocation10 + $0x648] sm:$0xff] }
 0x7da   :  { %v3028_v41 = vld [vmem:[#allocation10 + $0x668] sm:$0xff] }
 0x7db   :  { %5361 = vmatpush1.bf16.msra.mxu1 %v5360_v63  ;;  %v2955_v63 = vld [vmem:[#allocation10 + $0x420] sm:$0xff] }
 0x7dc   :  { %5363 = vmatprep.subr.bf16.mxu1 %v5362_v44  ;;  %v2960_v44 = vld [vmem:[#allocation10 + $0x448] sm:$0xff]  ;;  %v5400_v46 = vpack.c.bf16 %v2955_v63, %v2951_v43  ;;  %v3023_v43 = vld [vmem:[#allocation10 + $0x640] sm:$0xff] }
 0x7dd   :  { %v5402_v48 = vpack.c.bf16 %v2964_v45, %v2960_v44  ;;  %v3027_v63 = vld [vmem:[#allocation10 + $0x660] sm:$0xff]  ;;  %v3032_v44 = vld [vmem:[#allocation10 + $0x688] sm:$0xff] }
 0x7de   :  { %v3036_v45 = vld [vmem:[#allocation10 + $0x6a8] sm:$0xff] }
 0x7df   :  { %5365 = vmatpush1.bf16.msra.mxu1 %v5364_v53  ;;  %v2963_v53 = vld [vmem:[#allocation10 + $0x460] sm:$0xff] }
 0x7e0   :  { %5367 = vmatprep.subr.bf16.mxu1 %v5366_v56  ;;  %v2968_v56 = vld [vmem:[#allocation10 + $0x488] sm:$0xff]  ;;  %v5404_v61 = vpack.c.bf16 %v2963_v53, %v2959_v51  ;;  %v3031_v51 = vld [vmem:[#allocation10 + $0x680] sm:$0xff] }
 0x7e1   :  { %v5406_v62 = vpack.c.bf16 %v2972_v58, %v2968_v56  ;;  %v3035_v53 = vld [vmem:[#allocation10 + $0x6a0] sm:$0xff]  ;;  %v3040_v56 = vld [vmem:[#allocation10 + $0x6c8] sm:$0xff] }
 0x7e2   :  { %v3044_v58 = vld [vmem:[#allocation10 + $0x6e8] sm:$0xff] }
 0x7e3   :  { %5369 = vmatpush1.bf16.msra.mxu1 %v5368_v1  ;;  %v2971_v1 = vld [vmem:[#allocation10 + $0x4a0] sm:$0xff] }
 0x7e4   :  { %5371 = vmatprep.subr.bf16.mxu1 %v5370_v2  ;;  %v2976_v2 = vld [vmem:[#allocation10 + $0x4c8] sm:$0xff]  ;;  %v5408_v4 = vpack.c.bf16 %v2971_v1, %v2967_v0  ;;  %v3039_v0 = vld [vmem:[#allocation10 + $0x6c0] sm:$0xff] }
 0x7e5   :  { %v5410_v50 = vpack.c.bf16 %v2980_v3, %v2976_v2  ;;  %v3043_v1 = vld [vmem:[#allocation10 + $0x6e0] sm:$0xff]  ;;  %v3048_v2 = vld [vmem:[#allocation10 + $0x708] sm:$0xff] }
 0x7e6   :  { %v3052_v3 = vld [vmem:[#allocation10 + $0x728] sm:$0xff] }
 0x7e7   :  { %5373 = vmatpush1.bf16.msra.mxu1 %v5372_v6  ;;  %v2979_v6 = vld [vmem:[#allocation10 + $0x4e0] sm:$0xff] }
 0x7e8   :  { %5375 = vmatprep.subr.bf16.mxu1 %v5374_v7  ;;  %v2984_v7 = vld [vmem:[#allocation10 + $0x508] sm:$0xff] }
 0x7e9   :  { %v5414_v9 = vpack.c.bf16 %v2988_v8, %v2984_v7  ;;  %v3056_v7 = vld [vmem:[#allocation10 + $0x748] sm:$0xff] }
 0x7ea   :  { %v3060_v8 = vld [vmem:[#allocation10 + $0x768] sm:$0xff] }
 0x7eb   :  { %5377 = vmatpush1.bf16.msra.mxu1 %v5376_v10  ;;  %v2996_v10 = vld [vmem:[#allocation10 + $0x568] sm:$0xff] }
 0x7ec   :  { %5379 = vmatprep.subr.bf16.mxu1 %v5378_v11  ;;  %v5418_v13 = vpack.c.bf16 %v2996_v10, %v2992_v27  ;;  %v3064_v27 = vld [vmem:[#allocation10 + $0x788] sm:$0xff] }
 0x7ed   :  { %v3068_v10 = vld [vmem:[#allocation10 + $0x7a8] sm:$0xff] }
 0x7ef   :  { %5381 = vmatpush1.bf16.msra.mxu1 %v5380_v16  ;;  %v3004_v16 = vld [vmem:[#allocation10 + $0x5a8] sm:$0xff] }
 0x7f0   :  { %5383 = vmatprep.subr.bf16.mxu1 %v5382_v19  ;;  %v5420_v19 = vpack.c.bf16 %v2995_v14, %v2991_v60  ;;  %v5422_v20 = vpack.c.bf16 %v3004_v16, %v3000_v15  ;;  %v3063_v60 = vld [vmem:[#allocation10 + $0x780] sm:$0xff]  ;;  %v3903_v15 = vld [vmem:[%s6918_s17] sm:$0xf]  ;;  %v3072_v16 = vld [vmem:[#allocation10 + $0x7c8] sm:$0xff] }
 0x7f1   :  { %v3067_v14 = vld [vmem:[#allocation10 + $0x7a0] sm:$0xff]  ;;  %v3916_v25 = vrot.slane %v3903_v15, %v6303_v57  ;;  %v3908_v57 = vrot.slane %v3903_v15, %v6294_v47 }
 0x7f3   :  { %5385 = vmatpush1.bf16.msra.mxu1 %v5384_v26  ;;  %v3008_v26 = vld [vmem:[#allocation10 + $0x5c8] sm:$0xff] }
 0x7f4   :  { %5387 = vmatprep.subr.bf16.mxu1 %v5386_v28  ;;  %v3012_v28 = vld [vmem:[#allocation10 + $0x5e8] sm:$0xff] }
 0x7f7   :  { %5389 = vmatpush1.bf16.msra.mxu1 %v5388_v32  ;;  %v5426_v32 = vpack.c.bf16 %v3012_v28, %v3008_v26  ;;  %v3075_v26 = vld [vmem:[#allocation10 + $0x7e0] sm:$0xff]  ;;  %v3920_v28 = vrot.slane %v3903_v15, %v6305_v59 }
 0x7f8   :  { %5391 = vmatprep.subr.bf16.mxu1 %v5390_v33  ;;  %v3007_v33 = vld [vmem:[#allocation10 + $0x5c0] sm:$0xff] }
 0x7fb   :  { %5393 = vmatpush1.bf16.msra.mxu1 %v5392_v36  ;;  %v5428_v36 = vpack.c.bf16 %v3011_v52, %v3007_v33  ;;  %v3912_v52 = vrot.slane %v3903_v15, %v6299_v49 }
 0x7fc   :  { %5395 = vmatprep.subr.bf16.mxu1 %v5394_v37  ;;  %v5430_v37 = vpack.c.bf16 %v3020_v35, %v3016_v55 }
 0x7ff   :  { %5397 = vmatpush1.bf16.msra.mxu1 %v5396_v42  ;;  %v5432_v42 = vpack.c.bf16 %v3019_v39, %v3015_v38 }
 0x800   :  { %5399 = vmatprep.subr.bf16.mxu1 %v5398_v21  ;;  %v5434_v21 = vpack.c.bf16 %v3028_v41, %v3024_v40 }
 0x802   :  { %3684 = vmatmul.mubr.f32.vlgmr.msra.gmra.mrb[18].mxu1 %v6310_v17  ;;  %v5412_v17 = vpack.c.bf16 %v2979_v6, %v2975_v5  ;;  %v3047_v5 = vld [vmem:[#allocation10 + $0x700] sm:$0xff] }
 0x803   :  { %5401 = vmatpush1.bf16.msra.mxu1 %v5400_v46  ;;  %3754 = vmatprep.mubr.f32.mxu1 %v6330_v30  ;;  %v2983_v30 = vld [vmem:[#allocation10 + $0x500] sm:$0xff]  ;;  %v5436_v46 = vpack.c.bf16 %v3027_v63, %v3023_v43 }
 0x804   :  { %5403 = vmatprep.subr.bf16.mxu1 %v5402_v48  ;;  %v5416_v11 = vpack.c.bf16 %v2987_v12, %v2983_v30  ;;  %v5438_v48 = vpack.c.bf16 %v3036_v45, %v3032_v44  ;;  %v3051_v6 = vld [vmem:[#allocation10 + $0x720] sm:$0xff] }
 0x805   :  { %v3055_v30 = vld [vmem:[#allocation10 + $0x740] sm:$0xff] }
 0x806   :  { %v3059_v12 = vld [vmem:[#allocation10 + $0x760] sm:$0xff] }
 0x807   :  { %5405 = vmatpush1.bf16.msra.mxu1 %v5404_v61  ;;  %v5440_v61 = vpack.c.bf16 %v3035_v53, %v3031_v51 }
 0x808   :  { %5407 = vmatprep.subr.bf16.mxu1 %v5406_v62  ;;  %v5442_v62 = vpack.c.bf16 %v3044_v58, %v3040_v56 }
 0x80b   :  { %5409 = vmatpush1.bf16.msra.mxu1 %v5408_v4  ;;  %v5444_v4 = vpack.c.bf16 %v3043_v1, %v3039_v0 }
 0x80c   :  { %5411 = vmatprep.subr.bf16.mxu1 %v5410_v50  ;;  %v5446_v50 = vpack.c.bf16 %v3052_v3, %v3048_v2 }
 0x80f   :  { %5413 = vmatpush1.bf16.msra.mxu1 %v5412_v17  ;;  %v5448_v17 = vpack.c.bf16 %v3051_v6, %v3047_v5 }
 0x810   :  { %5415 = vmatprep.subr.bf16.mxu1 %v5414_v9  ;;  %v5450_v9 = vpack.c.bf16 %v3060_v8, %v3056_v7 }
 0x813   :  { %5417 = vmatpush1.bf16.msra.mxu1 %v5416_v11  ;;  %v5452_v11 = vpack.c.bf16 %v3059_v12, %v3055_v30 }
 0x814   :  { %5419 = vmatprep.subr.bf16.mxu1 %v5418_v13  ;;  %v5454_v13 = vpack.c.bf16 %v3068_v10, %v3064_v27 }
 0x815   :  { %v4067_v23 = vpop.f32.mrb[16].mxu1 }
 0x816   :  { %v4068_v54 = vpop.f32.mrb[17].mxu1 }
 0x817   :  { %v4069_v31 = vadd.f32 %v4068_v54, %v4067_v23  ;;  %5421 = vmatpush1.bf16.msra.mxu1 %v5420_v19  ;;  %v3076_v19 = vld [vmem:[#allocation10 + $0x7e8] sm:$0xff]  ;;  %v3071_v23 = vld [vmem:[#allocation10 + $0x7c0] sm:$0xff] }
 0x818   :  { %5423 = vmatprep.subr.bf16.mxu1 %v5422_v20  ;;  %v5456_v20 = vpack.c.bf16 %v3067_v14, %v3063_v60  ;;  %v5458_v22 = vpack.c.bf16 %v3076_v19, %v3072_v16  ;;  %v5460_v54 = vpack.c.bf16 %v3075_v26, %v3071_v23 }
 0x819   :  { %v2818_v34 = vadd.f32 %v4069_v31, %v3964_v29 }
 0x81b   :  { %2822 = vst.msk [vmem:[%s6919_s18] sm:$0xf] %vm2821_vm3, %v2818_v34  ;;  %5425 = vmatpush1.bf16.msra.mxu1 %v5424_v18 }
 0x81c   :  { %5427 = vmatprep.subr.bf16.mxu1 %v5426_v32 }
 0x81f   :  { %5429 = vmatpush1.bf16.msra.mxu1 %v5428_v36 }
 0x820   :  { %5431 = vmatprep.subr.bf16.mxu1 %v5430_v37 }
 0x823   :  { %5433 = vmatpush1.bf16.msra.mxu1 %v5432_v42 }
 0x824   :  { %5435 = vmatprep.subr.bf16.mxu1 %v5434_v21 }
 0x827   :  { %5437 = vmatpush1.bf16.msra.mxu1 %v5436_v46 }
 0x828   :  { %5439 = vmatprep.subr.bf16.mxu1 %v5438_v48 }
 0x82b   :  { %5441 = vmatpush1.bf16.msra.mxu1 %v5440_v61 }
 0x82c   :  { %5443 = vmatprep.subr.bf16.mxu1 %v5442_v62 }
 0x82f   :  { %5445 = vmatpush1.bf16.msra.mxu1 %v5444_v4 }
 0x830   :  { %5447 = vmatprep.subr.bf16.mxu1 %v5446_v50 }
 0x833   :  { %5449 = vmatpush1.bf16.msra.mxu1 %v5448_v17 }
 0x834   :  { %5451 = vmatprep.subr.bf16.mxu1 %v5450_v9 }
 0x837   :  { %5453 = vmatpush1.bf16.msra.mxu1 %v5452_v11 }
 0x838   :  { %5455 = vmatprep.subr.bf16.mxu1 %v5454_v13 }
 0x83b   :  { %5457 = vmatpush1.bf16.msra.mxu1 %v5456_v20  ;;  %v3898_v29 = vpop.f32.mrb[6].mxu0 }
 0x83c   :  { %v3927_v31 = vadd.f32 %v3916_v25, %v3898_v29  ;;  %v3900_v18 = vpop.f32.mrb[7].mxu0  ;;  %5459 = vmatprep.subr.bf16.mxu1 %v5458_v22 }
 0x83d   :  { %v3928_v32 = vadd.f32 %v3920_v28, %v3900_v18 }
 0x83f   :  { %v3934_v33 = vcombine.low %v3927_v31, %v3928_v32  ;;  %5461 = vmatpush1.bf16.msra.mxu1 %v5460_v54 }
 0x841   :  { %3938 = vst [vmem:[%s6920_s19 + $0x8] sm:$0xff] %v3934_v33 }
 0x842   :  { %3755 = vmatmul.mubr.f32.vlgmr.msra.gmra.mrb[18].mxu1 %v6326_v24 }
 0x915   :  { %v3756_v59 = vpop.f32.mrb[18].mxu1 }
 0x916   :  { %v3925_v34 = vadd.f32 %v3908_v57, %v3756_v59  ;;  %v3758_v55 = vpop.f32.mrb[19].mxu1 }
 0x917   :  { %v3926_v35 = vadd.f32 %v3912_v52, %v3758_v55 }
 0x919   :  { %v3933_v36 = vcombine.low %v3925_v34, %v3926_v35 }
 0x91b   :  { %3937 = vst [vmem:[%s6920_s19] sm:$0xff] %v3933_v36 }
 0x91c   :  { %3947 = vsyncpa [#allocation3], 1 }
 0x91d   :  { %3948 = vsyncpa [#allocation5], 1 }
 0x91e   :  { %3949 = vsyncpa [#allocation8], 1 }
 0x91f   :  { %3950 = vsyncpa [#allocation11], 1 }

</bundles_post_ra>
